<compile_context>
chip_gen: v7x
topology: tpu7x:2x2x1
jax: 0.10.0
libtpu: 0.0.40
codegen_flags: <defaults>
</compile_context>

<pallas_src>
import functools

import jax
import jax.numpy as jnp
from jax.experimental import pallas as pl
from jax.experimental.pallas import tpu as pltpu

K1, S1 = 10, 3
K2, S2 = 7, 2
K3, S3 = 5, 1


def _round_up(v, m):
    return ((v + m - 1) // m) * m


# ---------------------------------------------------------------------------
# Fused kernel: conv1 -> conv2 -> conv3 -> linear1 -> linear2 for TB samples.
# All activations keep batch in the sublane / MXU-M dimension.
# ---------------------------------------------------------------------------
def _fused_kernel(p1_ref, w1_ref, b1_ref, w2_ref, b2_ref, w3_ref, b3_ref,
                  wl1_ref, bl1_ref, wl2_ref, bl2_ref, o_ref, *,
                  act, l1, l2, l3):
    f32 = jnp.float32

    def activate(v):
        return jnp.tanh(v) if act == "tanh" else jnp.maximum(v, 0.0)

    w1 = w1_ref[...]
    w2 = w2_ref[...]
    w3 = w3_ref[...]
    wl1 = wl1_ref[...]
    wl2 = wl2_ref[...]
    cdt = w1.dtype                 # matmul operand dtype (bf16 default, or f32)

    # conv1 (k=10, s=3): wrapper-built im2col rows; one
    # (TB, K1*C_in) @ (K1*C_in, 64) matmul per output position.
    h1 = []
    for l in range(l1):
        y = jnp.dot(p1_ref[l].astype(cdt), w1, preferred_element_type=f32)
        h1.append(activate(y + b1_ref[...]).astype(cdt))

    # conv2 (k=7, s=2): fused-tap im2col via lane concat of the 7 window rows,
    # then one (TB, 448) @ (448, 128) matmul per output position.
    h2 = []
    for l in range(l2):
        row = jnp.concatenate([h1[S2 * l + k] for k in range(K2)], axis=-1)
        y = jnp.dot(row, w2, preferred_element_type=f32)
        h2.append(activate(y + b2_ref[...]).astype(cdt))

    # conv3 (k=5, s=1): pieces are 128-lane aligned so the concat is cheap;
    # one (TB, 640) @ (640, 256) matmul per output position.
    h3 = []
    for l in range(l3):
        row = jnp.concatenate([h2[S3 * l + k] for k in range(K3)], axis=-1)
        y = jnp.dot(row, w3, preferred_element_type=f32)
        h3.append(activate(y + b3_ref[...]).astype(cdt))

    # linear1: PyTorch's channel-major flatten is folded into wl1's layout, so
    # this is a single (TB, 2304) @ (2304, 128) matmul.
    flat = jnp.concatenate(h3, axis=-1)
    h4 = activate(jnp.dot(flat, wl1, preferred_element_type=f32) + bl1_ref[...])

    # linear2 (no activation); columns padded to 128 -> dense unmasked store.
    out = jnp.dot(h4.astype(cdt), wl2, preferred_element_type=f32) + bl2_ref[...]
    o_ref[...] = out.astype(o_ref.dtype)


# ---------------------------------------------------------------------------
# Wrapper
# ---------------------------------------------------------------------------
def _full_spec(shape):
    nd = len(shape)
    return pl.BlockSpec(tuple(shape), lambda i, _nd=nd: (0,) * _nd)


def shallow_cnn_forward(kparams, x, output_dim, act="relu", batch_tile=128):
    """x: (N, input_dim, 100) float32, NCL layout like the PyTorch module."""
    if act not in ("relu", "tanh"):
        raise ValueError(f"unsupported activation: {act!r}")
    n, c_in, length = x.shape
    l1 = (length - K1) // S1 + 1
    l2 = (l1 - K2) // S2 + 1
    l3 = (l2 - K3) // S3 + 1
    if l3 != 9:
        raise ValueError("input length must be 100 so the conv stack ends at "
                         "length 9 (required by the 256*9 flatten)")
    out_pad = kparams["wl2"].shape[-1]
    if not (0 < output_dim <= out_pad):
        raise ValueError("output_dim inconsistent with prepared params")

    # conv1 im2col (one cheap XLA gather on the tiny raw input), laid out as
    # (position, batch, tap-major*channel) so batch is the sublane / M dim.
    pos = S1 * jnp.arange(l1)[:, None] + jnp.arange(K1)[None, :]     # (l1, K1)
    xw = x[:, :, pos]                                                # (N, C_in, l1, K1)
    p1 = jnp.transpose(xw, (2, 0, 3, 1)).reshape(l1, n, K1 * c_in)   # (l1, N, 40)
    p1 = p1.astype(kparams["w1"].dtype)        # bf16 (default) or f32 operands

    # Batch tile: multiple of 32 (covers f32/bf16 sublane tiling). On v7x keep
    # n_pad // tb >= 2 so "parallel" actually splits across the two TCs.
    tb = max(32, _round_up(min(batch_tile, n), 32))
    n_pad = _round_up(n, tb)
    if n_pad != n:
        p1 = jnp.pad(p1, ((0, 0), (0, n_pad - n), (0, 0)))

    kernel = functools.partial(_fused_kernel, act=act, l1=l1, l2=l2, l3=l3)
    out = pl.pallas_call(
        kernel,
        out_shape=jax.ShapeDtypeStruct((n_pad, out_pad), jnp.float32),
        grid_spec=pltpu.PrefetchScalarGridSpec(
            num_scalar_prefetch=0,
            grid=(n_pad // tb,),
            in_specs=[
                # per-step batch tile of conv1 im2col rows
                pl.BlockSpec((l1, tb, K1 * c_in), lambda i: (0, i, 0)),
                # weights / biases: full blocks, constant index maps -> DMA'd to
                # VMEM once and kept resident across the whole batch grid.
                _full_spec(kparams["w1"].shape), _full_spec(kparams["b1"].shape),
                _full_spec(kparams["w2"].shape), _full_spec(kparams["b2"].shape),
                _full_spec(kparams["w3"].shape), _full_spec(kparams["b3"].shape),
                _full_spec(kparams["wl1"].shape), _full_spec(kparams["bl1"].shape),
                _full_spec(kparams["wl2"].shape), _full_spec(kparams["bl2"].shape),
            ],
            out_specs=pl.BlockSpec((tb, out_pad), lambda i: (i, 0)),
        ),
        compiler_params=pltpu.CompilerParams(
            dimension_semantics=("parallel",)),
    )(p1,
      kparams["w1"], kparams["b1"], kparams["w2"], kparams["b2"],
      kparams["w3"], kparams["b3"], kparams["wl1"], kparams["bl1"],
      kparams["wl2"], kparams["bl2"])

    return out[:n, :output_dim]


# ---------------------------------------------------------------------------
# Parameters: PyTorch-layout init + one-time re-layout for the kernel
# ---------------------------------------------------------------------------
def init_params(key, input_dim, output_dim):
    """PyTorch-layout parameters (same shapes the nn.Module would hold)."""
    def uniform(k, shape, fan_in):
        bound = 1.0 / jnp.sqrt(jnp.float32(fan_in))
        return jax.random.uniform(k, shape, jnp.float32, -bound, bound)

    ks = jax.random.split(key, 10)
    return {
        "cnn1_w": uniform(ks[0], (64, input_dim, K1), input_dim * K1),
        "cnn1_b": uniform(ks[1], (64,), input_dim * K1),
        "cnn2_w": uniform(ks[2], (128, 64, K2), 64 * K2),
        "cnn2_b": uniform(ks[3], (128,), 64 * K2),
        "cnn3_w": uniform(ks[4], (256, 128, K3), 128 * K3),
        "cnn3_b": uniform(ks[5], (256,), 128 * K3),
        "lin1_w": uniform(ks[6], (128, 256 * 9), 256 * 9),
        "lin1_b": uniform(ks[7], (128,), 256 * 9),
        "lin2_w": uniform(ks[8], (output_dim, 128), 128),
        "lin2_b": uniform(ks[9], (output_dim,), 128),
    }


def prepare_params(params, use_bf16=True):
    """One-time re-layout of PyTorch params into the kernel's fused layouts.

    * conv weights (C_out, C_in, K) -> (K*C_in, C_out)   [tap-major rows]
    * linear1 (128, 256*9) -> (9*256, 128): the channel-major view(-1, 256*9)
      is folded into the weight so the kernel never reorders activations.
    * linear2 (out, 128) -> (128, out_pad) zero-padded to a lane-dense 128
      multiple (padded columns sliced off in the wrapper).
    * With use_bf16=True (default) matmul weights are stored bf16 (f32 MXU
      accumulation in-kernel); biases stay f32. use_bf16=False = f32 parity.
    """
    wdt = jnp.bfloat16 if use_bf16 else jnp.float32
    f32 = jnp.float32
    c_in = params["cnn1_w"].shape[1]
    out_dim = params["lin2_w"].shape[0]
    out_pad = _round_up(out_dim, 128)

    w1 = jnp.transpose(params["cnn1_w"], (2, 1, 0)).reshape(K1 * c_in, 64)
    w2 = jnp.transpose(params["cnn2_w"], (2, 1, 0)).reshape(K2 * 64, 128)
    w3 = jnp.transpose(params["cnn3_w"], (2, 1, 0)).reshape(K3 * 128, 256)
    wl1 = jnp.transpose(params["lin1_w"].reshape(128, 256, 9),
                        (2, 1, 0)).reshape(9 * 256, 128)
    wl2 = jnp.zeros((128, out_pad), f32).at[:, :out_dim].set(
        jnp.transpose(params["lin2_w"], (1, 0)))
    bl2 = jnp.zeros((1, out_pad), f32).at[:, :out_dim].set(
        params["lin2_b"][None, :])
    return {
        "w1": w1.astype(wdt), "b1": params["cnn1_b"].reshape(1, -1).astype(f32),
        "w2": w2.astype(wdt), "b2": params["cnn2_b"].reshape(1, -1).astype(f32),
        "w3": w3.astype(wdt), "b3": params["cnn3_b"].reshape(1, -1).astype(f32),
        "wl1": wl1.astype(wdt), "bl1": params["lin1_b"].reshape(1, -1).astype(f32),
        "wl2": wl2.astype(wdt), "bl2": bl2,
    }


# ---------------------------------------------------------------------------
# Pure-JAX reference (same math as the PyTorch module) for a sanity check
# ---------------------------------------------------------------------------
def _reference_forward(params, x, act="relu"):
    def act_fn(v):
        return jnp.tanh(v) if act == "tanh" else jax.nn.relu(v)

    def conv1d(h, w, b, stride):
        n, c_in, l = h.shape
        c_out, _, k = w.shape
        l_out = (l - k) // stride + 1
        idx = (jnp.arange(l_out) * stride)[:, None] + jnp.arange(k)[None, :]
        patches = h[:, :, idx]                               # (n, c_in, l_out, k)
        patches = jnp.transpose(patches, (0, 2, 1, 3)).reshape(n * l_out, c_in * k)
        y = patches @ w.reshape(c_out, c_in * k).T + b
        return y.reshape(n, l_out, c_out).transpose(0, 2, 1)

    h = act_fn(conv1d(x, params["cnn1_w"], params["cnn1_b"], S1))
    h = act_fn(conv1d(h, params["cnn2_w"], params["cnn2_b"], S2))
    h = act_fn(conv1d(h, params["cnn3_w"], params["cnn3_b"], S3))
    h = h.reshape(h.shape[0], -1)            # channel-major flatten (NCL view)
    h = act_fn(h @ params["lin1_w"].T + params["lin1_b"])
    return h @ params["lin2_w"].T + params["lin2_b"]


if __name__ == "__main__":
    INPUT_DIM = 4     # channels
    OUTPUT_DIM = 8
    BATCH = 2
    LENGTH = 100      # 100 -(k10,s3)-> 31 -(k7,s2)-> 13 -(k5,s1)-> 9

    key = jax.random.PRNGKey(0)
    k_x, k_p = jax.random.split(key)
    x = jax.random.normal(k_x, (BATCH, INPUT_DIM, LENGTH), jnp.float32)

    params = init_params(k_p, INPUT_DIM, OUTPUT_DIM)
    ref = _reference_forward(params, x, act="relu")

    fwd = jax.jit(shallow_cnn_forward,
                  static_argnames=("output_dim", "act", "batch_tile"))

    # Default bf16-matmul path (f32 accumulation / biases / output).
    kparams = prepare_params(params, use_bf16=True)
    out = jax.block_until_ready(
        fwd(kparams, x, output_dim=OUTPUT_DIM, act="relu", batch_tile=128))
    assert out.shape == (BATCH, OUTPUT_DIM), out.shape
    err = float(jnp.max(jnp.abs(out - ref)))
    assert jnp.allclose(out, ref, rtol=2e-2, atol=2e-2), f"bf16 max abs err {err}"

    # Strict f32-parity path.
    kparams32 = prepare_params(params, use_bf16=False)
    out32 = jax.block_until_ready(
        fwd(kparams32, x, output_dim=OUTPUT_DIM, act="relu", batch_tile=128))
    err32 = float(jnp.max(jnp.abs(out32 - ref)))
    assert jnp.allclose(out32, ref, rtol=2e-3, atol=2e-3), f"f32 max abs err {err32}"

    print("KERNEL_OK")
</pallas_src>

<mosaic_0001>
module attributes {stable_mosaic.version = 11 : i64} {
  func.func @_fused_kernel(%arg0: i32, %arg1: memref<31x32x40xbf16, #tpu.memory_space<vmem>>, %arg2: memref<40x64xbf16, #tpu.memory_space<vmem>>, %arg3: memref<1x64xf32, #tpu.memory_space<vmem>>, %arg4: memref<448x128xbf16, #tpu.memory_space<vmem>>, %arg5: memref<1x128xf32, #tpu.memory_space<vmem>>, %arg6: memref<640x256xbf16, #tpu.memory_space<vmem>>, %arg7: memref<1x256xf32, #tpu.memory_space<vmem>>, %arg8: memref<2304x128xbf16, #tpu.memory_space<vmem>>, %arg9: memref<1x128xf32, #tpu.memory_space<vmem>>, %arg10: memref<128x128xbf16, #tpu.memory_space<vmem>>, %arg11: memref<1x128xf32, #tpu.memory_space<vmem>>, %arg12: memref<32x128xf32, #tpu.memory_space<vmem>>) attributes {dimension_semantics = [#tpu.dimension_semantics<parallel>], iteration_bounds = array<i64: 1>, scalar_prefetch = 0 : i64, scratch_operands = 0 : i64, tpu.core_type = #tpu.core_type<tc>, window_params = [{transform_indices = @transform_0, window_bounds = array<i64: 31, 32, 40>}, {pipeline_mode = #tpu.pipeline_mode<synchronous>, transform_indices = @transform_1, window_bounds = array<i64: 40, 64>}, {pipeline_mode = #tpu.pipeline_mode<synchronous>, transform_indices = @transform_2, window_bounds = array<i64: 1, 64>}, {pipeline_mode = #tpu.pipeline_mode<synchronous>, transform_indices = @transform_3, window_bounds = array<i64: 448, 128>}, {pipeline_mode = #tpu.pipeline_mode<synchronous>, transform_indices = @transform_4, window_bounds = array<i64: 1, 128>}, {pipeline_mode = #tpu.pipeline_mode<synchronous>, transform_indices = @transform_5, window_bounds = array<i64: 640, 256>}, {pipeline_mode = #tpu.pipeline_mode<synchronous>, transform_indices = @transform_6, window_bounds = array<i64: 1, 256>}, {pipeline_mode = #tpu.pipeline_mode<synchronous>, transform_indices = @transform_7, window_bounds = array<i64: 2304, 128>}, {pipeline_mode = #tpu.pipeline_mode<synchronous>, transform_indices = @transform_8, window_bounds = array<i64: 1, 128>}, {pipeline_mode = #tpu.pipeline_mode<synchronous>, transform_indices = @transform_9, window_bounds = array<i64: 128, 128>}, {pipeline_mode = #tpu.pipeline_mode<synchronous>, transform_indices = @transform_10, window_bounds = array<i64: 1, 128>}, {transform_indices = @transform_11, window_bounds = array<i64: 32, 128>}]} {
    %c0 = arith.constant 0 : index
    %c0_0 = arith.constant 0 : index
    %0 = vector.load %arg2[%c0, %c0_0] : memref<40x64xbf16, #tpu.memory_space<vmem>>, vector<40x64xbf16>
    %c0_1 = arith.constant 0 : index
    %c0_2 = arith.constant 0 : index
    %1 = vector.load %arg4[%c0_1, %c0_2] : memref<448x128xbf16, #tpu.memory_space<vmem>>, vector<448x128xbf16>
    %c0_3 = arith.constant 0 : index
    %c0_4 = arith.constant 0 : index
    %2 = vector.load %arg6[%c0_3, %c0_4] : memref<640x256xbf16, #tpu.memory_space<vmem>>, vector<640x256xbf16>
    %c0_5 = arith.constant 0 : index
    %c0_6 = arith.constant 0 : index
    %3 = vector.load %arg8[%c0_5, %c0_6] : memref<2304x128xbf16, #tpu.memory_space<vmem>>, vector<2304x128xbf16>
    %c0_7 = arith.constant 0 : index
    %c0_8 = arith.constant 0 : index
    %4 = vector.load %arg10[%c0_7, %c0_8] : memref<128x128xbf16, #tpu.memory_space<vmem>>, vector<128x128xbf16>
    %c0_9 = arith.constant 0 : index
    %c0_10 = arith.constant 0 : index
    %c0_11 = arith.constant 0 : index
    %5 = vector.load %arg1[%c0_9, %c0_10, %c0_11] : memref<31x32x40xbf16, #tpu.memory_space<vmem>>, vector<1x32x40xbf16>
    %6 = vector.shape_cast %5 : vector<1x32x40xbf16> to vector<32x40xbf16>
    %cst = arith.constant dense<0.000000e+00> : vector<32x64xf32>
    %7 = tpu.matmul %6, %0, %cst {dimension_numbers = #tpu.dot_dimension_numbers<[1], [0], [0], [1], [0, 0, 1, 1], [], []>} : vector<32x40xbf16>, vector<40x64xbf16>, vector<32x64xf32> -> vector<32x64xf32>
    %c0_12 = arith.constant 0 : index
    %c0_13 = arith.constant 0 : index
    %8 = vector.load %arg3[%c0_12, %c0_13] : memref<1x64xf32, #tpu.memory_space<vmem>>, vector<1x64xf32>
    %9 = vector.broadcast %8 : vector<1x64xf32> to vector<32x64xf32>
    %10 = arith.addf %7, %9 : vector<32x64xf32>
    %cst_14 = arith.constant 0.000000e+00 : f32
    %11 = vector.broadcast %cst_14 : f32 to vector<32x64xf32>
    %12 = arith.maximumf %10, %11 : vector<32x64xf32>
    %13 = arith.truncf %12 : vector<32x64xf32> to vector<32x64xbf16>
    %c1 = arith.constant 1 : index
    %c0_15 = arith.constant 0 : index
    %c0_16 = arith.constant 0 : index
    %14 = vector.load %arg1[%c1, %c0_15, %c0_16] : memref<31x32x40xbf16, #tpu.memory_space<vmem>>, vector<1x32x40xbf16>
    %15 = vector.shape_cast %14 : vector<1x32x40xbf16> to vector<32x40xbf16>
    %cst_17 = arith.constant dense<0.000000e+00> : vector<32x64xf32>
    %16 = tpu.matmul %15, %0, %cst_17 {dimension_numbers = #tpu.dot_dimension_numbers<[1], [0], [0], [1], [0, 0, 1, 1], [], []>} : vector<32x40xbf16>, vector<40x64xbf16>, vector<32x64xf32> -> vector<32x64xf32>
    %c0_18 = arith.constant 0 : index
    %c0_19 = arith.constant 0 : index
    %17 = vector.load %arg3[%c0_18, %c0_19] : memref<1x64xf32, #tpu.memory_space<vmem>>, vector<1x64xf32>
    %18 = vector.broadcast %17 : vector<1x64xf32> to vector<32x64xf32>
    %19 = arith.addf %16, %18 : vector<32x64xf32>
    %cst_20 = arith.constant 0.000000e+00 : f32
    %20 = vector.broadcast %cst_20 : f32 to vector<32x64xf32>
    %21 = arith.maximumf %19, %20 : vector<32x64xf32>
    %22 = arith.truncf %21 : vector<32x64xf32> to vector<32x64xbf16>
    %c2 = arith.constant 2 : index
    %c0_21 = arith.constant 0 : index
    %c0_22 = arith.constant 0 : index
    %23 = vector.load %arg1[%c2, %c0_21, %c0_22] : memref<31x32x40xbf16, #tpu.memory_space<vmem>>, vector<1x32x40xbf16>
    %24 = vector.shape_cast %23 : vector<1x32x40xbf16> to vector<32x40xbf16>
    %cst_23 = arith.constant dense<0.000000e+00> : vector<32x64xf32>
    %25 = tpu.matmul %24, %0, %cst_23 {dimension_numbers = #tpu.dot_dimension_numbers<[1], [0], [0], [1], [0, 0, 1, 1], [], []>} : vector<32x40xbf16>, vector<40x64xbf16>, vector<32x64xf32> -> vector<32x64xf32>
    %c0_24 = arith.constant 0 : index
    %c0_25 = arith.constant 0 : index
    %26 = vector.load %arg3[%c0_24, %c0_25] : memref<1x64xf32, #tpu.memory_space<vmem>>, vector<1x64xf32>
    %27 = vector.broadcast %26 : vector<1x64xf32> to vector<32x64xf32>
    %28 = arith.addf %25, %27 : vector<32x64xf32>
    %cst_26 = arith.constant 0.000000e+00 : f32
    %29 = vector.broadcast %cst_26 : f32 to vector<32x64xf32>
    %30 = arith.maximumf %28, %29 : vector<32x64xf32>
    %31 = arith.truncf %30 : vector<32x64xf32> to vector<32x64xbf16>
    %c3 = arith.constant 3 : index
    %c0_27 = arith.constant 0 : index
    %c0_28 = arith.constant 0 : index
    %32 = vector.load %arg1[%c3, %c0_27, %c0_28] : memref<31x32x40xbf16, #tpu.memory_space<vmem>>, vector<1x32x40xbf16>
    %33 = vector.shape_cast %32 : vector<1x32x40xbf16> to vector<32x40xbf16>
    %cst_29 = arith.constant dense<0.000000e+00> : vector<32x64xf32>
    %34 = tpu.matmul %33, %0, %cst_29 {dimension_numbers = #tpu.dot_dimension_numbers<[1], [0], [0], [1], [0, 0, 1, 1], [], []>} : vector<32x40xbf16>, vector<40x64xbf16>, vector<32x64xf32> -> vector<32x64xf32>
    %c0_30 = arith.constant 0 : index
    %c0_31 = arith.constant 0 : index
    %35 = vector.load %arg3[%c0_30, %c0_31] : memref<1x64xf32, #tpu.memory_space<vmem>>, vector<1x64xf32>
    %36 = vector.broadcast %35 : vector<1x64xf32> to vector<32x64xf32>
    %37 = arith.addf %34, %36 : vector<32x64xf32>
    %cst_32 = arith.constant 0.000000e+00 : f32
    %38 = vector.broadcast %cst_32 : f32 to vector<32x64xf32>
    %39 = arith.maximumf %37, %38 : vector<32x64xf32>
    %40 = arith.truncf %39 : vector<32x64xf32> to vector<32x64xbf16>
    %c4 = arith.constant 4 : index
    %c0_33 = arith.constant 0 : index
    %c0_34 = arith.constant 0 : index
    %41 = vector.load %arg1[%c4, %c0_33, %c0_34] : memref<31x32x40xbf16, #tpu.memory_space<vmem>>, vector<1x32x40xbf16>
    %42 = vector.shape_cast %41 : vector<1x32x40xbf16> to vector<32x40xbf16>
    %cst_35 = arith.constant dense<0.000000e+00> : vector<32x64xf32>
    %43 = tpu.matmul %42, %0, %cst_35 {dimension_numbers = #tpu.dot_dimension_numbers<[1], [0], [0], [1], [0, 0, 1, 1], [], []>} : vector<32x40xbf16>, vector<40x64xbf16>, vector<32x64xf32> -> vector<32x64xf32>
    %c0_36 = arith.constant 0 : index
    %c0_37 = arith.constant 0 : index
    %44 = vector.load %arg3[%c0_36, %c0_37] : memref<1x64xf32, #tpu.memory_space<vmem>>, vector<1x64xf32>
    %45 = vector.broadcast %44 : vector<1x64xf32> to vector<32x64xf32>
    %46 = arith.addf %43, %45 : vector<32x64xf32>
    %cst_38 = arith.constant 0.000000e+00 : f32
    %47 = vector.broadcast %cst_38 : f32 to vector<32x64xf32>
    %48 = arith.maximumf %46, %47 : vector<32x64xf32>
    %49 = arith.truncf %48 : vector<32x64xf32> to vector<32x64xbf16>
    %c5 = arith.constant 5 : index
    %c0_39 = arith.constant 0 : index
    %c0_40 = arith.constant 0 : index
    %50 = vector.load %arg1[%c5, %c0_39, %c0_40] : memref<31x32x40xbf16, #tpu.memory_space<vmem>>, vector<1x32x40xbf16>
    %51 = vector.shape_cast %50 : vector<1x32x40xbf16> to vector<32x40xbf16>
    %cst_41 = arith.constant dense<0.000000e+00> : vector<32x64xf32>
    %52 = tpu.matmul %51, %0, %cst_41 {dimension_numbers = #tpu.dot_dimension_numbers<[1], [0], [0], [1], [0, 0, 1, 1], [], []>} : vector<32x40xbf16>, vector<40x64xbf16>, vector<32x64xf32> -> vector<32x64xf32>
    %c0_42 = arith.constant 0 : index
    %c0_43 = arith.constant 0 : index
    %53 = vector.load %arg3[%c0_42, %c0_43] : memref<1x64xf32, #tpu.memory_space<vmem>>, vector<1x64xf32>
    %54 = vector.broadcast %53 : vector<1x64xf32> to vector<32x64xf32>
    %55 = arith.addf %52, %54 : vector<32x64xf32>
    %cst_44 = arith.constant 0.000000e+00 : f32
    %56 = vector.broadcast %cst_44 : f32 to vector<32x64xf32>
    %57 = arith.maximumf %55, %56 : vector<32x64xf32>
    %58 = arith.truncf %57 : vector<32x64xf32> to vector<32x64xbf16>
    %c6 = arith.constant 6 : index
    %c0_45 = arith.constant 0 : index
    %c0_46 = arith.constant 0 : index
    %59 = vector.load %arg1[%c6, %c0_45, %c0_46] : memref<31x32x40xbf16, #tpu.memory_space<vmem>>, vector<1x32x40xbf16>
    %60 = vector.shape_cast %59 : vector<1x32x40xbf16> to vector<32x40xbf16>
    %cst_47 = arith.constant dense<0.000000e+00> : vector<32x64xf32>
    %61 = tpu.matmul %60, %0, %cst_47 {dimension_numbers = #tpu.dot_dimension_numbers<[1], [0], [0], [1], [0, 0, 1, 1], [], []>} : vector<32x40xbf16>, vector<40x64xbf16>, vector<32x64xf32> -> vector<32x64xf32>
    %c0_48 = arith.constant 0 : index
    %c0_49 = arith.constant 0 : index
    %62 = vector.load %arg3[%c0_48, %c0_49] : memref<1x64xf32, #tpu.memory_space<vmem>>, vector<1x64xf32>
    %63 = vector.broadcast %62 : vector<1x64xf32> to vector<32x64xf32>
    %64 = arith.addf %61, %63 : vector<32x64xf32>
    %cst_50 = arith.constant 0.000000e+00 : f32
    %65 = vector.broadcast %cst_50 : f32 to vector<32x64xf32>
    %66 = arith.maximumf %64, %65 : vector<32x64xf32>
    %67 = arith.truncf %66 : vector<32x64xf32> to vector<32x64xbf16>
    %c7 = arith.constant 7 : index
    %c0_51 = arith.constant 0 : index
    %c0_52 = arith.constant 0 : index
    %68 = vector.load %arg1[%c7, %c0_51, %c0_52] : memref<31x32x40xbf16, #tpu.memory_space<vmem>>, vector<1x32x40xbf16>
    %69 = vector.shape_cast %68 : vector<1x32x40xbf16> to vector<32x40xbf16>
    %cst_53 = arith.constant dense<0.000000e+00> : vector<32x64xf32>
    %70 = tpu.matmul %69, %0, %cst_53 {dimension_numbers = #tpu.dot_dimension_numbers<[1], [0], [0], [1], [0, 0, 1, 1], [], []>} : vector<32x40xbf16>, vector<40x64xbf16>, vector<32x64xf32> -> vector<32x64xf32>
    %c0_54 = arith.constant 0 : index
    %c0_55 = arith.constant 0 : index
    %71 = vector.load %arg3[%c0_54, %c0_55] : memref<1x64xf32, #tpu.memory_space<vmem>>, vector<1x64xf32>
    %72 = vector.broadcast %71 : vector<1x64xf32> to vector<32x64xf32>
    %73 = arith.addf %70, %72 : vector<32x64xf32>
    %cst_56 = arith.constant 0.000000e+00 : f32
    %74 = vector.broadcast %cst_56 : f32 to vector<32x64xf32>
    %75 = arith.maximumf %73, %74 : vector<32x64xf32>
    %76 = arith.truncf %75 : vector<32x64xf32> to vector<32x64xbf16>
    %c8 = arith.constant 8 : index
    %c0_57 = arith.constant 0 : index
    %c0_58 = arith.constant 0 : index
    %77 = vector.load %arg1[%c8, %c0_57, %c0_58] : memref<31x32x40xbf16, #tpu.memory_space<vmem>>, vector<1x32x40xbf16>
    %78 = vector.shape_cast %77 : vector<1x32x40xbf16> to vector<32x40xbf16>
    %cst_59 = arith.constant dense<0.000000e+00> : vector<32x64xf32>
    %79 = tpu.matmul %78, %0, %cst_59 {dimension_numbers = #tpu.dot_dimension_numbers<[1], [0], [0], [1], [0, 0, 1, 1], [], []>} : vector<32x40xbf16>, vector<40x64xbf16>, vector<32x64xf32> -> vector<32x64xf32>
    %c0_60 = arith.constant 0 : index
    %c0_61 = arith.constant 0 : index
    %80 = vector.load %arg3[%c0_60, %c0_61] : memref<1x64xf32, #tpu.memory_space<vmem>>, vector<1x64xf32>
    %81 = vector.broadcast %80 : vector<1x64xf32> to vector<32x64xf32>
    %82 = arith.addf %79, %81 : vector<32x64xf32>
    %cst_62 = arith.constant 0.000000e+00 : f32
    %83 = vector.broadcast %cst_62 : f32 to vector<32x64xf32>
    %84 = arith.maximumf %82, %83 : vector<32x64xf32>
    %85 = arith.truncf %84 : vector<32x64xf32> to vector<32x64xbf16>
    %c9 = arith.constant 9 : index
    %c0_63 = arith.constant 0 : index
    %c0_64 = arith.constant 0 : index
    %86 = vector.load %arg1[%c9, %c0_63, %c0_64] : memref<31x32x40xbf16, #tpu.memory_space<vmem>>, vector<1x32x40xbf16>
    %87 = vector.shape_cast %86 : vector<1x32x40xbf16> to vector<32x40xbf16>
    %cst_65 = arith.constant dense<0.000000e+00> : vector<32x64xf32>
    %88 = tpu.matmul %87, %0, %cst_65 {dimension_numbers = #tpu.dot_dimension_numbers<[1], [0], [0], [1], [0, 0, 1, 1], [], []>} : vector<32x40xbf16>, vector<40x64xbf16>, vector<32x64xf32> -> vector<32x64xf32>
    %c0_66 = arith.constant 0 : index
    %c0_67 = arith.constant 0 : index
    %89 = vector.load %arg3[%c0_66, %c0_67] : memref<1x64xf32, #tpu.memory_space<vmem>>, vector<1x64xf32>
    %90 = vector.broadcast %89 : vector<1x64xf32> to vector<32x64xf32>
    %91 = arith.addf %88, %90 : vector<32x64xf32>
    %cst_68 = arith.constant 0.000000e+00 : f32
    %92 = vector.broadcast %cst_68 : f32 to vector<32x64xf32>
    %93 = arith.maximumf %91, %92 : vector<32x64xf32>
    %94 = arith.truncf %93 : vector<32x64xf32> to vector<32x64xbf16>
    %c10 = arith.constant 10 : index
    %c0_69 = arith.constant 0 : index
    %c0_70 = arith.constant 0 : index
    %95 = vector.load %arg1[%c10, %c0_69, %c0_70] : memref<31x32x40xbf16, #tpu.memory_space<vmem>>, vector<1x32x40xbf16>
    %96 = vector.shape_cast %95 : vector<1x32x40xbf16> to vector<32x40xbf16>
    %cst_71 = arith.constant dense<0.000000e+00> : vector<32x64xf32>
    %97 = tpu.matmul %96, %0, %cst_71 {dimension_numbers = #tpu.dot_dimension_numbers<[1], [0], [0], [1], [0, 0, 1, 1], [], []>} : vector<32x40xbf16>, vector<40x64xbf16>, vector<32x64xf32> -> vector<32x64xf32>
    %c0_72 = arith.constant 0 : index
    %c0_73 = arith.constant 0 : index
    %98 = vector.load %arg3[%c0_72, %c0_73] : memref<1x64xf32, #tpu.memory_space<vmem>>, vector<1x64xf32>
    %99 = vector.broadcast %98 : vector<1x64xf32> to vector<32x64xf32>
    %100 = arith.addf %97, %99 : vector<32x64xf32>
    %cst_74 = arith.constant 0.000000e+00 : f32
    %101 = vector.broadcast %cst_74 : f32 to vector<32x64xf32>
    %102 = arith.maximumf %100, %101 : vector<32x64xf32>
    %103 = arith.truncf %102 : vector<32x64xf32> to vector<32x64xbf16>
    %c11 = arith.constant 11 : index
    %c0_75 = arith.constant 0 : index
    %c0_76 = arith.constant 0 : index
    %104 = vector.load %arg1[%c11, %c0_75, %c0_76] : memref<31x32x40xbf16, #tpu.memory_space<vmem>>, vector<1x32x40xbf16>
    %105 = vector.shape_cast %104 : vector<1x32x40xbf16> to vector<32x40xbf16>
    %cst_77 = arith.constant dense<0.000000e+00> : vector<32x64xf32>
    %106 = tpu.matmul %105, %0, %cst_77 {dimension_numbers = #tpu.dot_dimension_numbers<[1], [0], [0], [1], [0, 0, 1, 1], [], []>} : vector<32x40xbf16>, vector<40x64xbf16>, vector<32x64xf32> -> vector<32x64xf32>
    %c0_78 = arith.constant 0 : index
    %c0_79 = arith.constant 0 : index
    %107 = vector.load %arg3[%c0_78, %c0_79] : memref<1x64xf32, #tpu.memory_space<vmem>>, vector<1x64xf32>
    %108 = vector.broadcast %107 : vector<1x64xf32> to vector<32x64xf32>
    %109 = arith.addf %106, %108 : vector<32x64xf32>
    %cst_80 = arith.constant 0.000000e+00 : f32
    %110 = vector.broadcast %cst_80 : f32 to vector<32x64xf32>
    %111 = arith.maximumf %109, %110 : vector<32x64xf32>
    %112 = arith.truncf %111 : vector<32x64xf32> to vector<32x64xbf16>
    %c12 = arith.constant 12 : index
    %c0_81 = arith.constant 0 : index
    %c0_82 = arith.constant 0 : index
    %113 = vector.load %arg1[%c12, %c0_81, %c0_82] : memref<31x32x40xbf16, #tpu.memory_space<vmem>>, vector<1x32x40xbf16>
    %114 = vector.shape_cast %113 : vector<1x32x40xbf16> to vector<32x40xbf16>
    %cst_83 = arith.constant dense<0.000000e+00> : vector<32x64xf32>
    %115 = tpu.matmul %114, %0, %cst_83 {dimension_numbers = #tpu.dot_dimension_numbers<[1], [0], [0], [1], [0, 0, 1, 1], [], []>} : vector<32x40xbf16>, vector<40x64xbf16>, vector<32x64xf32> -> vector<32x64xf32>
    %c0_84 = arith.constant 0 : index
    %c0_85 = arith.constant 0 : index
    %116 = vector.load %arg3[%c0_84, %c0_85] : memref<1x64xf32, #tpu.memory_space<vmem>>, vector<1x64xf32>
    %117 = vector.broadcast %116 : vector<1x64xf32> to vector<32x64xf32>
    %118 = arith.addf %115, %117 : vector<32x64xf32>
    %cst_86 = arith.constant 0.000000e+00 : f32
    %119 = vector.broadcast %cst_86 : f32 to vector<32x64xf32>
    %120 = arith.maximumf %118, %119 : vector<32x64xf32>
    %121 = arith.truncf %120 : vector<32x64xf32> to vector<32x64xbf16>
    %c13 = arith.constant 13 : index
    %c0_87 = arith.constant 0 : index
    %c0_88 = arith.constant 0 : index
    %122 = vector.load %arg1[%c13, %c0_87, %c0_88] : memref<31x32x40xbf16, #tpu.memory_space<vmem>>, vector<1x32x40xbf16>
    %123 = vector.shape_cast %122 : vector<1x32x40xbf16> to vector<32x40xbf16>
    %cst_89 = arith.constant dense<0.000000e+00> : vector<32x64xf32>
    %124 = tpu.matmul %123, %0, %cst_89 {dimension_numbers = #tpu.dot_dimension_numbers<[1], [0], [0], [1], [0, 0, 1, 1], [], []>} : vector<32x40xbf16>, vector<40x64xbf16>, vector<32x64xf32> -> vector<32x64xf32>
    %c0_90 = arith.constant 0 : index
    %c0_91 = arith.constant 0 : index
    %125 = vector.load %arg3[%c0_90, %c0_91] : memref<1x64xf32, #tpu.memory_space<vmem>>, vector<1x64xf32>
    %126 = vector.broadcast %125 : vector<1x64xf32> to vector<32x64xf32>
    %127 = arith.addf %124, %126 : vector<32x64xf32>
    %cst_92 = arith.constant 0.000000e+00 : f32
    %128 = vector.broadcast %cst_92 : f32 to vector<32x64xf32>
    %129 = arith.maximumf %127, %128 : vector<32x64xf32>
    %130 = arith.truncf %129 : vector<32x64xf32> to vector<32x64xbf16>
    %c14 = arith.constant 14 : index
    %c0_93 = arith.constant 0 : index
    %c0_94 = arith.constant 0 : index
    %131 = vector.load %arg1[%c14, %c0_93, %c0_94] : memref<31x32x40xbf16, #tpu.memory_space<vmem>>, vector<1x32x40xbf16>
    %132 = vector.shape_cast %131 : vector<1x32x40xbf16> to vector<32x40xbf16>
    %cst_95 = arith.constant dense<0.000000e+00> : vector<32x64xf32>
    %133 = tpu.matmul %132, %0, %cst_95 {dimension_numbers = #tpu.dot_dimension_numbers<[1], [0], [0], [1], [0, 0, 1, 1], [], []>} : vector<32x40xbf16>, vector<40x64xbf16>, vector<32x64xf32> -> vector<32x64xf32>
    %c0_96 = arith.constant 0 : index
    %c0_97 = arith.constant 0 : index
    %134 = vector.load %arg3[%c0_96, %c0_97] : memref<1x64xf32, #tpu.memory_space<vmem>>, vector<1x64xf32>
    %135 = vector.broadcast %134 : vector<1x64xf32> to vector<32x64xf32>
    %136 = arith.addf %133, %135 : vector<32x64xf32>
    %cst_98 = arith.constant 0.000000e+00 : f32
    %137 = vector.broadcast %cst_98 : f32 to vector<32x64xf32>
    %138 = arith.maximumf %136, %137 : vector<32x64xf32>
    %139 = arith.truncf %138 : vector<32x64xf32> to vector<32x64xbf16>
    %c15 = arith.constant 15 : index
    %c0_99 = arith.constant 0 : index
    %c0_100 = arith.constant 0 : index
    %140 = vector.load %arg1[%c15, %c0_99, %c0_100] : memref<31x32x40xbf16, #tpu.memory_space<vmem>>, vector<1x32x40xbf16>
    %141 = vector.shape_cast %140 : vector<1x32x40xbf16> to vector<32x40xbf16>
    %cst_101 = arith.constant dense<0.000000e+00> : vector<32x64xf32>
    %142 = tpu.matmul %141, %0, %cst_101 {dimension_numbers = #tpu.dot_dimension_numbers<[1], [0], [0], [1], [0, 0, 1, 1], [], []>} : vector<32x40xbf16>, vector<40x64xbf16>, vector<32x64xf32> -> vector<32x64xf32>
    %c0_102 = arith.constant 0 : index
    %c0_103 = arith.constant 0 : index
    %143 = vector.load %arg3[%c0_102, %c0_103] : memref<1x64xf32, #tpu.memory_space<vmem>>, vector<1x64xf32>
    %144 = vector.broadcast %143 : vector<1x64xf32> to vector<32x64xf32>
    %145 = arith.addf %142, %144 : vector<32x64xf32>
    %cst_104 = arith.constant 0.000000e+00 : f32
    %146 = vector.broadcast %cst_104 : f32 to vector<32x64xf32>
    %147 = arith.maximumf %145, %146 : vector<32x64xf32>
    %148 = arith.truncf %147 : vector<32x64xf32> to vector<32x64xbf16>
    %c16 = arith.constant 16 : index
    %c0_105 = arith.constant 0 : index
    %c0_106 = arith.constant 0 : index
    %149 = vector.load %arg1[%c16, %c0_105, %c0_106] : memref<31x32x40xbf16, #tpu.memory_space<vmem>>, vector<1x32x40xbf16>
    %150 = vector.shape_cast %149 : vector<1x32x40xbf16> to vector<32x40xbf16>
    %cst_107 = arith.constant dense<0.000000e+00> : vector<32x64xf32>
    %151 = tpu.matmul %150, %0, %cst_107 {dimension_numbers = #tpu.dot_dimension_numbers<[1], [0], [0], [1], [0, 0, 1, 1], [], []>} : vector<32x40xbf16>, vector<40x64xbf16>, vector<32x64xf32> -> vector<32x64xf32>
    %c0_108 = arith.constant 0 : index
    %c0_109 = arith.constant 0 : index
    %152 = vector.load %arg3[%c0_108, %c0_109] : memref<1x64xf32, #tpu.memory_space<vmem>>, vector<1x64xf32>
    %153 = vector.broadcast %152 : vector<1x64xf32> to vector<32x64xf32>
    %154 = arith.addf %151, %153 : vector<32x64xf32>
    %cst_110 = arith.constant 0.000000e+00 : f32
    %155 = vector.broadcast %cst_110 : f32 to vector<32x64xf32>
    %156 = arith.maximumf %154, %155 : vector<32x64xf32>
    %157 = arith.truncf %156 : vector<32x64xf32> to vector<32x64xbf16>
    %c17 = arith.constant 17 : index
    %c0_111 = arith.constant 0 : index
    %c0_112 = arith.constant 0 : index
    %158 = vector.load %arg1[%c17, %c0_111, %c0_112] : memref<31x32x40xbf16, #tpu.memory_space<vmem>>, vector<1x32x40xbf16>
    %159 = vector.shape_cast %158 : vector<1x32x40xbf16> to vector<32x40xbf16>
    %cst_113 = arith.constant dense<0.000000e+00> : vector<32x64xf32>
    %160 = tpu.matmul %159, %0, %cst_113 {dimension_numbers = #tpu.dot_dimension_numbers<[1], [0], [0], [1], [0, 0, 1, 1], [], []>} : vector<32x40xbf16>, vector<40x64xbf16>, vector<32x64xf32> -> vector<32x64xf32>
    %c0_114 = arith.constant 0 : index
    %c0_115 = arith.constant 0 : index
    %161 = vector.load %arg3[%c0_114, %c0_115] : memref<1x64xf32, #tpu.memory_space<vmem>>, vector<1x64xf32>
    %162 = vector.broadcast %161 : vector<1x64xf32> to vector<32x64xf32>
    %163 = arith.addf %160, %162 : vector<32x64xf32>
    %cst_116 = arith.constant 0.000000e+00 : f32
    %164 = vector.broadcast %cst_116 : f32 to vector<32x64xf32>
    %165 = arith.maximumf %163, %164 : vector<32x64xf32>
    %166 = arith.truncf %165 : vector<32x64xf32> to vector<32x64xbf16>
    %c18 = arith.constant 18 : index
    %c0_117 = arith.constant 0 : index
    %c0_118 = arith.constant 0 : index
    %167 = vector.load %arg1[%c18, %c0_117, %c0_118] : memref<31x32x40xbf16, #tpu.memory_space<vmem>>, vector<1x32x40xbf16>
    %168 = vector.shape_cast %167 : vector<1x32x40xbf16> to vector<32x40xbf16>
    %cst_119 = arith.constant dense<0.000000e+00> : vector<32x64xf32>
    %169 = tpu.matmul %168, %0, %cst_119 {dimension_numbers = #tpu.dot_dimension_numbers<[1], [0], [0], [1], [0, 0, 1, 1], [], []>} : vector<32x40xbf16>, vector<40x64xbf16>, vector<32x64xf32> -> vector<32x64xf32>
    %c0_120 = arith.constant 0 : index
    %c0_121 = arith.constant 0 : index
    %170 = vector.load %arg3[%c0_120, %c0_121] : memref<1x64xf32, #tpu.memory_space<vmem>>, vector<1x64xf32>
    %171 = vector.broadcast %170 : vector<1x64xf32> to vector<32x64xf32>
    %172 = arith.addf %169, %171 : vector<32x64xf32>
    %cst_122 = arith.constant 0.000000e+00 : f32
    %173 = vector.broadcast %cst_122 : f32 to vector<32x64xf32>
    %174 = arith.maximumf %172, %173 : vector<32x64xf32>
    %175 = arith.truncf %174 : vector<32x64xf32> to vector<32x64xbf16>
    %c19 = arith.constant 19 : index
    %c0_123 = arith.constant 0 : index
    %c0_124 = arith.constant 0 : index
    %176 = vector.load %arg1[%c19, %c0_123, %c0_124] : memref<31x32x40xbf16, #tpu.memory_space<vmem>>, vector<1x32x40xbf16>
    %177 = vector.shape_cast %176 : vector<1x32x40xbf16> to vector<32x40xbf16>
    %cst_125 = arith.constant dense<0.000000e+00> : vector<32x64xf32>
    %178 = tpu.matmul %177, %0, %cst_125 {dimension_numbers = #tpu.dot_dimension_numbers<[1], [0], [0], [1], [0, 0, 1, 1], [], []>} : vector<32x40xbf16>, vector<40x64xbf16>, vector<32x64xf32> -> vector<32x64xf32>
    %c0_126 = arith.constant 0 : index
    %c0_127 = arith.constant 0 : index
    %179 = vector.load %arg3[%c0_126, %c0_127] : memref<1x64xf32, #tpu.memory_space<vmem>>, vector<1x64xf32>
    %180 = vector.broadcast %179 : vector<1x64xf32> to vector<32x64xf32>
    %181 = arith.addf %178, %180 : vector<32x64xf32>
    %cst_128 = arith.constant 0.000000e+00 : f32
    %182 = vector.broadcast %cst_128 : f32 to vector<32x64xf32>
    %183 = arith.maximumf %181, %182 : vector<32x64xf32>
    %184 = arith.truncf %183 : vector<32x64xf32> to vector<32x64xbf16>
    %c20 = arith.constant 20 : index
    %c0_129 = arith.constant 0 : index
    %c0_130 = arith.constant 0 : index
    %185 = vector.load %arg1[%c20, %c0_129, %c0_130] : memref<31x32x40xbf16, #tpu.memory_space<vmem>>, vector<1x32x40xbf16>
    %186 = vector.shape_cast %185 : vector<1x32x40xbf16> to vector<32x40xbf16>
    %cst_131 = arith.constant dense<0.000000e+00> : vector<32x64xf32>
    %187 = tpu.matmul %186, %0, %cst_131 {dimension_numbers = #tpu.dot_dimension_numbers<[1], [0], [0], [1], [0, 0, 1, 1], [], []>} : vector<32x40xbf16>, vector<40x64xbf16>, vector<32x64xf32> -> vector<32x64xf32>
    %c0_132 = arith.constant 0 : index
    %c0_133 = arith.constant 0 : index
    %188 = vector.load %arg3[%c0_132, %c0_133] : memref<1x64xf32, #tpu.memory_space<vmem>>, vector<1x64xf32>
    %189 = vector.broadcast %188 : vector<1x64xf32> to vector<32x64xf32>
    %190 = arith.addf %187, %189 : vector<32x64xf32>
    %cst_134 = arith.constant 0.000000e+00 : f32
    %191 = vector.broadcast %cst_134 : f32 to vector<32x64xf32>
    %192 = arith.maximumf %190, %191 : vector<32x64xf32>
    %193 = arith.truncf %192 : vector<32x64xf32> to vector<32x64xbf16>
    %c21 = arith.constant 21 : index
    %c0_135 = arith.constant 0 : index
    %c0_136 = arith.constant 0 : index
    %194 = vector.load %arg1[%c21, %c0_135, %c0_136] : memref<31x32x40xbf16, #tpu.memory_space<vmem>>, vector<1x32x40xbf16>
    %195 = vector.shape_cast %194 : vector<1x32x40xbf16> to vector<32x40xbf16>
    %cst_137 = arith.constant dense<0.000000e+00> : vector<32x64xf32>
    %196 = tpu.matmul %195, %0, %cst_137 {dimension_numbers = #tpu.dot_dimension_numbers<[1], [0], [0], [1], [0, 0, 1, 1], [], []>} : vector<32x40xbf16>, vector<40x64xbf16>, vector<32x64xf32> -> vector<32x64xf32>
    %c0_138 = arith.constant 0 : index
    %c0_139 = arith.constant 0 : index
    %197 = vector.load %arg3[%c0_138, %c0_139] : memref<1x64xf32, #tpu.memory_space<vmem>>, vector<1x64xf32>
    %198 = vector.broadcast %197 : vector<1x64xf32> to vector<32x64xf32>
    %199 = arith.addf %196, %198 : vector<32x64xf32>
    %cst_140 = arith.constant 0.000000e+00 : f32
    %200 = vector.broadcast %cst_140 : f32 to vector<32x64xf32>
    %201 = arith.maximumf %199, %200 : vector<32x64xf32>
    %202 = arith.truncf %201 : vector<32x64xf32> to vector<32x64xbf16>
    %c22 = arith.constant 22 : index
    %c0_141 = arith.constant 0 : index
    %c0_142 = arith.constant 0 : index
    %203 = vector.load %arg1[%c22, %c0_141, %c0_142] : memref<31x32x40xbf16, #tpu.memory_space<vmem>>, vector<1x32x40xbf16>
    %204 = vector.shape_cast %203 : vector<1x32x40xbf16> to vector<32x40xbf16>
    %cst_143 = arith.constant dense<0.000000e+00> : vector<32x64xf32>
    %205 = tpu.matmul %204, %0, %cst_143 {dimension_numbers = #tpu.dot_dimension_numbers<[1], [0], [0], [1], [0, 0, 1, 1], [], []>} : vector<32x40xbf16>, vector<40x64xbf16>, vector<32x64xf32> -> vector<32x64xf32>
    %c0_144 = arith.constant 0 : index
    %c0_145 = arith.constant 0 : index
    %206 = vector.load %arg3[%c0_144, %c0_145] : memref<1x64xf32, #tpu.memory_space<vmem>>, vector<1x64xf32>
    %207 = vector.broadcast %206 : vector<1x64xf32> to vector<32x64xf32>
    %208 = arith.addf %205, %207 : vector<32x64xf32>
    %cst_146 = arith.constant 0.000000e+00 : f32
    %209 = vector.broadcast %cst_146 : f32 to vector<32x64xf32>
    %210 = arith.maximumf %208, %209 : vector<32x64xf32>
    %211 = arith.truncf %210 : vector<32x64xf32> to vector<32x64xbf16>
    %c23 = arith.constant 23 : index
    %c0_147 = arith.constant 0 : index
    %c0_148 = arith.constant 0 : index
    %212 = vector.load %arg1[%c23, %c0_147, %c0_148] : memref<31x32x40xbf16, #tpu.memory_space<vmem>>, vector<1x32x40xbf16>
    %213 = vector.shape_cast %212 : vector<1x32x40xbf16> to vector<32x40xbf16>
    %cst_149 = arith.constant dense<0.000000e+00> : vector<32x64xf32>
    %214 = tpu.matmul %213, %0, %cst_149 {dimension_numbers = #tpu.dot_dimension_numbers<[1], [0], [0], [1], [0, 0, 1, 1], [], []>} : vector<32x40xbf16>, vector<40x64xbf16>, vector<32x64xf32> -> vector<32x64xf32>
    %c0_150 = arith.constant 0 : index
    %c0_151 = arith.constant 0 : index
    %215 = vector.load %arg3[%c0_150, %c0_151] : memref<1x64xf32, #tpu.memory_space<vmem>>, vector<1x64xf32>
    %216 = vector.broadcast %215 : vector<1x64xf32> to vector<32x64xf32>
    %217 = arith.addf %214, %216 : vector<32x64xf32>
    %cst_152 = arith.constant 0.000000e+00 : f32
    %218 = vector.broadcast %cst_152 : f32 to vector<32x64xf32>
    %219 = arith.maximumf %217, %218 : vector<32x64xf32>
    %220 = arith.truncf %219 : vector<32x64xf32> to vector<32x64xbf16>
    %c24 = arith.constant 24 : index
    %c0_153 = arith.constant 0 : index
    %c0_154 = arith.constant 0 : index
    %221 = vector.load %arg1[%c24, %c0_153, %c0_154] : memref<31x32x40xbf16, #tpu.memory_space<vmem>>, vector<1x32x40xbf16>
    %222 = vector.shape_cast %221 : vector<1x32x40xbf16> to vector<32x40xbf16>
    %cst_155 = arith.constant dense<0.000000e+00> : vector<32x64xf32>
    %223 = tpu.matmul %222, %0, %cst_155 {dimension_numbers = #tpu.dot_dimension_numbers<[1], [0], [0], [1], [0, 0, 1, 1], [], []>} : vector<32x40xbf16>, vector<40x64xbf16>, vector<32x64xf32> -> vector<32x64xf32>
    %c0_156 = arith.constant 0 : index
    %c0_157 = arith.constant 0 : index
    %224 = vector.load %arg3[%c0_156, %c0_157] : memref<1x64xf32, #tpu.memory_space<vmem>>, vector<1x64xf32>
    %225 = vector.broadcast %224 : vector<1x64xf32> to vector<32x64xf32>
    %226 = arith.addf %223, %225 : vector<32x64xf32>
    %cst_158 = arith.constant 0.000000e+00 : f32
    %227 = vector.broadcast %cst_158 : f32 to vector<32x64xf32>
    %228 = arith.maximumf %226, %227 : vector<32x64xf32>
    %229 = arith.truncf %228 : vector<32x64xf32> to vector<32x64xbf16>
    %c25 = arith.constant 25 : index
    %c0_159 = arith.constant 0 : index
    %c0_160 = arith.constant 0 : index
    %230 = vector.load %arg1[%c25, %c0_159, %c0_160] : memref<31x32x40xbf16, #tpu.memory_space<vmem>>, vector<1x32x40xbf16>
    %231 = vector.shape_cast %230 : vector<1x32x40xbf16> to vector<32x40xbf16>
    %cst_161 = arith.constant dense<0.000000e+00> : vector<32x64xf32>
    %232 = tpu.matmul %231, %0, %cst_161 {dimension_numbers = #tpu.dot_dimension_numbers<[1], [0], [0], [1], [0, 0, 1, 1], [], []>} : vector<32x40xbf16>, vector<40x64xbf16>, vector<32x64xf32> -> vector<32x64xf32>
    %c0_162 = arith.constant 0 : index
    %c0_163 = arith.constant 0 : index
    %233 = vector.load %arg3[%c0_162, %c0_163] : memref<1x64xf32, #tpu.memory_space<vmem>>, vector<1x64xf32>
    %234 = vector.broadcast %233 : vector<1x64xf32> to vector<32x64xf32>
    %235 = arith.addf %232, %234 : vector<32x64xf32>
    %cst_164 = arith.constant 0.000000e+00 : f32
    %236 = vector.broadcast %cst_164 : f32 to vector<32x64xf32>
    %237 = arith.maximumf %235, %236 : vector<32x64xf32>
    %238 = arith.truncf %237 : vector<32x64xf32> to vector<32x64xbf16>
    %c26 = arith.constant 26 : index
    %c0_165 = arith.constant 0 : index
    %c0_166 = arith.constant 0 : index
    %239 = vector.load %arg1[%c26, %c0_165, %c0_166] : memref<31x32x40xbf16, #tpu.memory_space<vmem>>, vector<1x32x40xbf16>
    %240 = vector.shape_cast %239 : vector<1x32x40xbf16> to vector<32x40xbf16>
    %cst_167 = arith.constant dense<0.000000e+00> : vector<32x64xf32>
    %241 = tpu.matmul %240, %0, %cst_167 {dimension_numbers = #tpu.dot_dimension_numbers<[1], [0], [0], [1], [0, 0, 1, 1], [], []>} : vector<32x40xbf16>, vector<40x64xbf16>, vector<32x64xf32> -> vector<32x64xf32>
    %c0_168 = arith.constant 0 : index
    %c0_169 = arith.constant 0 : index
    %242 = vector.load %arg3[%c0_168, %c0_169] : memref<1x64xf32, #tpu.memory_space<vmem>>, vector<1x64xf32>
    %243 = vector.broadcast %242 : vector<1x64xf32> to vector<32x64xf32>
    %244 = arith.addf %241, %243 : vector<32x64xf32>
    %cst_170 = arith.constant 0.000000e+00 : f32
    %245 = vector.broadcast %cst_170 : f32 to vector<32x64xf32>
    %246 = arith.maximumf %244, %245 : vector<32x64xf32>
    %247 = arith.truncf %246 : vector<32x64xf32> to vector<32x64xbf16>
    %c27 = arith.constant 27 : index
    %c0_171 = arith.constant 0 : index
    %c0_172 = arith.constant 0 : index
    %248 = vector.load %arg1[%c27, %c0_171, %c0_172] : memref<31x32x40xbf16, #tpu.memory_space<vmem>>, vector<1x32x40xbf16>
    %249 = vector.shape_cast %248 : vector<1x32x40xbf16> to vector<32x40xbf16>
    %cst_173 = arith.constant dense<0.000000e+00> : vector<32x64xf32>
    %250 = tpu.matmul %249, %0, %cst_173 {dimension_numbers = #tpu.dot_dimension_numbers<[1], [0], [0], [1], [0, 0, 1, 1], [], []>} : vector<32x40xbf16>, vector<40x64xbf16>, vector<32x64xf32> -> vector<32x64xf32>
    %c0_174 = arith.constant 0 : index
    %c0_175 = arith.constant 0 : index
    %251 = vector.load %arg3[%c0_174, %c0_175] : memref<1x64xf32, #tpu.memory_space<vmem>>, vector<1x64xf32>
    %252 = vector.broadcast %251 : vector<1x64xf32> to vector<32x64xf32>
    %253 = arith.addf %250, %252 : vector<32x64xf32>
    %cst_176 = arith.constant 0.000000e+00 : f32
    %254 = vector.broadcast %cst_176 : f32 to vector<32x64xf32>
    %255 = arith.maximumf %253, %254 : vector<32x64xf32>
    %256 = arith.truncf %255 : vector<32x64xf32> to vector<32x64xbf16>
    %c28 = arith.constant 28 : index
    %c0_177 = arith.constant 0 : index
    %c0_178 = arith.constant 0 : index
    %257 = vector.load %arg1[%c28, %c0_177, %c0_178] : memref<31x32x40xbf16, #tpu.memory_space<vmem>>, vector<1x32x40xbf16>
    %258 = vector.shape_cast %257 : vector<1x32x40xbf16> to vector<32x40xbf16>
    %cst_179 = arith.constant dense<0.000000e+00> : vector<32x64xf32>
    %259 = tpu.matmul %258, %0, %cst_179 {dimension_numbers = #tpu.dot_dimension_numbers<[1], [0], [0], [1], [0, 0, 1, 1], [], []>} : vector<32x40xbf16>, vector<40x64xbf16>, vector<32x64xf32> -> vector<32x64xf32>
    %c0_180 = arith.constant 0 : index
    %c0_181 = arith.constant 0 : index
    %260 = vector.load %arg3[%c0_180, %c0_181] : memref<1x64xf32, #tpu.memory_space<vmem>>, vector<1x64xf32>
    %261 = vector.broadcast %260 : vector<1x64xf32> to vector<32x64xf32>
    %262 = arith.addf %259, %261 : vector<32x64xf32>
    %cst_182 = arith.constant 0.000000e+00 : f32
    %263 = vector.broadcast %cst_182 : f32 to vector<32x64xf32>
    %264 = arith.maximumf %262, %263 : vector<32x64xf32>
    %265 = arith.truncf %264 : vector<32x64xf32> to vector<32x64xbf16>
    %c29 = arith.constant 29 : index
    %c0_183 = arith.constant 0 : index
    %c0_184 = arith.constant 0 : index
    %266 = vector.load %arg1[%c29, %c0_183, %c0_184] : memref<31x32x40xbf16, #tpu.memory_space<vmem>>, vector<1x32x40xbf16>
    %267 = vector.shape_cast %266 : vector<1x32x40xbf16> to vector<32x40xbf16>
    %cst_185 = arith.constant dense<0.000000e+00> : vector<32x64xf32>
    %268 = tpu.matmul %267, %0, %cst_185 {dimension_numbers = #tpu.dot_dimension_numbers<[1], [0], [0], [1], [0, 0, 1, 1], [], []>} : vector<32x40xbf16>, vector<40x64xbf16>, vector<32x64xf32> -> vector<32x64xf32>
    %c0_186 = arith.constant 0 : index
    %c0_187 = arith.constant 0 : index
    %269 = vector.load %arg3[%c0_186, %c0_187] : memref<1x64xf32, #tpu.memory_space<vmem>>, vector<1x64xf32>
    %270 = vector.broadcast %269 : vector<1x64xf32> to vector<32x64xf32>
    %271 = arith.addf %268, %270 : vector<32x64xf32>
    %cst_188 = arith.constant 0.000000e+00 : f32
    %272 = vector.broadcast %cst_188 : f32 to vector<32x64xf32>
    %273 = arith.maximumf %271, %272 : vector<32x64xf32>
    %274 = arith.truncf %273 : vector<32x64xf32> to vector<32x64xbf16>
    %c30 = arith.constant 30 : index
    %c0_189 = arith.constant 0 : index
    %c0_190 = arith.constant 0 : index
    %275 = vector.load %arg1[%c30, %c0_189, %c0_190] : memref<31x32x40xbf16, #tpu.memory_space<vmem>>, vector<1x32x40xbf16>
    %276 = vector.shape_cast %275 : vector<1x32x40xbf16> to vector<32x40xbf16>
    %cst_191 = arith.constant dense<0.000000e+00> : vector<32x64xf32>
    %277 = tpu.matmul %276, %0, %cst_191 {dimension_numbers = #tpu.dot_dimension_numbers<[1], [0], [0], [1], [0, 0, 1, 1], [], []>} : vector<32x40xbf16>, vector<40x64xbf16>, vector<32x64xf32> -> vector<32x64xf32>
    %c0_192 = arith.constant 0 : index
    %c0_193 = arith.constant 0 : index
    %278 = vector.load %arg3[%c0_192, %c0_193] : memref<1x64xf32, #tpu.memory_space<vmem>>, vector<1x64xf32>
    %279 = vector.broadcast %278 : vector<1x64xf32> to vector<32x64xf32>
    %280 = arith.addf %277, %279 : vector<32x64xf32>
    %cst_194 = arith.constant 0.000000e+00 : f32
    %281 = vector.broadcast %cst_194 : f32 to vector<32x64xf32>
    %282 = arith.maximumf %280, %281 : vector<32x64xf32>
    %283 = arith.truncf %282 : vector<32x64xf32> to vector<32x64xbf16>
    %284 = tpu.concatenate %13, %22, %31, %40, %49, %58, %67 in 1 : vector<32x64xbf16>, vector<32x64xbf16>, vector<32x64xbf16>, vector<32x64xbf16>, vector<32x64xbf16>, vector<32x64xbf16>, vector<32x64xbf16> -> vector<32x448xbf16>
    %cst_195 = arith.constant dense<0.000000e+00> : vector<32x128xf32>
    %285 = tpu.matmul %284, %1, %cst_195 {dimension_numbers = #tpu.dot_dimension_numbers<[1], [0], [0], [1], [0, 0, 1, 1], [], []>} : vector<32x448xbf16>, vector<448x128xbf16>, vector<32x128xf32> -> vector<32x128xf32>
    %c0_196 = arith.constant 0 : index
    %c0_197 = arith.constant 0 : index
    %286 = vector.load %arg5[%c0_196, %c0_197] : memref<1x128xf32, #tpu.memory_space<vmem>>, vector<1x128xf32>
    %287 = vector.broadcast %286 : vector<1x128xf32> to vector<32x128xf32>
    %288 = arith.addf %285, %287 : vector<32x128xf32>
    %cst_198 = arith.constant 0.000000e+00 : f32
    %289 = vector.broadcast %cst_198 : f32 to vector<32x128xf32>
    %290 = arith.maximumf %288, %289 : vector<32x128xf32>
    %291 = arith.truncf %290 : vector<32x128xf32> to vector<32x128xbf16>
    %292 = tpu.concatenate %31, %40, %49, %58, %67, %76, %85 in 1 : vector<32x64xbf16>, vector<32x64xbf16>, vector<32x64xbf16>, vector<32x64xbf16>, vector<32x64xbf16>, vector<32x64xbf16>, vector<32x64xbf16> -> vector<32x448xbf16>
    %cst_199 = arith.constant dense<0.000000e+00> : vector<32x128xf32>
    %293 = tpu.matmul %292, %1, %cst_199 {dimension_numbers = #tpu.dot_dimension_numbers<[1], [0], [0], [1], [0, 0, 1, 1], [], []>} : vector<32x448xbf16>, vector<448x128xbf16>, vector<32x128xf32> -> vector<32x128xf32>
    %c0_200 = arith.constant 0 : index
    %c0_201 = arith.constant 0 : index
    %294 = vector.load %arg5[%c0_200, %c0_201] : memref<1x128xf32, #tpu.memory_space<vmem>>, vector<1x128xf32>
    %295 = vector.broadcast %294 : vector<1x128xf32> to vector<32x128xf32>
    %296 = arith.addf %293, %295 : vector<32x128xf32>
    %cst_202 = arith.constant 0.000000e+00 : f32
    %297 = vector.broadcast %cst_202 : f32 to vector<32x128xf32>
    %298 = arith.maximumf %296, %297 : vector<32x128xf32>
    %299 = arith.truncf %298 : vector<32x128xf32> to vector<32x128xbf16>
    %300 = tpu.concatenate %49, %58, %67, %76, %85, %94, %103 in 1 : vector<32x64xbf16>, vector<32x64xbf16>, vector<32x64xbf16>, vector<32x64xbf16>, vector<32x64xbf16>, vector<32x64xbf16>, vector<32x64xbf16> -> vector<32x448xbf16>
    %cst_203 = arith.constant dense<0.000000e+00> : vector<32x128xf32>
    %301 = tpu.matmul %300, %1, %cst_203 {dimension_numbers = #tpu.dot_dimension_numbers<[1], [0], [0], [1], [0, 0, 1, 1], [], []>} : vector<32x448xbf16>, vector<448x128xbf16>, vector<32x128xf32> -> vector<32x128xf32>
    %c0_204 = arith.constant 0 : index
    %c0_205 = arith.constant 0 : index
    %302 = vector.load %arg5[%c0_204, %c0_205] : memref<1x128xf32, #tpu.memory_space<vmem>>, vector<1x128xf32>
    %303 = vector.broadcast %302 : vector<1x128xf32> to vector<32x128xf32>
    %304 = arith.addf %301, %303 : vector<32x128xf32>
    %cst_206 = arith.constant 0.000000e+00 : f32
    %305 = vector.broadcast %cst_206 : f32 to vector<32x128xf32>
    %306 = arith.maximumf %304, %305 : vector<32x128xf32>
    %307 = arith.truncf %306 : vector<32x128xf32> to vector<32x128xbf16>
    %308 = tpu.concatenate %67, %76, %85, %94, %103, %112, %121 in 1 : vector<32x64xbf16>, vector<32x64xbf16>, vector<32x64xbf16>, vector<32x64xbf16>, vector<32x64xbf16>, vector<32x64xbf16>, vector<32x64xbf16> -> vector<32x448xbf16>
    %cst_207 = arith.constant dense<0.000000e+00> : vector<32x128xf32>
    %309 = tpu.matmul %308, %1, %cst_207 {dimension_numbers = #tpu.dot_dimension_numbers<[1], [0], [0], [1], [0, 0, 1, 1], [], []>} : vector<32x448xbf16>, vector<448x128xbf16>, vector<32x128xf32> -> vector<32x128xf32>
    %c0_208 = arith.constant 0 : index
    %c0_209 = arith.constant 0 : index
    %310 = vector.load %arg5[%c0_208, %c0_209] : memref<1x128xf32, #tpu.memory_space<vmem>>, vector<1x128xf32>
    %311 = vector.broadcast %310 : vector<1x128xf32> to vector<32x128xf32>
    %312 = arith.addf %309, %311 : vector<32x128xf32>
    %cst_210 = arith.constant 0.000000e+00 : f32
    %313 = vector.broadcast %cst_210 : f32 to vector<32x128xf32>
    %314 = arith.maximumf %312, %313 : vector<32x128xf32>
    %315 = arith.truncf %314 : vector<32x128xf32> to vector<32x128xbf16>
    %316 = tpu.concatenate %85, %94, %103, %112, %121, %130, %139 in 1 : vector<32x64xbf16>, vector<32x64xbf16>, vector<32x64xbf16>, vector<32x64xbf16>, vector<32x64xbf16>, vector<32x64xbf16>, vector<32x64xbf16> -> vector<32x448xbf16>
    %cst_211 = arith.constant dense<0.000000e+00> : vector<32x128xf32>
    %317 = tpu.matmul %316, %1, %cst_211 {dimension_numbers = #tpu.dot_dimension_numbers<[1], [0], [0], [1], [0, 0, 1, 1], [], []>} : vector<32x448xbf16>, vector<448x128xbf16>, vector<32x128xf32> -> vector<32x128xf32>
    %c0_212 = arith.constant 0 : index
    %c0_213 = arith.constant 0 : index
    %318 = vector.load %arg5[%c0_212, %c0_213] : memref<1x128xf32, #tpu.memory_space<vmem>>, vector<1x128xf32>
    %319 = vector.broadcast %318 : vector<1x128xf32> to vector<32x128xf32>
    %320 = arith.addf %317, %319 : vector<32x128xf32>
    %cst_214 = arith.constant 0.000000e+00 : f32
    %321 = vector.broadcast %cst_214 : f32 to vector<32x128xf32>
    %322 = arith.maximumf %320, %321 : vector<32x128xf32>
    %323 = arith.truncf %322 : vector<32x128xf32> to vector<32x128xbf16>
    %324 = tpu.concatenate %103, %112, %121, %130, %139, %148, %157 in 1 : vector<32x64xbf16>, vector<32x64xbf16>, vector<32x64xbf16>, vector<32x64xbf16>, vector<32x64xbf16>, vector<32x64xbf16>, vector<32x64xbf16> -> vector<32x448xbf16>
    %cst_215 = arith.constant dense<0.000000e+00> : vector<32x128xf32>
    %325 = tpu.matmul %324, %1, %cst_215 {dimension_numbers = #tpu.dot_dimension_numbers<[1], [0], [0], [1], [0, 0, 1, 1], [], []>} : vector<32x448xbf16>, vector<448x128xbf16>, vector<32x128xf32> -> vector<32x128xf32>
    %c0_216 = arith.constant 0 : index
    %c0_217 = arith.constant 0 : index
    %326 = vector.load %arg5[%c0_216, %c0_217] : memref<1x128xf32, #tpu.memory_space<vmem>>, vector<1x128xf32>
    %327 = vector.broadcast %326 : vector<1x128xf32> to vector<32x128xf32>
    %328 = arith.addf %325, %327 : vector<32x128xf32>
    %cst_218 = arith.constant 0.000000e+00 : f32
    %329 = vector.broadcast %cst_218 : f32 to vector<32x128xf32>
    %330 = arith.maximumf %328, %329 : vector<32x128xf32>
    %331 = arith.truncf %330 : vector<32x128xf32> to vector<32x128xbf16>
    %332 = tpu.concatenate %121, %130, %139, %148, %157, %166, %175 in 1 : vector<32x64xbf16>, vector<32x64xbf16>, vector<32x64xbf16>, vector<32x64xbf16>, vector<32x64xbf16>, vector<32x64xbf16>, vector<32x64xbf16> -> vector<32x448xbf16>
    %cst_219 = arith.constant dense<0.000000e+00> : vector<32x128xf32>
    %333 = tpu.matmul %332, %1, %cst_219 {dimension_numbers = #tpu.dot_dimension_numbers<[1], [0], [0], [1], [0, 0, 1, 1], [], []>} : vector<32x448xbf16>, vector<448x128xbf16>, vector<32x128xf32> -> vector<32x128xf32>
    %c0_220 = arith.constant 0 : index
    %c0_221 = arith.constant 0 : index
    %334 = vector.load %arg5[%c0_220, %c0_221] : memref<1x128xf32, #tpu.memory_space<vmem>>, vector<1x128xf32>
    %335 = vector.broadcast %334 : vector<1x128xf32> to vector<32x128xf32>
    %336 = arith.addf %333, %335 : vector<32x128xf32>
    %cst_222 = arith.constant 0.000000e+00 : f32
    %337 = vector.broadcast %cst_222 : f32 to vector<32x128xf32>
    %338 = arith.maximumf %336, %337 : vector<32x128xf32>
    %339 = arith.truncf %338 : vector<32x128xf32> to vector<32x128xbf16>
    %340 = tpu.concatenate %139, %148, %157, %166, %175, %184, %193 in 1 : vector<32x64xbf16>, vector<32x64xbf16>, vector<32x64xbf16>, vector<32x64xbf16>, vector<32x64xbf16>, vector<32x64xbf16>, vector<32x64xbf16> -> vector<32x448xbf16>
    %cst_223 = arith.constant dense<0.000000e+00> : vector<32x128xf32>
    %341 = tpu.matmul %340, %1, %cst_223 {dimension_numbers = #tpu.dot_dimension_numbers<[1], [0], [0], [1], [0, 0, 1, 1], [], []>} : vector<32x448xbf16>, vector<448x128xbf16>, vector<32x128xf32> -> vector<32x128xf32>
    %c0_224 = arith.constant 0 : index
    %c0_225 = arith.constant 0 : index
    %342 = vector.load %arg5[%c0_224, %c0_225] : memref<1x128xf32, #tpu.memory_space<vmem>>, vector<1x128xf32>
    %343 = vector.broadcast %342 : vector<1x128xf32> to vector<32x128xf32>
    %344 = arith.addf %341, %343 : vector<32x128xf32>
    %cst_226 = arith.constant 0.000000e+00 : f32
    %345 = vector.broadcast %cst_226 : f32 to vector<32x128xf32>
    %346 = arith.maximumf %344, %345 : vector<32x128xf32>
    %347 = arith.truncf %346 : vector<32x128xf32> to vector<32x128xbf16>
    %348 = tpu.concatenate %157, %166, %175, %184, %193, %202, %211 in 1 : vector<32x64xbf16>, vector<32x64xbf16>, vector<32x64xbf16>, vector<32x64xbf16>, vector<32x64xbf16>, vector<32x64xbf16>, vector<32x64xbf16> -> vector<32x448xbf16>
    %cst_227 = arith.constant dense<0.000000e+00> : vector<32x128xf32>
    %349 = tpu.matmul %348, %1, %cst_227 {dimension_numbers = #tpu.dot_dimension_numbers<[1], [0], [0], [1], [0, 0, 1, 1], [], []>} : vector<32x448xbf16>, vector<448x128xbf16>, vector<32x128xf32> -> vector<32x128xf32>
    %c0_228 = arith.constant 0 : index
    %c0_229 = arith.constant 0 : index
    %350 = vector.load %arg5[%c0_228, %c0_229] : memref<1x128xf32, #tpu.memory_space<vmem>>, vector<1x128xf32>
    %351 = vector.broadcast %350 : vector<1x128xf32> to vector<32x128xf32>
    %352 = arith.addf %349, %351 : vector<32x128xf32>
    %cst_230 = arith.constant 0.000000e+00 : f32
    %353 = vector.broadcast %cst_230 : f32 to vector<32x128xf32>
    %354 = arith.maximumf %352, %353 : vector<32x128xf32>
    %355 = arith.truncf %354 : vector<32x128xf32> to vector<32x128xbf16>
    %356 = tpu.concatenate %175, %184, %193, %202, %211, %220, %229 in 1 : vector<32x64xbf16>, vector<32x64xbf16>, vector<32x64xbf16>, vector<32x64xbf16>, vector<32x64xbf16>, vector<32x64xbf16>, vector<32x64xbf16> -> vector<32x448xbf16>
    %cst_231 = arith.constant dense<0.000000e+00> : vector<32x128xf32>
    %357 = tpu.matmul %356, %1, %cst_231 {dimension_numbers = #tpu.dot_dimension_numbers<[1], [0], [0], [1], [0, 0, 1, 1], [], []>} : vector<32x448xbf16>, vector<448x128xbf16>, vector<32x128xf32> -> vector<32x128xf32>
    %c0_232 = arith.constant 0 : index
    %c0_233 = arith.constant 0 : index
    %358 = vector.load %arg5[%c0_232, %c0_233] : memref<1x128xf32, #tpu.memory_space<vmem>>, vector<1x128xf32>
    %359 = vector.broadcast %358 : vector<1x128xf32> to vector<32x128xf32>
    %360 = arith.addf %357, %359 : vector<32x128xf32>
    %cst_234 = arith.constant 0.000000e+00 : f32
    %361 = vector.broadcast %cst_234 : f32 to vector<32x128xf32>
    %362 = arith.maximumf %360, %361 : vector<32x128xf32>
    %363 = arith.truncf %362 : vector<32x128xf32> to vector<32x128xbf16>
    %364 = tpu.concatenate %193, %202, %211, %220, %229, %238, %247 in 1 : vector<32x64xbf16>, vector<32x64xbf16>, vector<32x64xbf16>, vector<32x64xbf16>, vector<32x64xbf16>, vector<32x64xbf16>, vector<32x64xbf16> -> vector<32x448xbf16>
    %cst_235 = arith.constant dense<0.000000e+00> : vector<32x128xf32>
    %365 = tpu.matmul %364, %1, %cst_235 {dimension_numbers = #tpu.dot_dimension_numbers<[1], [0], [0], [1], [0, 0, 1, 1], [], []>} : vector<32x448xbf16>, vector<448x128xbf16>, vector<32x128xf32> -> vector<32x128xf32>
    %c0_236 = arith.constant 0 : index
    %c0_237 = arith.constant 0 : index
    %366 = vector.load %arg5[%c0_236, %c0_237] : memref<1x128xf32, #tpu.memory_space<vmem>>, vector<1x128xf32>
    %367 = vector.broadcast %366 : vector<1x128xf32> to vector<32x128xf32>
    %368 = arith.addf %365, %367 : vector<32x128xf32>
    %cst_238 = arith.constant 0.000000e+00 : f32
    %369 = vector.broadcast %cst_238 : f32 to vector<32x128xf32>
    %370 = arith.maximumf %368, %369 : vector<32x128xf32>
    %371 = arith.truncf %370 : vector<32x128xf32> to vector<32x128xbf16>
    %372 = tpu.concatenate %211, %220, %229, %238, %247, %256, %265 in 1 : vector<32x64xbf16>, vector<32x64xbf16>, vector<32x64xbf16>, vector<32x64xbf16>, vector<32x64xbf16>, vector<32x64xbf16>, vector<32x64xbf16> -> vector<32x448xbf16>
    %cst_239 = arith.constant dense<0.000000e+00> : vector<32x128xf32>
    %373 = tpu.matmul %372, %1, %cst_239 {dimension_numbers = #tpu.dot_dimension_numbers<[1], [0], [0], [1], [0, 0, 1, 1], [], []>} : vector<32x448xbf16>, vector<448x128xbf16>, vector<32x128xf32> -> vector<32x128xf32>
    %c0_240 = arith.constant 0 : index
    %c0_241 = arith.constant 0 : index
    %374 = vector.load %arg5[%c0_240, %c0_241] : memref<1x128xf32, #tpu.memory_space<vmem>>, vector<1x128xf32>
    %375 = vector.broadcast %374 : vector<1x128xf32> to vector<32x128xf32>
    %376 = arith.addf %373, %375 : vector<32x128xf32>
    %cst_242 = arith.constant 0.000000e+00 : f32
    %377 = vector.broadcast %cst_242 : f32 to vector<32x128xf32>
    %378 = arith.maximumf %376, %377 : vector<32x128xf32>
    %379 = arith.truncf %378 : vector<32x128xf32> to vector<32x128xbf16>
    %380 = tpu.concatenate %229, %238, %247, %256, %265, %274, %283 in 1 : vector<32x64xbf16>, vector<32x64xbf16>, vector<32x64xbf16>, vector<32x64xbf16>, vector<32x64xbf16>, vector<32x64xbf16>, vector<32x64xbf16> -> vector<32x448xbf16>
    %cst_243 = arith.constant dense<0.000000e+00> : vector<32x128xf32>
    %381 = tpu.matmul %380, %1, %cst_243 {dimension_numbers = #tpu.dot_dimension_numbers<[1], [0], [0], [1], [0, 0, 1, 1], [], []>} : vector<32x448xbf16>, vector<448x128xbf16>, vector<32x128xf32> -> vector<32x128xf32>
    %c0_244 = arith.constant 0 : index
    %c0_245 = arith.constant 0 : index
    %382 = vector.load %arg5[%c0_244, %c0_245] : memref<1x128xf32, #tpu.memory_space<vmem>>, vector<1x128xf32>
    %383 = vector.broadcast %382 : vector<1x128xf32> to vector<32x128xf32>
    %384 = arith.addf %381, %383 : vector<32x128xf32>
    %cst_246 = arith.constant 0.000000e+00 : f32
    %385 = vector.broadcast %cst_246 : f32 to vector<32x128xf32>
    %386 = arith.maximumf %384, %385 : vector<32x128xf32>
    %387 = arith.truncf %386 : vector<32x128xf32> to vector<32x128xbf16>
    %388 = tpu.concatenate %291, %299, %307, %315, %323 in 1 : vector<32x128xbf16>, vector<32x128xbf16>, vector<32x128xbf16>, vector<32x128xbf16>, vector<32x128xbf16> -> vector<32x640xbf16>
    %cst_247 = arith.constant dense<0.000000e+00> : vector<32x256xf32>
    %389 = tpu.matmul %388, %2, %cst_247 {dimension_numbers = #tpu.dot_dimension_numbers<[1], [0], [0], [1], [0, 0, 1, 1], [], []>} : vector<32x640xbf16>, vector<640x256xbf16>, vector<32x256xf32> -> vector<32x256xf32>
    %c0_248 = arith.constant 0 : index
    %c0_249 = arith.constant 0 : index
    %390 = vector.load %arg7[%c0_248, %c0_249] : memref<1x256xf32, #tpu.memory_space<vmem>>, vector<1x256xf32>
    %391 = vector.broadcast %390 : vector<1x256xf32> to vector<32x256xf32>
    %392 = arith.addf %389, %391 : vector<32x256xf32>
    %cst_250 = arith.constant 0.000000e+00 : f32
    %393 = vector.broadcast %cst_250 : f32 to vector<32x256xf32>
    %394 = arith.maximumf %392, %393 : vector<32x256xf32>
    %395 = arith.truncf %394 : vector<32x256xf32> to vector<32x256xbf16>
    %396 = tpu.concatenate %299, %307, %315, %323, %331 in 1 : vector<32x128xbf16>, vector<32x128xbf16>, vector<32x128xbf16>, vector<32x128xbf16>, vector<32x128xbf16> -> vector<32x640xbf16>
    %cst_251 = arith.constant dense<0.000000e+00> : vector<32x256xf32>
    %397 = tpu.matmul %396, %2, %cst_251 {dimension_numbers = #tpu.dot_dimension_numbers<[1], [0], [0], [1], [0, 0, 1, 1], [], []>} : vector<32x640xbf16>, vector<640x256xbf16>, vector<32x256xf32> -> vector<32x256xf32>
    %c0_252 = arith.constant 0 : index
    %c0_253 = arith.constant 0 : index
    %398 = vector.load %arg7[%c0_252, %c0_253] : memref<1x256xf32, #tpu.memory_space<vmem>>, vector<1x256xf32>
    %399 = vector.broadcast %398 : vector<1x256xf32> to vector<32x256xf32>
    %400 = arith.addf %397, %399 : vector<32x256xf32>
    %cst_254 = arith.constant 0.000000e+00 : f32
    %401 = vector.broadcast %cst_254 : f32 to vector<32x256xf32>
    %402 = arith.maximumf %400, %401 : vector<32x256xf32>
    %403 = arith.truncf %402 : vector<32x256xf32> to vector<32x256xbf16>
    %404 = tpu.concatenate %307, %315, %323, %331, %339 in 1 : vector<32x128xbf16>, vector<32x128xbf16>, vector<32x128xbf16>, vector<32x128xbf16>, vector<32x128xbf16> -> vector<32x640xbf16>
    %cst_255 = arith.constant dense<0.000000e+00> : vector<32x256xf32>
    %405 = tpu.matmul %404, %2, %cst_255 {dimension_numbers = #tpu.dot_dimension_numbers<[1], [0], [0], [1], [0, 0, 1, 1], [], []>} : vector<32x640xbf16>, vector<640x256xbf16>, vector<32x256xf32> -> vector<32x256xf32>
    %c0_256 = arith.constant 0 : index
    %c0_257 = arith.constant 0 : index
    %406 = vector.load %arg7[%c0_256, %c0_257] : memref<1x256xf32, #tpu.memory_space<vmem>>, vector<1x256xf32>
    %407 = vector.broadcast %406 : vector<1x256xf32> to vector<32x256xf32>
    %408 = arith.addf %405, %407 : vector<32x256xf32>
    %cst_258 = arith.constant 0.000000e+00 : f32
    %409 = vector.broadcast %cst_258 : f32 to vector<32x256xf32>
    %410 = arith.maximumf %408, %409 : vector<32x256xf32>
    %411 = arith.truncf %410 : vector<32x256xf32> to vector<32x256xbf16>
    %412 = tpu.concatenate %315, %323, %331, %339, %347 in 1 : vector<32x128xbf16>, vector<32x128xbf16>, vector<32x128xbf16>, vector<32x128xbf16>, vector<32x128xbf16> -> vector<32x640xbf16>
    %cst_259 = arith.constant dense<0.000000e+00> : vector<32x256xf32>
    %413 = tpu.matmul %412, %2, %cst_259 {dimension_numbers = #tpu.dot_dimension_numbers<[1], [0], [0], [1], [0, 0, 1, 1], [], []>} : vector<32x640xbf16>, vector<640x256xbf16>, vector<32x256xf32> -> vector<32x256xf32>
    %c0_260 = arith.constant 0 : index
    %c0_261 = arith.constant 0 : index
    %414 = vector.load %arg7[%c0_260, %c0_261] : memref<1x256xf32, #tpu.memory_space<vmem>>, vector<1x256xf32>
    %415 = vector.broadcast %414 : vector<1x256xf32> to vector<32x256xf32>
    %416 = arith.addf %413, %415 : vector<32x256xf32>
    %cst_262 = arith.constant 0.000000e+00 : f32
    %417 = vector.broadcast %cst_262 : f32 to vector<32x256xf32>
    %418 = arith.maximumf %416, %417 : vector<32x256xf32>
    %419 = arith.truncf %418 : vector<32x256xf32> to vector<32x256xbf16>
    %420 = tpu.concatenate %323, %331, %339, %347, %355 in 1 : vector<32x128xbf16>, vector<32x128xbf16>, vector<32x128xbf16>, vector<32x128xbf16>, vector<32x128xbf16> -> vector<32x640xbf16>
    %cst_263 = arith.constant dense<0.000000e+00> : vector<32x256xf32>
    %421 = tpu.matmul %420, %2, %cst_263 {dimension_numbers = #tpu.dot_dimension_numbers<[1], [0], [0], [1], [0, 0, 1, 1], [], []>} : vector<32x640xbf16>, vector<640x256xbf16>, vector<32x256xf32> -> vector<32x256xf32>
    %c0_264 = arith.constant 0 : index
    %c0_265 = arith.constant 0 : index
    %422 = vector.load %arg7[%c0_264, %c0_265] : memref<1x256xf32, #tpu.memory_space<vmem>>, vector<1x256xf32>
    %423 = vector.broadcast %422 : vector<1x256xf32> to vector<32x256xf32>
    %424 = arith.addf %421, %423 : vector<32x256xf32>
    %cst_266 = arith.constant 0.000000e+00 : f32
    %425 = vector.broadcast %cst_266 : f32 to vector<32x256xf32>
    %426 = arith.maximumf %424, %425 : vector<32x256xf32>
    %427 = arith.truncf %426 : vector<32x256xf32> to vector<32x256xbf16>
    %428 = tpu.concatenate %331, %339, %347, %355, %363 in 1 : vector<32x128xbf16>, vector<32x128xbf16>, vector<32x128xbf16>, vector<32x128xbf16>, vector<32x128xbf16> -> vector<32x640xbf16>
    %cst_267 = arith.constant dense<0.000000e+00> : vector<32x256xf32>
    %429 = tpu.matmul %428, %2, %cst_267 {dimension_numbers = #tpu.dot_dimension_numbers<[1], [0], [0], [1], [0, 0, 1, 1], [], []>} : vector<32x640xbf16>, vector<640x256xbf16>, vector<32x256xf32> -> vector<32x256xf32>
    %c0_268 = arith.constant 0 : index
    %c0_269 = arith.constant 0 : index
    %430 = vector.load %arg7[%c0_268, %c0_269] : memref<1x256xf32, #tpu.memory_space<vmem>>, vector<1x256xf32>
    %431 = vector.broadcast %430 : vector<1x256xf32> to vector<32x256xf32>
    %432 = arith.addf %429, %431 : vector<32x256xf32>
    %cst_270 = arith.constant 0.000000e+00 : f32
    %433 = vector.broadcast %cst_270 : f32 to vector<32x256xf32>
    %434 = arith.maximumf %432, %433 : vector<32x256xf32>
    %435 = arith.truncf %434 : vector<32x256xf32> to vector<32x256xbf16>
    %436 = tpu.concatenate %339, %347, %355, %363, %371 in 1 : vector<32x128xbf16>, vector<32x128xbf16>, vector<32x128xbf16>, vector<32x128xbf16>, vector<32x128xbf16> -> vector<32x640xbf16>
    %cst_271 = arith.constant dense<0.000000e+00> : vector<32x256xf32>
    %437 = tpu.matmul %436, %2, %cst_271 {dimension_numbers = #tpu.dot_dimension_numbers<[1], [0], [0], [1], [0, 0, 1, 1], [], []>} : vector<32x640xbf16>, vector<640x256xbf16>, vector<32x256xf32> -> vector<32x256xf32>
    %c0_272 = arith.constant 0 : index
    %c0_273 = arith.constant 0 : index
    %438 = vector.load %arg7[%c0_272, %c0_273] : memref<1x256xf32, #tpu.memory_space<vmem>>, vector<1x256xf32>
    %439 = vector.broadcast %438 : vector<1x256xf32> to vector<32x256xf32>
    %440 = arith.addf %437, %439 : vector<32x256xf32>
    %cst_274 = arith.constant 0.000000e+00 : f32
    %441 = vector.broadcast %cst_274 : f32 to vector<32x256xf32>
    %442 = arith.maximumf %440, %441 : vector<32x256xf32>
    %443 = arith.truncf %442 : vector<32x256xf32> to vector<32x256xbf16>
    %444 = tpu.concatenate %347, %355, %363, %371, %379 in 1 : vector<32x128xbf16>, vector<32x128xbf16>, vector<32x128xbf16>, vector<32x128xbf16>, vector<32x128xbf16> -> vector<32x640xbf16>
    %cst_275 = arith.constant dense<0.000000e+00> : vector<32x256xf32>
    %445 = tpu.matmul %444, %2, %cst_275 {dimension_numbers = #tpu.dot_dimension_numbers<[1], [0], [0], [1], [0, 0, 1, 1], [], []>} : vector<32x640xbf16>, vector<640x256xbf16>, vector<32x256xf32> -> vector<32x256xf32>
    %c0_276 = arith.constant 0 : index
    %c0_277 = arith.constant 0 : index
    %446 = vector.load %arg7[%c0_276, %c0_277] : memref<1x256xf32, #tpu.memory_space<vmem>>, vector<1x256xf32>
    %447 = vector.broadcast %446 : vector<1x256xf32> to vector<32x256xf32>
    %448 = arith.addf %445, %447 : vector<32x256xf32>
    %cst_278 = arith.constant 0.000000e+00 : f32
    %449 = vector.broadcast %cst_278 : f32 to vector<32x256xf32>
    %450 = arith.maximumf %448, %449 : vector<32x256xf32>
    %451 = arith.truncf %450 : vector<32x256xf32> to vector<32x256xbf16>
    %452 = tpu.concatenate %355, %363, %371, %379, %387 in 1 : vector<32x128xbf16>, vector<32x128xbf16>, vector<32x128xbf16>, vector<32x128xbf16>, vector<32x128xbf16> -> vector<32x640xbf16>
    %cst_279 = arith.constant dense<0.000000e+00> : vector<32x256xf32>
    %453 = tpu.matmul %452, %2, %cst_279 {dimension_numbers = #tpu.dot_dimension_numbers<[1], [0], [0], [1], [0, 0, 1, 1], [], []>} : vector<32x640xbf16>, vector<640x256xbf16>, vector<32x256xf32> -> vector<32x256xf32>
    %c0_280 = arith.constant 0 : index
    %c0_281 = arith.constant 0 : index
    %454 = vector.load %arg7[%c0_280, %c0_281] : memref<1x256xf32, #tpu.memory_space<vmem>>, vector<1x256xf32>
    %455 = vector.broadcast %454 : vector<1x256xf32> to vector<32x256xf32>
    %456 = arith.addf %453, %455 : vector<32x256xf32>
    %cst_282 = arith.constant 0.000000e+00 : f32
    %457 = vector.broadcast %cst_282 : f32 to vector<32x256xf32>
    %458 = arith.maximumf %456, %457 : vector<32x256xf32>
    %459 = arith.truncf %458 : vector<32x256xf32> to vector<32x256xbf16>
    %460 = tpu.concatenate %395, %403, %411, %419, %427, %435, %443, %451, %459 in 1 : vector<32x256xbf16>, vector<32x256xbf16>, vector<32x256xbf16>, vector<32x256xbf16>, vector<32x256xbf16>, vector<32x256xbf16>, vector<32x256xbf16>, vector<32x256xbf16>, vector<32x256xbf16> -> vector<32x2304xbf16>
    %cst_283 = arith.constant dense<0.000000e+00> : vector<32x128xf32>
    %461 = tpu.matmul %460, %3, %cst_283 {dimension_numbers = #tpu.dot_dimension_numbers<[1], [0], [0], [1], [0, 0, 1, 1], [], []>} : vector<32x2304xbf16>, vector<2304x128xbf16>, vector<32x128xf32> -> vector<32x128xf32>
    %c0_284 = arith.constant 0 : index
    %c0_285 = arith.constant 0 : index
    %462 = vector.load %arg9[%c0_284, %c0_285] : memref<1x128xf32, #tpu.memory_space<vmem>>, vector<1x128xf32>
    %463 = vector.broadcast %462 : vector<1x128xf32> to vector<32x128xf32>
    %464 = arith.addf %461, %463 : vector<32x128xf32>
    %cst_286 = arith.constant 0.000000e+00 : f32
    %465 = vector.broadcast %cst_286 : f32 to vector<32x128xf32>
    %466 = arith.maximumf %464, %465 : vector<32x128xf32>
    %467 = arith.truncf %466 : vector<32x128xf32> to vector<32x128xbf16>
    %cst_287 = arith.constant dense<0.000000e+00> : vector<32x128xf32>
    %468 = tpu.matmul %467, %4, %cst_287 {dimension_numbers = #tpu.dot_dimension_numbers<[1], [0], [0], [1], [0, 0, 1, 1], [], []>} : vector<32x128xbf16>, vector<128x128xbf16>, vector<32x128xf32> -> vector<32x128xf32>
    %c0_288 = arith.constant 0 : index
    %c0_289 = arith.constant 0 : index
    %469 = vector.load %arg11[%c0_288, %c0_289] : memref<1x128xf32, #tpu.memory_space<vmem>>, vector<1x128xf32>
    %470 = vector.broadcast %469 : vector<1x128xf32> to vector<32x128xf32>
    %471 = arith.addf %468, %470 : vector<32x128xf32>
    %c0_290 = arith.constant 0 : index
    %c0_291 = arith.constant 0 : index
    %472 = vector.load %arg12[%c0_290, %c0_291] : memref<32x128xf32, #tpu.memory_space<vmem>>, vector<32x128xf32>
    tpu.vector_store %arg12[%c0_290, %c0_291], %471 {strides = array<i32>} : memref<32x128xf32, #tpu.memory_space<vmem>>, vector<32x128xf32>,
    return
  }
  func.func @transform_0(%arg0: i32) -> (i32, i32, i32) {
    %c0_i32 = arith.constant 0 : i32
    %c0_i32_0 = arith.constant 0 : i32
    %c0_i32_1 = arith.constant 0 : i32
    return %c0_i32, %arg0, %c0_i32_0 : i32, i32, i32
  }
  func.func @transform_1(%arg0: i32) -> (i32, i32) {
    %c0_i32 = arith.constant 0 : i32
    %c0_i32_0 = arith.constant 0 : i32
    %c0_i32_1 = arith.constant 0 : i32
    return %c0_i32, %c0_i32_0 : i32, i32
  }
  func.func @transform_2(%arg0: i32) -> (i32, i32) {
    %c0_i32 = arith.constant 0 : i32
    %c0_i32_0 = arith.constant 0 : i32
    %c0_i32_1 = arith.constant 0 : i32
    return %c0_i32, %c0_i32_0 : i32, i32
  }
  func.func @transform_3(%arg0: i32) -> (i32, i32) {
    %c0_i32 = arith.constant 0 : i32
    %c0_i32_0 = arith.constant 0 : i32
    %c0_i32_1 = arith.constant 0 : i32
    return %c0_i32, %c0_i32_0 : i32, i32
  }
  func.func @transform_4(%arg0: i32) -> (i32, i32) {
    %c0_i32 = arith.constant 0 : i32
    %c0_i32_0 = arith.constant 0 : i32
    %c0_i32_1 = arith.constant 0 : i32
    return %c0_i32, %c0_i32_0 : i32, i32
  }
  func.func @transform_5(%arg0: i32) -> (i32, i32) {
    %c0_i32 = arith.constant 0 : i32
    %c0_i32_0 = arith.constant 0 : i32
    %c0_i32_1 = arith.constant 0 : i32
    return %c0_i32, %c0_i32_0 : i32, i32
  }
  func.func @transform_6(%arg0: i32) -> (i32, i32) {
    %c0_i32 = arith.constant 0 : i32
    %c0_i32_0 = arith.constant 0 : i32
    %c0_i32_1 = arith.constant 0 : i32
    return %c0_i32, %c0_i32_0 : i32, i32
  }
  func.func @transform_7(%arg0: i32) -> (i32, i32) {
    %c0_i32 = arith.constant 0 : i32
    %c0_i32_0 = arith.constant 0 : i32
    %c0_i32_1 = arith.constant 0 : i32
    return %c0_i32, %c0_i32_0 : i32, i32
  }
  func.func @transform_8(%arg0: i32) -> (i32, i32) {
    %c0_i32 = arith.constant 0 : i32
    %c0_i32_0 = arith.constant 0 : i32
    %c0_i32_1 = arith.constant 0 : i32
    return %c0_i32, %c0_i32_0 : i32, i32
  }
  func.func @transform_9(%arg0: i32) -> (i32, i32) {
    %c0_i32 = arith.constant 0 : i32
    %c0_i32_0 = arith.constant 0 : i32
    %c0_i32_1 = arith.constant 0 : i32
    return %c0_i32, %c0_i32_0 : i32, i32
  }
  func.func @transform_10(%arg0: i32) -> (i32, i32) {
    %c0_i32 = arith.constant 0 : i32
    %c0_i32_0 = arith.constant 0 : i32
    %c0_i32_1 = arith.constant 0 : i32
    return %c0_i32, %c0_i32_0 : i32, i32
  }
  func.func @transform_11(%arg0: i32) -> (i32, i32) {
    %c0_i32 = arith.constant 0 : i32
    %c0_i32_0 = arith.constant 0 : i32
    return %arg0, %c0_i32 : i32, i32
  }
}

</mosaic_0001>

<bundles_post_ra>
// kernel: shallow_cnn_forward.1
= control target key start
LH: loop header
LB: loop body
LE: loop exit
PB: predicated region body
PF: predicated region fallthrough
CT: control target
= control target key end

     0   :  { %16 = vsyncpa [#allocation3], 0  ;;  %s10533_s17 = smov [#allocation2]   ;;  %s14440_s0 = inlined_call_operand.vmem [shape: bf16[31,32,40], index: 0, kind: input, shape index: {}]   ;;  %s14441_s1 = inlined_call_operand.vmem [shape: bf16[40,64], index: 1, kind: input, shape index: {}]   ;;  %s14442_s2 = inlined_call_operand.vmem [shape: f32[1,64], index: 2, kind: input, shape index: {}]   ;;  %s14443_s3 = inlined_call_operand.vmem [shape: bf16[448,128], index: 3, kind: input, shape index: {}]   ;;  %s14444_s4 = inlined_call_operand.vmem [shape: f32[1,128], index: 4, kind: input, shape index: {}]   ;;  %s14445_s5 = inlined_call_operand.hbm [shape: bf16[640,256], index: 5, kind: input, shape index: {}]   ;;  %s14446_s6 = inlined_call_operand.vmem [shape: f32[1,256], index: 6, kind: input, shape index: {}]   ;;  %s14447_s7 = inlined_call_operand.vmem [shape: bf16[2304,128], index: 7, kind: input, shape index: {}]   ;;  %s14448_s8 = inlined_call_operand.vmem [shape: f32[1,128], index: 8, kind: input, shape index: {}]   ;;  %s14449_s9 = inlined_call_operand.vmem [shape: bf16[128,128], index: 9, kind: input, shape index: {}]   ;;  %s14450_s10 = inlined_call_operand.vmem [shape: f32[1,128], index: 10, kind: input, shape index: {}]   ;;  %s14451_s11 = inlined_call_operand.vmem [shape: f32[32,128], index: 11, kind: output, shape index: {}]  }
   0x1   :  { %s32_s18 = sshll.u32 %s10533_s17, 4  ;;  %s10509_s21 = scalar_lea.hbm %s14445_s5, 10240  ;;  %s33_s18 = int_to_ptr.vmem [resolvable:$true] %s32_s18 }
   0x2   :  { %p10510_p0 = scmp.ne.s32.totalorder %s14445_s5, %s10509_s21  ;;  %p10513_p1 = scmp.lt.u32.totalorder %s10509_s21, %s14445_s5 }
   0x4   :  { %p10515_p2 = pnand %p10513_p1, %p10510_p0 }
   0x6   :  { %10518 = shalt.err (!%p10515_p2)
}
   0x7   :  { %s10519_s26 = scalar_lea.vmem %s33_s18, 10240  ;;  %p10524_p4 = scmp.lt.s32.totalorder %s33_s18, %s33_s18 }
   0x8   :  { %p10520_p3 = scmp.ne.s32.totalorder %s33_s18, %s10519_s26  ;;  %p10525_p5 = scmp.lt.s32.totalorder %s10519_s26, %s10519_s26 }
   0xa   :  { %p10526_p6 = por %p10525_p5, %p10524_p4 }
   0xc   :  { %p10527_p7 = pnand %p10526_p6, %p10520_p3 }
   0xe   :  { %10530 = shalt.err (!%p10527_p7)
}
   0xf   :  { %s10534_s27 = smov 128   ;;  %s10535_s28 = smov 8  }
  0x10   :  { %38 = dma.hbm_to_vmem [thread:$0]  %s14445_s5, 10240, %s33_s18, [#allocation3], %s10534_s27, %s10534_s27, %s10535_s28  }
  0x11   :  { %10531 = dma.done.wait [#allocation3], 10240  }
  0x12   :  { %10532 = vsyncadd [#allocation3], 4294957056  ;;  %v10613_v0 = vld [vmem:[%s14441_s1] sm:$0xff]   ;;  %v10618_v1 = vld [vmem:[%s14441_s1 + $0x8] sm:$0xff]   ;;  %vm534_vm0 = vcmask 326656   ;;  %vm541_vm1 = vcmask 1043456  }
  0x13   :  { %9382 = vmatprep.subr.bf16.mxu1 %v10613_v0  ;;  %9372 = vmatprep.subr.bf16.mxu0 %v10613_v0  ;;  %v9957_v2 = vld [vmem:[%s14440_s0 + $0x10] sm:$0xff]   ;;  %v9958_v5 = vld [vmem:[%s14440_s0 + $0x18] sm:$0xff]   ;;  %v9973_v7 = vld [vmem:[%s14440_s0] sm:$0xff]   ;;  %s10537_s27 = smov 64   ;;  %vm2898_vm2 = vcmask 523264  }
  0x14   :  { %9383 = vmatpush3.bf16.msra.mxu1 %v10613_v0  ;;  %9373 = vmatpush3.bf16.msra.mxu0 %v10613_v0  ;;  %v10631_v3 = vld [vmem:[%s14441_s1 + $0x10] ss:$0 sps:$4 sm:$0xff]   ;;  %v9974_v8 = vld [vmem:[%s14440_s0 + $0x8] sm:$0xff]   ;;  %v9960_v9 = vld [vmem:[%s14440_s0 + $0x38] sm:$0xff]  }
  0x15   :  { %9384 = vmatprep.subr.bf16.mxu1 %v10618_v1  ;;  %9374 = vmatprep.subr.bf16.mxu0 %v10618_v1  ;;  %v10641_v4 = vsel %vm541_vm1, %v10631_v3, 0  ;;  %v9959_v6 = vld [vmem:[%s14440_s0 + $0x30] sm:$0xff]   ;;  %v9977_v11 = vld [vmem:[%s14440_s0 + $0x20] sm:$0xff]   ;;  %v9978_v12 = vld [vmem:[%s14440_s0 + $0x28] sm:$0xff]  }
  0x16   :  { %9388 = vmatprep.mubr.msk.bf16.mxu1 %vm534_vm0, %v9957_v2  ;;  %9378 = vmatprep.mubr.msk.bf16.mxu0 %vm534_vm0, %v9973_v7  ;;  %v9961_v10 = vld [vmem:[%s14440_s0 + $0x50] sm:$0xff]   ;;  %v9981_v13 = vld [vmem:[%s14440_s0 + $0x40] sm:$0xff]   ;;  %v9962_v14 = vld [vmem:[%s14440_s0 + $0x58] sm:$0xff]   ;;  %v14452_v7 = vmov 0  }
  0x17   :  { %v9963_v15 = vld [vmem:[%s14440_s0 + $0x70] sm:$0xff]   ;;  %v9982_v16 = vld [vmem:[%s14440_s0 + $0x48] sm:$0xff]   ;;  %v9984_v17 = vld [vmem:[%s14440_s0 + $0x60] sm:$0xff]  }
  0x18   :  { %9385 = vmatpush3.bf16.msra.mxu1 %v10618_v1  ;;  %9375 = vmatpush3.bf16.msra.mxu0 %v10618_v1  ;;  %v9964_v18 = vld [vmem:[%s14440_s0 + $0x78] sm:$0xff]   ;;  %v9965_v19 = vld [vmem:[%s14440_s0 + $0x90] sm:$0xff]   ;;  %v9986_v20 = vld [vmem:[%s14440_s0 + $0x68] sm:$0xff]  }
  0x19   :  { %9919 = vmatprep.subr.msk.bf16.mxu1 %vm541_vm1, %v10631_v3  ;;  %9918 = vmatprep.subr.msk.bf16.mxu0 %vm541_vm1, %v10631_v3  ;;  %v9993_v21 = vld [vmem:[%s14440_s0 + $0x80] sm:$0xff]   ;;  %v9966_v22 = vld [vmem:[%s14440_s0 + $0x98] sm:$0xff]   ;;  %v9967_v23 = vld [vmem:[%s14440_s0 + $0xb0] sm:$0xff]  }
  0x1a   :  { %v9994_v24 = vld [vmem:[%s14440_s0 + $0x88] sm:$0xff]   ;;  %v9997_v25 = vld [vmem:[%s14440_s0 + $0xa0] sm:$0xff]   ;;  %v9968_v26 = vld [vmem:[%s14440_s0 + $0xb8] sm:$0xff]  }
  0x1b   :  { %v9969_v27 = vld [vmem:[%s14440_s0 + $0xd0] sm:$0xff]   ;;  %v9998_v28 = vld [vmem:[%s14440_s0 + $0xa8] sm:$0xff]   ;;  %v9999_v29 = vld [vmem:[%s14440_s0 + $0xc0] sm:$0xff]  }
  0x1c   :  { %9387 = vmatpush3.bf16.msra.mxu1 %v10641_v4  ;;  %9377 = vmatpush3.bf16.msra.mxu0 %v10641_v4  ;;  %v9970_v30 = vld [vmem:[%s14440_s0 + $0xd8] sm:$0xff]   ;;  %v9971_v31 = vld [vmem:[%s14440_s0 + $0xf0] sm:$0xff]   ;;  %v10000_v32 = vld [vmem:[%s14440_s0 + $0xc8] sm:$0xff]  }
  0x1d   :  { %9402 = vmatprep.subr.bf16.mxu1 %v10613_v0  ;;  %9392 = vmatprep.subr.bf16.mxu0 %v10613_v0  ;;  %v9972_v33 = vld [vmem:[%s14440_s0 + $0xf8] sm:$0xff]   ;;  %v9975_v34 = vld [vmem:[%s14440_s0 + $0x110] sm:$0xff]   ;;  %v10001_v35 = vld [vmem:[%s14440_s0 + $0xe0] sm:$0xff]  }
  0x1e   :  { %v10002_v36 = vld [vmem:[%s14440_s0 + $0xe8] sm:$0xff]   ;;  %v9976_v37 = vld [vmem:[%s14440_s0 + $0x118] sm:$0xff]   ;;  %v9979_v38 = vld [vmem:[%s14440_s0 + $0x130] sm:$0xff]  }
  0x1f   :  { %9389 = vmatmul.mubr.msk.bf16.vlgmr.msra.gmra.mrb[0].mxu1 %vm534_vm0, %v9958_v5  ;;  %9379 = vmatmul.mubr.msk.bf16.vlgmr.msra.gmra.mrb[0].mxu0 %vm534_vm0, %v9974_v8  ;;  %v10003_v39 = vld [vmem:[%s14440_s0 + $0x100] sm:$0xff]   ;;  %v10004_v40 = vld [vmem:[%s14440_s0 + $0x108] sm:$0xff]   ;;  %v9980_v41 = vld [vmem:[%s14440_s0 + $0x138] sm:$0xff]  }
  0x20   :  { %9403 = vmatpush3.bf16.msra.mxu1 %v10613_v0  ;;  %9408 = vmatprep.mubr.msk.bf16.mxu1 %vm534_vm0, %v9959_v6  ;;  %v9983_v42 = vld [vmem:[%s14440_s0 + $0x150] sm:$0xff]   ;;  %v10005_v43 = vld [vmem:[%s14440_s0 + $0x120] sm:$0xff]   ;;  %v10934_v45 = vld [vmem:[%s14441_s1 + $0x8] sm:$0xff]  }
  0x21   :  { %9404 = vmatprep.subr.bf16.mxu1 %v10618_v1  ;;  %9393 = vmatpush3.bf16.msra.mxu0 %v10613_v0  ;;  %v10927_v44 = vld [vmem:[%s14441_s1] sm:$0xff]   ;;  %v10006_v46 = vld [vmem:[%s14440_s0 + $0x128] sm:$0xff]   ;;  %v10948_v47 = vld [vmem:[%s14441_s1 + $0x10] ss:$0 sps:$4 sm:$0xff]  }
  0x22   :  { %9394 = vmatprep.subr.bf16.mxu0 %v10618_v1  ;;  %9398 = vmatprep.mubr.msk.bf16.mxu0 %vm534_vm0, %v9977_v11  ;;  %v9985_v48 = vld [vmem:[%s14440_s0 + $0x158] sm:$0xff]   ;;  %v9987_v49 = vld [vmem:[%s14440_s0 + $0x170] sm:$0xff]   ;;  %v10007_v50 = vld [vmem:[%s14440_s0 + $0x140] sm:$0xff]  }
  0x23   :  { %v10008_v51 = vld [vmem:[%s14440_s0 + $0x148] sm:$0xff]   ;;  %v9988_v52 = vld [vmem:[%s14440_s0 + $0x178] sm:$0xff]   ;;  %v9989_v53 = vld [vmem:[%s14440_s0 + $0x190] sm:$0xff]  }
  0x24   :  { %9405 = vmatpush3.bf16.msra.mxu1 %v10618_v1  ;;  %v10009_v54 = vld [vmem:[%s14440_s0 + $0x160] sm:$0xff]   ;;  %v10010_v55 = vld [vmem:[%s14440_s0 + $0x168] sm:$0xff]   ;;  %v9990_v56 = vld [vmem:[%s14440_s0 + $0x198] sm:$0xff]  }
  0x25   :  { %9921 = vmatprep.subr.msk.bf16.mxu1 %vm541_vm1, %v10631_v3  ;;  %9395 = vmatpush3.bf16.msra.mxu0 %v10618_v1  ;;  %v9991_v57 = vld [vmem:[%s14440_s0 + $0x1b0] sm:$0xff]   ;;  %v10011_v58 = vld [vmem:[%s14440_s0 + $0x180] sm:$0xff]   ;;  %v10012_v59 = vld [vmem:[%s14440_s0 + $0x188] sm:$0xff]  }
  0x26   :  { %9920 = vmatprep.subr.msk.bf16.mxu0 %vm541_vm1, %v10631_v3  ;;  %v10013_v60 = vld [vmem:[%s14440_s0 + $0x1a0] sm:$0xff]   ;;  %v9992_v61 = vld [vmem:[%s14440_s0 + $0x1b8] sm:$0xff]   ;;  %v9995_v62 = vld [vmem:[%s14440_s0 + $0x1d0] sm:$0xff]  }
  0x27   :  { %v10014_v63 = vld [vmem:[%s14440_s0 + $0x1a8] sm:$0xff]   ;;  %v11110_v6 = vld [vmem:[%s14443_s3 + $0x80] sm:$0xff]  }
  0x28   :  { %9407 = vmatpush3.bf16.msra.mxu1 %v10641_v4  ;;  %v10016_v2 = vld [vmem:[%s14440_s0 + $0x1c8] sm:$0xff]  }
  0x29   :  { %9422 = vmatprep.subr.bf16.mxu1 %v10613_v0  ;;  %9397 = vmatpush3.bf16.msra.mxu0 %v10641_v4  ;;  %v10018_v5 = vld [vmem:[%s14440_s0 + $0x1e8] sm:$0xff]  }
  0x2a   :  { %9412 = vmatprep.subr.bf16.mxu0 %v10613_v0  ;;  %v11118_v8 = vld [vmem:[%s14443_s3 + $0x88] sm:$0xff]  }
  0x2b   :  { %9409 = vmatmul.mubr.msk.bf16.vlgmr.msra.gmra.mrb[4].mxu1 %vm534_vm0, %v9960_v9  ;;  %v11125_v9 = vld [vmem:[%s14443_s3 + $0x90] sm:$0xff]   ;;  %v11147_v11 = vld [vmem:[%s14443_s3 + $0xa8] sm:$0xff]  }
  0x2c   :  { %9423 = vmatpush3.bf16.msra.mxu1 %v10613_v0  ;;  %9428 = vmatprep.mubr.msk.bf16.mxu1 %vm534_vm0, %v9961_v10  ;;  %v11140_v10 = vld [vmem:[%s14443_s3 + $0xa0] sm:$0xff]  }
  0x2d   :  { %9424 = vmatprep.subr.bf16.mxu1 %v10618_v1  ;;  %9399 = vmatmul.mubr.msk.bf16.vlgmr.msra.gmra.mrb[4].mxu0 %vm534_vm0, %v9978_v12  ;;  %v11153_v12 = vld [vmem:[%s14442_s2] ss:$0 sm:$0xff] }
  0x2e   :  { %9413 = vmatpush3.bf16.msra.mxu0 %v10613_v0  ;;  %9418 = vmatprep.mubr.msk.bf16.mxu0 %vm534_vm0, %v9981_v13  ;;  %v10025_v13 = vld [vmem:[%s14443_s3 + $0xb0] sm:$0xff]  }
  0x2f   :  { %9414 = vmatprep.subr.bf16.mxu0 %v10618_v1 }
  0x30   :  { %9425 = vmatpush3.bf16.msra.mxu1 %v10618_v1 }
  0x31   :  { %9923 = vmatprep.subr.msk.bf16.mxu1 %vm541_vm1, %v10631_v3 }
  0x32   :  { %9415 = vmatpush3.bf16.msra.mxu0 %v10618_v1 }
  0x33   :  { %9922 = vmatprep.subr.msk.bf16.mxu0 %vm541_vm1, %v10631_v3 }
  0x34   :  { %9427 = vmatpush3.bf16.msra.mxu1 %v10641_v4 }
  0x35   :  { %9442 = vmatprep.subr.bf16.mxu1 %v10613_v0 }
  0x36   :  { %9417 = vmatpush3.bf16.msra.mxu0 %v10641_v4 }
  0x37   :  { %9429 = vmatmul.mubr.msk.bf16.vlgmr.msra.gmra.mrb[8].mxu1 %vm534_vm0, %v9962_v14  ;;  %9432 = vmatprep.subr.bf16.mxu0 %v10613_v0 }
  0x38   :  { %9443 = vmatpush3.bf16.msra.mxu1 %v10613_v0  ;;  %9448 = vmatprep.mubr.msk.bf16.mxu1 %vm534_vm0, %v9963_v15  ;;  %v11163_v15 = vld [vmem:[%s14443_s3 + $0x40] sm:$0xff]  }
  0x39   :  { %9444 = vmatprep.subr.bf16.mxu1 %v10618_v1  ;;  %9419 = vmatmul.mubr.msk.bf16.vlgmr.msra.gmra.mrb[8].mxu0 %vm534_vm0, %v9982_v16 }
  0x3a   :  { %9433 = vmatpush3.bf16.msra.mxu0 %v10613_v0  ;;  %9438 = vmatprep.mubr.msk.bf16.mxu0 %vm534_vm0, %v9984_v17 }
  0x3b   :  { %9434 = vmatprep.subr.bf16.mxu0 %v10618_v1 }
  0x3c   :  { %9445 = vmatpush3.bf16.msra.mxu1 %v10618_v1 }
  0x3d   :  { %9925 = vmatprep.subr.msk.bf16.mxu1 %vm541_vm1, %v10631_v3 }
  0x3e   :  { %9435 = vmatpush3.bf16.msra.mxu0 %v10618_v1 }
  0x3f   :  { %9924 = vmatprep.subr.msk.bf16.mxu0 %vm541_vm1, %v10631_v3 }
  0x40   :  { %9447 = vmatpush3.bf16.msra.mxu1 %v10641_v4 }
  0x41   :  { %9462 = vmatprep.subr.bf16.mxu1 %v10613_v0 }
  0x42   :  { %9437 = vmatpush3.bf16.msra.mxu0 %v10641_v4 }
  0x43   :  { %9449 = vmatmul.mubr.msk.bf16.vlgmr.msra.gmra.mrb[12].mxu1 %vm534_vm0, %v9964_v18  ;;  %9452 = vmatprep.subr.bf16.mxu0 %v10613_v0 }
  0x44   :  { %9463 = vmatpush3.bf16.msra.mxu1 %v10613_v0  ;;  %9468 = vmatprep.mubr.msk.bf16.mxu1 %vm534_vm0, %v9965_v19 }
  0x45   :  { %9464 = vmatprep.subr.bf16.mxu1 %v10618_v1  ;;  %9439 = vmatmul.mubr.msk.bf16.vlgmr.msra.gmra.mrb[12].mxu0 %vm534_vm0, %v9986_v20  ;;  %v10031_v20 = vld [vmem:[%s14443_s3] sm:$0xff]  }
  0x46   :  { %9453 = vmatpush3.bf16.msra.mxu0 %v10613_v0  ;;  %9458 = vmatprep.mubr.msk.bf16.mxu0 %vm534_vm0, %v9993_v21 }
  0x47   :  { %9454 = vmatprep.subr.bf16.mxu0 %v10618_v1 }
  0x48   :  { %9465 = vmatpush3.bf16.msra.mxu1 %v10618_v1 }
  0x49   :  { %9927 = vmatprep.subr.msk.bf16.mxu1 %vm541_vm1, %v10631_v3 }
  0x4a   :  { %9455 = vmatpush3.bf16.msra.mxu0 %v10618_v1 }
  0x4b   :  { %9926 = vmatprep.subr.msk.bf16.mxu0 %vm541_vm1, %v10631_v3 }
  0x4c   :  { %9467 = vmatpush3.bf16.msra.mxu1 %v10641_v4 }
  0x4d   :  { %9482 = vmatprep.subr.bf16.mxu1 %v10613_v0 }
  0x4e   :  { %9457 = vmatpush3.bf16.msra.mxu0 %v10641_v4 }
  0x4f   :  { %9469 = vmatmul.mubr.msk.bf16.vlgmr.msra.gmra.mrb[16].mxu1 %vm534_vm0, %v9966_v22  ;;  %9472 = vmatprep.subr.bf16.mxu0 %v10613_v0 }
  0x50   :  { %9483 = vmatpush3.bf16.msra.mxu1 %v10613_v0  ;;  %9488 = vmatprep.mubr.msk.bf16.mxu1 %vm534_vm0, %v9967_v23 }
  0x51   :  { %9484 = vmatprep.subr.bf16.mxu1 %v10618_v1  ;;  %9459 = vmatmul.mubr.msk.bf16.vlgmr.msra.gmra.mrb[16].mxu0 %vm534_vm0, %v9994_v24  ;;  %v10026_v24 = vld [vmem:[%s14443_s3 + $0xb8] sm:$0xff]  }
  0x52   :  { %9473 = vmatpush3.bf16.msra.mxu0 %v10613_v0  ;;  %9478 = vmatprep.mubr.msk.bf16.mxu0 %vm534_vm0, %v9997_v25 }
  0x53   :  { %9474 = vmatprep.subr.bf16.mxu0 %v10618_v1 }
  0x54   :  { %9485 = vmatpush3.bf16.msra.mxu1 %v10618_v1 }
  0x55   :  { %9929 = vmatprep.subr.msk.bf16.mxu1 %vm541_vm1, %v10631_v3 }
  0x56   :  { %9475 = vmatpush3.bf16.msra.mxu0 %v10618_v1 }
  0x57   :  { %9928 = vmatprep.subr.msk.bf16.mxu0 %vm541_vm1, %v10631_v3 }
  0x58   :  { %9487 = vmatpush3.bf16.msra.mxu1 %v10641_v4 }
  0x59   :  { %9502 = vmatprep.subr.bf16.mxu1 %v10613_v0 }
  0x5a   :  { %9477 = vmatpush3.bf16.msra.mxu0 %v10641_v4 }
  0x5b   :  { %9489 = vmatmul.mubr.msk.bf16.vlgmr.msra.gmra.mrb[20].mxu1 %vm534_vm0, %v9968_v26  ;;  %9492 = vmatprep.subr.bf16.mxu0 %v10613_v0 }
  0x5c   :  { %9503 = vmatpush3.bf16.msra.mxu1 %v10613_v0  ;;  %9508 = vmatprep.mubr.msk.bf16.mxu1 %vm534_vm0, %v9969_v27 }
  0x5d   :  { %9504 = vmatprep.subr.bf16.mxu1 %v10618_v1  ;;  %9479 = vmatmul.mubr.msk.bf16.vlgmr.msra.gmra.mrb[20].mxu0 %vm534_vm0, %v9998_v28 }
  0x5e   :  { %9493 = vmatpush3.bf16.msra.mxu0 %v10613_v0  ;;  %9498 = vmatprep.mubr.msk.bf16.mxu0 %vm534_vm0, %v9999_v29 }
  0x5f   :  { %9494 = vmatprep.subr.bf16.mxu0 %v10618_v1 }
  0x60   :  { %9505 = vmatpush3.bf16.msra.mxu1 %v10618_v1 }
  0x61   :  { %9931 = vmatprep.subr.msk.bf16.mxu1 %vm541_vm1, %v10631_v3 }
  0x62   :  { %9495 = vmatpush3.bf16.msra.mxu0 %v10618_v1 }
  0x63   :  { %9930 = vmatprep.subr.msk.bf16.mxu0 %vm541_vm1, %v10631_v3 }
  0x64   :  { %9507 = vmatpush3.bf16.msra.mxu1 %v10641_v4 }
  0x65   :  { %9522 = vmatprep.subr.bf16.mxu1 %v10613_v0 }
  0x66   :  { %9497 = vmatpush3.bf16.msra.mxu0 %v10641_v4 }
  0x67   :  { %9509 = vmatmul.mubr.msk.bf16.vlgmr.msra.gmra.mrb[24].mxu1 %vm534_vm0, %v9970_v30  ;;  %9512 = vmatprep.subr.bf16.mxu0 %v10613_v0  ;;  %v10027_v30 = vld [vmem:[%s14443_s3 + $0xc0] sm:$0xff]  }
  0x68   :  { %9523 = vmatpush3.bf16.msra.mxu1 %v10613_v0  ;;  %9528 = vmatprep.mubr.msk.bf16.mxu1 %vm534_vm0, %v9971_v31 }
  0x69   :  { %9524 = vmatprep.subr.bf16.mxu1 %v10618_v1  ;;  %9499 = vmatmul.mubr.msk.bf16.vlgmr.msra.gmra.mrb[24].mxu0 %vm534_vm0, %v10000_v32 }
  0x6a   :  { %9513 = vmatpush3.bf16.msra.mxu0 %v10613_v0  ;;  %9518 = vmatprep.mubr.msk.bf16.mxu0 %vm534_vm0, %v10001_v35 }
  0x6b   :  { %9514 = vmatprep.subr.bf16.mxu0 %v10618_v1 }
  0x6c   :  { %9525 = vmatpush3.bf16.msra.mxu1 %v10618_v1 }
  0x6d   :  { %9933 = vmatprep.subr.msk.bf16.mxu1 %vm541_vm1, %v10631_v3 }
  0x6e   :  { %9515 = vmatpush3.bf16.msra.mxu0 %v10618_v1 }
  0x6f   :  { %9932 = vmatprep.subr.msk.bf16.mxu0 %vm541_vm1, %v10631_v3 }
  0x70   :  { %9527 = vmatpush3.bf16.msra.mxu1 %v10641_v4 }
  0x71   :  { %9542 = vmatprep.subr.bf16.mxu1 %v10613_v0 }
  0x72   :  { %9517 = vmatpush3.bf16.msra.mxu0 %v10641_v4 }
  0x73   :  { %9529 = vmatmul.mubr.msk.bf16.vlgmr.msra.gmra.mrb[28].mxu1 %vm534_vm0, %v9972_v33  ;;  %9532 = vmatprep.subr.bf16.mxu0 %v10613_v0 }
  0x74   :  { %9543 = vmatpush3.bf16.msra.mxu1 %v10613_v0  ;;  %9548 = vmatprep.mubr.msk.bf16.mxu1 %vm534_vm0, %v9975_v34 }
  0x75   :  { %9544 = vmatprep.subr.bf16.mxu1 %v10618_v1  ;;  %9519 = vmatmul.mubr.msk.bf16.vlgmr.msra.gmra.mrb[28].mxu0 %vm534_vm0, %v10002_v36 }
  0x76   :  { %9533 = vmatpush3.bf16.msra.mxu0 %v10613_v0  ;;  %9538 = vmatprep.mubr.msk.bf16.mxu0 %vm534_vm0, %v10003_v39 }
  0x77   :  { %9534 = vmatprep.subr.bf16.mxu0 %v10618_v1 }
  0x78   :  { %9545 = vmatpush3.bf16.msra.mxu1 %v10618_v1 }
  0x79   :  { %9935 = vmatprep.subr.msk.bf16.mxu1 %vm541_vm1, %v10631_v3 }
  0x7a   :  { %9535 = vmatpush3.bf16.msra.mxu0 %v10618_v1 }
  0x7b   :  { %9934 = vmatprep.subr.msk.bf16.mxu0 %vm541_vm1, %v10631_v3 }
  0x7c   :  { %9547 = vmatpush3.bf16.msra.mxu1 %v10641_v4 }
  0x7d   :  { %9562 = vmatprep.subr.bf16.mxu1 %v10613_v0 }
  0x7e   :  { %9537 = vmatpush3.bf16.msra.mxu0 %v10641_v4 }
  0x7f   :  { %9549 = vmatmul.mubr.msk.bf16.vlgmr.msra.gmra.mrb[32].mxu1 %vm534_vm0, %v9976_v37  ;;  %9552 = vmatprep.subr.bf16.mxu0 %v10613_v0 }
  0x80   :  { %9563 = vmatpush3.bf16.msra.mxu1 %v10613_v0  ;;  %9568 = vmatprep.mubr.msk.bf16.mxu1 %vm534_vm0, %v9979_v38 }
  0x81   :  { %9564 = vmatprep.subr.bf16.mxu1 %v10618_v1  ;;  %9539 = vmatmul.mubr.msk.bf16.vlgmr.msra.gmra.mrb[32].mxu0 %vm534_vm0, %v10004_v40  ;;  %v10028_v40 = vld [vmem:[%s14443_s3 + $0xc8] sm:$0xff]  }
  0x82   :  { %9553 = vmatpush3.bf16.msra.mxu0 %v10613_v0  ;;  %9558 = vmatprep.mubr.msk.bf16.mxu0 %vm534_vm0, %v10005_v43 }
  0x83   :  { %9554 = vmatprep.subr.bf16.mxu0 %v10618_v1 }
  0x84   :  { %9565 = vmatpush3.bf16.msra.mxu1 %v10618_v1  ;;  %v9996_v1 = vld [vmem:[%s14440_s0 + $0x1d8] sm:$0xff]  }
  0x85   :  { %9937 = vmatprep.subr.msk.bf16.mxu1 %vm541_vm1, %v10631_v3 }
  0x86   :  { %9555 = vmatpush3.bf16.msra.mxu0 %v10934_v45 }
  0x87   :  { %9936 = vmatprep.subr.msk.bf16.mxu0 %vm541_vm1, %v10631_v3  ;;  %v10017_v3 = vld [vmem:[%s14440_s0 + $0x1e0] sm:$0xff]  }
  0x88   :  { %9567 = vmatpush3.bf16.msra.mxu1 %v10641_v4 }
  0x89   :  { %9582 = vmatprep.subr.bf16.mxu1 %v10613_v0  ;;  %v10015_v0 = vld [vmem:[%s14440_s0 + $0x1c0] sm:$0xff]  }
  0x8a   :  { %9557 = vmatpush3.bf16.msra.mxu0 %v10641_v4 }
  0x8b   :  { %9569 = vmatmul.mubr.msk.bf16.vlgmr.msra.gmra.mrb[36].mxu1 %vm534_vm0, %v9980_v41  ;;  %9572 = vmatprep.subr.bf16.mxu0 %v10927_v44 }
  0x8c   :  { %9583 = vmatpush3.bf16.msra.mxu1 %v10927_v44  ;;  %9588 = vmatprep.mubr.msk.bf16.mxu1 %vm534_vm0, %v9983_v42 }
  0x8d   :  { %9584 = vmatprep.subr.bf16.mxu1 %v10934_v45  ;;  %9559 = vmatmul.mubr.msk.bf16.vlgmr.msra.gmra.mrb[36].mxu0 %vm534_vm0, %v10006_v46 }
  0x8e   :  { %9573 = vmatpush3.bf16.msra.mxu0 %v10927_v44  ;;  %9578 = vmatprep.mubr.msk.bf16.mxu0 %vm534_vm0, %v10007_v50 }
  0x8f   :  { %9574 = vmatprep.subr.bf16.mxu0 %v10934_v45 }
  0x90   :  { %9585 = vmatpush3.bf16.msra.mxu1 %v10934_v45 }
  0x91   :  { %9939 = vmatprep.subr.msk.bf16.mxu1 %vm541_vm1, %v10948_v47 }
  0x92   :  { %9575 = vmatpush3.bf16.msra.mxu0 %v10934_v45 }
  0x93   :  { %9938 = vmatprep.subr.msk.bf16.mxu0 %vm541_vm1, %v10948_v47 }
  0x94   :  { %9587 = vmatpush3.bf16.msra.mxu1 %v10641_v4 }
  0x95   :  { %9602 = vmatprep.subr.bf16.mxu1 %v10927_v44 }
  0x96   :  { %9577 = vmatpush3.bf16.msra.mxu0 %v10641_v4 }
  0x97   :  { %9589 = vmatmul.mubr.msk.bf16.vlgmr.msra.gmra.mrb[40].mxu1 %vm534_vm0, %v9985_v48  ;;  %9592 = vmatprep.subr.bf16.mxu0 %v10927_v44 }
  0x98   :  { %9603 = vmatpush3.bf16.msra.mxu1 %v10927_v44  ;;  %9608 = vmatprep.mubr.msk.bf16.mxu1 %vm534_vm0, %v9987_v49 }
  0x99   :  { %9604 = vmatprep.subr.bf16.mxu1 %v10934_v45  ;;  %9579 = vmatmul.mubr.msk.bf16.vlgmr.msra.gmra.mrb[40].mxu0 %vm534_vm0, %v10008_v51 }
  0x9a   :  { %9593 = vmatpush3.bf16.msra.mxu0 %v10927_v44  ;;  %9598 = vmatprep.mubr.msk.bf16.mxu0 %vm534_vm0, %v10009_v54  ;;  %v11201_v54 = vld [vmem:[%s14443_s3 + $0xd0] sm:$0xff]  }
  0x9b   :  { %9594 = vmatprep.subr.bf16.mxu0 %v10934_v45 }
  0x9c   :  { %9605 = vmatpush3.bf16.msra.mxu1 %v10934_v45 }
  0x9d   :  { %9941 = vmatprep.subr.msk.bf16.mxu1 %vm541_vm1, %v10948_v47 }
  0x9e   :  { %9595 = vmatpush3.bf16.msra.mxu0 %v10934_v45 }
  0x9f   :  { %9940 = vmatprep.subr.msk.bf16.mxu0 %vm541_vm1, %v10948_v47 }
  0xa0   :  { %9607 = vmatpush3.bf16.msra.mxu1 %v10641_v4 }
  0xa1   :  { %9622 = vmatprep.subr.bf16.mxu1 %v10927_v44 }
  0xa2   :  { %9597 = vmatpush3.bf16.msra.mxu0 %v10641_v4 }
  0xa3   :  { %9609 = vmatmul.mubr.msk.bf16.vlgmr.msra.gmra.mrb[44].mxu1 %vm534_vm0, %v9988_v52  ;;  %9612 = vmatprep.subr.bf16.mxu0 %v10927_v44 }
  0xa4   :  { %9623 = vmatpush3.bf16.msra.mxu1 %v10927_v44  ;;  %9628 = vmatprep.mubr.msk.bf16.mxu1 %vm534_vm0, %v9989_v53 }
  0xa5   :  { %9624 = vmatprep.subr.bf16.mxu1 %v10934_v45  ;;  %9599 = vmatmul.mubr.msk.bf16.vlgmr.msra.gmra.mrb[44].mxu0 %vm534_vm0, %v10010_v55 }
  0xa6   :  { %9613 = vmatpush3.bf16.msra.mxu0 %v10927_v44  ;;  %9618 = vmatprep.mubr.msk.bf16.mxu0 %vm534_vm0, %v10011_v58 }
  0xa7   :  { %9614 = vmatprep.subr.bf16.mxu0 %v10934_v45 }
  0xa8   :  { %9625 = vmatpush3.bf16.msra.mxu1 %v10934_v45 }
  0xa9   :  { %9943 = vmatprep.subr.msk.bf16.mxu1 %vm541_vm1, %v10948_v47 }
  0xaa   :  { %9615 = vmatpush3.bf16.msra.mxu0 %v10934_v45 }
  0xab   :  { %9942 = vmatprep.subr.msk.bf16.mxu0 %vm541_vm1, %v10948_v47 }
  0xac   :  { %9627 = vmatpush3.bf16.msra.mxu1 %v10641_v4 }
  0xad   :  { %9642 = vmatprep.subr.bf16.mxu1 %v10927_v44 }
  0xae   :  { %9617 = vmatpush3.bf16.msra.mxu0 %v10641_v4 }
  0xaf   :  { %9629 = vmatmul.mubr.msk.bf16.vlgmr.msra.gmra.mrb[48].mxu1 %vm534_vm0, %v9990_v56  ;;  %9632 = vmatprep.subr.bf16.mxu0 %v10927_v44 }
  0xb0   :  { %9643 = vmatpush3.bf16.msra.mxu1 %v10927_v44  ;;  %9648 = vmatprep.mubr.msk.bf16.mxu1 %vm534_vm0, %v9991_v57 }
  0xb1   :  { %9644 = vmatprep.subr.bf16.mxu1 %v10934_v45  ;;  %9619 = vmatmul.mubr.msk.bf16.vlgmr.msra.gmra.mrb[48].mxu0 %vm534_vm0, %v10012_v59 }
  0xb2   :  { %9633 = vmatpush3.bf16.msra.mxu0 %v10927_v44  ;;  %9638 = vmatprep.mubr.msk.bf16.mxu0 %vm534_vm0, %v10013_v60 }
  0xb3   :  { %9634 = vmatprep.subr.bf16.mxu0 %v10934_v45 }
  0xb4   :  { %9645 = vmatpush3.bf16.msra.mxu1 %v10934_v45 }
  0xb5   :  { %9945 = vmatprep.subr.msk.bf16.mxu1 %vm541_vm1, %v10948_v47 }
  0xb6   :  { %9635 = vmatpush3.bf16.msra.mxu0 %v10934_v45 }
  0xb7   :  { %9944 = vmatprep.subr.msk.bf16.mxu0 %vm541_vm1, %v10948_v47 }
  0xb8   :  { %9647 = vmatpush3.bf16.msra.mxu1 %v10641_v4 }
  0xb9   :  { %9662 = vmatprep.subr.bf16.mxu1 %v10927_v44 }
  0xba   :  { %9637 = vmatpush3.bf16.msra.mxu0 %v10641_v4 }
  0xbb   :  { %9649 = vmatmul.mubr.msk.bf16.vlgmr.msra.gmra.mrb[52].mxu1 %vm534_vm0, %v9992_v61  ;;  %9652 = vmatprep.subr.bf16.mxu0 %v10927_v44  ;;  %v11213_v61 = vld [vmem:[%s14443_s3 + $0xd8] sm:$0xff]  }
  0xbc   :  { %9663 = vmatpush3.bf16.msra.mxu1 %v10927_v44  ;;  %9668 = vmatprep.mubr.msk.bf16.mxu1 %vm534_vm0, %v9995_v62  ;;  %v11218_v62 = vld [vmem:[%s14443_s3 + $0x48] sm:$0xff]  }
  0xbd   :  { %9664 = vmatprep.subr.bf16.mxu1 %v10934_v45  ;;  %9639 = vmatmul.mubr.msk.bf16.vlgmr.msra.gmra.mrb[52].mxu0 %vm534_vm0, %v10014_v63 }
  0xbe   :  { %9653 = vmatpush3.bf16.msra.mxu0 %v10927_v44  ;;  %9658 = vmatprep.mubr.msk.bf16.mxu0 %vm534_vm0, %v10015_v0  ;;  %v11226_v0 = vld [vmem:[%s14443_s3 + $0x8] sm:$0xff]  }
  0xbf   :  { %9654 = vmatprep.subr.bf16.mxu0 %v10934_v45 }
  0xc0   :  { %9665 = vmatpush3.bf16.msra.mxu1 %v10934_v45 }
  0xc1   :  { %9947 = vmatprep.subr.msk.bf16.mxu1 %vm541_vm1, %v10948_v47 }
  0xc2   :  { %9655 = vmatpush3.bf16.msra.mxu0 %v10934_v45 }
  0xc3   :  { %9946 = vmatprep.subr.msk.bf16.mxu0 %vm541_vm1, %v10948_v47 }
  0xc4   :  { %9667 = vmatpush3.bf16.msra.mxu1 %v10641_v4 }
  0xc5   :  { %8746 = vmatprep.subr.bf16.mxu1 %v11163_v15 }
  0xc6   :  { %9657 = vmatpush3.bf16.msra.mxu0 %v10641_v4 }
  0xc7   :  { %9669 = vmatmul.mubr.msk.bf16.vlgmr.msra.gmra.mrb[56].mxu1 %vm534_vm0, %v9996_v1  ;;  %9672 = vmatprep.subr.bf16.mxu0 %v10927_v44 }
  0xc8   :  { %8747 = vmatpush3.bf16.msra.mxu1 %v10031_v20  ;;  %v11243_v20 = vld [vmem:[%s14443_s3 + $0x10] sm:$0xff]  }
  0xc9   :  { %9659 = vmatmul.mubr.msk.bf16.vlgmr.msra.gmra.mrb[56].mxu0 %vm534_vm0, %v10016_v2  ;;  %8748 = vmatprep.subr.bf16.mxu1 %v11218_v62 }
  0xca   :  { %9673 = vmatpush3.bf16.msra.mxu0 %v10927_v44  ;;  %9678 = vmatprep.mubr.msk.bf16.mxu0 %vm534_vm0, %v10017_v3 }
  0xcb   :  { %9674 = vmatprep.subr.bf16.mxu0 %v10934_v45 }
  0xcc   :  { %8749 = vmatpush3.bf16.msra.mxu1 %v11226_v0 }
  0xce   :  { %9675 = vmatpush3.bf16.msra.mxu0 %v10934_v45 }
  0xcf   :  { %9948 = vmatprep.subr.msk.bf16.mxu0 %vm541_vm1, %v10948_v47 }
  0xd2   :  { %9677 = vmatpush3.bf16.msra.mxu0 %v10641_v4  ;;  %v11132_v4 = vld [vmem:[%s14443_s3 + $0x98] sm:$0xff]  }
  0xd3   :  { %3153 = vmatprep.subr.bf16.mxu0 %v14452_v7 }
  0xd5   :  { %9679 = vmatmul.mubr.msk.bf16.vlgmr.msra.gmra.mrb[60].mxu0 %vm534_vm0, %v10018_v5 }
  0xd6   :  { %3154 = vmatpush1.bf16.msra.mxu0 %v11110_v6 }
  0xd7   :  { %3155 = vmatprep.subr.bf16.mxu0 %v14452_v7 }
  0xda   :  { %3156 = vmatpush1.bf16.msra.mxu0 %v11118_v8 }
  0xdb   :  { %3157 = vmatprep.subr.bf16.mxu0 %v14452_v7 }
  0xde   :  { %3158 = vmatpush1.bf16.msra.mxu0 %v11125_v9 }
  0xdf   :  { %3159 = vmatprep.subr.bf16.mxu0 %v14452_v7 }
  0xe2   :  { %3160 = vmatpush1.bf16.msra.mxu0 %v11132_v4 }
  0xe3   :  { %3161 = vmatprep.subr.bf16.mxu0 %v14452_v7 }
  0xe6   :  { %3162 = vmatpush1.bf16.msra.mxu0 %v11140_v10 }
  0xe7   :  { %3163 = vmatprep.subr.bf16.mxu0 %v14452_v7 }
  0xea   :  { %3164 = vmatpush1.bf16.msra.mxu0 %v11147_v11 }
  0xeb   :  { %3165 = vmatprep.subr.bf16.mxu0 %v14452_v7 }
  0xee   :  { %3166 = vmatpush1.bf16.msra.mxu0 %v10025_v13 }
  0xef   :  { %3167 = vmatprep.subr.bf16.mxu0 %v14452_v7 }
  0xf2   :  { %v9390_v14 = vpop.f32.mrb[0].mxu1  ;;  %3168 = vmatpush1.bf16.msra.mxu0 %v10026_v24  ;;  %v9380_v32 = vpop.f32.mrb[0].mxu0 }
  0xf3   :  { %v664_v16 = vadd.f32 %v9390_v14, %v11153_v12  ;;  %v655_v17 = vpop.f32.mrb[1].mxu1  ;;  %3169 = vmatprep.subr.bf16.mxu0 %v14452_v7  ;;  %v588_v33 = vadd.f32 %v9380_v32, %v11153_v12  ;;  %v579_v34 = vpop.f32.mrb[1].mxu0 }
  0xf4   :  { %v656_v18 = vadd.f32 %v11153_v12, %v655_v17  ;;  %v9391_v19 = vpop.f32.mrb[2].mxu1  ;;  %v580_v35 = vadd.f32 %v11153_v12, %v579_v34  ;;  %v9381_v36 = vpop.f32.mrb[2].mxu0 }
  0xf5   :  { %v672_v21 = vmax.f32 %v664_v16, 0.0  ;;  %v667_v22 = vadd.f32 %v9391_v19, %v11153_v12  ;;  %v658_v23 = vpop.f32.mrb[3].mxu1  ;;  %v596_v37 = vmax.f32 %v588_v33, 0.0  ;;  %v591_v38 = vadd.f32 %v9381_v36, %v11153_v12  ;;  %v582_v39 = vpop.f32.mrb[3].mxu0  ;;  %v11238_v19 = vld [vmem:[%s14443_s3 + $0x50] sm:$0xff]   ;;  %v11254_v33 = vld [vmem:[%s14443_s3 + $0x58] sm:$0xff]  }
  0xf6   :  { %v659_v25 = vadd.f32 %v11153_v12, %v658_v23  ;;  %v670_v27 = vmax.f32 %v656_v18, 0.0  ;;  %3170 = vmatpush1.bf16.msra.mxu0 %v10027_v30  ;;  %v594_v42 = vmax.f32 %v580_v35, 0.0  ;;  %v583_v43 = vadd.f32 %v11153_v12, %v582_v39  ;;  %8750 = vmatprep.subr.bf16.mxu1 %v11238_v19  ;;  %v11262_v36 = vld [vmem:[%s14443_s3 + $0x18] sm:$0xff]  }
  0xf7   :  { %v673_v26 = vmax.f32 %v667_v22, 0.0  ;;  %3171 = vmatprep.subr.bf16.mxu0 %v14452_v7  ;;  %v597_v46 = vmax.f32 %v591_v38, 0.0  ;;  %8751 = vmatpush3.bf16.msra.mxu1 %v11243_v20 }
  0xf8   :  { %v671_v28 = vmax.f32 %v659_v25, 0.0  ;;  %v595_v49 = vmax.f32 %v583_v43, 0.0  ;;  %8752 = vmatprep.subr.bf16.mxu1 %v11254_v33 }
  0xf9   :  { %v11177_v29 = vpack.c.bf16 %v673_v26, %v672_v21  ;;  %v11196_v53 = vpack.c.bf16 %v597_v46, %v596_v37  ;;  %v11276_v46 = vld [vmem:[%s14443_s3 + $0x20] sm:$0xff]  }
  0xfa   :  { %v11182_v31 = vpack.c.bf16 %v671_v28, %v670_v27  ;;  %3172 = vmatpush1.bf16.msra.mxu0 %v10028_v40  ;;  %v11204_v56 = vpack.c.bf16 %v595_v49, %v594_v42 }
  0xfb   :  { %3173 = vmatprep.subr.bf16.mxu0 %v14452_v7  ;;  %8753 = vmatpush3.bf16.msra.mxu1 %v11262_v36 }
  0xfe   :  { %v9410_v41 = vpop.f32.mrb[4].mxu1  ;;  %3174 = vmatpush1.bf16.msra.mxu0 %v11201_v54 }
  0xff   :  { %v816_v44 = vadd.f32 %v9410_v41, %v11153_v12  ;;  %v807_v45 = vpop.f32.mrb[5].mxu1  ;;  %3175 = vmatprep.subr.bf16.mxu0 %v14452_v7 }
 0x100   :  { %v808_v47 = vadd.f32 %v11153_v12, %v807_v45  ;;  %v9411_v48 = vpop.f32.mrb[6].mxu1  ;;  %v9400_v1 = vpop.f32.mrb[4].mxu0 }
 0x101   :  { %v824_v50 = vmax.f32 %v816_v44, 0.0  ;;  %v819_v51 = vadd.f32 %v9411_v48, %v11153_v12  ;;  %v810_v52 = vpop.f32.mrb[7].mxu1  ;;  %v740_v2 = vadd.f32 %v9400_v1, %v11153_v12  ;;  %v731_v3 = vpop.f32.mrb[5].mxu0  ;;  %v11271_v44 = vld [vmem:[%s14443_s3 + $0x60] sm:$0xff]  }
 0x102   :  { %v811_v55 = vadd.f32 %v11153_v12, %v810_v52  ;;  %v822_v58 = vmax.f32 %v808_v47, 0.0  ;;  %v732_v5 = vadd.f32 %v11153_v12, %v731_v3  ;;  %v9401_v13 = vpop.f32.mrb[6].mxu0  ;;  %3176 = vmatpush1.bf16.msra.mxu0 %v11213_v61  ;;  %8754 = vmatprep.subr.bf16.mxu1 %v11271_v44 }
 0x103   :  { %v825_v57 = vmax.f32 %v819_v51, 0.0  ;;  %v748_v16 = vmax.f32 %v740_v2, 0.0  ;;  %v743_v17 = vadd.f32 %v9401_v13, %v11153_v12  ;;  %v734_v18 = vpop.f32.mrb[7].mxu0  ;;  %3275 = vmatprep.subr.bf16.mxu0 %v14452_v7  ;;  %8755 = vmatpush3.bf16.msra.mxu1 %v11276_v46 }
 0x104   :  { %v823_v59 = vmax.f32 %v811_v55, 0.0  ;;  %v746_v23 = vmax.f32 %v732_v5, 0.0  ;;  %v735_v24 = vadd.f32 %v11153_v12, %v734_v18 }
 0x105   :  { %v11207_v60 = vpack.c.bf16 %v825_v57, %v824_v50  ;;  %v749_v27 = vmax.f32 %v743_v17, 0.0 }
 0x106   :  { %v11220_v63 = vpack.c.bf16 %v823_v59, %v822_v58  ;;  %v747_v32 = vmax.f32 %v735_v24, 0.0  ;;  %v11287_v58 = vld [vmem:[%s14443_s3 + $0x68] sm:$0xff]  }
 0x107   :  { %v11257_v35 = vpack.c.bf16 %v749_v27, %v748_v16  ;;  %v11292_v59 = vld [vmem:[%s14443_s3 + $0x28] sm:$0xff]   ;;  %8756 = vmatprep.subr.bf16.mxu1 %v11287_v58  ;;  %v11312_v27 = vld [vmem:[%s14443_s3 + $0x30] sm:$0xff]  }
 0x108   :  { %v11264_v39 = vpack.c.bf16 %v747_v32, %v746_v23  ;;  %8757 = vmatpush3.bf16.msra.mxu1 %v11292_v59 }
 0x10a   :  { %v9430_v14 = vpop.f32.mrb[8].mxu1 }
 0x10b   :  { %v968_v21 = vadd.f32 %v9430_v14, %v11153_v12  ;;  %v959_v22 = vpop.f32.mrb[9].mxu1 }
 0x10c   :  { %v960_v25 = vadd.f32 %v11153_v12, %v959_v22  ;;  %v9431_v26 = vpop.f32.mrb[10].mxu1  ;;  %v9420_v45 = vpop.f32.mrb[8].mxu0 }
 0x10d   :  { %v971_v28 = vadd.f32 %v9431_v26, %v11153_v12  ;;  %v962_v30 = vpop.f32.mrb[11].mxu1  ;;  %v976_v37 = vmax.f32 %v968_v21, 0.0  ;;  %v892_v47 = vadd.f32 %v9420_v45, %v11153_v12  ;;  %v883_v48 = vpop.f32.mrb[9].mxu0  ;;  %v11307_v26 = vld [vmem:[%s14443_s3 + $0x70] sm:$0xff]  }
 0x10e   :  { %v963_v34 = vadd.f32 %v11153_v12, %v962_v30  ;;  %v974_v40 = vmax.f32 %v960_v25, 0.0  ;;  %v884_v49 = vadd.f32 %v11153_v12, %v883_v48  ;;  %v9421_v50 = vpop.f32.mrb[10].mxu0  ;;  %8758 = vmatprep.subr.bf16.mxu1 %v11307_v26 }
 0x10f   :  { %v977_v38 = vmax.f32 %v971_v28, 0.0  ;;  %v900_v52 = vmax.f32 %v892_v47, 0.0  ;;  %v895_v55 = vadd.f32 %v9421_v50, %v11153_v12  ;;  %v886_v57 = vpop.f32.mrb[11].mxu0  ;;  %8759 = vmatpush3.bf16.msra.mxu1 %v11312_v27 }
 0x110   :  { %v975_v41 = vmax.f32 %v963_v34, 0.0  ;;  %v898_v3 = vmax.f32 %v884_v49, 0.0  ;;  %v887_v5 = vadd.f32 %v11153_v12, %v886_v57 }
 0x111   :  { %v979_v42 = vpack.c.bf16 %v977_v38, %v976_v37  ;;  %v901_v16 = vmax.f32 %v895_v55, 0.0  ;;  %v11321_v38 = vld [vmem:[%s14443_s3 + $0x78] sm:$0xff]  }
 0x112   :  { %v978_v43 = vpack.c.bf16 %v975_v41, %v974_v40  ;;  %v899_v22 = vmax.f32 %v887_v5, 0.0  ;;  %v11326_v40 = vld [vmem:[%s14443_s3 + $0x38] sm:$0xff]   ;;  %8760 = vmatprep.subr.bf16.mxu1 %v11321_v38 }
 0x113   :  { %v11302_v25 = vpack.c.bf16 %v901_v16, %v900_v52  ;;  %8761 = vmatpush3.bf16.msra.mxu1 %v11326_v40 }
 0x114   :  { %2894 = vrot.lane.b32.xlu0 %v978_v43, %s10537_s27  ;;  %v11314_v30 = vpack.c.bf16 %v899_v22, %v898_v3  ;;  %8774 = vmatprep.subr.bf16.mxu1 %v11163_v15 }
 0x116   :  { %v9450_v51 = vpop.f32.mrb[12].mxu1 }
 0x117   :  { %v1120_v1 = vadd.f32 %v9450_v51, %v11153_v12  ;;  %v1111_v2 = vpop.f32.mrb[13].mxu1 }
 0x118   :  { %v1112_v13 = vadd.f32 %v11153_v12, %v1111_v2  ;;  %v9451_v14 = vpop.f32.mrb[14].mxu1  ;;  %2896 = vrot.lane.b32.xlu0 %v979_v42, %s10537_s27  ;;  %v9440_v41 = vpop.f32.mrb[12].mxu0 }
 0x119   :  { %v1128_v17 = vmax.f32 %v1120_v1, 0.0  ;;  %v1123_v18 = vadd.f32 %v9451_v14, %v11153_v12  ;;  %v1114_v21 = vpop.f32.mrb[15].mxu1  ;;  %v1044_v42 = vadd.f32 %v9440_v41, %v11153_v12  ;;  %v1035_v43 = vpop.f32.mrb[13].mxu0 }
 0x11a   :  { %v1126_v23 = vmax.f32 %v1112_v13, 0.0  ;;  %v1115_v24 = vadd.f32 %v11153_v12, %v1114_v21  ;;  %v1036_v45 = vadd.f32 %v11153_v12, %v1035_v43  ;;  %v9441_v47 = vpop.f32.mrb[14].mxu0 }
 0x11b   :  { %v1129_v28 = vmax.f32 %v1123_v18, 0.0  ;;  %v1052_v49 = vmax.f32 %v1044_v42, 0.0  ;;  %v1047_v50 = vadd.f32 %v9441_v47, %v11153_v12  ;;  %v1038_v51 = vpop.f32.mrb[15].mxu0 }
 0x11c   :  { %v1127_v32 = vmax.f32 %v1115_v24, 0.0  ;;  %v1050_v57 = vmax.f32 %v1036_v45, 0.0  ;;  %v1039_v1 = vadd.f32 %v11153_v12, %v1038_v51 }
 0x11d   :  { %v1131_v34 = vpack.c.bf16 %v1129_v28, %v1128_v17  ;;  %v1053_v5 = vmax.f32 %v1047_v50, 0.0 }
 0x11e   :  { %v1130_v37 = vpack.c.bf16 %v1127_v32, %v1126_v23  ;;  %v1051_v17 = vmax.f32 %v1039_v1, 0.0 }
 0x11f   :  { %v11341_v21 = vpack.c.bf16 %v1053_v5, %v1052_v49 }
 0x120   :  { %3210 = vrot.lane.b32.xlu1 %v1130_v37, %s10537_s27  ;;  %v11343_v23 = vpack.c.bf16 %v1051_v17, %v1050_v57 }
 0x122   :  { %v9470_v48 = vpop.f32.mrb[16].mxu1  ;;  %8331 = vmatprep.mubr.msk.bf16.mxu0 %vm2898_vm2, %v11343_v23 }
 0x123   :  { %v1272_v52 = vadd.f32 %v9470_v48, %v11153_v12  ;;  %v1263_v55 = vpop.f32.mrb[17].mxu1 }
 0x124   :  { %v1264_v2 = vadd.f32 %v11153_v12, %v1263_v55  ;;  %v9471_v3 = vpop.f32.mrb[18].mxu1  ;;  %3212 = vrot.lane.b32.xlu1 %v1131_v34, %s10537_s27  ;;  %v9460_v34 = vpop.f32.mrb[16].mxu0 }
 0x125   :  { %v1280_v13 = vmax.f32 %v1272_v52, 0.0  ;;  %v1275_v14 = vadd.f32 %v9471_v3, %v11153_v12  ;;  %v1266_v16 = vpop.f32.mrb[19].mxu1  ;;  %v1196_v37 = vadd.f32 %v9460_v34, %v11153_v12  ;;  %v1187_v41 = vpop.f32.mrb[17].mxu0 }
 0x126   :  { %v1278_v18 = vmax.f32 %v1264_v2, 0.0  ;;  %v1267_v15 = vadd.f32 %v11153_v12, %v1266_v16  ;;  %v1188_v42 = vadd.f32 %v11153_v12, %v1187_v41  ;;  %v9461_v43 = vpop.f32.mrb[18].mxu0 }
 0x127   :  { %v1281_v22 = vmax.f32 %v1275_v14, 0.0  ;;  %v1204_v47 = vmax.f32 %v1196_v37, 0.0  ;;  %v1190_v48 = vpop.f32.mrb[19].mxu0 }
 0x128   :  { %v1279_v24 = vmax.f32 %v1267_v15, 0.0  ;;  %2888 = vrot.lane.b32.xlu1 %v11220_v63, %s10537_s27  ;;  %v1199_v63 = vadd.f32 %v9461_v43, %v11153_v12  ;;  %v1202_v51 = vmax.f32 %v1188_v42, 0.0  ;;  %v1191_v52 = vadd.f32 %v11153_v12, %v1190_v48 }
 0x129   :  { %v1283_v28 = vpack.c.bf16 %v1281_v22, %v1280_v13 }
 0x12a   :  { %v1282_v32 = vpack.c.bf16 %v1279_v24, %v1278_v18  ;;  %v1205_v57 = vmax.f32 %v1199_v63, 0.0  ;;  %v1203_v5 = vmax.f32 %v1191_v52, 0.0 }
 0x12c   :  { %3332 = vrot.lane.b32.xlu0 %v1282_v32, %s10537_s27  ;;  %2890 = vrot.lane.b32.xlu1 %v11207_v60, %s10537_s27  ;;  %v11363_v16 = vpack.c.bf16 %v1205_v57, %v1204_v47  ;;  %v11365_v18 = vpack.c.bf16 %v1203_v5, %v1202_v51 }
 0x12e   :  { %v9490_v45 = vpop.f32.mrb[20].mxu1 }
 0x12f   :  { %v1424_v49 = vadd.f32 %v9490_v45, %v11153_v12  ;;  %v1415_v50 = vpop.f32.mrb[21].mxu1 }
 0x130   :  { %2882 = vrot.lane.b32.xlu0 %v11182_v31, %s10537_s27  ;;  %3334 = vrot.lane.b32.xlu1 %v1283_v28, %s10537_s27  ;;  %v1416_v60 = vadd.f32 %v11153_v12, %v1415_v50  ;;  %v9491_v55 = vpop.f32.mrb[22].mxu1  ;;  %v9480_v24 = vpop.f32.mrb[20].mxu0 }
 0x131   :  { %v1432_v1 = vmax.f32 %v1424_v49, 0.0  ;;  %v1427_v2 = vadd.f32 %v9491_v55, %v11153_v12  ;;  %v1418_v3 = vpop.f32.mrb[23].mxu1  ;;  %v1348_v28 = vadd.f32 %v9480_v24, %v11153_v12  ;;  %v1339_v32 = vpop.f32.mrb[21].mxu0 }
 0x132   :  { %v1430_v13 = vmax.f32 %v1416_v60, 0.0  ;;  %v1419_v14 = vadd.f32 %v11153_v12, %v1418_v3  ;;  %v1340_v34 = vadd.f32 %v11153_v12, %v1339_v32  ;;  %v9481_v37 = vpop.f32.mrb[22].mxu0 }
 0x133   :  { %v1433_v17 = vmax.f32 %v1427_v2, 0.0  ;;  %v1356_v42 = vmax.f32 %v1348_v28, 0.0  ;;  %v1351_v43 = vadd.f32 %v9481_v37, %v11153_v12  ;;  %v1342_v45 = vpop.f32.mrb[23].mxu0 }
 0x134   :  { %2884 = vrot.lane.b32.xlu0 %v11177_v29, %s10537_s27  ;;  %v1431_v31 = vmax.f32 %v1419_v14, 0.0  ;;  %v1354_v63 = vmax.f32 %v1340_v34, 0.0  ;;  %v1343_v48 = vadd.f32 %v11153_v12, %v1342_v45 }
 0x135   :  { %v1435_v15 = vpack.c.bf16 %v1433_v17, %v1432_v1  ;;  %v1357_v51 = vmax.f32 %v1351_v43, 0.0 }
 0x136   :  { %v1434_v22 = vpack.c.bf16 %v1431_v31, %v1430_v13  ;;  %v1355_v57 = vmax.f32 %v1343_v48, 0.0 }
 0x137   :  { %3456 = vrot.lane.b32.xlu1 %v1435_v15, %s10537_s27  ;;  %v11379_v3 = vpack.c.bf16 %v1357_v51, %v1356_v42 }
 0x138   :  { %3454 = vrot.lane.b32.xlu0 %v1434_v22, %s10537_s27  ;;  %v11381_v13 = vpack.c.bf16 %v1355_v57, %v1354_v63 }
 0x13a   :  { %v9510_v41 = vpop.f32.mrb[24].mxu1 }
 0x13b   :  { %v1576_v29 = vadd.f32 %v9510_v41, %v11153_v12  ;;  %v1567_v47 = vpop.f32.mrb[25].mxu1 }
 0x13c   :  { %v1568_v49 = vadd.f32 %v11153_v12, %v1567_v47  ;;  %v9511_v50 = vpop.f32.mrb[26].mxu1  ;;  %v9500_v15 = vpop.f32.mrb[24].mxu0 }
 0x13d   :  { %v1584_v52 = vmax.f32 %v1576_v29, 0.0  ;;  %v1579_v60 = vadd.f32 %v9511_v50, %v11153_v12  ;;  %v1570_v55 = vpop.f32.mrb[27].mxu1  ;;  %v1500_v22 = vadd.f32 %v9500_v15, %v11153_v12  ;;  %v1491_v24 = vpop.f32.mrb[25].mxu0 }
 0x13e   :  { %v1582_v1 = vmax.f32 %v1568_v49, 0.0  ;;  %v1571_v2 = vadd.f32 %v11153_v12, %v1570_v55  ;;  %v1492_v28 = vadd.f32 %v11153_v12, %v1491_v24  ;;  %v9501_v32 = vpop.f32.mrb[26].mxu0 }
 0x13f   :  { %v1585_v5 = vmax.f32 %v1579_v60, 0.0  ;;  %v1508_v37 = vmax.f32 %v1500_v22, 0.0  ;;  %v1503_v41 = vadd.f32 %v9501_v32, %v11153_v12  ;;  %v1494_v42 = vpop.f32.mrb[27].mxu0 }
 0x140   :  { %v1583_v14 = vmax.f32 %v1571_v2, 0.0  ;;  %v1506_v29 = vmax.f32 %v1492_v28, 0.0  ;;  %v1495_v47 = vadd.f32 %v11153_v12, %v1494_v42 }
 0x141   :  { %v1587_v17 = vpack.c.bf16 %v1585_v5, %v1584_v52  ;;  %v1509_v49 = vmax.f32 %v1503_v41, 0.0 }
 0x142   :  { %v1586_v31 = vpack.c.bf16 %v1583_v14, %v1582_v1  ;;  %v1507_v60 = vmax.f32 %v1495_v47, 0.0 }
 0x143   :  { %3578 = vrot.lane.b32.xlu1 %v1587_v17, %s10537_s27  ;;  %v11393_v1 = vpack.c.bf16 %v1509_v49, %v1508_v37 }
 0x144   :  { %3576 = vrot.lane.b32.xlu0 %v1586_v31, %s10537_s27  ;;  %v11395_v5 = vpack.c.bf16 %v1507_v60, %v1506_v29 }
 0x146   :  { %v9530_v34 = vpop.f32.mrb[28].mxu1 }
 0x147   :  { %v1728_v43 = vadd.f32 %v9530_v34, %v11153_v12  ;;  %v1719_v45 = vpop.f32.mrb[29].mxu1 }
 0x148   :  { %v1720_v63 = vadd.f32 %v11153_v12, %v1719_v45  ;;  %v9531_v48 = vpop.f32.mrb[30].mxu1  ;;  %v9520_v15 = vpop.f32.mrb[28].mxu0 }
 0x149   :  { %v1736_v50 = vmax.f32 %v1728_v43, 0.0  ;;  %v1731_v51 = vadd.f32 %v9531_v48, %v11153_v12  ;;  %v1722_v52 = vpop.f32.mrb[31].mxu1  ;;  %v1652_v22 = vadd.f32 %v9520_v15, %v11153_v12  ;;  %v1643_v24 = vpop.f32.mrb[29].mxu0 }
 0x14a   :  { %v1734_v55 = vmax.f32 %v1720_v63, 0.0  ;;  %v1723_v57 = vadd.f32 %v11153_v12, %v1722_v52  ;;  %v1644_v28 = vadd.f32 %v11153_v12, %v1643_v24  ;;  %v9521_v32 = vpop.f32.mrb[30].mxu0 }
 0x14b   :  { %v1737_v2 = vmax.f32 %v1731_v51, 0.0  ;;  %v1660_v37 = vmax.f32 %v1652_v22, 0.0  ;;  %v1655_v41 = vadd.f32 %v9521_v32, %v11153_v12  ;;  %v1646_v42 = vpop.f32.mrb[31].mxu0 }
 0x14c   :  { %v1735_v14 = vmax.f32 %v1723_v57, 0.0  ;;  %v1658_v29 = vmax.f32 %v1644_v28, 0.0  ;;  %v1647_v47 = vadd.f32 %v11153_v12, %v1646_v42 }
 0x14d   :  { %v1739_v17 = vpack.c.bf16 %v1737_v2, %v1736_v50  ;;  %v1661_v49 = vmax.f32 %v1655_v41, 0.0 }
 0x14e   :  { %v1738_v31 = vpack.c.bf16 %v1735_v14, %v1734_v55  ;;  %v1659_v60 = vmax.f32 %v1647_v47, 0.0 }
 0x14f   :  { %3700 = vrot.lane.b32.xlu1 %v1739_v17, %s10537_s27  ;;  %v11407_v2 = vpack.c.bf16 %v1661_v49, %v1660_v37 }
 0x150   :  { %3698 = vrot.lane.b32.xlu0 %v1738_v31, %s10537_s27  ;;  %v11409_v17 = vpack.c.bf16 %v1659_v60, %v1658_v29 }
 0x152   :  { %v9550_v34 = vpop.f32.mrb[32].mxu1 }
 0x153   :  { %v1880_v43 = vadd.f32 %v9550_v34, %v11153_v12  ;;  %v1871_v45 = vpop.f32.mrb[33].mxu1 }
 0x154   :  { %v1872_v63 = vadd.f32 %v11153_v12, %v1871_v45  ;;  %v9551_v48 = vpop.f32.mrb[34].mxu1  ;;  %v9540_v24 = vpop.f32.mrb[32].mxu0 }
 0x155   :  { %v1888_v50 = vmax.f32 %v1880_v43, 0.0  ;;  %v1883_v51 = vadd.f32 %v9551_v48, %v11153_v12  ;;  %v1874_v52 = vpop.f32.mrb[35].mxu1  ;;  %v1804_v28 = vadd.f32 %v9540_v24, %v11153_v12  ;;  %v1795_v32 = vpop.f32.mrb[33].mxu0 }
 0x156   :  { %v1886_v55 = vmax.f32 %v1872_v63, 0.0  ;;  %v1875_v57 = vadd.f32 %v11153_v12, %v1874_v52  ;;  %v1796_v34 = vadd.f32 %v11153_v12, %v1795_v32  ;;  %v9541_v41 = vpop.f32.mrb[34].mxu0 }
 0x157   :  { %v1889_v14 = vmax.f32 %v1883_v51, 0.0  ;;  %v1812_v37 = vmax.f32 %v1804_v28, 0.0  ;;  %v1807_v43 = vadd.f32 %v9541_v41, %v11153_v12  ;;  %v1798_v45 = vpop.f32.mrb[35].mxu0 }
 0x158   :  { %v1887_v31 = vmax.f32 %v1875_v57, 0.0  ;;  %v1810_v63 = vmax.f32 %v1796_v34, 0.0  ;;  %v1799_v48 = vadd.f32 %v11153_v12, %v1798_v45 }
 0x159   :  { %v1891_v15 = vpack.c.bf16 %v1889_v14, %v1888_v50  ;;  %v1813_v51 = vmax.f32 %v1807_v43, 0.0 }
 0x15a   :  { %v1890_v22 = vpack.c.bf16 %v1887_v31, %v1886_v55  ;;  %v1811_v57 = vmax.f32 %v1799_v48, 0.0 }
 0x15b   :  { %3822 = vrot.lane.b32.xlu1 %v1891_v15, %s10537_s27  ;;  %v11421_v15 = vpack.c.bf16 %v1813_v51, %v1812_v37 }
 0x15c   :  { %3820 = vrot.lane.b32.xlu0 %v1890_v22, %s10537_s27  ;;  %v11423_v24 = vpack.c.bf16 %v1811_v57, %v1810_v63 }
 0x15e   :  { %v9570_v42 = vpop.f32.mrb[36].mxu1 }
 0x15f   :  { %v2032_v29 = vadd.f32 %v9570_v42, %v11153_v12  ;;  %v2023_v47 = vpop.f32.mrb[37].mxu1 }
 0x160   :  { %v2024_v49 = vadd.f32 %v11153_v12, %v2023_v47  ;;  %v9571_v50 = vpop.f32.mrb[38].mxu1  ;;  %v9560_v41 = vpop.f32.mrb[36].mxu0 }
 0x161   :  { %v2040_v52 = vmax.f32 %v2032_v29, 0.0  ;;  %v2035_v60 = vadd.f32 %v9571_v50, %v11153_v12  ;;  %v2026_v55 = vpop.f32.mrb[39].mxu1  ;;  %v1956_v42 = vadd.f32 %v9560_v41, %v11153_v12  ;;  %v1947_v43 = vpop.f32.mrb[37].mxu0 }
 0x162   :  { %v2038_v14 = vmax.f32 %v2024_v49, 0.0  ;;  %v2027_v31 = vadd.f32 %v11153_v12, %v2026_v55  ;;  %v1948_v45 = vadd.f32 %v11153_v12, %v1947_v43  ;;  %v9561_v29 = vpop.f32.mrb[38].mxu0 }
 0x163   :  { %v2041_v22 = vmax.f32 %v2035_v60, 0.0  ;;  %v1964_v37 = vmax.f32 %v1956_v42, 0.0  ;;  %v1959_v48 = vadd.f32 %v9561_v29, %v11153_v12  ;;  %v1950_v63 = vpop.f32.mrb[39].mxu0 }
 0x164   :  { %v2039_v28 = vmax.f32 %v2027_v31, 0.0  ;;  %v1962_v51 = vmax.f32 %v1948_v45, 0.0 }
 0x165   :  { %v2043_v32 = vpack.c.bf16 %v2041_v22, %v2040_v52  ;;  %v1951_v52 = vadd.f32 %v11153_v12, %v1950_v63  ;;  %v1965_v57 = vmax.f32 %v1959_v48, 0.0 }
 0x166   :  { %v2042_v34 = vpack.c.bf16 %v2039_v28, %v2038_v14 }
 0x167   :  { %3944 = vrot.lane.b32.xlu1 %v2043_v32, %s10537_s27  ;;  %v1963_v28 = vmax.f32 %v1951_v52, 0.0  ;;  %v11435_v41 = vpack.c.bf16 %v1965_v57, %v1964_v37 }
 0x168   :  { %3942 = vrot.lane.b32.xlu0 %v2042_v34, %s10537_s27 }
 0x169   :  { %14657 = vst [vmem:[#allocation5_spill] sm:$0xff] %v11435_v41  ;;  %v11437_v43 = vpack.c.bf16 %v1963_v28, %v1962_v51 }
 0x16a   :  { %v9590_v47 = vpop.f32.mrb[40].mxu1 }
 0x16b   :  { %v2184_v49 = vadd.f32 %v9590_v47, %v11153_v12  ;;  %v2175_v50 = vpop.f32.mrb[41].mxu1 }
 0x16c   :  { %v2176_v60 = vadd.f32 %v11153_v12, %v2175_v50  ;;  %v9591_v55 = vpop.f32.mrb[42].mxu1  ;;  %v9580_v63 = vpop.f32.mrb[40].mxu0 }
 0x16d   :  { %v2192_v14 = vmax.f32 %v2184_v49, 0.0  ;;  %v2187_v31 = vadd.f32 %v9591_v55, %v11153_v12  ;;  %v2178_v22 = vpop.f32.mrb[43].mxu1  ;;  %v2108_v48 = vadd.f32 %v9580_v63, %v11153_v12  ;;  %v2099_v49 = vpop.f32.mrb[41].mxu0 }
 0x16e   :  { %v2190_v32 = vmax.f32 %v2176_v60, 0.0  ;;  %v2179_v34 = vadd.f32 %v11153_v12, %v2178_v22  ;;  %v2100_v50 = vadd.f32 %v11153_v12, %v2099_v49  ;;  %v9581_v52 = vpop.f32.mrb[42].mxu0 }
 0x16f   :  { %v2193_v42 = vmax.f32 %v2187_v31, 0.0  ;;  %v2116_v37 = vmax.f32 %v2108_v48, 0.0  ;;  %v2111_v55 = vadd.f32 %v9581_v52, %v11153_v12  ;;  %v2102_v51 = vpop.f32.mrb[43].mxu0 }
 0x170   :  { %v2191_v45 = vmax.f32 %v2179_v34, 0.0  ;;  %v2114_v31 = vmax.f32 %v2100_v50, 0.0  ;;  %v2103_v22 = vadd.f32 %v11153_v12, %v2102_v51 }
 0x171   :  { %v2195_v29 = vpack.c.bf16 %v2193_v42, %v2192_v14  ;;  %v2117_v34 = vmax.f32 %v2111_v55, 0.0 }
 0x172   :  { %v2194_v47 = vpack.c.bf16 %v2191_v45, %v2190_v32 }
 0x173   :  { %4066 = vrot.lane.b32.xlu1 %v2195_v29, %s10537_s27  ;;  %v11449_v49 = vpack.c.bf16 %v2117_v34, %v2116_v37 }
 0x174   :  { %4064 = vrot.lane.b32.xlu0 %v2194_v47, %s10537_s27  ;;  %v2115_v47 = vmax.f32 %v2103_v22, 0.0 }
 0x176   :  { %v9610_v60 = vpop.f32.mrb[44].mxu1 }
 0x177   :  { %v2336_v57 = vadd.f32 %v9610_v60, %v11153_v12  ;;  %v2327_v14 = vpop.f32.mrb[45].mxu1  ;;  %v11451_v60 = vpack.c.bf16 %v2115_v47, %v2114_v31 }
 0x178   :  { %v2328_v28 = vadd.f32 %v11153_v12, %v2327_v14  ;;  %v9611_v32 = vpop.f32.mrb[46].mxu1  ;;  %v9600_v14 = vpop.f32.mrb[44].mxu0 }
 0x179   :  { %v2344_v42 = vmax.f32 %v2336_v57, 0.0  ;;  %v2339_v45 = vadd.f32 %v9611_v32, %v11153_v12  ;;  %v2330_v29 = vpop.f32.mrb[47].mxu1  ;;  %v2260_v55 = vadd.f32 %v9600_v14, %v11153_v12  ;;  %v2251_v57 = vpop.f32.mrb[45].mxu0 }
 0x17a   :  { %v2342_v63 = vmax.f32 %v2328_v28, 0.0  ;;  %v2331_v48 = vadd.f32 %v11153_v12, %v2330_v29  ;;  %v2252_v22 = vadd.f32 %v11153_v12, %v2251_v57  ;;  %v9601_v28 = vpop.f32.mrb[46].mxu0 }
 0x17b   :  { %v2345_v52 = vmax.f32 %v2339_v45, 0.0  ;;  %v2268_v37 = vmax.f32 %v2260_v55, 0.0  ;;  %v2263_v34 = vadd.f32 %v9601_v28, %v11153_v12  ;;  %v2254_v31 = vpop.f32.mrb[47].mxu0 }
 0x17c   :  { %v2343_v50 = vmax.f32 %v2331_v48, 0.0  ;;  %v2266_v29 = vmax.f32 %v2252_v22, 0.0 }
 0x17d   :  { %v2347_v7 = vpack.c.bf16 %v2345_v52, %v2344_v42  ;;  %v2269_v48 = vmax.f32 %v2263_v34, 0.0 }
 0x17e   :  { %v2346_v51 = vpack.c.bf16 %v2343_v50, %v2342_v63 }
 0x17f   :  { %4188 = vrot.lane.b32.xlu1 %v2347_v7, %s10537_s27  ;;  %v2255_v7 = vadd.f32 %v11153_v12, %v2254_v31  ;;  %v11463_v41 = vpack.c.bf16 %v2269_v48, %v2268_v37 }
 0x180   :  { %4186 = vrot.lane.b32.xlu0 %v2346_v51, %s10537_s27 }
 0x181   :  { %v2267_v14 = vmax.f32 %v2255_v7, 0.0  ;;  %14658 = vst [vmem:[#allocation6_spill] sm:$0xff] %v11463_v41 }
 0x182   :  { %v9630_v32 = vpop.f32.mrb[48].mxu1 }
 0x183   :  { %v2488_v45 = vadd.f32 %v9630_v32, %v11153_v12  ;;  %v2479_v42 = vpop.f32.mrb[49].mxu1  ;;  %v11469_v31 = vpack.c.bf16 %v2267_v14, %v2266_v29 }
 0x184   :  { %v2480_v47 = vadd.f32 %v11153_v12, %v2479_v42  ;;  %v9631_v63 = vpop.f32.mrb[50].mxu1  ;;  %v14659_v42 = vmov 0   ;;  %v9620_v7 = vpop.f32.mrb[48].mxu0 }
 0x185   :  { %v2496_v52 = vmax.f32 %v2488_v45, 0.0  ;;  %v2491_v50 = vadd.f32 %v9631_v63, %v11153_v12  ;;  %v2482_v51 = vpop.f32.mrb[51].mxu1  ;;  %v2412_v29 = vadd.f32 %v9620_v7, %v11153_v12 }
 0x186   :  { %v2895_v57 = vpop.permute.xlu0 %2894  ;;  %v2494_v55 = vmax.f32 %v2480_v47, 0.0  ;;  %v2483_v28 = vadd.f32 %v11153_v12, %v2482_v51  ;;  %v2403_v47 = vpop.f32.mrb[49].mxu0 }
 0x187   :  { %v11467_v22 = vsel %vm2898_vm2, %v11314_v30, %v2895_v57  ;;  %v2497_v32 = vmax.f32 %v2491_v50, 0.0  ;;  %v9621_v63 = vpop.f32.mrb[50].mxu0 }
 0x188   :  { %3186 = vmatmul.mubr.bf16.vlgmr.msra.gmra.mrb[64].mxu0 %v11467_v22  ;;  %v2495_v34 = vmax.f32 %v2483_v28, 0.0  ;;  %v2415_v50 = vadd.f32 %v9621_v63, %v11153_v12  ;;  %v2406_v51 = vpop.f32.mrb[51].mxu0 }
 0x189   :  { %3276 = vmatpush1.bf16.msra.mxu0 %v11110_v6  ;;  %8332 = vmatprep.mubr.msk.bf16.mxu0 %vm2898_vm2, %v11341_v21  ;;  %v2499_v45 = vpack.c.bf16 %v2497_v32, %v2496_v52  ;;  %v2404_v6 = vadd.f32 %v11153_v12, %v2403_v47  ;;  %v2420_v52 = vmax.f32 %v2412_v29, 0.0 }
 0x18a   :  { %3277 = vmatprep.subr.bf16.mxu0 %v14659_v42  ;;  %v2498_v37 = vpack.c.bf16 %v2495_v34, %v2494_v55  ;;  %v2897_v30 = vpop.permute.xlu0 %2896 }
 0x18b   :  { %4310 = vrot.lane.b32.xlu1 %v2499_v45, %s10537_s27  ;;  %v11485_v14 = vsel %vm2898_vm2, %v11302_v25, %v2897_v30  ;;  %v2418_v28 = vmax.f32 %v2404_v6, 0.0  ;;  %v2421_v45 = vmax.f32 %v2415_v50, 0.0 }
 0x18c   :  { %4308 = vrot.lane.b32.xlu0 %v2498_v37, %s10537_s27 }
 0x18d   :  { %3278 = vmatpush1.bf16.msra.mxu0 %v11118_v8  ;;  %v2407_v8 = vadd.f32 %v11153_v12, %v2406_v51  ;;  %v11499_v63 = vpack.c.bf16 %v2421_v45, %v2420_v52 }
 0x18e   :  { %3279 = vmatprep.subr.bf16.mxu0 %v14659_v42  ;;  %v9650_v48 = vpop.f32.mrb[52].mxu1 }
 0x18f   :  { %v2640_v57 = vadd.f32 %v9650_v48, %v11153_v12  ;;  %v2631_v55 = vpop.f32.mrb[53].mxu1  ;;  %v2419_v25 = vmax.f32 %v2407_v8, 0.0 }
 0x190   :  { %3194 = vmatmul.mubr.bf16.gmra.mrb[68].mxu0 %v11485_v14  ;;  %v2632_v32 = vadd.f32 %v11153_v12, %v2631_v55  ;;  %v9651_v34 = vpop.f32.mrb[54].mxu1  ;;  %v9640_v8 = vpop.f32.mrb[52].mxu0 }
 0x191   :  { %3280 = vmatpush1.bf16.msra.mxu0 %v11125_v9  ;;  %v2648_v37 = vmax.f32 %v2640_v57, 0.0  ;;  %v2643_v7 = vadd.f32 %v9651_v34, %v11153_v12  ;;  %v2634_v29 = vpop.f32.mrb[55].mxu1  ;;  %8333 = vmatprep.mubr.msk.bf16.mxu0 %vm2898_vm2, %v11365_v18  ;;  %v11501_v50 = vpack.c.bf16 %v2419_v25, %v2418_v28  ;;  %v2564_v52 = vadd.f32 %v9640_v8, %v11153_v12 }
 0x192   :  { %v11495_v30 = vpop.permute.xlu1 %3210  ;;  %3281 = vmatprep.subr.bf16.mxu0 %v14659_v42  ;;  %v2646_v47 = vmax.f32 %v2632_v32, 0.0  ;;  %v2635_v6 = vadd.f32 %v11153_v12, %v2634_v29  ;;  %v2555_v32 = vpop.f32.mrb[53].mxu0 }
 0x193   :  { %v2649_v48 = vmax.f32 %v2643_v7, 0.0  ;;  %v2556_v28 = vadd.f32 %v11153_v12, %v2555_v32  ;;  %v9641_v34 = vpop.f32.mrb[54].mxu0 }
 0x194   :  { %v2647_v9 = vmax.f32 %v2635_v6, 0.0  ;;  %v2567_v7 = vadd.f32 %v9641_v34, %v11153_v12  ;;  %v2558_v6 = vpop.f32.mrb[55].mxu0 }
 0x195   :  { %3282 = vmatpush1.bf16.msra.mxu0 %v11132_v4  ;;  %v2651_v51 = vpack.c.bf16 %v2649_v48, %v2648_v37  ;;  %v2572_v37 = vmax.f32 %v2564_v52, 0.0 }
 0x196   :  { %v11504_v57 = vpop.permute.xlu1 %3212  ;;  %3283 = vmatprep.subr.bf16.mxu0 %v14659_v42  ;;  %v2650_v55 = vpack.c.bf16 %v2647_v9, %v2646_v47  ;;  %v2570_v9 = vmax.f32 %v2556_v28, 0.0 }
 0x197   :  { %4432 = vrot.lane.b32.xlu1 %v2651_v51, %s10537_s27  ;;  %v2573_v51 = vmax.f32 %v2567_v7, 0.0 }
 0x198   :  { %4430 = vrot.lane.b32.xlu0 %v2650_v55, %s10537_s27  ;;  %v2559_v55 = vadd.f32 %v11153_v12, %v2558_v6 }
 0x199   :  { %3284 = vmatpush1.bf16.msra.mxu0 %v11140_v10 }
 0x19a   :  { %v2889_v4 = vpop.permute.xlu1 %2888  ;;  %3285 = vmatprep.subr.bf16.mxu0 %v14659_v42  ;;  %v9670_v45 = vpop.f32.mrb[56].mxu1 }
 0x19b   :  { %v11516_v29 = vsel %vm2898_vm2, %v11264_v39, %v2889_v4  ;;  %v2792_v25 = vadd.f32 %v9670_v45, %v11153_v12  ;;  %v2783_v47 = vpop.f32.mrb[57].mxu1  ;;  %v11528_v45 = vpack.c.bf16 %v2573_v51, %v2572_v37 }
 0x19c   :  { %3136 = vmatprep.mubr.bf16.mxu1 %v11516_v29  ;;  %v2784_v10 = vadd.f32 %v11153_v12, %v2783_v47  ;;  %v9671_v48 = vpop.f32.mrb[58].mxu1  ;;  %v2571_v47 = vmax.f32 %v2559_v55, 0.0 }
 0x19d   :  { %3286 = vmatpush1.bf16.msra.mxu0 %v11147_v11  ;;  %v2800_v8 = vmax.f32 %v2792_v25, 0.0  ;;  %v2795_v52 = vadd.f32 %v9671_v48, %v11153_v12  ;;  %v2786_v39 = vpop.f32.mrb[59].mxu1  ;;  %v11535_v11 = vld [vmem:[%s14443_s3 + $0xb0] sm:$0xff]  }
 0x19e   :  { %v11524_v32 = vpop.permute.xlu0 %3332  ;;  %3287 = vmatprep.subr.bf16.mxu0 %v14659_v42  ;;  %v2798_v34 = vmax.f32 %v2784_v10, 0.0  ;;  %v2787_v4 = vadd.f32 %v11153_v12, %v2786_v39  ;;  %v11530_v41 = vpack.c.bf16 %v2571_v47, %v2570_v9  ;;  %v2891_v6 = vpop.permute.xlu1 %2890  ;;  %v10323_v9 = vld [vmem:[%s14442_s2] ss:$0 sm:$0xff] }
 0x19f   :  { %v2801_v28 = vmax.f32 %v2795_v52, 0.0  ;;  %v9660_v10 = vpop.f32.mrb[56].mxu0  ;;  %v11560_v52 = vsel %vm2898_vm2, %v11257_v35, %v2891_v6  ;;  %v11569_v35 = vld [vmem:[%s14443_s3 + $0xc0] sm:$0xff]  }
 0x1a0   :  { %v2799_v7 = vmax.f32 %v2787_v4, 0.0  ;;  %v2716_v51 = vadd.f32 %v10323_v9, %v9660_v10  ;;  %v2707_v55 = vpop.f32.mrb[57].mxu0 }
 0x1a1   :  { %3288 = vmatpush1.bf16.msra.mxu0 %v11535_v11  ;;  %v2803_v25 = vpack.c.bf16 %v2801_v28, %v2800_v8  ;;  %v11549_v8 = vld [vmem:[%s14443_s3] sm:$0xff]   ;;  %v2708_v39 = vadd.f32 %v10323_v9, %v2707_v55 }
 0x1a2   :  { %v2883_v48 = vpop.permute.xlu0 %2882  ;;  %3289 = vmatprep.subr.bf16.mxu0 %v14659_v42  ;;  %v2802_v12 = vpack.c.bf16 %v2799_v7, %v2798_v34  ;;  %v9661_v34 = vpop.f32.mrb[58].mxu0  ;;  %v2724_v4 = vmax.f32 %v2716_v51, 0.0 }
 0x1a3   :  { %v2901_v37 = vsel %vm2898_vm2, %v11204_v56, %v2883_v48  ;;  %4554 = vrot.lane.b32.xlu1 %v2803_v25, %s10537_s27  ;;  %v11555_v56 = vld [vmem:[%s14443_s3 + $0xb8] sm:$0xff]   ;;  %v2719_v47 = vadd.f32 %v10323_v9, %v9661_v34  ;;  %v2710_v28 = vpop.f32.mrb[59].mxu0  ;;  %v2722_v7 = vmax.f32 %v2708_v39, 0.0 }
 0x1a4   :  { %3137 = vmatmul.mubr.bf16.vlgmr.msra.gmra.mrb[60].mxu1 %v2901_v37  ;;  %4552 = vrot.lane.b32.xlu0 %v2802_v12, %s10537_s27  ;;  %v2711_v25 = vadd.f32 %v10323_v9, %v2710_v28 }
 0x1a5   :  { %8775 = vmatpush3.bf16.msra.mxu1 %v11549_v8  ;;  %3290 = vmatpush1.bf16.msra.mxu0 %v11555_v56  ;;  %v2725_v12 = vmax.f32 %v2719_v47, 0.0 }
 0x1a6   :  { %3144 = vmatprep.mubr.bf16.mxu1 %v11560_v52  ;;  %8776 = vmatprep.subr.bf16.mxu1 %v11218_v62  ;;  %v2885_v48 = vpop.permute.xlu0 %2884  ;;  %v2723_v6 = vmax.f32 %v2711_v25, 0.0 }
 0x1a7   :  { %3291 = vmatprep.subr.bf16.mxu0 %v14659_v42  ;;  %v11574_v62 = vpack.c.bf16 %v2725_v12, %v2724_v4  ;;  %v2905_v37 = vsel %vm2898_vm2, %v11196_v53, %v2885_v48 }
 0x1a8   :  { %v11578_v10 = vpack.c.bf16 %v2723_v6, %v2722_v7  ;;  %v9680_v51 = vpop.f32.mrb[60].mxu0 }
 0x1a9   :  { %8777 = vmatpush3.bf16.msra.mxu1 %v11226_v0  ;;  %3292 = vmatpush1.bf16.msra.mxu0 %v11569_v35  ;;  %v11584_v0 = vld [vmem:[%s14443_s3 + $0xc8] sm:$0xff]   ;;  %v2868_v53 = vadd.f32 %v10323_v9, %v9680_v51  ;;  %v2859_v55 = vpop.f32.mrb[61].mxu0  ;;  %v11643_v51 = vld [vmem:[%s14443_s3 + $0x10] sm:$0xff]  }
 0x1aa   :  { %8778 = vmatprep.subr.bf16.mxu1 %v11238_v19  ;;  %3293 = vmatprep.subr.bf16.mxu0 %v14659_v42  ;;  %v9681_v39 = vpop.f32.mrb[62].mxu0 }
 0x1ab   :  { %v2876_v34 = vmax.f32 %v2868_v53, 0.0  ;;  %v2871_v4 = vadd.f32 %v10323_v9, %v9681_v39  ;;  %v2862_v47 = vpop.f32.mrb[63].mxu0  ;;  %v11846_v53 = vld [vmem:[%s14443_s3 + $0x70] sm:$0xff]  }
 0x1ac   :  { %3145 = vmatmul.mubr.bf16.gmra.mrb[64].mxu1 %v2905_v37  ;;  %v2863_v7 = vadd.f32 %v10323_v9, %v2862_v47  ;;  %v11636_v37 = vsel %vm2898_vm2, %v11365_v18, %v11524_v32  ;;  %v11824_v32 = vld [vmem:[%s14443_s3 + $0x20] sm:$0xff]  }
 0x1ad   :  { %8779 = vmatpush3.bf16.msra.mxu1 %v11243_v20  ;;  %3294 = vmatpush1.bf16.msra.mxu0 %v11584_v0  ;;  %v2860_v20 = vadd.f32 %v10323_v9, %v2859_v55  ;;  %v2877_v25 = vmax.f32 %v2871_v4, 0.0  ;;  %v3215_v9 = vsel %vm2898_vm2, %v11343_v23, %v11495_v30  ;;  %v11625_v23 = vld [vmem:[%s14443_s3 + $0x8] sm:$0xff]   ;;  %v3218_v30 = vsel %vm2898_vm2, %v11341_v21, %v11504_v57  ;;  %v3335_v21 = vpop.permute.xlu1 %3334  ;;  %v11853_v55 = vld [vmem:[%s14443_s3 + $0x30] sm:$0xff]  }
 0x1ae   :  { %3258 = vmatprep.mubr.bf16.mxu1 %v11467_v22  ;;  %8780 = vmatprep.subr.bf16.mxu1 %v11254_v33  ;;  %v2875_v48 = vmax.f32 %v2863_v7, 0.0  ;;  %v11689_v18 = vsel %vm2898_vm2, %v11363_v16, %v3335_v21 }
 0x1af   :  { %3295 = vmatprep.subr.bf16.mxu0 %v14659_v42  ;;  %v2874_v28 = vmax.f32 %v2860_v20, 0.0  ;;  %v11603_v12 = vpack.c.bf16 %v2877_v25, %v2876_v34  ;;  %v11860_v20 = vld [vmem:[%s14443_s3 + $0x78] sm:$0xff]  }
 0x1b0   :  { %v11867_v34 = vld [vmem:[%s14443_s3 + $0x38] sm:$0xff]  }
 0x1b1   :  { %8781 = vmatpush3.bf16.msra.mxu1 %v11262_v36  ;;  %3296 = vmatpush1.bf16.msra.mxu0 %v11201_v54  ;;  %v11600_v54 = vld [vmem:[%s14443_s3 + $0x40] sm:$0xff]   ;;  %v11608_v6 = vpack.c.bf16 %v2875_v48, %v2874_v28 }
 0x1b2   :  { %8782 = vmatprep.subr.bf16.mxu1 %v11271_v44  ;;  %3297 = vmatprep.subr.bf16.mxu0 %v14659_v42 }
 0x1b5   :  { %8783 = vmatpush3.bf16.msra.mxu1 %v11276_v46  ;;  %3298 = vmatpush1.bf16.msra.mxu0 %v11213_v61  ;;  %v11618_v61 = vld [vmem:[%s14443_s3 + $0x48] sm:$0xff]  }
 0x1b6   :  { %8784 = vmatprep.subr.bf16.mxu1 %v11287_v58  ;;  %8830 = vmatprep.subr.bf16.mxu0 %v11600_v54 }
 0x1b8   :  { %3308 = vmatmul.mubr.bf16.vlgmr.msra.gmra.mrb[72].mxu0 %v3215_v9 }
 0x1b9   :  { %8785 = vmatpush3.bf16.msra.mxu1 %v11292_v59  ;;  %8334 = vmatprep.mubr.msk.bf16.mxu0 %vm2898_vm2, %v11363_v16  ;;  %v11780_v16 = vld [vmem:[%s14443_s3 + $0xd8] sm:$0xff]  }
 0x1ba   :  { %8831 = vmatpush3.bf16.msra.mxu0 %v11549_v8  ;;  %8786 = vmatprep.subr.bf16.mxu1 %v11307_v26 }
 0x1bb   :  { %8832 = vmatprep.subr.bf16.mxu0 %v11618_v61 }
 0x1bd   :  { %8787 = vmatpush3.bf16.msra.mxu1 %v11312_v27 }
 0x1be   :  { %8833 = vmatpush3.bf16.msra.mxu0 %v11625_v23  ;;  %8788 = vmatprep.subr.bf16.mxu1 %v11321_v38 }
 0x1bf   :  { %8834 = vmatprep.subr.bf16.mxu0 %v11238_v19  ;;  %v11659_v19 = vld [vmem:[%s14443_s3 + $0x50] sm:$0xff]  }
 0x1c0   :  { %3316 = vmatmul.mubr.bf16.gmra.mrb[76].mxu0 %v3218_v30 }
 0x1c1   :  { %8789 = vmatpush3.bf16.msra.mxu1 %v11326_v40  ;;  %3502 = vmatprep.mubr.bf16.mxu0 %v11636_v37 }
 0x1c2   :  { %8835 = vmatpush3.bf16.msra.mxu0 %v11643_v51  ;;  %8802 = vmatprep.subr.bf16.mxu1 %v11600_v54 }
 0x1c3   :  { %8836 = vmatprep.subr.bf16.mxu0 %v11254_v33  ;;  %v11669_v33 = vld [vmem:[%s14443_s3 + $0x58] sm:$0xff]  }
 0x1c4   :  { %3259 = vmatmul.mubr.bf16.vlgmr.msra.gmra.mrb[68].mxu1 %v11516_v29 }
 0x1c5   :  { %3266 = vmatprep.mubr.bf16.mxu1 %v11485_v14  ;;  %8803 = vmatpush3.bf16.msra.mxu1 %v11549_v8 }
 0x1c6   :  { %8837 = vmatpush3.bf16.msra.mxu0 %v11262_v36  ;;  %8804 = vmatprep.subr.bf16.mxu1 %v11618_v61  ;;  %v11676_v36 = vld [vmem:[%s14443_s3 + $0x18] sm:$0xff]  }
 0x1c7   :  { %8838 = vmatprep.subr.bf16.mxu0 %v11271_v44 }
 0x1c9   :  { %8805 = vmatpush3.bf16.msra.mxu1 %v11625_v23 }
 0x1ca   :  { %8839 = vmatpush3.bf16.msra.mxu0 %v11276_v46  ;;  %8806 = vmatprep.subr.bf16.mxu1 %v11659_v19 }
 0x1cb   :  { %8840 = vmatprep.subr.bf16.mxu0 %v11287_v58 }
 0x1cc   :  { %3267 = vmatmul.mubr.bf16.gmra.mrb[72].mxu1 %v11560_v52  ;;  %v11839_v52 = vld [vmem:[%s14443_s3 + $0x28] sm:$0xff]  }
 0x1cd   :  { %8807 = vmatpush3.bf16.msra.mxu1 %v11643_v51  ;;  %3380 = vmatprep.mubr.bf16.mxu1 %v3215_v9 }
 0x1ce   :  { %8841 = vmatpush3.bf16.msra.mxu0 %v11292_v59  ;;  %8808 = vmatprep.subr.bf16.mxu1 %v11669_v33 }
 0x1cf   :  { %8842 = vmatprep.subr.bf16.mxu0 %v11307_v26 }
 0x1d1   :  { %8809 = vmatpush3.bf16.msra.mxu1 %v11676_v36 }
 0x1d2   :  { %8843 = vmatpush3.bf16.msra.mxu0 %v11312_v27  ;;  %8810 = vmatprep.subr.bf16.mxu1 %v11271_v44  ;;  %v11695_v44 = vld [vmem:[%s14443_s3 + $0x80] sm:$0xff]  }
 0x1d3   :  { %8844 = vmatprep.subr.bf16.mxu0 %v11321_v38 }
 0x1d5   :  { %8811 = vmatpush3.bf16.msra.mxu1 %v11276_v46  ;;  %v11704_v46 = vld [vmem:[%s14443_s3 + $0x88] sm:$0xff]  }
 0x1d6   :  { %8845 = vmatpush3.bf16.msra.mxu0 %v11326_v40  ;;  %8812 = vmatprep.subr.bf16.mxu1 %v11287_v58  ;;  %v11713_v58 = vld [vmem:[%s14443_s3 + $0x90] sm:$0xff]  }
 0x1d7   :  { %3519 = vmatprep.subr.bf16.mxu0 %v14659_v42 }
 0x1d9   :  { %3503 = vmatmul.mubr.bf16.vlgmr.msra.gmra.mrb[80].mxu0 %v3215_v9  ;;  %8813 = vmatpush3.bf16.msra.mxu1 %v11292_v59  ;;  %v11725_v59 = vld [vmem:[%s14443_s3 + $0x98] sm:$0xff]  }
 0x1da   :  { %3510 = vmatprep.mubr.bf16.mxu0 %v11689_v18  ;;  %3520 = vmatpush1.bf16.msra.mxu0 %v11695_v44 }
 0x1db   :  { %8814 = vmatprep.subr.bf16.mxu1 %v11307_v26  ;;  %3521 = vmatprep.subr.bf16.mxu0 %v14659_v42  ;;  %v11734_v26 = vld [vmem:[%s14443_s3 + $0xa0] sm:$0xff]  }
 0x1dd   :  { %8815 = vmatpush3.bf16.msra.mxu1 %v11312_v27  ;;  %v11746_v27 = vld [vmem:[%s14443_s3 + $0xa8] sm:$0xff]  }
 0x1de   :  { %3522 = vmatpush1.bf16.msra.mxu0 %v11704_v46  ;;  %8816 = vmatprep.subr.bf16.mxu1 %v11321_v38  ;;  %v11771_v38 = vld [vmem:[%s14443_s3 + $0xd0] sm:$0xff]  }
 0x1df   :  { %3523 = vmatprep.subr.bf16.mxu0 %v14659_v42 }
 0x1e1   :  { %3511 = vmatmul.mubr.bf16.gmra.mrb[84].mxu0 %v3218_v30  ;;  %8817 = vmatpush3.bf16.msra.mxu1 %v11326_v40  ;;  %v3455_v40 = vpop.permute.xlu0 %3454 }
 0x1e2   :  { %3524 = vmatpush1.bf16.msra.mxu0 %v11713_v58  ;;  %8337 = vmatprep.mubr.msk.bf16.mxu0 %vm2898_vm2, %v11395_v5 }
 0x1e3   :  { %3397 = vmatprep.subr.bf16.mxu1 %v14659_v42  ;;  %3525 = vmatprep.subr.bf16.mxu0 %v14659_v42 }
 0x1e4   :  { %3381 = vmatmul.mubr.bf16.vlgmr.msra.gmra.mrb[76].mxu1 %v11467_v22  ;;  %v3459_v22 = vsel %vm2898_vm2, %v11381_v13, %v3455_v40 }
 0x1e5   :  { %3388 = vmatprep.mubr.bf16.mxu1 %v3218_v30  ;;  %3398 = vmatpush1.bf16.msra.mxu1 %v11695_v44  ;;  %v3577_v57 = vpop.permute.xlu0 %3576 }
 0x1e6   :  { %3526 = vmatpush1.bf16.msra.mxu0 %v11725_v59  ;;  %3399 = vmatprep.subr.bf16.mxu1 %v14659_v42  ;;  %v11802_v29 = vsel %vm2898_vm2, %v11395_v5, %v3577_v57  ;;  %v11817_v5 = vld [vmem:[%s14443_s3 + $0x60] sm:$0xff]  }
 0x1e7   :  { %3527 = vmatprep.subr.bf16.mxu0 %v14659_v42 }
 0x1e9   :  { %3400 = vmatpush1.bf16.msra.mxu1 %v11704_v46 }
 0x1ea   :  { %3528 = vmatpush1.bf16.msra.mxu0 %v11734_v26  ;;  %3401 = vmatprep.subr.bf16.mxu1 %v14659_v42 }
 0x1eb   :  { %3529 = vmatprep.subr.bf16.mxu0 %v14659_v42 }
 0x1ec   :  { %3389 = vmatmul.mubr.bf16.gmra.mrb[80].mxu1 %v11485_v14  ;;  %v3457_v14 = vpop.permute.xlu1 %3456 }
 0x1ed   :  { %3402 = vmatpush1.bf16.msra.mxu1 %v11713_v58  ;;  %8335 = vmatprep.mubr.msk.bf16.mxu1 %vm2898_vm2, %v11381_v13  ;;  %v3462_v13 = vsel %vm2898_vm2, %v11379_v3, %v3457_v14  ;;  %v11992_v14 = vld [vmem:[%s14444_s4] ss:$0 sm:$0xff] }
 0x1ee   :  { %3530 = vmatpush1.bf16.msra.mxu0 %v11746_v27  ;;  %3403 = vmatprep.subr.bf16.mxu1 %v14659_v42 }
 0x1ef   :  { %3531 = vmatprep.subr.bf16.mxu0 %v14659_v42 }
 0x1f0   :  { %v3579_v39 = vpop.permute.xlu1 %3578 }
 0x1f1   :  { %3404 = vmatpush1.bf16.msra.mxu1 %v11725_v59  ;;  %v11875_v4 = vsel %vm2898_vm2, %v11393_v1, %v3579_v39 }
 0x1f2   :  { %3532 = vmatpush1.bf16.msra.mxu0 %v11535_v11  ;;  %3405 = vmatprep.subr.bf16.mxu1 %v14659_v42 }
 0x1f3   :  { %3533 = vmatprep.subr.bf16.mxu0 %v14659_v42 }
 0x1f4   :  { %v3701_v25 = vpop.permute.xlu1 %3700 }
 0x1f5   :  { %3406 = vmatpush1.bf16.msra.mxu1 %v11734_v26  ;;  %v11949_v30 = vsel %vm2898_vm2, %v11407_v2, %v3701_v25 }
 0x1f6   :  { %3534 = vmatpush1.bf16.msra.mxu0 %v11555_v56  ;;  %3407 = vmatprep.subr.bf16.mxu1 %v14659_v42 }
 0x1f7   :  { %3535 = vmatprep.subr.bf16.mxu0 %v14659_v42 }
 0x1f9   :  { %3408 = vmatpush1.bf16.msra.mxu1 %v11746_v27 }
 0x1fa   :  { %3536 = vmatpush1.bf16.msra.mxu0 %v11569_v35  ;;  %3409 = vmatprep.subr.bf16.mxu1 %v14659_v42 }
 0x1fb   :  { %3537 = vmatprep.subr.bf16.mxu0 %v14659_v42 }
 0x1fd   :  { %3410 = vmatpush1.bf16.msra.mxu1 %v11535_v11 }
 0x1fe   :  { %3538 = vmatpush1.bf16.msra.mxu0 %v11584_v0  ;;  %3411 = vmatprep.subr.bf16.mxu1 %v14659_v42 }
 0x1ff   :  { %3539 = vmatprep.subr.bf16.mxu0 %v14659_v42 }
 0x201   :  { %3412 = vmatpush1.bf16.msra.mxu1 %v11555_v56 }
 0x202   :  { %3540 = vmatpush1.bf16.msra.mxu0 %v11771_v38  ;;  %3413 = vmatprep.subr.bf16.mxu1 %v14659_v42 }
 0x203   :  { %3541 = vmatprep.subr.bf16.mxu0 %v14659_v42 }
 0x205   :  { %3414 = vmatpush1.bf16.msra.mxu1 %v11569_v35 }
 0x206   :  { %3542 = vmatpush1.bf16.msra.mxu0 %v11780_v16  ;;  %3415 = vmatprep.subr.bf16.mxu1 %v14659_v42 }
 0x207   :  { %8886 = vmatprep.subr.bf16.mxu0 %v11600_v54 }
 0x209   :  { %3552 = vmatmul.mubr.bf16.vlgmr.msra.gmra.mrb[88].mxu0 %v3459_v22  ;;  %3416 = vmatpush1.bf16.msra.mxu1 %v11584_v0 }
 0x20a   :  { %8338 = vmatprep.mubr.msk.bf16.mxu0 %vm2898_vm2, %v11393_v1  ;;  %8887 = vmatpush3.bf16.msra.mxu0 %v11549_v8  ;;  %v3699_v1 = vpop.permute.xlu0 %3698 }
 0x20b   :  { %3417 = vmatprep.subr.bf16.mxu1 %v14659_v42  ;;  %8888 = vmatprep.subr.bf16.mxu0 %v11618_v61  ;;  %v3703_v47 = vsel %vm2898_vm2, %v11409_v17, %v3699_v1 }
 0x20d   :  { %3418 = vmatpush1.bf16.msra.mxu1 %v11771_v38 }
 0x20e   :  { %8889 = vmatpush3.bf16.msra.mxu0 %v11625_v23  ;;  %3419 = vmatprep.subr.bf16.mxu1 %v14659_v42 }
 0x20f   :  { %8890 = vmatprep.subr.bf16.mxu0 %v11659_v19 }
 0x211   :  { %3560 = vmatmul.mubr.bf16.gmra.mrb[92].mxu0 %v3462_v13  ;;  %3420 = vmatpush1.bf16.msra.mxu1 %v11780_v16 }
 0x212   :  { %8891 = vmatpush3.bf16.msra.mxu0 %v11643_v51  ;;  %3746 = vmatprep.mubr.bf16.mxu0 %v11802_v29 }
 0x213   :  { %8858 = vmatprep.subr.bf16.mxu1 %v11600_v54  ;;  %8892 = vmatprep.subr.bf16.mxu0 %v11669_v33 }
 0x214   :  { %3430 = vmatmul.mubr.bf16.vlgmr.msra.gmra.mrb[84].mxu1 %v11636_v37 }
 0x215   :  { %8336 = vmatprep.mubr.msk.bf16.mxu1 %vm2898_vm2, %v11379_v3  ;;  %8859 = vmatpush3.bf16.msra.mxu1 %v11549_v8  ;;  %v11831_v3 = vld [vmem:[%s14443_s3 + $0x68] sm:$0xff]  }
 0x216   :  { %8893 = vmatpush3.bf16.msra.mxu0 %v11676_v36  ;;  %8860 = vmatprep.subr.bf16.mxu1 %v11618_v61 }
 0x217   :  { %8894 = vmatprep.subr.bf16.mxu0 %v11817_v5 }
 0x219   :  { %8861 = vmatpush3.bf16.msra.mxu1 %v11625_v23 }
 0x21a   :  { %8895 = vmatpush3.bf16.msra.mxu0 %v11824_v32  ;;  %8862 = vmatprep.subr.bf16.mxu1 %v11659_v19 }
 0x21b   :  { %8896 = vmatprep.subr.bf16.mxu0 %v11831_v3 }
 0x21c   :  { %3438 = vmatmul.mubr.bf16.gmra.mrb[88].mxu1 %v11689_v18 }
 0x21d   :  { %8863 = vmatpush3.bf16.msra.mxu1 %v11643_v51  ;;  %3624 = vmatprep.mubr.bf16.mxu1 %v3459_v22 }
 0x21e   :  { %8897 = vmatpush3.bf16.msra.mxu0 %v11839_v52  ;;  %8864 = vmatprep.subr.bf16.mxu1 %v11669_v33 }
 0x21f   :  { %8898 = vmatprep.subr.bf16.mxu0 %v11846_v53 }
 0x221   :  { %8865 = vmatpush3.bf16.msra.mxu1 %v11676_v36 }
 0x222   :  { %8899 = vmatpush3.bf16.msra.mxu0 %v11853_v55  ;;  %8866 = vmatprep.subr.bf16.mxu1 %v11817_v5 }
 0x223   :  { %8900 = vmatprep.subr.bf16.mxu0 %v11860_v20 }
 0x225   :  { %8867 = vmatpush3.bf16.msra.mxu1 %v11824_v32 }
 0x226   :  { %8901 = vmatpush3.bf16.msra.mxu0 %v11867_v34  ;;  %8868 = vmatprep.subr.bf16.mxu1 %v11831_v3 }
 0x227   :  { %3763 = vmatprep.subr.bf16.mxu0 %v14659_v42 }
 0x229   :  { %3747 = vmatmul.mubr.bf16.vlgmr.msra.gmra.mrb[96].mxu0 %v3459_v22  ;;  %8869 = vmatpush3.bf16.msra.mxu1 %v11839_v52 }
 0x22a   :  { %3754 = vmatprep.mubr.bf16.mxu0 %v11875_v4  ;;  %3764 = vmatpush1.bf16.msra.mxu0 %v11695_v44 }
 0x22b   :  { %8870 = vmatprep.subr.bf16.mxu1 %v11846_v53  ;;  %3765 = vmatprep.subr.bf16.mxu0 %v14659_v42 }
 0x22d   :  { %8871 = vmatpush3.bf16.msra.mxu1 %v11853_v55 }
 0x22e   :  { %3766 = vmatpush1.bf16.msra.mxu0 %v11704_v46  ;;  %8872 = vmatprep.subr.bf16.mxu1 %v11860_v20 }
 0x22f   :  { %3767 = vmatprep.subr.bf16.mxu0 %v14659_v42 }
 0x231   :  { %3755 = vmatmul.mubr.bf16.gmra.mrb[100].mxu0 %v3462_v13  ;;  %8873 = vmatpush3.bf16.msra.mxu1 %v11867_v34 }
 0x232   :  { %3768 = vmatpush1.bf16.msra.mxu0 %v11713_v58  ;;  %8341 = vmatprep.mubr.msk.bf16.mxu0 %vm2898_vm2, %v11423_v24 }
 0x233   :  { %3641 = vmatprep.subr.bf16.mxu1 %v14659_v42  ;;  %3769 = vmatprep.subr.bf16.mxu0 %v14659_v42 }
 0x234   :  { %3625 = vmatmul.mubr.bf16.vlgmr.msra.gmra.mrb[92].mxu1 %v11636_v37 }
 0x235   :  { %3632 = vmatprep.mubr.bf16.mxu1 %v3462_v13  ;;  %3642 = vmatpush1.bf16.msra.mxu1 %v11695_v44 }
 0x236   :  { %3770 = vmatpush1.bf16.msra.mxu0 %v11725_v59  ;;  %3643 = vmatprep.subr.bf16.mxu1 %v14659_v42 }
 0x237   :  { %3771 = vmatprep.subr.bf16.mxu0 %v14659_v42 }
 0x239   :  { %3644 = vmatpush1.bf16.msra.mxu1 %v11704_v46 }
 0x23a   :  { %3772 = vmatpush1.bf16.msra.mxu0 %v11734_v26  ;;  %3645 = vmatprep.subr.bf16.mxu1 %v14659_v42 }
 0x23b   :  { %3773 = vmatprep.subr.bf16.mxu0 %v14659_v42 }
 0x23c   :  { %3633 = vmatmul.mubr.bf16.gmra.mrb[96].mxu1 %v11689_v18 }
 0x23d   :  { %3646 = vmatpush1.bf16.msra.mxu1 %v11713_v58  ;;  %8339 = vmatprep.mubr.msk.bf16.mxu1 %vm2898_vm2, %v11409_v17  ;;  %v3821_v17 = vpop.permute.xlu0 %3820 }
 0x23e   :  { %3774 = vmatpush1.bf16.msra.mxu0 %v11746_v27  ;;  %3647 = vmatprep.subr.bf16.mxu1 %v14659_v42  ;;  %v11955_v37 = vsel %vm2898_vm2, %v11423_v24, %v3821_v17 }
 0x23f   :  { %3775 = vmatprep.subr.bf16.mxu0 %v14659_v42 }
 0x241   :  { %3648 = vmatpush1.bf16.msra.mxu1 %v11725_v59 }
 0x242   :  { %3776 = vmatpush1.bf16.msra.mxu0 %v11535_v11  ;;  %3649 = vmatprep.subr.bf16.mxu1 %v14659_v42 }
 0x243   :  { %3777 = vmatprep.subr.bf16.mxu0 %v14659_v42 }
 0x245   :  { %3650 = vmatpush1.bf16.msra.mxu1 %v11734_v26 }
 0x246   :  { %3778 = vmatpush1.bf16.msra.mxu0 %v11555_v56  ;;  %3651 = vmatprep.subr.bf16.mxu1 %v14659_v42 }
 0x247   :  { %3779 = vmatprep.subr.bf16.mxu0 %v14659_v42 }
 0x249   :  { %3652 = vmatpush1.bf16.msra.mxu1 %v11746_v27 }
 0x24a   :  { %3780 = vmatpush1.bf16.msra.mxu0 %v11569_v35  ;;  %3653 = vmatprep.subr.bf16.mxu1 %v14659_v42 }
 0x24b   :  { %3781 = vmatprep.subr.bf16.mxu0 %v14659_v42 }
 0x24d   :  { %3654 = vmatpush1.bf16.msra.mxu1 %v11535_v11 }
 0x24e   :  { %3782 = vmatpush1.bf16.msra.mxu0 %v11584_v0  ;;  %3655 = vmatprep.subr.bf16.mxu1 %v14659_v42 }
 0x24f   :  { %3783 = vmatprep.subr.bf16.mxu0 %v14659_v42 }
 0x251   :  { %3656 = vmatpush1.bf16.msra.mxu1 %v11555_v56 }
 0x252   :  { %3784 = vmatpush1.bf16.msra.mxu0 %v11771_v38  ;;  %3657 = vmatprep.subr.bf16.mxu1 %v14659_v42 }
 0x253   :  { %3785 = vmatprep.subr.bf16.mxu0 %v14659_v42 }
 0x255   :  { %3658 = vmatpush1.bf16.msra.mxu1 %v11569_v35 }
 0x256   :  { %3786 = vmatpush1.bf16.msra.mxu0 %v11780_v16  ;;  %3659 = vmatprep.subr.bf16.mxu1 %v14659_v42 }
 0x257   :  { %8942 = vmatprep.subr.bf16.mxu0 %v11600_v54 }
 0x259   :  { %3796 = vmatmul.mubr.bf16.vlgmr.msra.gmra.mrb[104].mxu0 %v3703_v47  ;;  %3660 = vmatpush1.bf16.msra.mxu1 %v11584_v0 }
 0x25a   :  { %8342 = vmatprep.mubr.msk.bf16.mxu0 %vm2898_vm2, %v11421_v15  ;;  %8943 = vmatpush3.bf16.msra.mxu0 %v11549_v8 }
 0x25b   :  { %v11937_v28 = vpop.f32.mrb[64].mxu0  ;;  %3661 = vmatprep.subr.bf16.mxu1 %v14659_v42  ;;  %8944 = vmatprep.subr.bf16.mxu0 %v11618_v61 }
 0x25c   :  { %v3189_v7 = vpop.f32.mrb[65].mxu0 }
 0x25d   :  { %3662 = vmatpush1.bf16.msra.mxu1 %v11771_v38  ;;  %v11942_v48 = vpop.f32.mrb[66].mxu0 }
 0x25e   :  { %8945 = vmatpush3.bf16.msra.mxu0 %v11625_v23  ;;  %v3192_v9 = vpop.f32.mrb[67].mxu0  ;;  %3663 = vmatprep.subr.bf16.mxu1 %v14659_v42 }
 0x25f   :  { %8946 = vmatprep.subr.bf16.mxu0 %v11659_v19 }
 0x261   :  { %3804 = vmatmul.mubr.bf16.gmra.mrb[108].mxu0 %v11949_v30  ;;  %3664 = vmatpush1.bf16.msra.mxu1 %v11780_v16 }
 0x262   :  { %8947 = vmatpush3.bf16.msra.mxu0 %v11643_v51  ;;  %3990 = vmatprep.mubr.bf16.mxu0 %v11955_v37 }
 0x263   :  { %v11959_v21 = vpop.f32.mrb[68].mxu0  ;;  %8914 = vmatprep.subr.bf16.mxu1 %v11600_v54  ;;  %8948 = vmatprep.subr.bf16.mxu0 %v11669_v33 }
 0x264   :  { %3674 = vmatmul.mubr.bf16.vlgmr.msra.gmra.mrb[100].mxu1 %v11802_v29  ;;  %v3197_v18 = vpop.f32.mrb[69].mxu0 }
 0x265   :  { %8340 = vmatprep.mubr.msk.bf16.mxu1 %vm2898_vm2, %v11407_v2  ;;  %8915 = vmatpush3.bf16.msra.mxu1 %v11549_v8  ;;  %v11967_v24 = vpop.f32.mrb[70].mxu0  ;;  %v3823_v2 = vpop.permute.xlu1 %3822 }
 0x266   :  { %8949 = vmatpush3.bf16.msra.mxu0 %v11676_v36  ;;  %v3200_v40 = vpop.f32.mrb[71].mxu0  ;;  %8916 = vmatprep.subr.bf16.mxu1 %v11618_v61  ;;  %v11997_v39 = vsel %vm2898_vm2, %v11421_v15, %v3823_v2 }
 0x267   :  { %8950 = vmatprep.subr.bf16.mxu0 %v11817_v5 }
 0x269   :  { %8917 = vmatpush3.bf16.msra.mxu1 %v11625_v23 }
 0x26a   :  { %8951 = vmatpush3.bf16.msra.mxu0 %v11824_v32  ;;  %8918 = vmatprep.subr.bf16.mxu1 %v11659_v19 }
 0x26b   :  { %8952 = vmatprep.subr.bf16.mxu0 %v11831_v3 }
 0x26c   :  { %3682 = vmatmul.mubr.bf16.gmra.mrb[104].mxu1 %v11875_v4 }
 0x26d   :  { %8919 = vmatpush3.bf16.msra.mxu1 %v11643_v51  ;;  %3868 = vmatprep.mubr.bf16.mxu1 %v3703_v47 }
 0x26e   :  { %8953 = vmatpush3.bf16.msra.mxu0 %v11839_v52  ;;  %8920 = vmatprep.subr.bf16.mxu1 %v11669_v33 }
 0x26f   :  { %8954 = vmatprep.subr.bf16.mxu0 %v11846_v53 }
 0x271   :  { %8921 = vmatpush3.bf16.msra.mxu1 %v11676_v36 }
 0x272   :  { %8955 = vmatpush3.bf16.msra.mxu0 %v11853_v55  ;;  %8922 = vmatprep.subr.bf16.mxu1 %v11817_v5 }
 0x273   :  { %8956 = vmatprep.subr.bf16.mxu0 %v11860_v20 }
 0x275   :  { %8923 = vmatpush3.bf16.msra.mxu1 %v11824_v32 }
 0x276   :  { %8957 = vmatpush3.bf16.msra.mxu0 %v11867_v34  ;;  %8924 = vmatprep.subr.bf16.mxu1 %v11831_v3 }
 0x277   :  { %v8762_v22 = vpop.f32.mrb[60].mxu1  ;;  %4007 = vmatprep.subr.bf16.mxu0 %v14659_v42 }
 0x278   :  { %v8763_v57 = vpop.f32.mrb[61].mxu1 }
 0x279   :  { %3991 = vmatmul.mubr.bf16.vlgmr.msra.gmra.mrb[112].mxu0 %v3703_v47  ;;  %v8764_v13 = vadd.f32 %v8763_v57, %v8762_v22  ;;  %8925 = vmatpush3.bf16.msra.mxu1 %v11839_v52  ;;  %v8765_v1 = vpop.f32.mrb[62].mxu1 }
 0x27a   :  { %3998 = vmatprep.mubr.bf16.mxu0 %v11997_v39  ;;  %4008 = vmatpush1.bf16.msra.mxu0 %v11695_v44  ;;  %v8766_v7 = vpop.f32.mrb[63].mxu1 }
 0x27b   :  { %v3139_v25 = vadd.f32 %v8764_v13, %v11992_v14  ;;  %v8767_v17 = vadd.f32 %v8766_v7, %v8765_v1  ;;  %8926 = vmatprep.subr.bf16.mxu1 %v11846_v53  ;;  %4009 = vmatprep.subr.bf16.mxu0 %v14659_v42 }
 0x27d   :  { %v3188_v47 = vadd.f32 %v11937_v28, %v3139_v25  ;;  %v3142_v9 = vadd.f32 %v8767_v17, %v11992_v14  ;;  %8927 = vmatpush3.bf16.msra.mxu1 %v11853_v55 }
 0x27e   :  { %4010 = vmatpush1.bf16.msra.mxu0 %v11704_v46  ;;  %8928 = vmatprep.subr.bf16.mxu1 %v11860_v20 }
 0x27f   :  { %v3191_v15 = vadd.f32 %v11942_v48, %v3142_v9  ;;  %v8768_v18 = vpop.f32.mrb[64].mxu1  ;;  %4011 = vmatprep.subr.bf16.mxu0 %v14659_v42  ;;  %v3202_v2 = vmax.f32 %v3188_v47, 0.0 }
 0x280   :  { %v8769_v40 = vpop.f32.mrb[65].mxu1 }
 0x281   :  { %v3203_v22 = vmax.f32 %v3191_v15, 0.0  ;;  %3999 = vmatmul.mubr.bf16.gmra.mrb[116].mxu0 %v11949_v30  ;;  %v8770_v57 = vadd.f32 %v8769_v40, %v8768_v18  ;;  %8929 = vmatpush3.bf16.msra.mxu1 %v11867_v34  ;;  %v8771_v28 = vpop.f32.mrb[66].mxu1 }
 0x282   :  { %4012 = vmatpush1.bf16.msra.mxu0 %v11713_v58  ;;  %8345 = vmatprep.mubr.msk.bf16.mxu0 %vm2898_vm2, %v11451_v60  ;;  %v8772_v13 = vpop.f32.mrb[67].mxu1 }
 0x283   :  { %v12016_v1 = vpack.c.bf16 %v3203_v22, %v3202_v2  ;;  %v3147_v48 = vadd.f32 %v8770_v57, %v11992_v14  ;;  %v8773_v7 = vadd.f32 %v8772_v13, %v8771_v28  ;;  %3885 = vmatprep.subr.bf16.mxu1 %v14659_v42  ;;  %4013 = vmatprep.subr.bf16.mxu0 %v14659_v42 }
 0x284   :  { %3869 = vmatmul.mubr.bf16.vlgmr.msra.gmra.mrb[108].mxu1 %v11802_v29 }
 0x285   :  { %v3196_v25 = vadd.f32 %v11959_v21, %v3147_v48  ;;  %v3150_v17 = vadd.f32 %v8773_v7, %v11992_v14  ;;  %3876 = vmatprep.mubr.bf16.mxu1 %v11949_v30  ;;  %3886 = vmatpush1.bf16.msra.mxu1 %v11695_v44 }
 0x286   :  { %4014 = vmatpush1.bf16.msra.mxu0 %v11725_v59  ;;  %3887 = vmatprep.subr.bf16.mxu1 %v14659_v42 }
 0x287   :  { %v3199_v47 = vadd.f32 %v11967_v24, %v3150_v17  ;;  %4015 = vmatprep.subr.bf16.mxu0 %v14659_v42  ;;  %v3204_v9 = vmax.f32 %v3196_v25, 0.0 }
 0x289   :  { %v3205_v15 = vmax.f32 %v3199_v47, 0.0  ;;  %3888 = vmatpush1.bf16.msra.mxu1 %v11704_v46 }
 0x28a   :  { %4016 = vmatpush1.bf16.msra.mxu0 %v11734_v26  ;;  %3889 = vmatprep.subr.bf16.mxu1 %v14659_v42 }
 0x28b   :  { %v3309_v29 = vpop.f32.mrb[72].mxu0  ;;  %4017 = vmatprep.subr.bf16.mxu0 %v14659_v42  ;;  %v12034_v30 = vpack.c.bf16 %v3205_v15, %v3204_v9 }
 0x28c   :  { %v3311_v21 = vpop.f32.mrb[73].mxu0  ;;  %3877 = vmatmul.mubr.bf16.gmra.mrb[112].mxu1 %v11875_v4 }
 0x28d   :  { %v3312_v18 = vpop.f32.mrb[74].mxu0  ;;  %3890 = vmatpush1.bf16.msra.mxu1 %v11713_v58  ;;  %8343 = vmatprep.mubr.msk.bf16.mxu1 %vm2898_vm2, %v11437_v43 }
 0x28e   :  { %4018 = vmatpush1.bf16.msra.mxu0 %v11746_v27  ;;  %v3314_v24 = vpop.f32.mrb[75].mxu0  ;;  %3891 = vmatprep.subr.bf16.mxu1 %v14659_v42 }
 0x28f   :  { %4019 = vmatprep.subr.bf16.mxu0 %v14659_v42 }
 0x291   :  { %3892 = vmatpush1.bf16.msra.mxu1 %v11725_v59 }
 0x292   :  { %4020 = vmatpush1.bf16.msra.mxu0 %v11535_v11  ;;  %3893 = vmatprep.subr.bf16.mxu1 %v14659_v42 }
 0x293   :  { %v3317_v4 = vpop.f32.mrb[76].mxu0  ;;  %4021 = vmatprep.subr.bf16.mxu0 %v14659_v42 }
 0x294   :  { %v3319_v40 = vpop.f32.mrb[77].mxu0 }
 0x295   :  { %v3320_v2 = vpop.f32.mrb[78].mxu0  ;;  %3894 = vmatpush1.bf16.msra.mxu1 %v11734_v26 }
 0x296   :  { %4022 = vmatpush1.bf16.msra.mxu0 %v11555_v56  ;;  %v3322_v22 = vpop.f32.mrb[79].mxu0  ;;  %3895 = vmatprep.subr.bf16.mxu1 %v14659_v42 }
 0x297   :  { %v8790_v57 = vpop.f32.mrb[68].mxu1  ;;  %4023 = vmatprep.subr.bf16.mxu0 %v14659_v42 }
 0x298   :  { %v8791_v28 = vpop.f32.mrb[69].mxu1 }
 0x299   :  { %v8792_v13 = vadd.f32 %v8791_v28, %v8790_v57  ;;  %v8793_v48 = vpop.f32.mrb[70].mxu1  ;;  %3896 = vmatpush1.bf16.msra.mxu1 %v11746_v27 }
 0x29a   :  { %4024 = vmatpush1.bf16.msra.mxu0 %v11569_v35  ;;  %v8794_v7 = vpop.f32.mrb[71].mxu1  ;;  %3897 = vmatprep.subr.bf16.mxu1 %v14659_v42 }
 0x29b   :  { %v3261_v25 = vadd.f32 %v8792_v13, %v11992_v14  ;;  %v8795_v17 = vadd.f32 %v8794_v7, %v8793_v48  ;;  %4025 = vmatprep.subr.bf16.mxu0 %v14659_v42  ;;  %v3943_v48 = vpop.permute.xlu0 %3942 }
 0x29d   :  { %v3310_v47 = vadd.f32 %v3309_v29, %v3261_v25  ;;  %v3264_v9 = vadd.f32 %v8795_v17, %v11992_v14  ;;  %3898 = vmatpush1.bf16.msra.mxu1 %v11535_v11  ;;  %v12075_v17 = vsel %vm2898_vm2, %v11437_v43, %v3943_v48  ;;  %v3945_v43 = vpop.permute.xlu1 %3944 }
 0x29e   :  { %4026 = vmatpush1.bf16.msra.mxu0 %v11584_v0  ;;  %3899 = vmatprep.subr.bf16.mxu1 %v14659_v42 }
 0x29f   :  { %v3313_v15 = vadd.f32 %v3312_v18, %v3264_v9  ;;  %v8796_v21 = vpop.f32.mrb[72].mxu1  ;;  %4027 = vmatprep.subr.bf16.mxu0 %v14659_v42  ;;  %v3324_v40 = vmax.f32 %v3310_v47, 0.0 }
 0x2a0   :  { %v8797_v24 = vpop.f32.mrb[73].mxu1 }
 0x2a1   :  { %v3325_v22 = vmax.f32 %v3313_v15, 0.0  ;;  %v8798_v57 = vadd.f32 %v8797_v24, %v8796_v21  ;;  %v8799_v28 = vpop.f32.mrb[74].mxu1  ;;  %3900 = vmatpush1.bf16.msra.mxu1 %v11555_v56  ;;  %v4065_v15 = vpop.permute.xlu0 %4064 }
 0x2a2   :  { %4028 = vmatpush1.bf16.msra.mxu0 %v11771_v38  ;;  %v8800_v29 = vpop.f32.mrb[75].mxu1  ;;  %3901 = vmatprep.subr.bf16.mxu1 %v14659_v42 }
 0x2a3   :  { %v3269_v11 = vadd.f32 %v8798_v57, %v11992_v14  ;;  %v8801_v13 = vadd.f32 %v8800_v29, %v8799_v28  ;;  %4029 = vmatprep.subr.bf16.mxu0 %v14659_v42  ;;  %v12066_v18 = vpack.c.bf16 %v3325_v22, %v3324_v40  ;;  %v14661_v22 = vld [vmem:[#allocation5_spill] sm:$0xff]  ;;  %v12102_v28 = vsel %vm2898_vm2, %v11451_v60, %v4065_v15 }
 0x2a4   :  { %v12096_v57 = vsel %vm2898_vm2, %v14661_v22, %v3945_v43 }
 0x2a5   :  { %14660 = vst [vmem:[#allocation7_spill] sm:$0xff] %v12066_v18  ;;  %v3318_v7 = vadd.f32 %v3317_v4, %v3269_v11  ;;  %v3272_v25 = vadd.f32 %v8801_v13, %v11992_v14  ;;  %3902 = vmatpush1.bf16.msra.mxu1 %v11569_v35 }
 0x2a6   :  { %4030 = vmatpush1.bf16.msra.mxu0 %v11780_v16  ;;  %3903 = vmatprep.subr.bf16.mxu1 %v14659_v42 }
 0x2a7   :  { %v3321_v56 = vadd.f32 %v3320_v2, %v3272_v25  ;;  %8998 = vmatprep.subr.bf16.mxu0 %v11600_v54  ;;  %v3326_v47 = vmax.f32 %v3318_v7, 0.0 }
 0x2a9   :  { %v3327_v9 = vmax.f32 %v3321_v56, 0.0  ;;  %4040 = vmatmul.mubr.bf16.vlgmr.msra.gmra.mrb[120].mxu0 %v12075_v17  ;;  %3904 = vmatpush1.bf16.msra.mxu1 %v11584_v0 }
 0x2aa   :  { %8346 = vmatprep.mubr.msk.bf16.mxu0 %vm2898_vm2, %v11449_v49  ;;  %8999 = vmatpush3.bf16.msra.mxu0 %v11549_v8 }
 0x2ab   :  { %3905 = vmatprep.subr.bf16.mxu1 %v14659_v42  ;;  %9000 = vmatprep.subr.bf16.mxu0 %v11618_v61  ;;  %v12084_v35 = vpack.c.bf16 %v3327_v9, %v3326_v47 }
 0x2ac   :  { %v8846_v4 = vpop.f32.mrb[80].mxu0 }
 0x2ad   :  { %v8847_v2 = vpop.f32.mrb[81].mxu0  ;;  %3906 = vmatpush1.bf16.msra.mxu1 %v11771_v38 }
 0x2ae   :  { %v12087_v21 = vadd.f32 %v8847_v2, %v8846_v4  ;;  %v8849_v0 = vpop.f32.mrb[82].mxu0  ;;  %9001 = vmatpush3.bf16.msra.mxu0 %v11625_v23  ;;  %3907 = vmatprep.subr.bf16.mxu1 %v14659_v42 }
 0x2af   :  { %v8850_v24 = vpop.f32.mrb[83].mxu0  ;;  %9002 = vmatprep.subr.bf16.mxu0 %v11659_v19 }
 0x2b0   :  { %v12092_v40 = vadd.f32 %v8850_v24, %v8849_v0 }
 0x2b1   :  { %4048 = vmatmul.mubr.bf16.gmra.mrb[124].mxu0 %v12096_v57  ;;  %3908 = vmatpush1.bf16.msra.mxu1 %v11780_v16 }
 0x2b2   :  { %9003 = vmatpush3.bf16.msra.mxu0 %v11643_v51  ;;  %4234 = vmatprep.mubr.bf16.mxu0 %v12102_v28  ;;  %v3508_v2 = vadd.f32 %v12092_v40, %v11992_v14 }
 0x2b3   :  { %8970 = vmatprep.subr.bf16.mxu1 %v11600_v54  ;;  %9004 = vmatprep.subr.bf16.mxu0 %v11669_v33 }
 0x2b4   :  { %v8852_v29 = vpop.f32.mrb[84].mxu0  ;;  %3918 = vmatmul.mubr.bf16.vlgmr.msra.gmra.mrb[116].mxu1 %v11955_v37 }
 0x2b5   :  { %v8853_v11 = vpop.f32.mrb[85].mxu0  ;;  %8344 = vmatprep.mubr.msk.bf16.mxu1 %vm2898_vm2, %v14661_v22  ;;  %8971 = vmatpush3.bf16.msra.mxu1 %v11549_v8 }
 0x2b6   :  { %v12112_v13 = vadd.f32 %v8853_v11, %v8852_v29  ;;  %v8855_v60 = vpop.f32.mrb[86].mxu0  ;;  %9005 = vmatpush3.bf16.msra.mxu0 %v11676_v36  ;;  %8972 = vmatprep.subr.bf16.mxu1 %v11618_v61 }
 0x2b7   :  { %v8856_v48 = vpop.f32.mrb[87].mxu0  ;;  %v8818_v54 = vpop.f32.mrb[76].mxu1  ;;  %9006 = vmatprep.subr.bf16.mxu0 %v11817_v5 }
 0x2b8   :  { %v12117_v7 = vadd.f32 %v8856_v48, %v8855_v60  ;;  %v8819_v25 = vpop.f32.mrb[77].mxu1  ;;  %v3513_v40 = vadd.f32 %v12112_v13, %v11992_v14  ;;  %v12206_v60 = vld [vmem:[%s14443_s3 + $0xb8] sm:$0xff]  }
 0x2b9   :  { %v12119_v56 = vadd.f32 %v8819_v25, %v8818_v54  ;;  %v8821_v47 = vpop.f32.mrb[78].mxu1  ;;  %8973 = vmatpush3.bf16.msra.mxu1 %v11625_v23 }
 0x2ba   :  { %9007 = vmatpush3.bf16.msra.mxu0 %v11824_v32  ;;  %v8822_v8 = vpop.f32.mrb[79].mxu1  ;;  %8974 = vmatprep.subr.bf16.mxu1 %v11659_v19 }
 0x2bb   :  { %v12124_v9 = vadd.f32 %v8822_v8, %v8821_v47  ;;  %9008 = vmatprep.subr.bf16.mxu0 %v11831_v3  ;;  %v3383_v13 = vadd.f32 %v12119_v56, %v11992_v14  ;;  %v12219_v56 = vld [vmem:[%s14443_s3 + $0xc0] sm:$0xff]  }
 0x2bc   :  { %3926 = vmatmul.mubr.bf16.gmra.mrb[120].mxu1 %v11997_v39 }
 0x2bd   :  { %8975 = vmatpush3.bf16.msra.mxu1 %v11643_v51  ;;  %4112 = vmatprep.mubr.bf16.mxu1 %v12075_v17  ;;  %v3386_v47 = vadd.f32 %v12124_v9, %v11992_v14 }
 0x2be   :  { %9009 = vmatpush3.bf16.msra.mxu0 %v11839_v52  ;;  %8976 = vmatprep.subr.bf16.mxu1 %v11669_v33  ;;  %v4067_v33 = vpop.permute.xlu1 %4066 }
 0x2bf   :  { %v8824_v61 = vpop.f32.mrb[80].mxu1  ;;  %9010 = vmatprep.subr.bf16.mxu0 %v11846_v53 }
 0x2c0   :  { %v8825_v23 = vpop.f32.mrb[81].mxu1 }
 0x2c1   :  { %v12133_v4 = vadd.f32 %v8825_v23, %v8824_v61  ;;  %v8827_v19 = vpop.f32.mrb[82].mxu1  ;;  %8977 = vmatpush3.bf16.msra.mxu1 %v11676_v36  ;;  %v12149_v36 = vsel %vm2898_vm2, %v11449_v49, %v4067_v33  ;;  %v3505_v49 = vadd.f32 %v12087_v21, %v11992_v14 }
 0x2c2   :  { %9011 = vmatpush3.bf16.msra.mxu0 %v11853_v55  ;;  %v8828_v43 = vpop.f32.mrb[83].mxu1  ;;  %8978 = vmatprep.subr.bf16.mxu1 %v11817_v5 }
 0x2c3   :  { %v12138_v51 = vadd.f32 %v8828_v43, %v8827_v19  ;;  %9012 = vmatprep.subr.bf16.mxu0 %v11860_v20 }
 0x2c5   :  { %8979 = vmatpush3.bf16.msra.mxu1 %v11824_v32 }
 0x2c6   :  { %9013 = vmatpush3.bf16.msra.mxu0 %v11867_v34  ;;  %8980 = vmatprep.subr.bf16.mxu1 %v11831_v3 }
 0x2c7   :  { %4251 = vmatprep.subr.bf16.mxu0 %v14659_v42 }
 0x2c9   :  { %4235 = vmatmul.mubr.bf16.vlgmr.msra.gmra.mrb[128].mxu0 %v12075_v17  ;;  %8981 = vmatpush3.bf16.msra.mxu1 %v11839_v52 }
 0x2ca   :  { %4242 = vmatprep.mubr.bf16.mxu0 %v12149_v36  ;;  %4252 = vmatpush1.bf16.msra.mxu0 %v11695_v44 }
 0x2cb   :  { %8982 = vmatprep.subr.bf16.mxu1 %v11846_v53  ;;  %4253 = vmatprep.subr.bf16.mxu0 %v14659_v42 }
 0x2cd   :  { %8983 = vmatpush3.bf16.msra.mxu1 %v11853_v55 }
 0x2ce   :  { %4254 = vmatpush1.bf16.msra.mxu0 %v11704_v46  ;;  %8984 = vmatprep.subr.bf16.mxu1 %v11860_v20 }
 0x2cf   :  { %4255 = vmatprep.subr.bf16.mxu0 %v14659_v42 }
 0x2d1   :  { %4243 = vmatmul.mubr.bf16.gmra.mrb[132].mxu0 %v12096_v57  ;;  %8985 = vmatpush3.bf16.msra.mxu1 %v11867_v34 }
 0x2d2   :  { %4256 = vmatpush1.bf16.msra.mxu0 %v11713_v58  ;;  %8349 = vmatprep.mubr.msk.bf16.mxu0 %vm2898_vm2, %v11501_v50 }
 0x2d3   :  { %4129 = vmatprep.subr.bf16.mxu1 %v14659_v42  ;;  %4257 = vmatprep.subr.bf16.mxu0 %v14659_v42 }
 0x2d4   :  { %4113 = vmatmul.mubr.bf16.vlgmr.msra.gmra.mrb[124].mxu1 %v11955_v37 }
 0x2d5   :  { %4120 = vmatprep.mubr.bf16.mxu1 %v12096_v57  ;;  %4130 = vmatpush1.bf16.msra.mxu1 %v11695_v44 }
 0x2d6   :  { %4258 = vmatpush1.bf16.msra.mxu0 %v11725_v59  ;;  %4131 = vmatprep.subr.bf16.mxu1 %v14659_v42 }
 0x2d7   :  { %4259 = vmatprep.subr.bf16.mxu0 %v14659_v42 }
 0x2d9   :  { %4132 = vmatpush1.bf16.msra.mxu1 %v11704_v46 }
 0x2da   :  { %4260 = vmatpush1.bf16.msra.mxu0 %v11734_v26  ;;  %4133 = vmatprep.subr.bf16.mxu1 %v14659_v42 }
 0x2db   :  { %4261 = vmatprep.subr.bf16.mxu0 %v14659_v42 }
 0x2dc   :  { %v3553_v37 = vpop.f32.mrb[88].mxu0  ;;  %4121 = vmatmul.mubr.bf16.gmra.mrb[128].mxu1 %v11997_v39 }
 0x2dd   :  { %v3554_v44 = vadd.f32 %v3553_v37, %v3505_v49  ;;  %v3555_v17 = vpop.f32.mrb[89].mxu0  ;;  %4134 = vmatpush1.bf16.msra.mxu1 %v11713_v58  ;;  %8347 = vmatprep.mubr.msk.bf16.mxu1 %vm2898_vm2, %v11469_v31  ;;  %v12191_v58 = vld [vmem:[%s14443_s3 + $0xb0] sm:$0xff]   ;;  %v12232_v37 = vld [vmem:[%s14443_s3 + $0xc8] sm:$0xff]  }
 0x2de   :  { %v3556_v46 = vpop.f32.mrb[90].mxu0  ;;  %4262 = vmatpush1.bf16.msra.mxu0 %v11746_v27  ;;  %4135 = vmatprep.subr.bf16.mxu1 %v14659_v42 }
 0x2df   :  { %v3557_v15 = vadd.f32 %v3556_v46, %v3508_v2  ;;  %v3558_v21 = vpop.f32.mrb[91].mxu0  ;;  %4263 = vmatprep.subr.bf16.mxu0 %v14659_v42  ;;  %v3568_v39 = vmax.f32 %v3554_v44, 0.0  ;;  %v3391_v44 = vadd.f32 %v12133_v4, %v11992_v14 }
 0x2e1   :  { %v3569_v0 = vmax.f32 %v3557_v15, 0.0  ;;  %4136 = vmatpush1.bf16.msra.mxu1 %v11725_v59  ;;  %v3516_v59 = vadd.f32 %v12117_v7, %v11992_v14  ;;  %v3394_v15 = vadd.f32 %v12138_v51, %v11992_v14  ;;  %v12253_v51 = vld [vmem:[%s14443_s3 + $0x40] sm:$0xff]  }
 0x2e2   :  { %4264 = vmatpush1.bf16.msra.mxu0 %v12191_v58  ;;  %4137 = vmatprep.subr.bf16.mxu1 %v14659_v42 }
 0x2e3   :  { %v12195_v24 = vpack.c.bf16 %v3569_v0, %v3568_v39  ;;  %4265 = vmatprep.subr.bf16.mxu0 %v14659_v42 }
 0x2e4   :  { %v3561_v22 = vpop.f32.mrb[92].mxu0 }
 0x2e5   :  { %14662 = vst [vmem:[#allocation5_spill] sm:$0xff] %v12195_v24  ;;  %v3562_v57 = vadd.f32 %v3561_v22, %v3513_v40  ;;  %v3563_v29 = vpop.f32.mrb[93].mxu0  ;;  %4138 = vmatpush1.bf16.msra.mxu1 %v11734_v26  ;;  %v4187_v22 = vpop.permute.xlu0 %4186 }
 0x2e6   :  { %v3564_v11 = vpop.f32.mrb[94].mxu0  ;;  %4266 = vmatpush1.bf16.msra.mxu0 %v12206_v60  ;;  %4139 = vmatprep.subr.bf16.mxu1 %v14659_v42  ;;  %v12258_v29 = vsel %vm2898_vm2, %v11469_v31, %v4187_v22  ;;  %v12274_v31 = vld [vmem:[%s14443_s3 + $0x48] sm:$0xff]  }
 0x2e7   :  { %v3565_v48 = vadd.f32 %v3564_v11, %v3516_v59  ;;  %v3566_v54 = vpop.f32.mrb[95].mxu0  ;;  %v3431_v25 = vpop.f32.mrb[84].mxu1  ;;  %4267 = vmatprep.subr.bf16.mxu0 %v14659_v42  ;;  %v3570_v8 = vmax.f32 %v3562_v57, 0.0  ;;  %v12267_v59 = vld [vmem:[%s14443_s3] sm:$0xff]  }
 0x2e8   :  { %v3432_v7 = vadd.f32 %v3431_v25, %v3383_v13  ;;  %v3433_v26 = vpop.f32.mrb[85].mxu1  ;;  %v4189_v13 = vpop.permute.xlu1 %4188 }
 0x2e9   :  { %v3571_v61 = vmax.f32 %v3565_v48, 0.0  ;;  %v3434_v23 = vpop.f32.mrb[86].mxu1  ;;  %4140 = vmatpush1.bf16.msra.mxu1 %v11746_v27  ;;  %v4309_v54 = vpop.permute.xlu0 %4308  ;;  %v12283_v26 = vld [vmem:[%s14443_s3 + $0x8] sm:$0xff]  }
 0x2ea   :  { %v3435_v19 = vadd.f32 %v3434_v23, %v3386_v47  ;;  %4268 = vmatpush1.bf16.msra.mxu0 %v12219_v56  ;;  %v3436_v43 = vpop.f32.mrb[87].mxu1  ;;  %4141 = vmatprep.subr.bf16.mxu1 %v14659_v42  ;;  %v3446_v9 = vmax.f32 %v3432_v7, 0.0 }
 0x2eb   :  { %v12223_v33 = vpack.c.bf16 %v3571_v61, %v3570_v8  ;;  %4269 = vmatprep.subr.bf16.mxu0 %v14659_v42  ;;  %v12290_v8 = vld [vmem:[%s14443_s3 + $0x50] sm:$0xff]   ;;  %v14666_v61 = vld [vmem:[#allocation6_spill] sm:$0xff] }
 0x2ec   :  { %v3447_v49 = vmax.f32 %v3435_v19, 0.0  ;;  %v12297_v23 = vsel %vm2898_vm2, %v14666_v61, %v4189_v13  ;;  %v12303_v19 = vsel %vm2898_vm2, %v11501_v50, %v4309_v54  ;;  %v12308_v43 = vld [vmem:[%s14443_s3 + $0x10] sm:$0xff]  }
 0x2ed   :  { %14663 = vst [vmem:[#allocation8_spill] sm:$0xff] %v12223_v33  ;;  %4142 = vmatpush1.bf16.msra.mxu1 %v12191_v58 }
 0x2ee   :  { %v12227_v27 = vpack.c.bf16 %v3447_v49, %v3446_v9  ;;  %4270 = vmatpush1.bf16.msra.mxu0 %v12232_v37  ;;  %4143 = vmatprep.subr.bf16.mxu1 %v14659_v42  ;;  %v12316_v9 = vld [vmem:[%s14443_s3 + $0x58] sm:$0xff]  }
 0x2ef   :  { %v3439_v17 = vpop.f32.mrb[88].mxu1  ;;  %4271 = vmatprep.subr.bf16.mxu0 %v14659_v42 }
 0x2f0   :  { %14664 = vst [vmem:[#allocation9_spill] sm:$0xff] %v12227_v27  ;;  %v3440_v2 = vadd.f32 %v3439_v17, %v3391_v44  ;;  %v3441_v46 = vpop.f32.mrb[89].mxu1  ;;  %v12328_v17 = vld [vmem:[%s14443_s3 + $0x18] sm:$0xff]  }
 0x2f1   :  { %v3442_v21 = vpop.f32.mrb[90].mxu1  ;;  %4144 = vmatpush1.bf16.msra.mxu1 %v12206_v60 }
 0x2f2   :  { %v3443_v39 = vadd.f32 %v3442_v21, %v3394_v15  ;;  %4272 = vmatpush1.bf16.msra.mxu0 %v11771_v38  ;;  %v3444_v0 = vpop.f32.mrb[91].mxu1  ;;  %4145 = vmatprep.subr.bf16.mxu1 %v14659_v42  ;;  %v3448_v4 = vmax.f32 %v3440_v2, 0.0 }
 0x2f3   :  { %4273 = vmatprep.subr.bf16.mxu0 %v14659_v42 }
 0x2f4   :  { %v3449_v40 = vmax.f32 %v3443_v39, 0.0 }
 0x2f5   :  { %4146 = vmatpush1.bf16.msra.mxu1 %v12219_v56 }
 0x2f6   :  { %v12246_v57 = vpack.c.bf16 %v3449_v40, %v3448_v4  ;;  %4274 = vmatpush1.bf16.msra.mxu0 %v11780_v16  ;;  %4147 = vmatprep.subr.bf16.mxu1 %v14659_v42 }
 0x2f7   :  { %9054 = vmatprep.subr.bf16.mxu0 %v12253_v51 }
 0x2f8   :  { %14665 = vst [vmem:[#allocation10_spill] sm:$0xff] %v12246_v57 }
 0x2f9   :  { %4284 = vmatmul.mubr.bf16.vlgmr.msra.gmra.mrb[136].mxu0 %v12258_v29  ;;  %4148 = vmatpush1.bf16.msra.mxu1 %v12232_v37 }
 0x2fa   :  { %8350 = vmatprep.mubr.msk.bf16.mxu0 %vm2898_vm2, %v11499_v63  ;;  %9055 = vmatpush3.bf16.msra.mxu0 %v12267_v59 }
 0x2fb   :  { %4149 = vmatprep.subr.bf16.mxu1 %v14659_v42  ;;  %9056 = vmatprep.subr.bf16.mxu0 %v12274_v31 }
 0x2fc   :  { %v8902_v11 = vpop.f32.mrb[96].mxu0 }
 0x2fd   :  { %v8903_v48 = vpop.f32.mrb[97].mxu0  ;;  %4150 = vmatpush1.bf16.msra.mxu1 %v11771_v38 }
 0x2fe   :  { %v12278_v25 = vadd.f32 %v8903_v48, %v8902_v11  ;;  %v8905_v7 = vpop.f32.mrb[98].mxu0  ;;  %9057 = vmatpush3.bf16.msra.mxu0 %v12283_v26  ;;  %4151 = vmatprep.subr.bf16.mxu1 %v14659_v42 }
 0x2ff   :  { %v8906_v47 = vpop.f32.mrb[99].mxu0  ;;  %9058 = vmatprep.subr.bf16.mxu0 %v12290_v8 }
 0x300   :  { %v12293_v38 = vadd.f32 %v8906_v47, %v8905_v7  ;;  %v4311_v47 = vpop.permute.xlu1 %4310 }
 0x301   :  { %4292 = vmatmul.mubr.bf16.gmra.mrb[140].mxu0 %v12297_v23  ;;  %4152 = vmatpush1.bf16.msra.mxu1 %v11780_v16 }
 0x302   :  { %9059 = vmatpush3.bf16.msra.mxu0 %v12308_v43  ;;  %4478 = vmatprep.mubr.bf16.mxu0 %v12303_v19 }
 0x303   :  { %9026 = vmatprep.subr.bf16.mxu1 %v12253_v51  ;;  %9060 = vmatprep.subr.bf16.mxu0 %v12316_v9 }
 0x304   :  { %v8908_v50 = vpop.f32.mrb[100].mxu0  ;;  %4162 = vmatmul.mubr.bf16.vlgmr.msra.gmra.mrb[132].mxu1 %v12102_v28 }
 0x305   :  { %v8909_v16 = vpop.f32.mrb[101].mxu0  ;;  %8348 = vmatprep.mubr.msk.bf16.mxu1 %vm2898_vm2, %v14666_v61  ;;  %9027 = vmatpush3.bf16.msra.mxu1 %v12267_v59 }
 0x306   :  { %v12323_v49 = vadd.f32 %v8909_v16, %v8908_v50  ;;  %v8911_v44 = vpop.f32.mrb[102].mxu0  ;;  %9061 = vmatpush3.bf16.msra.mxu0 %v12328_v17  ;;  %9028 = vmatprep.subr.bf16.mxu1 %v12274_v31 }
 0x307   :  { %v8912_v2 = vpop.f32.mrb[103].mxu0  ;;  %v8874_v46 = vpop.f32.mrb[92].mxu1  ;;  %9062 = vmatprep.subr.bf16.mxu0 %v11817_v5 }
 0x308   :  { %v12333_v15 = vadd.f32 %v8912_v2, %v8911_v44  ;;  %v8875_v21 = vpop.f32.mrb[93].mxu1  ;;  %v3757_v44 = vadd.f32 %v12323_v49, %v11992_v14 }
 0x309   :  { %v12335_v39 = vadd.f32 %v8875_v21, %v8874_v46  ;;  %v8877_v0 = vpop.f32.mrb[94].mxu1  ;;  %9029 = vmatpush3.bf16.msra.mxu1 %v12283_v26 }
 0x30a   :  { %9063 = vmatpush3.bf16.msra.mxu0 %v11824_v32  ;;  %v8878_v4 = vpop.f32.mrb[95].mxu1  ;;  %9030 = vmatprep.subr.bf16.mxu1 %v12290_v8 }
 0x30b   :  { %v12340_v40 = vadd.f32 %v8878_v4, %v8877_v0  ;;  %9064 = vmatprep.subr.bf16.mxu0 %v11831_v3  ;;  %v3760_v0 = vadd.f32 %v12333_v15, %v11992_v14 }
 0x30c   :  { %4170 = vmatmul.mubr.bf16.gmra.mrb[136].mxu1 %v12149_v36 }
 0x30d   :  { %9031 = vmatpush3.bf16.msra.mxu1 %v12308_v43  ;;  %4356 = vmatprep.mubr.bf16.mxu1 %v12258_v29  ;;  %v3630_v15 = vadd.f32 %v12340_v40, %v11992_v14 }
 0x30e   :  { %9065 = vmatpush3.bf16.msra.mxu0 %v11839_v52  ;;  %9032 = vmatprep.subr.bf16.mxu1 %v12316_v9 }
 0x30f   :  { %v8880_v22 = vpop.f32.mrb[96].mxu1  ;;  %9066 = vmatprep.subr.bf16.mxu0 %v11846_v53 }
 0x310   :  { %v8881_v11 = vpop.f32.mrb[97].mxu1 }
 0x311   :  { %v12349_v13 = vadd.f32 %v8881_v11, %v8880_v22  ;;  %v8883_v48 = vpop.f32.mrb[98].mxu1  ;;  %9033 = vmatpush3.bf16.msra.mxu1 %v12328_v17  ;;  %v3627_v22 = vadd.f32 %v12335_v39, %v11992_v14 }
 0x312   :  { %9067 = vmatpush3.bf16.msra.mxu0 %v11853_v55  ;;  %v8884_v54 = vpop.f32.mrb[99].mxu1  ;;  %9034 = vmatprep.subr.bf16.mxu1 %v11817_v5  ;;  %v12365_v5 = vsel %vm2898_vm2, %v11499_v63, %v4311_v47  ;;  %v12380_v63 = vld [vmem:[%s14443_s3 + $0x88] sm:$0xff]  }
 0x313   :  { %v12354_v7 = vadd.f32 %v8884_v54, %v8883_v48  ;;  %9068 = vmatprep.subr.bf16.mxu0 %v11860_v20 }
 0x315   :  { %9035 = vmatpush3.bf16.msra.mxu1 %v11824_v32  ;;  %v12371_v32 = vld [vmem:[%s14443_s3 + $0x80] sm:$0xff]  }
 0x316   :  { %9069 = vmatpush3.bf16.msra.mxu0 %v11867_v34  ;;  %9036 = vmatprep.subr.bf16.mxu1 %v11831_v3  ;;  %v12390_v3 = vld [vmem:[%s14443_s3 + $0x90] sm:$0xff]  }
 0x317   :  { %4495 = vmatprep.subr.bf16.mxu0 %v14659_v42 }
 0x319   :  { %4479 = vmatmul.mubr.bf16.vlgmr.msra.gmra.mrb[144].mxu0 %v12258_v29  ;;  %9037 = vmatpush3.bf16.msra.mxu1 %v11839_v52  ;;  %v12403_v52 = vld [vmem:[%s14443_s3 + $0x98] sm:$0xff]   ;;  %v3752_v29 = vadd.f32 %v12293_v38, %v11992_v14 }
 0x31a   :  { %4486 = vmatprep.mubr.bf16.mxu0 %v12365_v5  ;;  %4496 = vmatpush1.bf16.msra.mxu0 %v12371_v32 }
 0x31b   :  { %9038 = vmatprep.subr.bf16.mxu1 %v11846_v53  ;;  %4497 = vmatprep.subr.bf16.mxu0 %v14659_v42  ;;  %v12412_v53 = vld [vmem:[%s14443_s3 + $0xa0] sm:$0xff]  }
 0x31d   :  { %9039 = vmatpush3.bf16.msra.mxu1 %v11853_v55  ;;  %v3749_v55 = vadd.f32 %v12278_v25, %v11992_v14  ;;  %v12428_v25 = vld [vmem:[%s14443_s3 + $0xa8] sm:$0xff]  }
 0x31e   :  { %4498 = vmatpush1.bf16.msra.mxu0 %v12380_v63  ;;  %9040 = vmatprep.subr.bf16.mxu1 %v11860_v20 }
 0x31f   :  { %4499 = vmatprep.subr.bf16.mxu0 %v14659_v42 }
 0x321   :  { %4487 = vmatmul.mubr.bf16.gmra.mrb[148].mxu0 %v12297_v23  ;;  %9041 = vmatpush3.bf16.msra.mxu1 %v11867_v34 }
 0x322   :  { %4500 = vmatpush1.bf16.msra.mxu0 %v12390_v3  ;;  %8353 = vmatprep.mubr.msk.bf16.mxu0 %vm2898_vm2, %v11578_v10 }
 0x323   :  { %4373 = vmatprep.subr.bf16.mxu1 %v14659_v42  ;;  %4501 = vmatprep.subr.bf16.mxu0 %v14659_v42 }
 0x324   :  { %4357 = vmatmul.mubr.bf16.vlgmr.msra.gmra.mrb[140].mxu1 %v12102_v28 }
 0x325   :  { %4364 = vmatprep.mubr.bf16.mxu1 %v12297_v23  ;;  %4374 = vmatpush1.bf16.msra.mxu1 %v12371_v32 }
 0x326   :  { %4502 = vmatpush1.bf16.msra.mxu0 %v12403_v52  ;;  %4375 = vmatprep.subr.bf16.mxu1 %v14659_v42 }
 0x327   :  { %4503 = vmatprep.subr.bf16.mxu0 %v14659_v42 }
 0x329   :  { %4376 = vmatpush1.bf16.msra.mxu1 %v12380_v63 }
 0x32a   :  { %4504 = vmatpush1.bf16.msra.mxu0 %v12412_v53  ;;  %4377 = vmatprep.subr.bf16.mxu1 %v14659_v42 }
 0x32b   :  { %4505 = vmatprep.subr.bf16.mxu0 %v14659_v42 }
 0x32c   :  { %v3797_v20 = vpop.f32.mrb[104].mxu0  ;;  %4365 = vmatmul.mubr.bf16.gmra.mrb[144].mxu1 %v12149_v36 }
 0x32d   :  { %v3798_v34 = vadd.f32 %v3797_v20, %v3749_v55  ;;  %v3799_v28 = vpop.f32.mrb[105].mxu0  ;;  %4378 = vmatpush1.bf16.msra.mxu1 %v12390_v3  ;;  %8351 = vmatprep.mubr.msk.bf16.mxu1 %vm2898_vm2, %v11530_v41 }
 0x32e   :  { %v3800_v61 = vpop.f32.mrb[106].mxu0  ;;  %4506 = vmatpush1.bf16.msra.mxu0 %v12428_v25  ;;  %4379 = vmatprep.subr.bf16.mxu1 %v14659_v42 }
 0x32f   :  { %v3801_v36 = vadd.f32 %v3800_v61, %v3752_v29  ;;  %v3802_v23 = vpop.f32.mrb[107].mxu0  ;;  %4507 = vmatprep.subr.bf16.mxu0 %v14659_v42  ;;  %v3812_v38 = vmax.f32 %v3798_v34, 0.0 }
 0x330   :  { %v3635_v23 = vadd.f32 %v12349_v13, %v11992_v14 }
 0x331   :  { %v3813_v50 = vmax.f32 %v3801_v36, 0.0  ;;  %4380 = vmatpush1.bf16.msra.mxu1 %v12403_v52 }
 0x332   :  { %4508 = vmatpush1.bf16.msra.mxu0 %v12191_v58  ;;  %4381 = vmatprep.subr.bf16.mxu1 %v14659_v42 }
 0x333   :  { %v12436_v16 = vpack.c.bf16 %v3813_v50, %v3812_v38  ;;  %4509 = vmatprep.subr.bf16.mxu0 %v14659_v42 }
 0x334   :  { %v3805_v2 = vpop.f32.mrb[108].mxu0 }
 0x335   :  { %14667 = vst [vmem:[#allocation6_spill] sm:$0xff] %v12436_v16  ;;  %v3806_v46 = vadd.f32 %v3805_v2, %v3757_v44  ;;  %v3807_v21 = vpop.f32.mrb[109].mxu0  ;;  %4382 = vmatpush1.bf16.msra.mxu1 %v12412_v53  ;;  %v3638_v2 = vadd.f32 %v12354_v7, %v11992_v14  ;;  %v4431_v7 = vpop.permute.xlu0 %4430  ;;  %v10378_v16 = vld [vmem:[%s14443_s3 + $0x38] sm:$0xff]  }
 0x336   :  { %v3808_v4 = vpop.f32.mrb[110].mxu0  ;;  %4510 = vmatpush1.bf16.msra.mxu0 %v12206_v60  ;;  %4383 = vmatprep.subr.bf16.mxu1 %v14659_v42 }
 0x337   :  { %v3809_v11 = vadd.f32 %v3808_v4, %v3760_v0  ;;  %v3810_v49 = vpop.f32.mrb[111].mxu0  ;;  %v3675_v48 = vpop.f32.mrb[100].mxu1  ;;  %4511 = vmatprep.subr.bf16.mxu0 %v14659_v42  ;;  %v3814_v55 = vmax.f32 %v3806_v46, 0.0  ;;  %v12471_v0 = vld [vmem:[%s14443_s3 + $0xd0] sm:$0xff]   ;;  %v12476_v4 = vld [vmem:[#allocation2 + $0x4] ss:$8 sps:$4 sm:$0xff]  }
 0x338   :  { %v3676_v54 = vadd.f32 %v3675_v48, %v3627_v22  ;;  %v3677_v47 = vpop.f32.mrb[101].mxu1  ;;  %v12484_v49 = vld [vmem:[%s14443_s3 + $0xd8] sm:$0xff]   ;;  %v12488_v48 = vld [vmem:[#allocation2] ss:$8 sps:$4 sm:$0xff]  }
 0x339   :  { %v3815_v20 = vmax.f32 %v3809_v11, 0.0  ;;  %v3678_v34 = vpop.f32.mrb[102].mxu1  ;;  %4384 = vmatpush1.bf16.msra.mxu1 %v12428_v25  ;;  %v4435_v47 = vsel %vm2898_vm2, %v11530_v41, %v4431_v7 }
 0x33a   :  { %v3679_v28 = vadd.f32 %v3678_v34, %v3630_v15  ;;  %4512 = vmatpush1.bf16.msra.mxu0 %v12219_v56  ;;  %v3680_v39 = vpop.f32.mrb[103].mxu1  ;;  %4385 = vmatprep.subr.bf16.mxu1 %v14659_v42  ;;  %v3690_v61 = vmax.f32 %v3676_v54, 0.0  ;;  %v12491_v54 = vld [vmem:[#allocation2 + $0x14] ss:$8 sps:$4 sm:$0xff]   ;;  %v12499_v15 = vld [vmem:[#allocation2 + $0x10] ss:$8 sps:$4 sm:$0xff]   ;;  %v4433_v34 = vpop.permute.xlu1 %4432 }
 0x33b   :  { %v12454_v29 = vpack.c.bf16 %v3815_v20, %v3814_v55  ;;  %4513 = vmatprep.subr.bf16.mxu0 %v14659_v42  ;;  %v12503_v55 = vld [vmem:[#allocation2 + $0x24] ss:$8 sps:$4 sm:$0xff]  }
 0x33c   :  { %v3691_v36 = vmax.f32 %v3679_v28, 0.0 }
 0x33d   :  { %14668 = vst [vmem:[#allocation11_spill] sm:$0xff] %v12454_v29  ;;  %4386 = vmatpush1.bf16.msra.mxu1 %v12191_v58  ;;  %v12612_v29 = vld [vmem:[#allocation2 + $0xa0] ss:$8 sps:$4 sm:$0xff]  }
 0x33e   :  { %v12458_v40 = vpack.c.bf16 %v3691_v36, %v3690_v61  ;;  %4514 = vmatpush1.bf16.msra.mxu0 %v12232_v37  ;;  %4387 = vmatprep.subr.bf16.mxu1 %v14659_v42  ;;  %v12510_v61 = vld [vmem:[#allocation2 + $0x20] ss:$8 sps:$4 sm:$0xff]   ;;  %14673 = vst [vmem:[#allocation16_spill] sm:$0xff] %v12612_v29 }
 0x33f   :  { %v3683_v38 = vpop.f32.mrb[104].mxu1  ;;  %4515 = vmatprep.subr.bf16.mxu0 %v14659_v42 }
 0x340   :  { %14669 = vst [vmem:[#allocation12_spill] sm:$0xff] %v12458_v40  ;;  %v3684_v50 = vadd.f32 %v3683_v38, %v3635_v23  ;;  %v3685_v44 = vpop.f32.mrb[105].mxu1  ;;  %v12513_v23 = vld [vmem:[#allocation2 + $0x34] ss:$8 sps:$4 sm:$0xff]   ;;  %v12650_v40 = vld [vmem:[#allocation2 + $0xe4] ss:$8 sps:$4 sm:$0xff]  }
 0x341   :  { %v3686_v46 = vpop.f32.mrb[106].mxu1  ;;  %4388 = vmatpush1.bf16.msra.mxu1 %v12206_v60  ;;  %v12525_v44 = vld [vmem:[#allocation2 + $0x30] ss:$8 sps:$4 sm:$0xff]  }
 0x342   :  { %v3687_v21 = vadd.f32 %v3686_v46, %v3638_v2  ;;  %4516 = vmatpush1.bf16.msra.mxu0 %v12471_v0  ;;  %v3688_v13 = vpop.f32.mrb[107].mxu1  ;;  %4389 = vmatprep.subr.bf16.mxu1 %v14659_v42  ;;  %v3692_v22 = vmax.f32 %v3684_v50, 0.0  ;;  %v12519_v50 = vsel %vm2898_vm2, %v11528_v45, %v4433_v34  ;;  %v12529_v2 = vld [vmem:[#allocation2 + $0x44] ss:$8 sps:$4 sm:$0xff]  }
 0x343   :  { %4517 = vmatprep.subr.bf16.mxu0 %v14659_v42 }
 0x344   :  { %v3693_v14 = vmax.f32 %v3687_v21, 0.0 }
 0x345   :  { %4390 = vmatpush1.bf16.msra.mxu1 %v12219_v56 }
 0x346   :  { %v12479_v11 = vpack.c.bf16 %v3693_v14, %v3692_v22  ;;  %4518 = vmatpush1.bf16.msra.mxu0 %v12484_v49  ;;  %4391 = vmatprep.subr.bf16.mxu1 %v14659_v42 }
 0x347   :  { %5084 = vmatprep.subr.bf16.mxu0 %v12476_v4 }
 0x348   :  { %14670 = vst [vmem:[#allocation13_spill] sm:$0xff] %v12479_v11  ;;  %v12635_v11 = vld [vmem:[#allocation2 + $0xd4] ss:$8 sps:$4 sm:$0xff]  }
 0x349   :  { %4528 = vmatmul.mubr.bf16.vlgmr.msra.gmra.mrb[152].mxu0 %v4435_v47  ;;  %4392 = vmatpush1.bf16.msra.mxu1 %v12232_v37  ;;  %14678 = vst [vmem:[#allocation21_spill] sm:$0xff] %v12635_v11 }
 0x34a   :  { %8354 = vmatprep.mubr.msk.bf16.mxu0 %vm2898_vm2, %v11574_v62  ;;  %5085 = vmatpush1.bf16.msra.mxu0 %v12488_v48 }
 0x34b   :  { %4393 = vmatprep.subr.bf16.mxu1 %v14659_v42  ;;  %5086 = vmatprep.subr.bf16.mxu0 %v12491_v54 }
 0x34c   :  { %v8958_v20 = vpop.f32.mrb[112].mxu0 }
 0x34d   :  { %v8959_v28 = vpop.f32.mrb[113].mxu0  ;;  %4394 = vmatpush1.bf16.msra.mxu1 %v12471_v0 }
 0x34e   :  { %v12506_v41 = vadd.f32 %v8959_v28, %v8958_v20  ;;  %v8961_v39 = vpop.f32.mrb[114].mxu0  ;;  %5087 = vmatpush1.bf16.msra.mxu0 %v12499_v15  ;;  %4395 = vmatprep.subr.bf16.mxu1 %v14659_v42  ;;  %v12542_v20 = vld [vmem:[#allocation2 + $0x54] ss:$8 sps:$4 sm:$0xff]  }
 0x34f   :  { %v8962_v36 = vpop.f32.mrb[115].mxu0  ;;  %5088 = vmatprep.subr.bf16.mxu0 %v12503_v55 }
 0x350   :  { %v12515_v38 = vadd.f32 %v8962_v36, %v8961_v39 }
 0x351   :  { %4536 = vmatmul.mubr.bf16.gmra.mrb[156].mxu0 %v12519_v50  ;;  %4396 = vmatpush1.bf16.msra.mxu1 %v12484_v49 }
 0x352   :  { %5089 = vmatpush1.bf16.msra.mxu0 %v12510_v61  ;;  %5116 = vmatprep.mubr.bf16.mxu0 %v12066_v18 }
 0x353   :  { %9082 = vmatprep.subr.bf16.mxu1 %v12253_v51  ;;  %5090 = vmatprep.subr.bf16.mxu0 %v12513_v23  ;;  %v12539_v51 = vld [vmem:[#allocation2 + $0x40] ss:$8 sps:$4 sm:$0xff]  }
 0x354   :  { %v8964_v46 = vpop.f32.mrb[116].mxu0  ;;  %4406 = vmatmul.mubr.bf16.vlgmr.msra.gmra.mrb[148].mxu1 %v12303_v19 }
 0x355   :  { %v8965_v21 = vpop.f32.mrb[117].mxu0  ;;  %8352 = vmatprep.mubr.msk.bf16.mxu1 %vm2898_vm2, %v11528_v45  ;;  %9083 = vmatpush3.bf16.msra.mxu1 %v12267_v59 }
 0x356   :  { %v12535_v13 = vadd.f32 %v8965_v21, %v8964_v46  ;;  %v8967_v22 = vpop.f32.mrb[118].mxu0  ;;  %5091 = vmatpush1.bf16.msra.mxu0 %v12525_v44  ;;  %9084 = vmatprep.subr.bf16.mxu1 %v12274_v31  ;;  %v12551_v31 = vld [vmem:[#allocation2 + $0x50] ss:$8 sps:$4 sm:$0xff]   ;;  %v12556_v46 = vld [vmem:[#allocation2 + $0x64] ss:$8 sps:$4 sm:$0xff]  }
 0x357   :  { %v8968_v14 = vpop.f32.mrb[119].mxu0  ;;  %v8930_v7 = vpop.f32.mrb[108].mxu1  ;;  %5092 = vmatprep.subr.bf16.mxu0 %v12529_v2  ;;  %v12565_v21 = vld [vmem:[#allocation2 + $0x74] ss:$8 sps:$4 sm:$0xff]  }
 0x358   :  { %v12544_v34 = vadd.f32 %v8968_v14, %v8967_v22  ;;  %v8931_v45 = vpop.f32.mrb[109].mxu1 }
 0x359   :  { %v12546_v28 = vadd.f32 %v8931_v45, %v8930_v7  ;;  %v8933_v59 = vpop.f32.mrb[110].mxu1  ;;  %9085 = vmatpush3.bf16.msra.mxu1 %v12283_v26  ;;  %v12562_v26 = vld [vmem:[#allocation2 + $0x60] ss:$8 sps:$4 sm:$0xff]  }
 0x35a   :  { %5093 = vmatpush1.bf16.msra.mxu0 %v12539_v51  ;;  %v8934_v39 = vpop.f32.mrb[111].mxu1  ;;  %9086 = vmatprep.subr.bf16.mxu1 %v12290_v8 }
 0x35b   :  { %v12553_v36 = vadd.f32 %v8934_v39, %v8933_v59  ;;  %5094 = vmatprep.subr.bf16.mxu0 %v12542_v20  ;;  %v12579_v59 = vld [vmem:[#allocation2 + $0x84] ss:$8 sps:$4 sm:$0xff]  }
 0x35c   :  { %4414 = vmatmul.mubr.bf16.gmra.mrb[152].mxu1 %v12365_v5  ;;  %v10373_v39 = vld [vmem:[%s14443_s3 + $0x68] sm:$0xff]  }
 0x35d   :  { %9087 = vmatpush3.bf16.msra.mxu1 %v12308_v43  ;;  %4600 = vmatprep.mubr.bf16.mxu1 %v4435_v47  ;;  %v12574_v47 = vld [vmem:[#allocation2 + $0x70] ss:$8 sps:$4 sm:$0xff]  }
 0x35e   :  { %5095 = vmatpush1.bf16.msra.mxu0 %v12551_v31  ;;  %9088 = vmatprep.subr.bf16.mxu1 %v12316_v9  ;;  %v10371_v9 = vld [vmem:[%s14443_s3 + $0x60] sm:$0xff]  }
 0x35f   :  { %v8936_v8 = vpop.f32.mrb[112].mxu1  ;;  %5096 = vmatprep.subr.bf16.mxu0 %v12556_v46 }
 0x360   :  { %v8937_v22 = vpop.f32.mrb[113].mxu1 }
 0x361   :  { %v12567_v14 = vadd.f32 %v8937_v22, %v8936_v8  ;;  %v8939_v7 = vpop.f32.mrb[114].mxu1  ;;  %9089 = vmatpush3.bf16.msra.mxu1 %v12328_v17  ;;  %v10372_v17 = vld [vmem:[%s14443_s3 + $0x20] sm:$0xff]   ;;  %v12591_v22 = vld [vmem:[#allocation2 + $0x94] ss:$8 sps:$4 sm:$0xff]  }
 0x362   :  { %5097 = vmatpush1.bf16.msra.mxu0 %v12562_v26  ;;  %v8940_v43 = vpop.f32.mrb[115].mxu1  ;;  %9090 = vmatprep.subr.bf16.mxu1 %v10371_v9  ;;  %v12588_v8 = vld [vmem:[#allocation2 + $0x80] ss:$8 sps:$4 sm:$0xff]   ;;  %v12600_v9 = vld [vmem:[#allocation2 + $0x90] ss:$8 sps:$4 sm:$0xff]  }
 0x363   :  { %v12576_v45 = vadd.f32 %v8940_v43, %v8939_v7  ;;  %5098 = vmatprep.subr.bf16.mxu0 %v12565_v21  ;;  %v10374_v7 = vld [vmem:[%s14443_s3 + $0x28] sm:$0xff]   ;;  %v10375_v43 = vld [vmem:[%s14443_s3 + $0x70] sm:$0xff]   ;;  %14671 = vst [vmem:[#allocation14_spill] sm:$0xff] %v12600_v9 }
 0x365   :  { %9091 = vmatpush3.bf16.msra.mxu1 %v10372_v17  ;;  %v12603_v17 = vld [vmem:[#allocation2 + $0xa4] ss:$8 sps:$4 sm:$0xff]  }
 0x366   :  { %5099 = vmatpush1.bf16.msra.mxu0 %v12574_v47  ;;  %9092 = vmatprep.subr.bf16.mxu1 %v10373_v39  ;;  %14672 = vst [vmem:[#allocation15_spill] sm:$0xff] %v12603_v17  ;;  %v10376_v39 = vld [vmem:[%s14443_s3 + $0x30] sm:$0xff]  }
 0x367   :  { %5100 = vmatprep.subr.bf16.mxu0 %v12579_v59 }
 0x369   :  { %9093 = vmatpush3.bf16.msra.mxu1 %v10374_v7  ;;  %v10377_v7 = vld [vmem:[%s14443_s3 + $0x78] sm:$0xff]  }
 0x36a   :  { %5101 = vmatpush1.bf16.msra.mxu0 %v12588_v8  ;;  %9094 = vmatprep.subr.bf16.mxu1 %v10375_v43  ;;  %v12615_v43 = vld [vmem:[#allocation2 + $0xb4] ss:$8 sps:$4 sm:$0xff]  }
 0x36b   :  { %5102 = vmatprep.subr.bf16.mxu0 %v12591_v22  ;;  %14674 = vst [vmem:[#allocation17_spill] sm:$0xff] %v12615_v43 }
 0x36d   :  { %9095 = vmatpush3.bf16.msra.mxu1 %v10376_v39  ;;  %v12622_v39 = vld [vmem:[#allocation2 + $0xb0] ss:$8 sps:$4 sm:$0xff]  }
 0x36e   :  { %5103 = vmatpush1.bf16.msra.mxu0 %v12600_v9  ;;  %9096 = vmatprep.subr.bf16.mxu1 %v10377_v7  ;;  %14675 = vst [vmem:[#allocation18_spill] sm:$0xff] %v12622_v39  ;;  %v12625_v7 = vld [vmem:[#allocation2 + $0xc4] ss:$8 sps:$4 sm:$0xff]  }
 0x36f   :  { %5104 = vmatprep.subr.bf16.mxu0 %v12603_v17  ;;  %14676 = vst [vmem:[#allocation19_spill] sm:$0xff] %v12625_v7 }
 0x371   :  { %9097 = vmatpush3.bf16.msra.mxu1 %v10378_v16  ;;  %v12632_v16 = vld [vmem:[#allocation2 + $0xc0] ss:$8 sps:$4 sm:$0xff]  }
 0x372   :  { %5105 = vmatpush1.bf16.msra.mxu0 %v12612_v29  ;;  %4617 = vmatprep.subr.bf16.mxu1 %v14659_v42  ;;  %14677 = vst [vmem:[#allocation20_spill] sm:$0xff] %v12632_v16 }
 0x373   :  { %5106 = vmatprep.subr.bf16.mxu0 %v12615_v43 }
 0x374   :  { %4601 = vmatmul.mubr.bf16.vlgmr.msra.gmra.mrb[156].mxu1 %v12303_v19  ;;  %v12640_v19 = vld [vmem:[#allocation2 + $0xd0] ss:$8 sps:$4 sm:$0xff]  }
 0x375   :  { %4608 = vmatprep.mubr.bf16.mxu1 %v12519_v50  ;;  %4618 = vmatpush1.bf16.msra.mxu1 %v12371_v32  ;;  %v12645_v32 = vld [vmem:[%s14444_s4] ss:$0 sm:$0xff] }
 0x376   :  { %5107 = vmatpush1.bf16.msra.mxu0 %v12622_v39  ;;  %4619 = vmatprep.subr.bf16.mxu1 %v14659_v42  ;;  %v3993_v50 = vadd.f32 %v12645_v32, %v12506_v41  ;;  %v12660_v41 = vld [vmem:[#allocation2 + $0xe0] ss:$8 sps:$4 sm:$0xff]  }
 0x377   :  { %5108 = vmatprep.subr.bf16.mxu0 %v12625_v7  ;;  %v3996_v7 = vadd.f32 %v12645_v32, %v12515_v38 }
 0x379   :  { %4620 = vmatpush1.bf16.msra.mxu1 %v12380_v63 }
 0x37a   :  { %5109 = vmatpush1.bf16.msra.mxu0 %v12632_v16  ;;  %4621 = vmatprep.subr.bf16.mxu1 %v14659_v42 }
 0x37b   :  { %5110 = vmatprep.subr.bf16.mxu0 %v12635_v11 }
 0x37c   :  { %v4041_v18 = vpop.f32.mrb[120].mxu0  ;;  %4609 = vmatmul.mubr.bf16.gmra.mrb[160].mxu1 %v12365_v5 }
 0x37d   :  { %v4042_v63 = vadd.f32 %v4041_v18, %v3993_v50  ;;  %v4043_v16 = vpop.f32.mrb[121].mxu0  ;;  %4622 = vmatpush1.bf16.msra.mxu1 %v12390_v3  ;;  %8355 = vmatprep.mubr.msk.bf16.mxu1 %vm2898_vm2, %v11608_v6  ;;  %v12663_v18 = vld [vmem:[#allocation2 + $0xf4] ss:$8 sps:$4 sm:$0xff]   ;;  %v12668_v6 = vld [vmem:[#allocation2 + $0xf0] ss:$8 sps:$4 sm:$0xff]  }
 0x37e   :  { %v4044_v39 = vpop.f32.mrb[122].mxu0  ;;  %5111 = vmatpush1.bf16.msra.mxu0 %v12640_v19  ;;  %4623 = vmatprep.subr.bf16.mxu1 %v14659_v42  ;;  %14679 = vst [vmem:[#allocation22_spill] sm:$0xff] %v12663_v18  ;;  %14680 = vst [vmem:[#allocation23_spill] sm:$0xff] %v12668_v6 }
 0x37f   :  { %v4045_v11 = vadd.f32 %v4044_v39, %v3996_v7  ;;  %v4046_v57 = vpop.f32.mrb[123].mxu0  ;;  %5112 = vmatprep.subr.bf16.mxu0 %v12650_v40  ;;  %v4056_v5 = vmax.f32 %v4042_v63, 0.0  ;;  %v4001_v39 = vadd.f32 %v12645_v32, %v12535_v13  ;;  %v3871_v63 = vadd.f32 %v12645_v32, %v12546_v28  ;;  %v12684_v13 = vld [vmem:[#allocation2 + $0x100] ss:$8 sps:$4 sm:$0xff]  }
 0x380   :  { %v12675_v57 = vld [vmem:[#allocation2 + $0x104] ss:$8 sps:$4 sm:$0xff]  }
 0x381   :  { %v4057_v38 = vmax.f32 %v4045_v11, 0.0  ;;  %4624 = vmatpush1.bf16.msra.mxu1 %v12403_v52  ;;  %v4004_v52 = vadd.f32 %v12645_v32, %v12544_v34 }
 0x382   :  { %5113 = vmatpush1.bf16.msra.mxu0 %v12660_v41  ;;  %4625 = vmatprep.subr.bf16.mxu1 %v14659_v42 }
 0x383   :  { %v12670_v3 = vpack.c.bf16 %v4057_v38, %v4056_v5  ;;  %5114 = vmatprep.subr.bf16.mxu0 %v12663_v18 }
 0x384   :  { %v4049_v7 = vpop.f32.mrb[124].mxu0 }
 0x385   :  { %14681 = vst [vmem:[#allocation24_spill] sm:$0xff] %v12670_v3  ;;  %v4050_v16 = vadd.f32 %v4049_v7, %v4001_v39  ;;  %v4051_v11 = vpop.f32.mrb[125].mxu0  ;;  %4626 = vmatpush1.bf16.msra.mxu1 %v12412_v53  ;;  %v12687_v39 = vld [vmem:[#allocation2 + $0x114] ss:$8 sps:$4 sm:$0xff]   ;;  %v3874_v53 = vadd.f32 %v12645_v32, %v12553_v36  ;;  %v12701_v36 = vld [vmem:[#allocation2 + $0x124] ss:$8 sps:$4 sm:$0xff]  }
 0x386   :  { %v4052_v50 = vpop.f32.mrb[126].mxu0  ;;  %5115 = vmatpush1.bf16.msra.mxu0 %v12668_v6  ;;  %4627 = vmatprep.subr.bf16.mxu1 %v14659_v42 }
 0x387   :  { %v4053_v5 = vadd.f32 %v4052_v50, %v4004_v52  ;;  %v4054_v38 = vpop.f32.mrb[127].mxu0  ;;  %v3919_v3 = vpop.f32.mrb[116].mxu1  ;;  %5137 = vmatprep.subr.bf16.mxu0 %v12675_v57  ;;  %v4058_v11 = vmax.f32 %v4050_v16, 0.0  ;;  %v12695_v50 = vld [vmem:[#allocation2 + $0x110] ss:$8 sps:$4 sm:$0xff]  }
 0x388   :  { %v3920_v34 = vadd.f32 %v3919_v3, %v3871_v63  ;;  %v3921_v7 = vpop.f32.mrb[117].mxu1  ;;  %v3879_v63 = vadd.f32 %v12645_v32, %v12567_v14  ;;  %v12713_v38 = vld [vmem:[#allocation2 + $0x134] ss:$8 sps:$4 sm:$0xff]  }
 0x389   :  { %v4059_v6 = vmax.f32 %v4053_v5, 0.0  ;;  %5117 = vmatmul.mubr.bf16.vlgmr.msra.gmra.mrb[160].mxu0 %v12016_v1  ;;  %v3922_v28 = vpop.f32.mrb[118].mxu1  ;;  %4628 = vmatpush1.bf16.msra.mxu1 %v12428_v25 }
 0x38a   :  { %v3923_v18 = vadd.f32 %v3922_v28, %v3874_v53  ;;  %5126 = vmatprep.mubr.bf16.mxu0 %v12084_v35  ;;  %5138 = vmatpush1.bf16.msra.mxu0 %v12684_v13  ;;  %v3924_v52 = vpop.f32.mrb[119].mxu1  ;;  %v3934_v1 = vmax.f32 %v3920_v34, 0.0  ;;  %v12725_v28 = vld [vmem:[#allocation2 + $0x144] ss:$8 sps:$4 sm:$0xff]  }
 0x38b   :  { %v12697_v3 = vpack.c.bf16 %v4059_v6, %v4058_v11  ;;  %4629 = vmatprep.subr.bf16.mxu1 %v14659_v42  ;;  %5139 = vmatprep.subr.bf16.mxu0 %v12687_v39  ;;  %v12710_v6 = vld [vmem:[#allocation2 + $0x120] ss:$8 sps:$4 sm:$0xff]   ;;  %v12721_v11 = vld [vmem:[#allocation2 + $0x130] ss:$8 sps:$4 sm:$0xff]  }
 0x38c   :  { %v3935_v16 = vmax.f32 %v3923_v18, 0.0 }
 0x38d   :  { %14682 = vst [vmem:[#allocation25_spill] sm:$0xff] %v12697_v3  ;;  %4630 = vmatpush1.bf16.msra.mxu1 %v12191_v58  ;;  %v3882_v58 = vadd.f32 %v12645_v32, %v12576_v45  ;;  %v4555_v3 = vpop.permute.xlu1 %4554 }
 0x38e   :  { %v12704_v25 = vpack.c.bf16 %v3935_v16, %v3934_v1  ;;  %5140 = vmatpush1.bf16.msra.mxu0 %v12695_v50  ;;  %4631 = vmatprep.subr.bf16.mxu1 %v14659_v42  ;;  %v12735_v1 = vld [vmem:[#allocation2 + $0x154] ss:$8 sps:$4 sm:$0xff]   ;;  %v12740_v16 = vld [vmem:[#allocation2 + $0x150] ss:$8 sps:$4 sm:$0xff]  }
 0x38f   :  { %v3927_v5 = vpop.f32.mrb[120].mxu1  ;;  %5141 = vmatprep.subr.bf16.mxu0 %v12701_v36 }
 0x390   :  { %14683 = vst [vmem:[#allocation26_spill] sm:$0xff] %v12704_v25  ;;  %v3928_v34 = vadd.f32 %v3927_v5, %v3879_v63  ;;  %v3929_v18 = vpop.f32.mrb[121].mxu1 }
 0x391   :  { %5127 = vmatmul.mubr.bf16.gmra.mrb[164].mxu0 %v12034_v30  ;;  %v3930_v7 = vpop.f32.mrb[122].mxu1  ;;  %4632 = vmatpush1.bf16.msra.mxu1 %v12206_v60  ;;  %v12732_v60 = vld [vmem:[#allocation2 + $0x140] ss:$8 sps:$4 sm:$0xff]  }
 0x392   :  { %v3931_v14 = vadd.f32 %v3930_v7, %v3882_v58  ;;  %5142 = vmatpush1.bf16.msra.mxu0 %v12710_v6  ;;  %5169 = vmatprep.mubr.bf16.mxu0 %v12195_v24  ;;  %v3932_v53 = vpop.f32.mrb[123].mxu1  ;;  %v3936_v45 = vmax.f32 %v3928_v34, 0.0  ;;  %v12753_v7 = vld [vmem:[#allocation2 + $0x174] ss:$8 sps:$4 sm:$0xff]  }
 0x393   :  { %4633 = vmatprep.subr.bf16.mxu1 %v14659_v42  ;;  %5143 = vmatprep.subr.bf16.mxu0 %v12713_v38  ;;  %14685 = vst [vmem:[#allocation28_spill] sm:$0xff] %v12753_v7 }
 0x394   :  { %v3937_v52 = vmax.f32 %v3931_v14, 0.0  ;;  %v4553_v14 = vpop.permute.xlu0 %4552 }
 0x395   :  { %4634 = vmatpush1.bf16.msra.mxu1 %v12219_v56  ;;  %v12743_v56 = vld [vmem:[#allocation2 + $0x164] ss:$8 sps:$4 sm:$0xff]  }
 0x396   :  { %v12728_v30 = vpack.c.bf16 %v3937_v52, %v3936_v45  ;;  %5144 = vmatpush1.bf16.msra.mxu0 %v12721_v11  ;;  %4635 = vmatprep.subr.bf16.mxu1 %v14659_v42  ;;  %v4557_v45 = vsel %vm2898_vm2, %v11578_v10, %v4553_v14  ;;  %v12765_v52 = vld [vmem:[#allocation2 + $0x184] ss:$8 sps:$4 sm:$0xff]   ;;  %v12774_v10 = vld [vmem:[#allocation2 + $0x180] ss:$8 sps:$4 sm:$0xff]  }
 0x397   :  { %5145 = vmatprep.subr.bf16.mxu0 %v12725_v28  ;;  %14687 = vst [vmem:[#allocation30_spill] sm:$0xff] %v12765_v52 }
 0x398   :  { %14684 = vst [vmem:[#allocation27_spill] sm:$0xff] %v12728_v30 }
 0x399   :  { %4636 = vmatpush1.bf16.msra.mxu1 %v12232_v37  ;;  %v12750_v37 = vld [vmem:[#allocation2 + $0x160] ss:$8 sps:$4 sm:$0xff]  }
 0x39a   :  { %5146 = vmatpush1.bf16.msra.mxu0 %v12732_v60  ;;  %4637 = vmatprep.subr.bf16.mxu1 %v14659_v42 }
 0x39b   :  { %5147 = vmatprep.subr.bf16.mxu0 %v12735_v1 }
 0x39c   :  { %v9014_v63 = vpop.f32.mrb[128].mxu0 }
 0x39d   :  { %v9015_v5 = vpop.f32.mrb[129].mxu0  ;;  %4638 = vmatpush1.bf16.msra.mxu1 %v12471_v0  ;;  %v12760_v0 = vld [vmem:[#allocation2 + $0x170] ss:$8 sps:$4 sm:$0xff]  }
 0x39e   :  { %v12746_v34 = vadd.f32 %v9015_v5, %v9014_v63  ;;  %v9017_v18 = vpop.f32.mrb[130].mxu0  ;;  %5148 = vmatpush1.bf16.msra.mxu0 %v12740_v16  ;;  %4639 = vmatprep.subr.bf16.mxu1 %v14659_v42  ;;  %14686 = vst [vmem:[#allocation29_spill] sm:$0xff] %v12760_v0 }
 0x39f   :  { %v9018_v58 = vpop.f32.mrb[131].mxu0  ;;  %5149 = vmatprep.subr.bf16.mxu0 %v12743_v56 }
 0x3a0   :  { %v12755_v53 = vadd.f32 %v9018_v58, %v9017_v18 }
 0x3a1   :  { %4640 = vmatpush1.bf16.msra.mxu1 %v12484_v49 }
 0x3a2   :  { %5150 = vmatpush1.bf16.msra.mxu0 %v12750_v37  ;;  %5255 = vmatprep.subr.bf16.mxu1 %v12476_v4 }
 0x3a3   :  { %5151 = vmatprep.subr.bf16.mxu0 %v12753_v7 }
 0x3a4   :  { %v9020_v63 = vpop.f32.mrb[132].mxu0  ;;  %4650 = vmatmul.mubr.bf16.vlgmr.msra.gmra.mrb[164].mxu1 %v4557_v45  ;;  %v12777_v45 = vld [vmem:[#allocation2 + $0x194] ss:$8 sps:$4 sm:$0xff]  }
 0x3a5   :  { %v9021_v5 = vpop.f32.mrb[133].mxu0  ;;  %8356 = vmatprep.mubr.msk.bf16.mxu1 %vm2898_vm2, %v11603_v12  ;;  %5256 = vmatpush1.bf16.msra.mxu1 %v12488_v48 }
 0x3a6   :  { %v12770_v49 = vadd.f32 %v9021_v5, %v9020_v63  ;;  %v9023_v18 = vpop.f32.mrb[134].mxu0  ;;  %5152 = vmatpush1.bf16.msra.mxu0 %v12760_v0  ;;  %5257 = vmatprep.subr.bf16.mxu1 %v12491_v54  ;;  %v12786_v0 = vld [vmem:[#allocation2 + $0x190] ss:$8 sps:$4 sm:$0xff]  }
 0x3a7   :  { %v9024_v58 = vpop.f32.mrb[135].mxu0  ;;  %v8986_v14 = vpop.f32.mrb[124].mxu1  ;;  %5153 = vmatprep.subr.bf16.mxu0 %v12765_v52  ;;  %14688 = vst [vmem:[#allocation31_spill] sm:$0xff] %v12786_v0  ;;  %v4560_v52 = vsel %vm2898_vm2, %v11574_v62, %v4555_v3 }
 0x3a8   :  { %v12779_v30 = vadd.f32 %v9024_v58, %v9023_v18  ;;  %v8987_v12 = vpop.f32.mrb[125].mxu1  ;;  %v12793_v18 = vld [vmem:[#allocation2 + $0x1a4] ss:$8 sps:$4 sm:$0xff]   ;;  %v12799_v58 = vld [vmem:[#allocation2 + $0x1a0] ss:$8 sps:$4 sm:$0xff]  }
 0x3a9   :  { %v12781_v25 = vadd.f32 %v8987_v12, %v8986_v14  ;;  %v8989_v63 = vpop.f32.mrb[126].mxu1  ;;  %5258 = vmatpush1.bf16.msra.mxu1 %v12499_v15  ;;  %14689 = vst [vmem:[#allocation32_spill] sm:$0xff] %v12793_v18  ;;  %14690 = vst [vmem:[#allocation33_spill] sm:$0xff] %v12799_v58  ;;  %v12802_v12 = vld [vmem:[#allocation2 + $0x1b4] ss:$8 sps:$4 sm:$0xff]  }
 0x3aa   :  { %5154 = vmatpush1.bf16.msra.mxu0 %v12774_v10  ;;  %v8990_v5 = vpop.f32.mrb[127].mxu1  ;;  %5259 = vmatprep.subr.bf16.mxu1 %v12503_v55  ;;  %14691 = vst [vmem:[#allocation34_spill] sm:$0xff] %v12802_v12 }
 0x3ab   :  { %v12788_v7 = vadd.f32 %v8990_v5, %v8989_v63  ;;  %5155 = vmatprep.subr.bf16.mxu0 %v12777_v45  ;;  %v12809_v5 = vld [vmem:[#allocation2 + $0x1b0] ss:$8 sps:$4 sm:$0xff]  }
 0x3ac   :  { %4658 = vmatmul.mubr.bf16.gmra.mrb[168].mxu1 %v4560_v52  ;;  %14692 = vst [vmem:[#allocation35_spill] sm:$0xff] %v12809_v5 }
 0x3ad   :  { %5260 = vmatpush1.bf16.msra.mxu1 %v12510_v61  ;;  %5287 = vmatprep.mubr.bf16.mxu1 %v12227_v27 }
 0x3ae   :  { %5156 = vmatpush1.bf16.msra.mxu0 %v12786_v0  ;;  %5261 = vmatprep.subr.bf16.mxu1 %v12513_v23 }
 0x3af   :  { %v8992_v14 = vpop.f32.mrb[128].mxu1  ;;  %5157 = vmatprep.subr.bf16.mxu0 %v12793_v18  ;;  %v12814_v18 = vld [vmem:[#allocation2 + $0x1c4] ss:$8 sps:$4 sm:$0xff]  }
 0x3b0   :  { %v8993_v62 = vpop.f32.mrb[129].mxu1  ;;  %14693 = vst [vmem:[#allocation36_spill] sm:$0xff] %v12814_v18 }
 0x3b1   :  { %v12804_v3 = vadd.f32 %v8993_v62, %v8992_v14  ;;  %v8995_v63 = vpop.f32.mrb[130].mxu1  ;;  %5262 = vmatpush1.bf16.msra.mxu1 %v12525_v44  ;;  %v12819_v14 = vld [vmem:[#allocation2 + $0x1c0] ss:$8 sps:$4 sm:$0xff]   ;;  %v12822_v62 = vld [vmem:[#allocation2 + $0x1d4] ss:$8 sps:$4 sm:$0xff]  }
 0x3b2   :  { %5158 = vmatpush1.bf16.msra.mxu0 %v12799_v58  ;;  %v8996_v52 = vpop.f32.mrb[131].mxu1  ;;  %5263 = vmatprep.subr.bf16.mxu1 %v12529_v2  ;;  %14694 = vst [vmem:[#allocation37_spill] sm:$0xff] %v12819_v14  ;;  %14695 = vst [vmem:[#allocation38_spill] sm:$0xff] %v12822_v62 }
 0x3b3   :  { %v12811_v0 = vadd.f32 %v8996_v52, %v8995_v63  ;;  %5159 = vmatprep.subr.bf16.mxu0 %v12802_v12  ;;  %v12827_v63 = vld [vmem:[#allocation2 + $0x1d0] ss:$8 sps:$4 sm:$0xff]   ;;  %v12830_v52 = vld [vmem:[#allocation2 + $0x1e4] ss:$8 sps:$4 sm:$0xff]  }
 0x3b4   :  { %14696 = vst [vmem:[#allocation39_spill] sm:$0xff] %v12827_v63  ;;  %14697 = vst [vmem:[#allocation40_spill] sm:$0xff] %v12830_v52 }
 0x3b5   :  { %5264 = vmatpush1.bf16.msra.mxu1 %v12539_v51 }
 0x3b6   :  { %5160 = vmatpush1.bf16.msra.mxu0 %v12809_v5  ;;  %5265 = vmatprep.subr.bf16.mxu1 %v12542_v20  ;;  %v12838_v5 = vld [vmem:[#allocation2 + $0x1f4] ss:$8 sps:$4 sm:$0xff]  }
 0x3b7   :  { %5161 = vmatprep.subr.bf16.mxu0 %v12814_v18  ;;  %v12835_v18 = vld [vmem:[#allocation2 + $0x1e0] ss:$8 sps:$4 sm:$0xff]   ;;  %14699 = vst [vmem:[#allocation42_spill] sm:$0xff] %v12838_v5 }
 0x3b8   :  { %14698 = vst [vmem:[#allocation41_spill] sm:$0xff] %v12835_v18 }
 0x3b9   :  { %5266 = vmatpush1.bf16.msra.mxu1 %v12551_v31 }
 0x3ba   :  { %5162 = vmatpush1.bf16.msra.mxu0 %v12819_v14  ;;  %5267 = vmatprep.subr.bf16.mxu1 %v12556_v46  ;;  %v12846_v14 = vld [vmem:[#allocation2 + $0x204] ss:$8 sps:$4 sm:$0xff]  }
 0x3bb   :  { %5163 = vmatprep.subr.bf16.mxu0 %v12822_v62  ;;  %v12843_v62 = vld [vmem:[#allocation2 + $0x1f0] ss:$8 sps:$4 sm:$0xff]   ;;  %14701 = vst [vmem:[#allocation44_spill] sm:$0xff] %v12846_v14 }
 0x3bc   :  { %14700 = vst [vmem:[#allocation43_spill] sm:$0xff] %v12843_v62 }
 0x3bd   :  { %5268 = vmatpush1.bf16.msra.mxu1 %v12562_v26 }
 0x3be   :  { %5164 = vmatpush1.bf16.msra.mxu0 %v12827_v63  ;;  %5269 = vmatprep.subr.bf16.mxu1 %v12565_v21  ;;  %v12854_v63 = vld [vmem:[#allocation2 + $0x214] ss:$8 sps:$4 sm:$0xff]  }
 0x3bf   :  { %5165 = vmatprep.subr.bf16.mxu0 %v12830_v52  ;;  %v12851_v52 = vld [vmem:[#allocation2 + $0x200] ss:$8 sps:$4 sm:$0xff]   ;;  %14703 = vst [vmem:[#allocation46_spill] sm:$0xff] %v12854_v63 }
 0x3c0   :  { %14702 = vst [vmem:[#allocation45_spill] sm:$0xff] %v12851_v52 }
 0x3c1   :  { %5270 = vmatpush1.bf16.msra.mxu1 %v12574_v47 }
 0x3c2   :  { %5166 = vmatpush1.bf16.msra.mxu0 %v12835_v18  ;;  %5271 = vmatprep.subr.bf16.mxu1 %v12579_v59 }
 0x3c3   :  { %5167 = vmatprep.subr.bf16.mxu0 %v12838_v5  ;;  %v12860_v5 = vld [vmem:[#allocation2 + $0x210] ss:$8 sps:$4 sm:$0xff]  }
 0x3c4   :  { %14704 = vst [vmem:[#allocation47_spill] sm:$0xff] %v12860_v5 }
 0x3c5   :  { %5272 = vmatpush1.bf16.msra.mxu1 %v12588_v8 }
 0x3c6   :  { %5168 = vmatpush1.bf16.msra.mxu0 %v12843_v62  ;;  %5273 = vmatprep.subr.bf16.mxu1 %v12591_v22  ;;  %v4237_v62 = vadd.f32 %v12645_v32, %v12746_v34  ;;  %v12873_v34 = vld [vmem:[#allocation2 + $0x220] ss:$8 sps:$4 sm:$0xff]  }
 0x3c7   :  { %5190 = vmatprep.subr.bf16.mxu0 %v12846_v14  ;;  %v12866_v14 = vld [vmem:[#allocation2 + $0x224] ss:$8 sps:$4 sm:$0xff]   ;;  %14706 = vst [vmem:[#allocation49_spill] sm:$0xff] %v12873_v34 }
 0x3c8   :  { %14705 = vst [vmem:[#allocation48_spill] sm:$0xff] %v12866_v14 }
 0x3c9   :  { %5170 = vmatmul.mubr.bf16.vlgmr.msra.gmra.mrb[160].mxu0 %v12227_v27  ;;  %5274 = vmatpush1.bf16.msra.mxu1 %v12600_v9  ;;  %v4240_v9 = vadd.f32 %v12645_v32, %v12755_v53  ;;  %v14709_v53 = vld [vmem:[#allocation18_spill] sm:$0xff] }
 0x3ca   :  { %5179 = vmatprep.mubr.bf16.mxu0 %v12223_v33  ;;  %5191 = vmatpush1.bf16.msra.mxu0 %v12851_v52 }
 0x3cb   :  { %5192 = vmatprep.subr.bf16.mxu0 %v12854_v63  ;;  %5275 = vmatprep.subr.bf16.mxu1 %v12603_v17  ;;  %v12876_v17 = vld [vmem:[#allocation2 + $0x234] ss:$8 sps:$4 sm:$0xff]  }
 0x3cc   :  { %v4285_v18 = vpop.f32.mrb[136].mxu0  ;;  %14707 = vst [vmem:[#allocation50_spill] sm:$0xff] %v12876_v17 }
 0x3cd   :  { %v4286_v12 = vadd.f32 %v4285_v18, %v4237_v62  ;;  %v4287_v27 = vpop.f32.mrb[137].mxu0  ;;  %5276 = vmatpush1.bf16.msra.mxu1 %v12612_v29  ;;  %v14708_v62 = vld [vmem:[#allocation10_spill] sm:$0xff]  ;;  %v14710_v29 = vld [vmem:[#allocation19_spill] sm:$0xff] }
 0x3ce   :  { %v4288_v33 = vpop.f32.mrb[138].mxu0  ;;  %5193 = vmatpush1.bf16.msra.mxu0 %v12860_v5  ;;  %5277 = vmatprep.subr.bf16.mxu1 %v12615_v43  ;;  %v12882_v5 = vld [vmem:[#allocation2 + $0x230] ss:$8 sps:$4 sm:$0xff]  }
 0x3cf   :  { %v4289_v63 = vadd.f32 %v4288_v33, %v4240_v9  ;;  %v4290_v52 = vpop.f32.mrb[139].mxu0  ;;  %5194 = vmatprep.subr.bf16.mxu0 %v12866_v14  ;;  %v4300_v18 = vmax.f32 %v4286_v12, 0.0  ;;  %14711 = vst [vmem:[#allocation10_spill] sm:$0xff] %v12882_v5  ;;  %v4245_v33 = vadd.f32 %v12645_v32, %v12770_v49  ;;  %v12889_v9 = vld [vmem:[#allocation2 + $0x244] ss:$8 sps:$4 sm:$0xff]   ;;  %v14714_v14 = vld [vmem:[#allocation20_spill] sm:$0xff]  ;;  %v4115_v49 = vadd.f32 %v12645_v32, %v12781_v25 }
 0x3d0   :  { %14713 = vst [vmem:[#allocation52_spill] sm:$0xff] %v12889_v9 }
 0x3d1   :  { %v4301_v27 = vmax.f32 %v4289_v63, 0.0  ;;  %5180 = vmatmul.mubr.bf16.gmra.mrb[164].mxu0 %v14708_v62  ;;  %5278 = vmatpush1.bf16.msra.mxu1 %v14709_v53 }
 0x3d2   :  { %5195 = vmatpush1.bf16.msra.mxu0 %v12873_v34  ;;  %5279 = vmatprep.subr.bf16.mxu1 %v14710_v29  ;;  %v4248_v34 = vadd.f32 %v12645_v32, %v12779_v30 }
 0x3d3   :  { %v12884_v43 = vpack.c.bf16 %v4301_v27, %v4300_v18  ;;  %5196 = vmatprep.subr.bf16.mxu0 %v12876_v17  ;;  %5222 = vmatprep.mubr.bf16.mxu0 %v14659_v42  ;;  %v14715_v18 = vld [vmem:[#allocation21_spill] sm:$0xff] }
 0x3d4   :  { %v4293_v12 = vpop.f32.mrb[140].mxu0  ;;  %v12899_v27 = vld [vmem:[#allocation2 + $0x240] ss:$8 sps:$4 sm:$0xff]  }
 0x3d5   :  { %14712 = vst [vmem:[#allocation51_spill] sm:$0xff] %v12884_v43  ;;  %v4294_v63 = vadd.f32 %v4293_v12, %v4245_v33  ;;  %v4295_v52 = vpop.f32.mrb[141].mxu0  ;;  %5280 = vmatpush1.bf16.msra.mxu1 %v14714_v14  ;;  %14716 = vst [vmem:[#allocation21_spill] sm:$0xff] %v12899_v27  ;;  %v12902_v33 = vld [vmem:[#allocation2 + $0x254] ss:$8 sps:$4 sm:$0xff]  }
 0x3d6   :  { %v4296_v29 = vpop.f32.mrb[142].mxu0  ;;  %5197 = vmatpush1.bf16.msra.mxu0 %v12882_v5  ;;  %5281 = vmatprep.subr.bf16.mxu1 %v14715_v18  ;;  %14717 = vst [vmem:[#allocation53_spill] sm:$0xff] %v12902_v33  ;;  %v4118_v52 = vadd.f32 %v12645_v32, %v12788_v7 }
 0x3d7   :  { %v4297_v43 = vadd.f32 %v4296_v29, %v4248_v34  ;;  %v4298_v17 = vpop.f32.mrb[143].mxu0  ;;  %v4163_v53 = vpop.f32.mrb[132].mxu1  ;;  %5198 = vmatprep.subr.bf16.mxu0 %v12889_v9  ;;  %v4302_v5 = vmax.f32 %v4294_v63, 0.0 }
 0x3d8   :  { %v4164_v30 = vadd.f32 %v4163_v53, %v4115_v49  ;;  %v4165_v12 = vpop.f32.mrb[133].mxu1  ;;  %v12909_v17 = vld [vmem:[#allocation2 + $0x250] ss:$8 sps:$4 sm:$0xff]   ;;  %v12914_v53 = vld [vmem:[#allocation2 + $0x264] ss:$8 sps:$4 sm:$0xff]  }
 0x3d9   :  { %v4303_v14 = vmax.f32 %v4297_v43, 0.0  ;;  %v4166_v58 = vpop.f32.mrb[134].mxu1  ;;  %5282 = vmatpush1.bf16.msra.mxu1 %v12640_v19  ;;  %14719 = vst [vmem:[#allocation55_spill] sm:$0xff] %v12914_v53  ;;  %v14721_v49 = vld [vmem:[#allocation22_spill] sm:$0xff] }
 0x3da   :  { %v4167_v25 = vadd.f32 %v4166_v58, %v4118_v52  ;;  %5199 = vmatpush1.bf16.msra.mxu0 %v12899_v27  ;;  %v4168_v29 = vpop.f32.mrb[135].mxu1  ;;  %5283 = vmatprep.subr.bf16.mxu1 %v12650_v40  ;;  %v4178_v7 = vmax.f32 %v4164_v30, 0.0  ;;  %v4123_v58 = vadd.f32 %v12645_v32, %v12804_v3  ;;  %v12923_v12 = vld [vmem:[#allocation2 + $0x260] ss:$8 sps:$4 sm:$0xff]  }
 0x3db   :  { %v12911_v34 = vpack.c.bf16 %v4303_v14, %v4302_v5  ;;  %5200 = vmatprep.subr.bf16.mxu0 %v12902_v33  ;;  %v12926_v14 = vld [vmem:[#allocation2 + $0x274] ss:$8 sps:$4 sm:$0xff]  }
 0x3dc   :  { %v4179_v63 = vmax.f32 %v4167_v25, 0.0  ;;  %v4126_v25 = vadd.f32 %v12645_v32, %v12811_v0 }
 0x3dd   :  { %14718 = vst [vmem:[#allocation54_spill] sm:$0xff] %v12911_v34  ;;  %5284 = vmatpush1.bf16.msra.mxu1 %v12660_v41  ;;  %v12933_v34 = vld [vmem:[#allocation2 + $0x270] ss:$8 sps:$4 sm:$0xff]  }
 0x3de   :  { %v12917_v43 = vpack.c.bf16 %v4179_v63, %v4178_v7  ;;  %5201 = vmatpush1.bf16.msra.mxu0 %v12909_v17  ;;  %5285 = vmatprep.subr.bf16.mxu1 %v14721_v49  ;;  %v14722_v7 = vld [vmem:[#allocation23_spill] sm:$0xff] }
 0x3df   :  { %v4171_v5 = vpop.f32.mrb[136].mxu1  ;;  %5202 = vmatprep.subr.bf16.mxu0 %v12914_v53 }
 0x3e0   :  { %14720 = vst [vmem:[#allocation56_spill] sm:$0xff] %v12917_v43  ;;  %v4172_v30 = vadd.f32 %v4171_v5, %v4123_v58  ;;  %v4173_v52 = vpop.f32.mrb[137].mxu1  ;;  %v14723_v58 = vld [vmem:[#allocation7_spill] sm:$0xff]  ;;  %v14725_v5 = vld [vmem:[#allocation12_spill] sm:$0xff] }
 0x3e1   :  { %v4174_v29 = vpop.f32.mrb[138].mxu1  ;;  %5286 = vmatpush1.bf16.msra.mxu1 %v14722_v7  ;;  %v14726_v52 = vld [vmem:[#allocation13_spill] sm:$0xff] }
 0x3e2   :  { %v4175_v63 = vadd.f32 %v4174_v29, %v4126_v25  ;;  %5203 = vmatpush1.bf16.msra.mxu0 %v12923_v12  ;;  %v4176_v3 = vpop.f32.mrb[139].mxu1  ;;  %5308 = vmatprep.subr.bf16.mxu1 %v12675_v57  ;;  %v4180_v43 = vmax.f32 %v4172_v30, 0.0 }
 0x3e3   :  { %5204 = vmatprep.subr.bf16.mxu0 %v12926_v14 }
 0x3e4   :  { %v4181_v53 = vmax.f32 %v4175_v63, 0.0  ;;  %5288 = vmatmul.mubr.bf16.vlgmr.msra.gmra.mrb[172].mxu1 %v14723_v58 }
 0x3e5   :  { %5297 = vmatprep.mubr.bf16.mxu1 %v14708_v62  ;;  %5309 = vmatpush1.bf16.msra.mxu1 %v12684_v13 }
 0x3e6   :  { %v12939_v0 = vpack.c.bf16 %v4181_v53, %v4180_v43  ;;  %5205 = vmatpush1.bf16.msra.mxu0 %v12933_v34  ;;  %5310 = vmatprep.subr.bf16.mxu1 %v12687_v39 }
 0x3e7   :  { %5426 = vmatprep.subr.bf16.mxu0 %v12476_v4 }
 0x3e8   :  { %14724 = vst [vmem:[#allocation22_spill] sm:$0xff] %v12939_v0  ;;  %v14747_v0 = vld [vmem:[#allocation41_spill] sm:$0xff] }
 0x3e9   :  { %5223 = vmatmul.mubr.bf16.vlgmr.msra.gmra.mrb[160].mxu0 %v14725_v5  ;;  %5311 = vmatpush1.bf16.msra.mxu1 %v12695_v50 }
 0x3ea   :  { %5427 = vmatpush1.bf16.msra.mxu0 %v12488_v48  ;;  %5312 = vmatprep.subr.bf16.mxu1 %v12701_v36 }
 0x3eb   :  { %5428 = vmatprep.subr.bf16.mxu0 %v12491_v54  ;;  %5232 = vmatprep.mubr.bf16.mxu0 %v14659_v42 }
 0x3ec   :  { %v9070_v53 = vpop.f32.mrb[144].mxu0  ;;  %5298 = vmatmul.mubr.bf16.gmra.mrb[176].mxu1 %v12084_v35 }
 0x3ed   :  { %v9071_v43 = vpop.f32.mrb[145].mxu0  ;;  %5313 = vmatpush1.bf16.msra.mxu1 %v12710_v6  ;;  %5340 = vmatprep.mubr.bf16.mxu1 %v14725_v5 }
 0x3ee   :  { %v12953_v4 = vadd.f32 %v9071_v43, %v9070_v53  ;;  %v9073_v30 = vpop.f32.mrb[146].mxu0  ;;  %5429 = vmatpush1.bf16.msra.mxu0 %v12499_v15  ;;  %5314 = vmatprep.subr.bf16.mxu1 %v12713_v38 }
 0x3ef   :  { %v9074_v48 = vpop.f32.mrb[147].mxu0  ;;  %5430 = vmatprep.subr.bf16.mxu0 %v12503_v55 }
 0x3f0   :  { %v12958_v54 = vadd.f32 %v9074_v48, %v9073_v30 }
 0x3f1   :  { %5233 = vmatmul.mubr.bf16.gmra.mrb[164].mxu0 %v14726_v52  ;;  %5315 = vmatpush1.bf16.msra.mxu1 %v12721_v11 }
 0x3f2   :  { %5431 = vmatpush1.bf16.msra.mxu0 %v12510_v61  ;;  %5458 = vmatprep.mubr.bf16.mxu0 %v12195_v24 }
 0x3f3   :  { %5316 = vmatprep.subr.bf16.mxu1 %v12725_v28  ;;  %5432 = vmatprep.subr.bf16.mxu0 %v12513_v23 }
 0x3f4   :  { %v9076_v35 = vpop.f32.mrb[148].mxu0 }
 0x3f5   :  { %v9077_v15 = vpop.f32.mrb[149].mxu0  ;;  %5317 = vmatpush1.bf16.msra.mxu1 %v12732_v60 }
 0x3f6   :  { %v12967_v25 = vadd.f32 %v9077_v15, %v9076_v35  ;;  %v9079_v55 = vpop.f32.mrb[150].mxu0  ;;  %5433 = vmatpush1.bf16.msra.mxu0 %v12525_v44  ;;  %5318 = vmatprep.subr.bf16.mxu1 %v12735_v1  ;;  %v14728_v35 = vld [vmem:[#allocation29_spill] sm:$0xff] }
 0x3f7   :  { %v9080_v29 = vpop.f32.mrb[151].mxu0  ;;  %v9042_v63 = vpop.f32.mrb[140].mxu1  ;;  %5434 = vmatprep.subr.bf16.mxu0 %v12529_v2  ;;  %v14727_v2 = vld [vmem:[#allocation28_spill] sm:$0xff] }
 0x3f8   :  { %v12972_v61 = vadd.f32 %v9080_v29, %v9079_v55  ;;  %v9043_v3 = vpop.f32.mrb[141].mxu1  ;;  %v14729_v55 = vld [vmem:[#allocation30_spill] sm:$0xff] }
 0x3f9   :  { %v12974_v58 = vadd.f32 %v9043_v3, %v9042_v63  ;;  %v9045_v23 = vpop.f32.mrb[142].mxu1  ;;  %5319 = vmatpush1.bf16.msra.mxu1 %v12740_v16  ;;  %v14733_v29 = vld [vmem:[#allocation14_spill] sm:$0xff]  ;;  %v14735_v63 = vld [vmem:[#allocation15_spill] sm:$0xff]  ;;  %v14737_v3 = vld [vmem:[#allocation16_spill] sm:$0xff] }
 0x3fa   :  { %5435 = vmatpush1.bf16.msra.mxu0 %v12539_v51  ;;  %v9046_v53 = vpop.f32.mrb[143].mxu1  ;;  %5320 = vmatprep.subr.bf16.mxu1 %v12743_v56 }
 0x3fb   :  { %v12979_v44 = vadd.f32 %v9046_v53, %v9045_v23  ;;  %5436 = vmatprep.subr.bf16.mxu0 %v12542_v20  ;;  %v14739_v23 = vld [vmem:[#allocation17_spill] sm:$0xff]  ;;  %v14741_v53 = vld [vmem:[#allocation18_spill] sm:$0xff] }
 0x3fd   :  { %5321 = vmatpush1.bf16.msra.mxu1 %v12750_v37 }
 0x3fe   :  { %5437 = vmatpush1.bf16.msra.mxu0 %v12551_v31  ;;  %5322 = vmatprep.subr.bf16.mxu1 %v14727_v2  ;;  %v14730_v31 = vld [vmem:[#allocation31_spill] sm:$0xff] }
 0x3ff   :  { %v9048_v43 = vpop.f32.mrb[144].mxu1  ;;  %5438 = vmatprep.subr.bf16.mxu0 %v12556_v46  ;;  %v14731_v46 = vld [vmem:[#allocation32_spill] sm:$0xff] }
 0x400   :  { %v9049_v30 = vpop.f32.mrb[145].mxu1 }
 0x401   :  { %v12986_v48 = vadd.f32 %v9049_v30, %v9048_v43  ;;  %v9051_v51 = vpop.f32.mrb[146].mxu1  ;;  %5323 = vmatpush1.bf16.msra.mxu1 %v14728_v35  ;;  %v14743_v43 = vld [vmem:[#allocation19_spill] sm:$0xff] }
 0x402   :  { %5439 = vmatpush1.bf16.msra.mxu0 %v12562_v26  ;;  %v9052_v15 = vpop.f32.mrb[147].mxu1  ;;  %5324 = vmatprep.subr.bf16.mxu1 %v14729_v55  ;;  %v14732_v26 = vld [vmem:[#allocation33_spill] sm:$0xff]  ;;  %v14744_v30 = vld [vmem:[#allocation39_spill] sm:$0xff] }
 0x403   :  { %v12991_v20 = vadd.f32 %v9052_v15, %v9051_v51  ;;  %5440 = vmatprep.subr.bf16.mxu0 %v12565_v21  ;;  %v14734_v21 = vld [vmem:[#allocation34_spill] sm:$0xff]  ;;  %v14745_v51 = vld [vmem:[#allocation20_spill] sm:$0xff] }
 0x404   :  { %v14746_v15 = vld [vmem:[#allocation40_spill] sm:$0xff] }
 0x405   :  { %5325 = vmatpush1.bf16.msra.mxu1 %v12774_v10 }
 0x406   :  { %5441 = vmatpush1.bf16.msra.mxu0 %v12574_v47  ;;  %5326 = vmatprep.subr.bf16.mxu1 %v12777_v45  ;;  %v14736_v47 = vld [vmem:[#allocation35_spill] sm:$0xff] }
 0x407   :  { %5442 = vmatprep.subr.bf16.mxu0 %v12579_v59  ;;  %v14738_v59 = vld [vmem:[#allocation36_spill] sm:$0xff] }
 0x409   :  { %5327 = vmatpush1.bf16.msra.mxu1 %v14730_v31 }
 0x40a   :  { %5443 = vmatpush1.bf16.msra.mxu0 %v12588_v8  ;;  %5328 = vmatprep.subr.bf16.mxu1 %v14731_v46  ;;  %v14740_v8 = vld [vmem:[#allocation37_spill] sm:$0xff] }
 0x40b   :  { %5444 = vmatprep.subr.bf16.mxu0 %v12591_v22  ;;  %v14742_v22 = vld [vmem:[#allocation38_spill] sm:$0xff] }
 0x40d   :  { %5329 = vmatpush1.bf16.msra.mxu1 %v14732_v26 }
 0x40e   :  { %5445 = vmatpush1.bf16.msra.mxu0 %v14733_v29  ;;  %5330 = vmatprep.subr.bf16.mxu1 %v14734_v21  ;;  %v4481_v29 = vadd.f32 %v12645_v32, %v12953_v4 }
 0x40f   :  { %5446 = vmatprep.subr.bf16.mxu0 %v14735_v63 }
 0x411   :  { %5331 = vmatpush1.bf16.msra.mxu1 %v14736_v47 }
 0x412   :  { %5447 = vmatpush1.bf16.msra.mxu0 %v14737_v3  ;;  %5332 = vmatprep.subr.bf16.mxu1 %v14738_v59 }
 0x413   :  { %5448 = vmatprep.subr.bf16.mxu0 %v14739_v23 }
 0x415   :  { %5333 = vmatpush1.bf16.msra.mxu1 %v14740_v8 }
 0x416   :  { %5449 = vmatpush1.bf16.msra.mxu0 %v14741_v53  ;;  %5334 = vmatprep.subr.bf16.mxu1 %v14742_v22  ;;  %v4484_v53 = vadd.f32 %v12645_v32, %v12958_v54 }
 0x417   :  { %5450 = vmatprep.subr.bf16.mxu0 %v14743_v43 }
 0x419   :  { %5335 = vmatpush1.bf16.msra.mxu1 %v14744_v30  ;;  %v14748_v30 = vld [vmem:[#allocation42_spill] sm:$0xff] }
 0x41a   :  { %5451 = vmatpush1.bf16.msra.mxu0 %v14745_v51  ;;  %5336 = vmatprep.subr.bf16.mxu1 %v14746_v15 }
 0x41b   :  { %5452 = vmatprep.subr.bf16.mxu0 %v14715_v18  ;;  %v14749_v18 = vld [vmem:[#allocation43_spill] sm:$0xff] }
 0x41c   :  { %v4529_v63 = vpop.f32.mrb[152].mxu0 }
 0x41d   :  { %v4530_v3 = vadd.f32 %v4529_v63, %v4481_v29  ;;  %v4531_v23 = vpop.f32.mrb[153].mxu0  ;;  %5337 = vmatpush1.bf16.msra.mxu1 %v14747_v0  ;;  %v14750_v29 = vld [vmem:[#allocation44_spill] sm:$0xff]  ;;  %v4489_v63 = vadd.f32 %v12645_v32, %v12967_v25  ;;  %v4359_v25 = vadd.f32 %v12645_v32, %v12974_v58 }
 0x41e   :  { %v4532_v43 = vpop.f32.mrb[154].mxu0  ;;  %5453 = vmatpush1.bf16.msra.mxu0 %v12640_v19  ;;  %5338 = vmatprep.subr.bf16.mxu1 %v14748_v30 }
 0x41f   :  { %v4533_v51 = vadd.f32 %v4532_v43, %v4484_v53  ;;  %v4534_v15 = vpop.f32.mrb[155].mxu0  ;;  %5454 = vmatprep.subr.bf16.mxu0 %v12650_v40  ;;  %v4544_v4 = vmax.f32 %v4530_v3, 0.0  ;;  %v4492_v3 = vadd.f32 %v12645_v32, %v12972_v61  ;;  %v4362_v61 = vadd.f32 %v12645_v32, %v12979_v44 }
 0x421   :  { %v4545_v22 = vmax.f32 %v4533_v51, 0.0  ;;  %5339 = vmatpush1.bf16.msra.mxu1 %v14749_v18 }
 0x422   :  { %5455 = vmatpush1.bf16.msra.mxu0 %v12660_v41  ;;  %5361 = vmatprep.subr.bf16.mxu1 %v14750_v29  ;;  %v14752_v41 = vld [vmem:[#allocation45_spill] sm:$0xff] }
 0x423   :  { %v13029_v54 = vpack.c.bf16 %v4545_v22, %v4544_v4  ;;  %5456 = vmatprep.subr.bf16.mxu0 %v14721_v49  ;;  %v14753_v22 = vld [vmem:[#allocation46_spill] sm:$0xff] }
 0x424   :  { %v4537_v19 = vpop.f32.mrb[156].mxu0  ;;  %5341 = vmatmul.mubr.bf16.vlgmr.msra.gmra.mrb[172].mxu1 %v12195_v24  ;;  %v14756_v24 = vld [vmem:[#allocation8_spill] sm:$0xff] }
 0x425   :  { %14751 = vst [vmem:[#allocation23_spill] sm:$0xff] %v13029_v54  ;;  %v4538_v15 = vadd.f32 %v4537_v19, %v4489_v63  ;;  %v4539_v40 = vpop.f32.mrb[157].mxu0  ;;  %5350 = vmatprep.mubr.bf16.mxu1 %v14726_v52  ;;  %5362 = vmatpush1.bf16.msra.mxu1 %v14752_v41  ;;  %v14755_v54 = vld [vmem:[#allocation47_spill] sm:$0xff] }
 0x426   :  { %v4540_v23 = vpop.f32.mrb[158].mxu0  ;;  %5457 = vmatpush1.bf16.msra.mxu0 %v14722_v7  ;;  %5363 = vmatprep.subr.bf16.mxu1 %v14753_v22  ;;  %v14754_v40 = vld [vmem:[#allocation9_spill] sm:$0xff] }
 0x427   :  { %v4541_v49 = vadd.f32 %v4540_v23, %v4492_v3  ;;  %v4542_v53 = vpop.f32.mrb[159].mxu0  ;;  %v4407_v43 = vpop.f32.mrb[148].mxu1  ;;  %5479 = vmatprep.subr.bf16.mxu0 %v12675_v57  ;;  %v4546_v63 = vmax.f32 %v4538_v15, 0.0  ;;  %v14758_v57 = vld [vmem:[#allocation48_spill] sm:$0xff] }
 0x428   :  { %v4408_v51 = vadd.f32 %v4407_v43, %v4359_v25  ;;  %v4409_v4 = vpop.f32.mrb[149].mxu1  ;;  %v14759_v25 = vld [vmem:[#allocation49_spill] sm:$0xff]  ;;  %v14761_v53 = vld [vmem:[#allocation50_spill] sm:$0xff] }
 0x429   :  { %v4547_v19 = vmax.f32 %v4541_v49, 0.0  ;;  %5459 = vmatmul.mubr.bf16.vlgmr.msra.gmra.mrb[168].mxu0 %v14754_v40  ;;  %v4410_v7 = vpop.f32.mrb[150].mxu1  ;;  %5364 = vmatpush1.bf16.msra.mxu1 %v14755_v54  ;;  %v4370_v4 = vadd.f32 %v12645_v32, %v12991_v20  ;;  %v13098_v20 = vld [vmem:[#allocation2 + $0x14] ss:$8 sps:$4 sm:$0xff]  }
 0x42a   :  { %v4411_v58 = vadd.f32 %v4410_v7, %v4362_v61  ;;  %5468 = vmatprep.mubr.bf16.mxu0 %v14756_v24  ;;  %5480 = vmatpush1.bf16.msra.mxu0 %v12684_v13  ;;  %v4412_v3 = vpop.f32.mrb[151].mxu1  ;;  %v4422_v44 = vmax.f32 %v4408_v51, 0.0  ;;  %v4367_v13 = vadd.f32 %v12645_v32, %v12986_v48 }
 0x42b   :  { %v13050_v23 = vpack.c.bf16 %v4547_v19, %v4546_v63  ;;  %5365 = vmatprep.subr.bf16.mxu1 %v14758_v57  ;;  %5481 = vmatprep.subr.bf16.mxu0 %v12687_v39  ;;  %v14762_v63 = vld [vmem:[#allocation10_spill] sm:$0xff] }
 0x42c   :  { %v4423_v15 = vmax.f32 %v4411_v58, 0.0  ;;  %5351 = vmatmul.mubr.bf16.gmra.mrb[176].mxu1 %v14756_v24 }
 0x42d   :  { %14757 = vst [vmem:[#allocation7_spill] sm:$0xff] %v13050_v23  ;;  %5366 = vmatpush1.bf16.msra.mxu1 %v14759_v25  ;;  %5393 = vmatprep.mubr.bf16.mxu1 %v14659_v42  ;;  %v13136_v23 = vld [vmem:[#allocation2 + $0x40] ss:$8 sps:$4 sm:$0xff]  }
 0x42e   :  { %v13057_v49 = vpack.c.bf16 %v4423_v15, %v4422_v44  ;;  %5482 = vmatpush1.bf16.msra.mxu0 %v12695_v50  ;;  %5367 = vmatprep.subr.bf16.mxu1 %v14761_v53  ;;  %v14763_v50 = vld [vmem:[#allocation6_spill] sm:$0xff]  ;;  %v13104_v15 = vld [vmem:[#allocation2 + $0x10] ss:$8 sps:$4 sm:$0xff]  }
 0x42f   :  { %v4415_v43 = vpop.f32.mrb[152].mxu1  ;;  %5483 = vmatprep.subr.bf16.mxu0 %v12701_v36 }
 0x430   :  { %14760 = vst [vmem:[#allocation13_spill] sm:$0xff] %v13057_v49  ;;  %v4416_v39 = vadd.f32 %v4415_v43, %v4367_v13  ;;  %v4417_v51 = vpop.f32.mrb[153].mxu1  ;;  %v13108_v43 = vld [vmem:[#allocation2 + $0x24] ss:$8 sps:$4 sm:$0xff]   ;;  %v14771_v49 = vld [vmem:[#allocation39_spill] sm:$0xff] }
 0x431   :  { %5469 = vmatmul.mubr.bf16.gmra.mrb[172].mxu0 %v14708_v62  ;;  %v4418_v61 = vpop.f32.mrb[154].mxu1  ;;  %5368 = vmatpush1.bf16.msra.mxu1 %v14762_v63  ;;  %v13093_v62 = vld [vmem:[#allocation2] ss:$8 sps:$4 sm:$0xff]   ;;  %v14766_v51 = vld [vmem:[#allocation11_spill] sm:$0xff] }
 0x432   :  { %v4419_v19 = vadd.f32 %v4418_v61, %v4370_v4  ;;  %5484 = vmatpush1.bf16.msra.mxu0 %v12710_v6  ;;  %5511 = vmatprep.mubr.bf16.mxu0 %v14763_v50  ;;  %v4420_v48 = vpop.f32.mrb[155].mxu1  ;;  %v4424_v36 = vmax.f32 %v4416_v39, 0.0  ;;  %v14765_v6 = vld [vmem:[#allocation55_spill] sm:$0xff]  ;;  %v13115_v4 = vld [vmem:[#allocation2 + $0x20] ss:$8 sps:$4 sm:$0xff]  }
 0x433   :  { %5369 = vmatprep.subr.bf16.mxu1 %v12889_v9  ;;  %5485 = vmatprep.subr.bf16.mxu0 %v12713_v38  ;;  %v13088_v38 = vld [vmem:[#allocation2 + $0x4] ss:$8 sps:$4 sm:$0xff]   ;;  %v13120_v61 = vld [vmem:[#allocation2 + $0x34] ss:$8 sps:$4 sm:$0xff]  }
 0x434   :  { %v4425_v40 = vmax.f32 %v4419_v19, 0.0 }
 0x435   :  { %5370 = vmatpush1.bf16.msra.mxu1 %v12899_v27 }
 0x436   :  { %v13073_v32 = vpack.c.bf16 %v4425_v40, %v4424_v36  ;;  %5486 = vmatpush1.bf16.msra.mxu0 %v12721_v11  ;;  %5371 = vmatprep.subr.bf16.mxu1 %v12902_v33 }
 0x437   :  { %5487 = vmatprep.subr.bf16.mxu0 %v12725_v28 }
 0x438   :  { %14764 = vst [vmem:[#allocation28_spill] sm:$0xff] %v13073_v32  ;;  %v13152_v32 = vld [vmem:[#allocation2 + $0x60] ss:$8 sps:$4 sm:$0xff]  }
 0x439   :  { %5372 = vmatpush1.bf16.msra.mxu1 %v12909_v17  ;;  %14770 = vst [vmem:[#allocation31_spill] sm:$0xff] %v13152_v32 }
 0x43a   :  { %5488 = vmatpush1.bf16.msra.mxu0 %v12732_v60  ;;  %5373 = vmatprep.subr.bf16.mxu1 %v14765_v6 }
 0x43b   :  { %5489 = vmatprep.subr.bf16.mxu0 %v12735_v1 }
 0x43d   :  { %5374 = vmatpush1.bf16.msra.mxu1 %v12923_v12 }
 0x43e   :  { %5490 = vmatpush1.bf16.msra.mxu0 %v12740_v16  ;;  %5375 = vmatprep.subr.bf16.mxu1 %v12926_v14 }
 0x43f   :  { %5491 = vmatprep.subr.bf16.mxu0 %v12743_v56 }
 0x441   :  { %5376 = vmatpush1.bf16.msra.mxu1 %v12933_v34 }
 0x442   :  { %5492 = vmatpush1.bf16.msra.mxu0 %v12750_v37  ;;  %5597 = vmatprep.subr.bf16.mxu1 %v13088_v38 }
 0x443   :  { %5493 = vmatprep.subr.bf16.mxu0 %v14727_v2 }
 0x444   :  { %5394 = vmatmul.mubr.bf16.vlgmr.msra.gmra.mrb[172].mxu1 %v14763_v50 }
 0x445   :  { %5598 = vmatpush1.bf16.msra.mxu1 %v13093_v62  ;;  %5403 = vmatprep.mubr.bf16.mxu1 %v14659_v42 }
 0x446   :  { %5494 = vmatpush1.bf16.msra.mxu0 %v14728_v35  ;;  %5599 = vmatprep.subr.bf16.mxu1 %v13098_v20 }
 0x447   :  { %v9098_v7 = vpop.f32.mrb[156].mxu1  ;;  %5495 = vmatprep.subr.bf16.mxu0 %v14729_v55 }
 0x448   :  { %v9099_v58 = vpop.f32.mrb[157].mxu1 }
 0x449   :  { %v13102_v3 = vadd.f32 %v9099_v58, %v9098_v7  ;;  %v9101_v44 = vpop.f32.mrb[158].mxu1  ;;  %5600 = vmatpush1.bf16.msra.mxu1 %v13104_v15  ;;  %v13126_v7 = vld [vmem:[#allocation2 + $0x30] ss:$8 sps:$4 sm:$0xff]  }
 0x44a   :  { %5496 = vmatpush1.bf16.msra.mxu0 %v12774_v10  ;;  %v9102_v13 = vpop.f32.mrb[159].mxu1  ;;  %5601 = vmatprep.subr.bf16.mxu1 %v13108_v43 }
 0x44b   :  { %v13111_v39 = vadd.f32 %v9102_v13, %v9101_v44  ;;  %5497 = vmatprep.subr.bf16.mxu0 %v12777_v45  ;;  %v13130_v44 = vld [vmem:[#allocation2 + $0x44] ss:$8 sps:$4 sm:$0xff]  }
 0x44c   :  { %5404 = vmatmul.mubr.bf16.gmra.mrb[176].mxu1 %v14766_v51 }
 0x44d   :  { %5602 = vmatpush1.bf16.msra.mxu1 %v13115_v4  ;;  %5629 = vmatprep.mubr.bf16.mxu1 %v14725_v5 }
 0x44e   :  { %5498 = vmatpush1.bf16.msra.mxu0 %v14730_v31  ;;  %5603 = vmatprep.subr.bf16.mxu1 %v13120_v61 }
 0x44f   :  { %v9104_v19 = vpop.f32.mrb[160].mxu1  ;;  %5499 = vmatprep.subr.bf16.mxu0 %v14731_v46 }
 0x450   :  { %v9105_v48 = vpop.f32.mrb[161].mxu1 }
 0x451   :  { %v13124_v36 = vadd.f32 %v9105_v48, %v9104_v19  ;;  %v9107_v40 = vpop.f32.mrb[162].mxu1  ;;  %5604 = vmatpush1.bf16.msra.mxu1 %v13126_v7  ;;  %v13140_v19 = vld [vmem:[#allocation2 + $0x54] ss:$8 sps:$4 sm:$0xff]   ;;  %v13144_v48 = vld [vmem:[#allocation2 + $0x50] ss:$8 sps:$4 sm:$0xff]  }
 0x452   :  { %5500 = vmatpush1.bf16.msra.mxu0 %v14732_v26  ;;  %v9108_v58 = vpop.f32.mrb[163].mxu1  ;;  %5605 = vmatprep.subr.bf16.mxu1 %v13130_v44  ;;  %14767 = vst [vmem:[#allocation29_spill] sm:$0xff] %v13144_v48 }
 0x453   :  { %v13133_v13 = vadd.f32 %v9108_v58, %v9107_v40  ;;  %5501 = vmatprep.subr.bf16.mxu0 %v14734_v21  ;;  %v13148_v40 = vld [vmem:[#allocation2 + $0x64] ss:$8 sps:$4 sm:$0xff]   ;;  %v13160_v21 = vld [vmem:[#allocation2 + $0x70] ss:$8 sps:$4 sm:$0xff]  }
 0x454   :  { %14768 = vst [vmem:[#allocation30_spill] sm:$0xff] %v13148_v40  ;;  %v14769_v58 = vld [vmem:[#allocation38_spill] sm:$0xff]  ;;  %14774 = vst [vmem:[#allocation33_spill] sm:$0xff] %v13160_v21 }
 0x455   :  { %5606 = vmatpush1.bf16.msra.mxu1 %v13136_v23 }
 0x456   :  { %5502 = vmatpush1.bf16.msra.mxu0 %v14736_v47  ;;  %5607 = vmatprep.subr.bf16.mxu1 %v13140_v19  ;;  %v13156_v47 = vld [vmem:[#allocation2 + $0x74] ss:$8 sps:$4 sm:$0xff]  }
 0x457   :  { %5503 = vmatprep.subr.bf16.mxu0 %v14738_v59  ;;  %14772 = vst [vmem:[#allocation32_spill] sm:$0xff] %v13156_v47  ;;  %v14773_v59 = vld [vmem:[#allocation40_spill] sm:$0xff] }
 0x459   :  { %5608 = vmatpush1.bf16.msra.mxu1 %v13144_v48 }
 0x45a   :  { %5504 = vmatpush1.bf16.msra.mxu0 %v14740_v8  ;;  %5609 = vmatprep.subr.bf16.mxu1 %v13148_v40  ;;  %v13164_v8 = vld [vmem:[#allocation2 + $0x84] ss:$8 sps:$4 sm:$0xff]  }
 0x45b   :  { %5505 = vmatprep.subr.bf16.mxu0 %v14769_v58  ;;  %14775 = vst [vmem:[#allocation14_spill] sm:$0xff] %v13164_v8  ;;  %v13168_v58 = vld [vmem:[#allocation2 + $0x80] ss:$8 sps:$4 sm:$0xff]  }
 0x45c   :  { %14776 = vst [vmem:[#allocation15_spill] sm:$0xff] %v13168_v58 }
 0x45d   :  { %5610 = vmatpush1.bf16.msra.mxu1 %v13152_v32 }
 0x45e   :  { %5506 = vmatpush1.bf16.msra.mxu0 %v14771_v49  ;;  %5611 = vmatprep.subr.bf16.mxu1 %v13156_v47  ;;  %v13172_v49 = vld [vmem:[#allocation2 + $0x94] ss:$8 sps:$4 sm:$0xff]  }
 0x45f   :  { %5507 = vmatprep.subr.bf16.mxu0 %v14773_v59  ;;  %14777 = vst [vmem:[#allocation16_spill] sm:$0xff] %v13172_v49 }
 0x461   :  { %5612 = vmatpush1.bf16.msra.mxu1 %v13160_v21 }
 0x462   :  { %5508 = vmatpush1.bf16.msra.mxu0 %v14747_v0  ;;  %5613 = vmatprep.subr.bf16.mxu1 %v13164_v8  ;;  %v13177_v0 = vld [vmem:[#allocation2 + $0x90] ss:$8 sps:$4 sm:$0xff]  }
 0x463   :  { %5509 = vmatprep.subr.bf16.mxu0 %v14748_v30  ;;  %14778 = vst [vmem:[#allocation17_spill] sm:$0xff] %v13177_v0  ;;  %v13183_v30 = vld [vmem:[#allocation2 + $0xa4] ss:$8 sps:$4 sm:$0xff]  }
 0x464   :  { %14779 = vst [vmem:[#allocation18_spill] sm:$0xff] %v13183_v30 }
 0x465   :  { %5614 = vmatpush1.bf16.msra.mxu1 %v13168_v58 }
 0x466   :  { %5510 = vmatpush1.bf16.msra.mxu0 %v14749_v18  ;;  %5615 = vmatprep.subr.bf16.mxu1 %v13172_v49  ;;  %v13186_v18 = vld [vmem:[#allocation2 + $0xa0] ss:$8 sps:$4 sm:$0xff]  }
 0x467   :  { %5532 = vmatprep.subr.bf16.mxu0 %v14750_v29  ;;  %14780 = vst [vmem:[#allocation19_spill] sm:$0xff] %v13186_v18 }
 0x469   :  { %5512 = vmatmul.mubr.bf16.vlgmr.msra.gmra.mrb[168].mxu0 %v14725_v5  ;;  %5616 = vmatpush1.bf16.msra.mxu1 %v13177_v0  ;;  %v13190_v5 = vld [vmem:[#allocation2 + $0xb4] ss:$8 sps:$4 sm:$0xff]  }
 0x46a   :  { %5521 = vmatprep.mubr.bf16.mxu0 %v14766_v51  ;;  %5533 = vmatpush1.bf16.msra.mxu0 %v14752_v41  ;;  %14781 = vst [vmem:[#allocation20_spill] sm:$0xff] %v13190_v5  ;;  %v13195_v51 = vld [vmem:[#allocation2 + $0xb0] ss:$8 sps:$4 sm:$0xff]   ;;  %v13212_v41 = vld [vmem:[#allocation2 + $0xd4] ss:$8 sps:$4 sm:$0xff]  }
 0x46b   :  { %5534 = vmatprep.subr.bf16.mxu0 %v14753_v22  ;;  %5617 = vmatprep.subr.bf16.mxu1 %v13183_v30  ;;  %14782 = vst [vmem:[#allocation9_spill] sm:$0xff] %v13195_v51  ;;  %v13199_v22 = vld [vmem:[#allocation2 + $0xc4] ss:$8 sps:$4 sm:$0xff]   ;;  %14785 = vst [vmem:[#allocation57_spill] sm:$0xff] %v13212_v41 }
 0x46c   :  { %14783 = vst [vmem:[#allocation8_spill] sm:$0xff] %v13199_v22 }
 0x46d   :  { %5618 = vmatpush1.bf16.msra.mxu1 %v13186_v18 }
 0x46e   :  { %5535 = vmatpush1.bf16.msra.mxu0 %v14755_v54  ;;  %5619 = vmatprep.subr.bf16.mxu1 %v13190_v5  ;;  %v13204_v54 = vld [vmem:[#allocation2 + $0xc0] ss:$8 sps:$4 sm:$0xff]   ;;  %v13221_v5 = vld [vmem:[#allocation2 + $0xe4] ss:$8 sps:$4 sm:$0xff]  }
 0x46f   :  { %5536 = vmatprep.subr.bf16.mxu0 %v14758_v57  ;;  %14784 = vst [vmem:[#allocation55_spill] sm:$0xff] %v13204_v54  ;;  %v10406_v57 = vld [vmem:[%s14444_s4] ss:$0 sm:$0xff]  ;;  %14787 = vst [vmem:[#allocation59_spill] sm:$0xff] %v13221_v5 }
 0x471   :  { %5522 = vmatmul.mubr.bf16.gmra.mrb[172].mxu0 %v14726_v52  ;;  %5620 = vmatpush1.bf16.msra.mxu1 %v13195_v51  ;;  %v13217_v51 = vld [vmem:[#allocation2 + $0xd0] ss:$8 sps:$4 sm:$0xff]  }
 0x472   :  { %5537 = vmatpush1.bf16.msra.mxu0 %v14759_v25  ;;  %5621 = vmatprep.subr.bf16.mxu1 %v13199_v22  ;;  %v4603_v25 = vadd.f32 %v10406_v57, %v13102_v3  ;;  %v4606_v22 = vadd.f32 %v10406_v57, %v13111_v39  ;;  %14786 = vst [vmem:[#allocation58_spill] sm:$0xff] %v13217_v51 }
 0x473   :  { %5538 = vmatprep.subr.bf16.mxu0 %v14761_v53  ;;  %5564 = vmatprep.mubr.bf16.mxu0 %v14659_v42 }
 0x475   :  { %5622 = vmatpush1.bf16.msra.mxu1 %v13204_v54 }
 0x476   :  { %5539 = vmatpush1.bf16.msra.mxu0 %v14762_v63  ;;  %5623 = vmatprep.subr.bf16.mxu1 %v13212_v41 }
 0x477   :  { %v4651_v29 = vpop.f32.mrb[164].mxu1  ;;  %5540 = vmatprep.subr.bf16.mxu0 %v12889_v9 }
 0x478   :  { %v4652_v53 = vadd.f32 %v4651_v29, %v4603_v25  ;;  %v4653_v59 = vpop.f32.mrb[165].mxu1 }
 0x479   :  { %v4654_v54 = vpop.f32.mrb[166].mxu1  ;;  %5624 = vmatpush1.bf16.msra.mxu1 %v13217_v51  ;;  %v13225_v59 = vld [vmem:[#allocation2 + $0xe0] ss:$8 sps:$4 sm:$0xff]  }
 0x47a   :  { %v4655_v63 = vadd.f32 %v4654_v54, %v4606_v22  ;;  %5541 = vmatpush1.bf16.msra.mxu0 %v12899_v27  ;;  %v4656_v3 = vpop.f32.mrb[167].mxu1  ;;  %5625 = vmatprep.subr.bf16.mxu1 %v13221_v5  ;;  %v4666_v9 = vmax.f32 %v4652_v53, 0.0  ;;  %14788 = vst [vmem:[#allocation60_spill] sm:$0xff] %v13225_v59  ;;  %v4611_v54 = vadd.f32 %v10406_v57, %v13124_v36  ;;  %v13232_v22 = vld [vmem:[#allocation2 + $0xf4] ss:$8 sps:$4 sm:$0xff]  }
 0x47b   :  { %5542 = vmatprep.subr.bf16.mxu0 %v12902_v33  ;;  %14790 = vst [vmem:[#allocation62_spill] sm:$0xff] %v13232_v22  ;;  %v13237_v27 = vld [vmem:[#allocation2 + $0xf0] ss:$8 sps:$4 sm:$0xff]  }
 0x47c   :  { %v4667_v29 = vmax.f32 %v4655_v63, 0.0  ;;  %v4614_v63 = vadd.f32 %v10406_v57, %v13133_v13  ;;  %14791 = vst [vmem:[#allocation63_spill] sm:$0xff] %v13237_v27  ;;  %v13247_v57 = vld [vmem:[#allocation2 + $0x100] ss:$8 sps:$4 sm:$0xff]   ;;  %v13253_v13 = vld [vmem:[#allocation2 + $0x114] ss:$8 sps:$4 sm:$0xff]  }
 0x47d   :  { %5626 = vmatpush1.bf16.msra.mxu1 %v13225_v59 }
 0x47e   :  { %v13228_v25 = vpack.c.bf16 %v4667_v29, %v4666_v9  ;;  %5543 = vmatpush1.bf16.msra.mxu0 %v12909_v17  ;;  %5627 = vmatprep.subr.bf16.mxu1 %v13232_v22  ;;  %v13241_v29 = vld [vmem:[#allocation2 + $0x104] ss:$8 sps:$4 sm:$0xff]  }
 0x47f   :  { %v4659_v39 = vpop.f32.mrb[168].mxu1  ;;  %5544 = vmatprep.subr.bf16.mxu0 %v14765_v6  ;;  %14792 = vst [vmem:[#allocation64_spill] sm:$0xff] %v13241_v29 }
 0x480   :  { %14789 = vst [vmem:[#allocation61_spill] sm:$0xff] %v13228_v25  ;;  %v4660_v3 = vadd.f32 %v4659_v39, %v4611_v54  ;;  %v4661_v53 = vpop.f32.mrb[169].mxu1  ;;  %v14793_v39 = vld [vmem:[#allocation5_spill] sm:$0xff] }
 0x481   :  { %v4662_v33 = vpop.f32.mrb[170].mxu1  ;;  %5628 = vmatpush1.bf16.msra.mxu1 %v13237_v27  ;;  %v13258_v53 = vld [vmem:[#allocation2 + $0x110] ss:$8 sps:$4 sm:$0xff]  }
 0x482   :  { %v4663_v9 = vadd.f32 %v4662_v33, %v4614_v63  ;;  %5545 = vmatpush1.bf16.msra.mxu0 %v12923_v12  ;;  %v4664_v36 = vpop.f32.mrb[171].mxu1  ;;  %5650 = vmatprep.subr.bf16.mxu1 %v13241_v29  ;;  %v4668_v25 = vmax.f32 %v4660_v3, 0.0  ;;  %v14795_v3 = vld [vmem:[#allocation26_spill] sm:$0xff] }
 0x483   :  { %5546 = vmatprep.subr.bf16.mxu0 %v12926_v14  ;;  %v13262_v63 = vld [vmem:[#allocation2 + $0x124] ss:$8 sps:$4 sm:$0xff]   ;;  %v14796_v36 = vld [vmem:[#allocation27_spill] sm:$0xff] }
 0x484   :  { %v4669_v54 = vmax.f32 %v4663_v9, 0.0  ;;  %5630 = vmatmul.mubr.bf16.vlgmr.msra.gmra.mrb[180].mxu1 %v14793_v39  ;;  %v13273_v9 = vld [vmem:[#allocation2 + $0x134] ss:$8 sps:$4 sm:$0xff]  }
 0x485   :  { %5639 = vmatprep.mubr.bf16.mxu1 %v14726_v52  ;;  %5651 = vmatpush1.bf16.msra.mxu1 %v13247_v57  ;;  %v14807_v39 = vld [vmem:[#allocation40_spill] sm:$0xff] }
 0x486   :  { %v13250_v33 = vpack.c.bf16 %v4669_v54, %v4668_v25  ;;  %5547 = vmatpush1.bf16.msra.mxu0 %v12933_v34  ;;  %5652 = vmatprep.subr.bf16.mxu1 %v13253_v13  ;;  %v13268_v25 = vld [vmem:[#allocation2 + $0x120] ss:$8 sps:$4 sm:$0xff]  }
 0x487   :  { %5768 = vmatprep.subr.bf16.mxu0 %v13088_v38 }
 0x488   :  { %14794 = vst [vmem:[#allocation5_spill] sm:$0xff] %v13250_v33 }
 0x489   :  { %5565 = vmatmul.mubr.bf16.vlgmr.msra.gmra.mrb[168].mxu0 %v14795_v3  ;;  %5653 = vmatpush1.bf16.msra.mxu1 %v13258_v53 }
 0x48a   :  { %5769 = vmatpush1.bf16.msra.mxu0 %v13093_v62  ;;  %5654 = vmatprep.subr.bf16.mxu1 %v13262_v63 }
 0x48b   :  { %5770 = vmatprep.subr.bf16.mxu0 %v13098_v20  ;;  %5574 = vmatprep.mubr.bf16.mxu0 %v14659_v42 }
 0x48c   :  { %5640 = vmatmul.mubr.bf16.gmra.mrb[184].mxu1 %v14756_v24  ;;  %v4674_v24 = vlaneseq }
 0x48d   :  { %5655 = vmatpush1.bf16.msra.mxu1 %v13268_v25  ;;  %5682 = vmatprep.mubr.bf16.mxu1 %v14795_v3 }
 0x48e   :  { %5771 = vmatpush1.bf16.msra.mxu0 %v13104_v15  ;;  %5656 = vmatprep.subr.bf16.mxu1 %v13273_v9 }
 0x48f   :  { %5772 = vmatprep.subr.bf16.mxu0 %v13108_v43 }
 0x491   :  { %5575 = vmatmul.mubr.bf16.gmra.mrb[172].mxu0 %v14796_v36  ;;  %5657 = vmatpush1.bf16.msra.mxu1 %v12721_v11  ;;  %v14797_v11 = vld [vmem:[#allocation34_spill] sm:$0xff] }
 0x492   :  { %5773 = vmatpush1.bf16.msra.mxu0 %v13115_v4  ;;  %5800 = vmatprep.mubr.bf16.mxu0 %v14763_v50 }
 0x493   :  { %5658 = vmatprep.subr.bf16.mxu1 %v12725_v28  ;;  %5774 = vmatprep.subr.bf16.mxu0 %v13120_v61  ;;  %v14798_v28 = vld [vmem:[#allocation35_spill] sm:$0xff] }
 0x495   :  { %5659 = vmatpush1.bf16.msra.mxu1 %v12732_v60  ;;  %v4675_v60 = vshrl.u32 %v4674_v24, 7 }
 0x496   :  { %5775 = vmatpush1.bf16.msra.mxu0 %v13126_v7  ;;  %5660 = vmatprep.subr.bf16.mxu1 %v12735_v1  ;;  %v14799_v1 = vld [vmem:[#allocation36_spill] sm:$0xff] }
 0x497   :  { %5776 = vmatprep.subr.bf16.mxu0 %v13130_v44 }
 0x499   :  { %5661 = vmatpush1.bf16.msra.mxu1 %v12740_v16  ;;  %v14800_v16 = vld [vmem:[#allocation20_spill] sm:$0xff] }
 0x49a   :  { %5777 = vmatpush1.bf16.msra.mxu0 %v13136_v23  ;;  %5662 = vmatprep.subr.bf16.mxu1 %v12743_v56  ;;  %v14801_v56 = vld [vmem:[#allocation37_spill] sm:$0xff] }
 0x49b   :  { %5778 = vmatprep.subr.bf16.mxu0 %v13140_v19 }
 0x49d   :  { %5663 = vmatpush1.bf16.msra.mxu1 %v12750_v37  ;;  %v4676_v37 = vsub.s32 0, %v4675_v60 }
 0x49e   :  { %5779 = vmatpush1.bf16.msra.mxu0 %v13144_v48  ;;  %5664 = vmatprep.subr.bf16.mxu1 %v14727_v2  ;;  %v4672_v2 = vld [vmem:[%s14446_s6] sm:$0x3] }
 0x49f   :  { %5780 = vmatprep.subr.bf16.mxu0 %v13148_v40 }
 0x4a1   :  { %5665 = vmatpush1.bf16.msra.mxu1 %v14728_v35  ;;  %v4680_v35 = vsub.s32 1, %v4675_v60 }
 0x4a2   :  { %5781 = vmatpush1.bf16.msra.mxu0 %v13152_v32  ;;  %5666 = vmatprep.subr.bf16.mxu1 %v14729_v55  ;;  %v14804_v55 = vld [vmem:[#allocation8_spill] sm:$0xff] }
 0x4a3   :  { %5782 = vmatprep.subr.bf16.mxu0 %v13156_v47  ;;  %v13326_v54 = vrot.slane %v4672_v2, %v4680_v35 }
 0x4a5   :  { %5667 = vmatpush1.bf16.msra.mxu1 %v12774_v10  ;;  %v14802_v10 = vld [vmem:[#allocation9_spill] sm:$0xff] }
 0x4a6   :  { %5783 = vmatpush1.bf16.msra.mxu0 %v13160_v21  ;;  %5668 = vmatprep.subr.bf16.mxu1 %v12777_v45  ;;  %v14803_v45 = vld [vmem:[#allocation38_spill] sm:$0xff] }
 0x4a7   :  { %5784 = vmatprep.subr.bf16.mxu0 %v13164_v8 }
 0x4a9   :  { %5669 = vmatpush1.bf16.msra.mxu1 %v14730_v31  ;;  %v14805_v31 = vld [vmem:[#allocation39_spill] sm:$0xff] }
 0x4aa   :  { %5785 = vmatpush1.bf16.msra.mxu0 %v13168_v58  ;;  %5670 = vmatprep.subr.bf16.mxu1 %v14731_v46  ;;  %v13323_v46 = vrot.slane %v4672_v2, %v4676_v37  ;;  %v14809_v37 = vld [vmem:[#allocation42_spill] sm:$0xff] }
 0x4ab   :  { %5786 = vmatprep.subr.bf16.mxu0 %v13172_v49 }
 0x4ad   :  { %5671 = vmatpush1.bf16.msra.mxu1 %v14732_v26  ;;  %v14806_v26 = vld [vmem:[#allocation55_spill] sm:$0xff] }
 0x4ae   :  { %5787 = vmatpush1.bf16.msra.mxu0 %v13177_v0  ;;  %5672 = vmatprep.subr.bf16.mxu1 %v14797_v11 }
 0x4af   :  { %5788 = vmatprep.subr.bf16.mxu0 %v13183_v30 }
 0x4b1   :  { %5673 = vmatpush1.bf16.msra.mxu1 %v14798_v28 }
 0x4b2   :  { %5789 = vmatpush1.bf16.msra.mxu0 %v13186_v18  ;;  %5674 = vmatprep.subr.bf16.mxu1 %v14799_v1  ;;  %v14808_v1 = vld [vmem:[#allocation41_spill] sm:$0xff] }
 0x4b3   :  { %5790 = vmatprep.subr.bf16.mxu0 %v14800_v16 }
 0x4b5   :  { %5675 = vmatpush1.bf16.msra.mxu1 %v14801_v56 }
 0x4b6   :  { %5791 = vmatpush1.bf16.msra.mxu0 %v14802_v10  ;;  %5676 = vmatprep.subr.bf16.mxu1 %v14803_v45 }
 0x4b7   :  { %5792 = vmatprep.subr.bf16.mxu0 %v14804_v55 }
 0x4b9   :  { %5677 = vmatpush1.bf16.msra.mxu1 %v14805_v31 }
 0x4ba   :  { %5793 = vmatpush1.bf16.msra.mxu0 %v14806_v26  ;;  %5678 = vmatprep.subr.bf16.mxu1 %v14807_v39 }
 0x4bb   :  { %5794 = vmatprep.subr.bf16.mxu0 %v13212_v41 }
 0x4bc   :  { %v5224_v24 = vpop.f32.mrb[160].mxu0 }
 0x4bd   :  { %v9702_v11 = vadd.f32 %v5224_v24, %v13323_v46  ;;  %v5226_v28 = vpop.f32.mrb[161].mxu0  ;;  %5679 = vmatpush1.bf16.msra.mxu1 %v14808_v1  ;;  %v14810_v24 = vld [vmem:[#allocation43_spill] sm:$0xff] }
 0x4be   :  { %v9703_v60 = vadd.f32 %v5226_v28, %v13326_v54  ;;  %v5228_v56 = vpop.f32.mrb[162].mxu0  ;;  %5795 = vmatpush1.bf16.msra.mxu0 %v13217_v51  ;;  %5680 = vmatprep.subr.bf16.mxu1 %v14809_v37  ;;  %v14811_v28 = vld [vmem:[#allocation44_spill] sm:$0xff] }
 0x4bf   :  { %v9704_v45 = vadd.f32 %v5228_v56, %v13323_v46  ;;  %v5230_v2 = vpop.f32.mrb[163].mxu0  ;;  %5796 = vmatprep.subr.bf16.mxu0 %v13221_v5  ;;  %v5243_v31 = vmax.f32 %v9702_v11, 0.0 }
 0x4c0   :  { %v9705_v35 = vadd.f32 %v5230_v2, %v13326_v54  ;;  %v5244_v33 = vmax.f32 %v9703_v60, 0.0  ;;  %v14814_v60 = vld [vmem:[#allocation45_spill] sm:$0xff] }
 0x4c1   :  { %v5245_v39 = vmax.f32 %v9704_v45, 0.0  ;;  %5681 = vmatpush1.bf16.msra.mxu1 %v14810_v24 }
 0x4c2   :  { %v5246_v1 = vmax.f32 %v9705_v35, 0.0  ;;  %5797 = vmatpush1.bf16.msra.mxu0 %v13225_v59  ;;  %5703 = vmatprep.subr.bf16.mxu1 %v14811_v28 }
 0x4c3   :  { %v13341_v51 = vpack.c.bf16 %v5245_v39, %v5243_v31  ;;  %5798 = vmatprep.subr.bf16.mxu0 %v13232_v22  ;;  %v14815_v31 = vld [vmem:[#allocation46_spill] sm:$0xff] }
 0x4c4   :  { %v13344_v56 = vpack.c.bf16 %v5246_v1, %v5244_v33  ;;  %v5234_v37 = vpop.f32.mrb[164].mxu0  ;;  %5683 = vmatmul.mubr.bf16.vlgmr.msra.gmra.mrb[180].mxu1 %v14763_v50 }
 0x4c5   :  { %14812 = vst [vmem:[#allocation27_spill] sm:$0xff] %v13341_v51  ;;  %v9706_v11 = vadd.f32 %v5234_v37, %v13323_v46  ;;  %v5236_v45 = vpop.f32.mrb[165].mxu0  ;;  %5692 = vmatprep.mubr.bf16.mxu1 %v14796_v36  ;;  %5704 = vmatpush1.bf16.msra.mxu1 %v14814_v60  ;;  %v14816_v37 = vld [vmem:[#allocation12_spill] sm:$0xff]  ;;  %v14817_v51 = vld [vmem:[#allocation47_spill] sm:$0xff] }
 0x4c6   :  { %14813 = vst [vmem:[#allocation34_spill] sm:$0xff] %v13344_v56  ;;  %v9707_v2 = vadd.f32 %v5236_v45, %v13326_v54  ;;  %v5238_v35 = vpop.f32.mrb[166].mxu0  ;;  %5799 = vmatpush1.bf16.msra.mxu0 %v13237_v27  ;;  %5705 = vmatprep.subr.bf16.mxu1 %v14815_v31  ;;  %v14818_v56 = vld [vmem:[#allocation11_spill] sm:$0xff] }
 0x4c7   :  { %v9708_v33 = vadd.f32 %v5238_v35, %v13323_v46  ;;  %v5240_v39 = vpop.f32.mrb[167].mxu0  ;;  %5821 = vmatprep.subr.bf16.mxu0 %v13241_v29  ;;  %v5247_v1 = vmax.f32 %v9706_v11, 0.0  ;;  %v14820_v35 = vld [vmem:[#allocation48_spill] sm:$0xff]  ;;  %v14822_v11 = vld [vmem:[#allocation49_spill] sm:$0xff] }
 0x4c8   :  { %v9709_v24 = vadd.f32 %v5240_v39, %v13326_v54  ;;  %v5248_v60 = vmax.f32 %v9707_v2, 0.0  ;;  %v14824_v2 = vld [vmem:[#allocation10_spill] sm:$0xff]  ;;  %v14826_v39 = vld [vmem:[#allocation52_spill] sm:$0xff] }
 0x4c9   :  { %v5249_v28 = vmax.f32 %v9708_v33, 0.0  ;;  %5801 = vmatmul.mubr.bf16.vlgmr.msra.gmra.mrb[176].mxu0 %v14816_v37  ;;  %5706 = vmatpush1.bf16.msra.mxu1 %v14817_v51  ;;  %v14823_v51 = vld [vmem:[#allocation50_spill] sm:$0xff]  ;;  %v14825_v33 = vld [vmem:[#allocation24_spill] sm:$0xff] }
 0x4ca   :  { %v5250_v45 = vmax.f32 %v9709_v24, 0.0  ;;  %5810 = vmatprep.mubr.bf16.mxu0 %v14818_v56  ;;  %5822 = vmatpush1.bf16.msra.mxu0 %v13247_v57  ;;  %v14827_v24 = vld [vmem:[#allocation21_spill] sm:$0xff] }
 0x4cb   :  { %v13360_v31 = vpack.c.bf16 %v5249_v28, %v5247_v1  ;;  %5707 = vmatprep.subr.bf16.mxu1 %v14820_v35  ;;  %5823 = vmatprep.subr.bf16.mxu0 %v13253_v13  ;;  %v13379_v1 = vld [vmem:[#allocation2 + $0x130] ss:$8 sps:$4 sm:$0xff]   ;;  %v14828_v28 = vld [vmem:[#allocation53_spill] sm:$0xff] }
 0x4cc   :  { %v13364_v50 = vpack.c.bf16 %v5250_v45, %v5248_v60  ;;  %5693 = vmatmul.mubr.bf16.gmra.mrb[184].mxu1 %v14818_v56  ;;  %v13383_v37 = vld [vmem:[#allocation2 + $0x144] ss:$8 sps:$4 sm:$0xff]   ;;  %v13391_v60 = vld [vmem:[#allocation2 + $0x154] ss:$8 sps:$4 sm:$0xff]   ;;  %v13395_v45 = vld [vmem:[#allocation2 + $0x150] ss:$8 sps:$4 sm:$0xff]  }
 0x4cd   :  { %14819 = vst [vmem:[#allocation35_spill] sm:$0xff] %v13360_v31  ;;  %5708 = vmatpush1.bf16.msra.mxu1 %v14822_v11  ;;  %5735 = vmatprep.mubr.bf16.mxu1 %v14659_v42  ;;  %v13399_v35 = vld [vmem:[#allocation2 + $0x164] ss:$8 sps:$4 sm:$0xff]   ;;  %v13425_v11 = vld [vmem:[#allocation2 + $0x194] ss:$8 sps:$4 sm:$0xff]  }
 0x4ce   :  { %14821 = vst [vmem:[#allocation36_spill] sm:$0xff] %v13364_v50  ;;  %5824 = vmatpush1.bf16.msra.mxu0 %v13258_v53  ;;  %5709 = vmatprep.subr.bf16.mxu1 %v14823_v51  ;;  %v14829_v51 = vld [vmem:[#allocation25_spill] sm:$0xff]  ;;  %v13447_v31 = vld [vmem:[#allocation2 + $0x1b0] ss:$8 sps:$4 sm:$0xff]  }
 0x4cf   :  { %5825 = vmatprep.subr.bf16.mxu0 %v13262_v63  ;;  %14832 = vst [vmem:[#allocation39_spill] sm:$0xff] %v13447_v31  ;;  %v13451_v50 = vld [vmem:[#allocation2 + $0x1c4] ss:$8 sps:$4 sm:$0xff]  }
 0x4d0   :  { %14833 = vst [vmem:[#allocation40_spill] sm:$0xff] %v13451_v50 }
 0x4d1   :  { %5811 = vmatmul.mubr.bf16.gmra.mrb[180].mxu0 %v14726_v52  ;;  %5710 = vmatpush1.bf16.msra.mxu1 %v14824_v2  ;;  %v13387_v52 = vld [vmem:[#allocation2 + $0x140] ss:$8 sps:$4 sm:$0xff]   ;;  %v13431_v2 = vld [vmem:[#allocation2 + $0x190] ss:$8 sps:$4 sm:$0xff]  }
 0x4d2   :  { %5826 = vmatpush1.bf16.msra.mxu0 %v13268_v25  ;;  %5853 = vmatprep.mubr.bf16.mxu0 %v14825_v33 }
 0x4d3   :  { %5711 = vmatprep.subr.bf16.mxu1 %v14826_v39  ;;  %5827 = vmatprep.subr.bf16.mxu0 %v13273_v9  ;;  %v13435_v39 = vld [vmem:[#allocation2 + $0x1a4] ss:$8 sps:$4 sm:$0xff]  }
 0x4d5   :  { %5712 = vmatpush1.bf16.msra.mxu1 %v14827_v24  ;;  %v13439_v24 = vld [vmem:[#allocation2 + $0x1a0] ss:$8 sps:$4 sm:$0xff]  }
 0x4d6   :  { %5828 = vmatpush1.bf16.msra.mxu0 %v13379_v1  ;;  %5713 = vmatprep.subr.bf16.mxu1 %v14828_v28  ;;  %14830 = vst [vmem:[#allocation37_spill] sm:$0xff] %v13439_v24  ;;  %v13443_v28 = vld [vmem:[#allocation2 + $0x1b4] ss:$8 sps:$4 sm:$0xff]  }
 0x4d7   :  { %5829 = vmatprep.subr.bf16.mxu0 %v13383_v37  ;;  %14831 = vst [vmem:[#allocation38_spill] sm:$0xff] %v13443_v28 }
 0x4d9   :  { %5714 = vmatpush1.bf16.msra.mxu1 %v12909_v17  ;;  %v13403_v17 = vld [vmem:[#allocation2 + $0x160] ss:$8 sps:$4 sm:$0xff]  }
 0x4da   :  { %5830 = vmatpush1.bf16.msra.mxu0 %v13387_v52  ;;  %5715 = vmatprep.subr.bf16.mxu1 %v14765_v6  ;;  %v13407_v6 = vld [vmem:[#allocation2 + $0x174] ss:$8 sps:$4 sm:$0xff]  }
 0x4db   :  { %5831 = vmatprep.subr.bf16.mxu0 %v13391_v60 }
 0x4dd   :  { %5716 = vmatpush1.bf16.msra.mxu1 %v12923_v12  ;;  %v13413_v12 = vld [vmem:[#allocation2 + $0x170] ss:$8 sps:$4 sm:$0xff]  }
 0x4de   :  { %5832 = vmatpush1.bf16.msra.mxu0 %v13395_v45  ;;  %5717 = vmatprep.subr.bf16.mxu1 %v12926_v14  ;;  %v13421_v14 = vld [vmem:[#allocation2 + $0x180] ss:$8 sps:$4 sm:$0xff]  }
 0x4df   :  { %5833 = vmatprep.subr.bf16.mxu0 %v13399_v35 }
 0x4e1   :  { %5718 = vmatpush1.bf16.msra.mxu1 %v12933_v34  ;;  %v13417_v34 = vld [vmem:[#allocation2 + $0x184] ss:$8 sps:$4 sm:$0xff]  }
 0x4e2   :  { %5834 = vmatpush1.bf16.msra.mxu0 %v13403_v17  ;;  %5939 = vmatprep.subr.bf16.mxu1 %v13088_v38 }
 0x4e3   :  { %5835 = vmatprep.subr.bf16.mxu0 %v13407_v6 }
 0x4e4   :  { %5736 = vmatmul.mubr.bf16.vlgmr.msra.gmra.mrb[180].mxu1 %v14825_v33 }
 0x4e5   :  { %5940 = vmatpush1.bf16.msra.mxu1 %v13093_v62  ;;  %5745 = vmatprep.mubr.bf16.mxu1 %v14659_v42 }
 0x4e6   :  { %5836 = vmatpush1.bf16.msra.mxu0 %v13413_v12  ;;  %5941 = vmatprep.subr.bf16.mxu1 %v13098_v20 }
 0x4e7   :  { %5837 = vmatprep.subr.bf16.mxu0 %v13417_v34 }
 0x4e9   :  { %5942 = vmatpush1.bf16.msra.mxu1 %v13104_v15 }
 0x4ea   :  { %5838 = vmatpush1.bf16.msra.mxu0 %v13421_v14  ;;  %5943 = vmatprep.subr.bf16.mxu1 %v13108_v43 }
 0x4eb   :  { %5839 = vmatprep.subr.bf16.mxu0 %v13425_v11 }
 0x4ec   :  { %5746 = vmatmul.mubr.bf16.gmra.mrb[184].mxu1 %v14829_v51 }
 0x4ed   :  { %5944 = vmatpush1.bf16.msra.mxu1 %v13115_v4  ;;  %5971 = vmatprep.mubr.bf16.mxu1 %v14795_v3 }
 0x4ee   :  { %5840 = vmatpush1.bf16.msra.mxu0 %v13431_v2  ;;  %5945 = vmatprep.subr.bf16.mxu1 %v13120_v61 }
 0x4ef   :  { %5841 = vmatprep.subr.bf16.mxu0 %v13435_v39 }
 0x4f1   :  { %5946 = vmatpush1.bf16.msra.mxu1 %v13126_v7 }
 0x4f2   :  { %5842 = vmatpush1.bf16.msra.mxu0 %v13439_v24  ;;  %5947 = vmatprep.subr.bf16.mxu1 %v13130_v44  ;;  %v13455_v24 = vld [vmem:[#allocation2 + $0x1c0] ss:$8 sps:$4 sm:$0xff]  }
 0x4f3   :  { %5843 = vmatprep.subr.bf16.mxu0 %v13443_v28  ;;  %14834 = vst [vmem:[#allocation41_spill] sm:$0xff] %v13455_v24  ;;  %v13459_v28 = vld [vmem:[#allocation2 + $0x1d4] ss:$8 sps:$4 sm:$0xff]  }
 0x4f4   :  { %14835 = vst [vmem:[#allocation42_spill] sm:$0xff] %v13459_v28 }
 0x4f5   :  { %5948 = vmatpush1.bf16.msra.mxu1 %v13136_v23 }
 0x4f6   :  { %5844 = vmatpush1.bf16.msra.mxu0 %v13447_v31  ;;  %5949 = vmatprep.subr.bf16.mxu1 %v13140_v19  ;;  %v13463_v31 = vld [vmem:[#allocation2 + $0x1d0] ss:$8 sps:$4 sm:$0xff]  }
 0x4f7   :  { %5845 = vmatprep.subr.bf16.mxu0 %v13451_v50  ;;  %14836 = vst [vmem:[#allocation43_spill] sm:$0xff] %v13463_v31  ;;  %v13467_v50 = vld [vmem:[#allocation2 + $0x1e4] ss:$8 sps:$4 sm:$0xff]  }
 0x4f8   :  { %14837 = vst [vmem:[#allocation44_spill] sm:$0xff] %v13467_v50 }
 0x4f9   :  { %5950 = vmatpush1.bf16.msra.mxu1 %v13144_v48 }
 0x4fa   :  { %5846 = vmatpush1.bf16.msra.mxu0 %v13455_v24  ;;  %5951 = vmatprep.subr.bf16.mxu1 %v13148_v40  ;;  %v13471_v24 = vld [vmem:[#allocation2 + $0x1e0] ss:$8 sps:$4 sm:$0xff]  }
 0x4fb   :  { %5847 = vmatprep.subr.bf16.mxu0 %v13459_v28  ;;  %14838 = vst [vmem:[#allocation45_spill] sm:$0xff] %v13471_v24  ;;  %v13475_v28 = vld [vmem:[#allocation2 + $0x1f4] ss:$8 sps:$4 sm:$0xff]  }
 0x4fc   :  { %14839 = vst [vmem:[#allocation46_spill] sm:$0xff] %v13475_v28 }
 0x4fd   :  { %5952 = vmatpush1.bf16.msra.mxu1 %v13152_v32 }
 0x4fe   :  { %5848 = vmatpush1.bf16.msra.mxu0 %v13463_v31  ;;  %5953 = vmatprep.subr.bf16.mxu1 %v13156_v47  ;;  %v13479_v31 = vld [vmem:[#allocation2 + $0x1f0] ss:$8 sps:$4 sm:$0xff]  }
 0x4ff   :  { %5849 = vmatprep.subr.bf16.mxu0 %v13467_v50  ;;  %14840 = vst [vmem:[#allocation12_spill] sm:$0xff] %v13479_v31  ;;  %v13483_v50 = vld [vmem:[#allocation2 + $0x204] ss:$8 sps:$4 sm:$0xff]  }
 0x500   :  { %14841 = vst [vmem:[#allocation47_spill] sm:$0xff] %v13483_v50 }
 0x501   :  { %5954 = vmatpush1.bf16.msra.mxu1 %v13160_v21 }
 0x502   :  { %5850 = vmatpush1.bf16.msra.mxu0 %v13471_v24  ;;  %5955 = vmatprep.subr.bf16.mxu1 %v13164_v8  ;;  %v13489_v24 = vld [vmem:[#allocation2 + $0x200] ss:$8 sps:$4 sm:$0xff]  }
 0x503   :  { %5851 = vmatprep.subr.bf16.mxu0 %v13475_v28  ;;  %14842 = vst [vmem:[#allocation11_spill] sm:$0xff] %v13489_v24  ;;  %v13492_v28 = vld [vmem:[#allocation2 + $0x214] ss:$8 sps:$4 sm:$0xff]  }
 0x504   :  { %14843 = vst [vmem:[#allocation48_spill] sm:$0xff] %v13492_v28 }
 0x505   :  { %5956 = vmatpush1.bf16.msra.mxu1 %v13168_v58 }
 0x506   :  { %5852 = vmatpush1.bf16.msra.mxu0 %v13479_v31  ;;  %5957 = vmatprep.subr.bf16.mxu1 %v13172_v49  ;;  %v13497_v31 = vld [vmem:[#allocation2 + $0x210] ss:$8 sps:$4 sm:$0xff]  }
 0x507   :  { %5874 = vmatprep.subr.bf16.mxu0 %v13483_v50  ;;  %14844 = vst [vmem:[#allocation49_spill] sm:$0xff] %v13497_v31 }
 0x509   :  { %5854 = vmatmul.mubr.bf16.vlgmr.msra.gmra.mrb[176].mxu0 %v14795_v3  ;;  %5958 = vmatpush1.bf16.msra.mxu1 %v13177_v0  ;;  %v13501_v3 = vld [vmem:[#allocation2 + $0x224] ss:$8 sps:$4 sm:$0xff]  }
 0x50a   :  { %5863 = vmatprep.mubr.bf16.mxu0 %v14829_v51  ;;  %5875 = vmatpush1.bf16.msra.mxu0 %v13489_v24  ;;  %14845 = vst [vmem:[#allocation50_spill] sm:$0xff] %v13501_v3  ;;  %v13506_v51 = vld [vmem:[#allocation2 + $0x220] ss:$8 sps:$4 sm:$0xff]   ;;  %v13519_v24 = vld [vmem:[#allocation2 + $0x244] ss:$8 sps:$4 sm:$0xff]  }
 0x50b   :  { %5876 = vmatprep.subr.bf16.mxu0 %v13492_v28  ;;  %5959 = vmatprep.subr.bf16.mxu1 %v13183_v30  ;;  %14846 = vst [vmem:[#allocation10_spill] sm:$0xff] %v13506_v51  ;;  %v13510_v28 = vld [vmem:[#allocation2 + $0x234] ss:$8 sps:$4 sm:$0xff]   ;;  %14849 = vst [vmem:[#allocation53_spill] sm:$0xff] %v13519_v24 }
 0x50c   :  { %14847 = vst [vmem:[#allocation52_spill] sm:$0xff] %v13510_v28 }
 0x50d   :  { %5960 = vmatpush1.bf16.msra.mxu1 %v13186_v18 }
 0x50e   :  { %5877 = vmatpush1.bf16.msra.mxu0 %v13497_v31  ;;  %5961 = vmatprep.subr.bf16.mxu1 %v14800_v16  ;;  %v13515_v31 = vld [vmem:[#allocation2 + $0x230] ss:$8 sps:$4 sm:$0xff]   ;;  %v13526_v16 = vld [vmem:[#allocation2 + $0x240] ss:$8 sps:$4 sm:$0xff]  }
 0x50f   :  { %5878 = vmatprep.subr.bf16.mxu0 %v13501_v3  ;;  %14848 = vst [vmem:[#allocation21_spill] sm:$0xff] %v13515_v31  ;;  %14851 = vst [vmem:[#allocation65_spill] sm:$0xff] %v13526_v16 }
 0x511   :  { %5864 = vmatmul.mubr.bf16.gmra.mrb[180].mxu0 %v14796_v36  ;;  %5962 = vmatpush1.bf16.msra.mxu1 %v14802_v10  ;;  %v14850_v10 = vld [vmem:[#allocation58_spill] sm:$0xff] }
 0x512   :  { %5879 = vmatpush1.bf16.msra.mxu0 %v13506_v51  ;;  %5963 = vmatprep.subr.bf16.mxu1 %v14804_v55 }
 0x513   :  { %5880 = vmatprep.subr.bf16.mxu0 %v13510_v28  ;;  %5906 = vmatprep.mubr.bf16.mxu0 %v14659_v42 }
 0x515   :  { %5964 = vmatpush1.bf16.msra.mxu1 %v14806_v26 }
 0x516   :  { %5881 = vmatpush1.bf16.msra.mxu0 %v13515_v31  ;;  %5965 = vmatprep.subr.bf16.mxu1 %v13212_v41 }
 0x517   :  { %v5395_v3 = vpop.f32.mrb[172].mxu1  ;;  %5882 = vmatprep.subr.bf16.mxu0 %v13519_v24  ;;  %v13531_v24 = vld [vmem:[#allocation2 + $0x254] ss:$8 sps:$4 sm:$0xff]  }
 0x518   :  { %v9710_v51 = vadd.f32 %v5395_v3, %v13323_v46  ;;  %v5397_v50 = vpop.f32.mrb[173].mxu1 }
 0x519   :  { %v9711_v28 = vadd.f32 %v5397_v50, %v13326_v54  ;;  %v5399_v55 = vpop.f32.mrb[174].mxu1  ;;  %5966 = vmatpush1.bf16.msra.mxu1 %v14850_v10  ;;  %v13537_v10 = vld [vmem:[#allocation2 + $0x250] ss:$8 sps:$4 sm:$0xff]  }
 0x51a   :  { %v9712_v26 = vadd.f32 %v5399_v55, %v13323_v46  ;;  %5883 = vmatpush1.bf16.msra.mxu0 %v13526_v16  ;;  %v5401_v31 = vpop.f32.mrb[175].mxu1  ;;  %5967 = vmatprep.subr.bf16.mxu1 %v13221_v5  ;;  %v5414_v3 = vmax.f32 %v9710_v51, 0.0  ;;  %14853 = vst [vmem:[#allocation67_spill] sm:$0xff] %v13537_v10  ;;  %v13543_v5 = vld [vmem:[#allocation2 + $0x264] ss:$8 sps:$4 sm:$0xff]  }
 0x51b   :  { %v9713_v41 = vadd.f32 %v5401_v31, %v13326_v54  ;;  %5884 = vmatprep.subr.bf16.mxu0 %v13531_v24  ;;  %v5415_v18 = vmax.f32 %v9711_v28, 0.0  ;;  %14855 = vst [vmem:[#allocation69_spill] sm:$0xff] %v13543_v5 }
 0x51c   :  { %v5416_v50 = vmax.f32 %v9712_v26, 0.0 }
 0x51d   :  { %v5417_v30 = vmax.f32 %v9713_v41, 0.0  ;;  %5968 = vmatpush1.bf16.msra.mxu1 %v13225_v59 }
 0x51e   :  { %v13535_v55 = vpack.c.bf16 %v5416_v50, %v5414_v3  ;;  %5885 = vmatpush1.bf16.msra.mxu0 %v13537_v10  ;;  %5969 = vmatprep.subr.bf16.mxu1 %v13232_v22  ;;  %v13550_v50 = vld [vmem:[#allocation2 + $0x260] ss:$8 sps:$4 sm:$0xff]  }
 0x51f   :  { %v13541_v16 = vpack.c.bf16 %v5417_v30, %v5415_v18  ;;  %v5405_v31 = vpop.f32.mrb[176].mxu1  ;;  %5886 = vmatprep.subr.bf16.mxu0 %v13543_v5  ;;  %14856 = vst [vmem:[#allocation70_spill] sm:$0xff] %v13550_v50 }
 0x520   :  { %14852 = vst [vmem:[#allocation66_spill] sm:$0xff] %v13535_v55  ;;  %v9714_v26 = vadd.f32 %v5405_v31, %v13323_v46  ;;  %v5407_v41 = vpop.f32.mrb[177].mxu1  ;;  %v13555_v55 = vld [vmem:[#allocation2 + $0x274] ss:$8 sps:$4 sm:$0xff]  }
 0x521   :  { %14854 = vst [vmem:[#allocation68_spill] sm:$0xff] %v13541_v16  ;;  %v9715_v51 = vadd.f32 %v5407_v41, %v13326_v54  ;;  %v5409_v28 = vpop.f32.mrb[178].mxu1  ;;  %5970 = vmatpush1.bf16.msra.mxu1 %v13237_v27  ;;  %v14857_v16 = vld [vmem:[#allocation6_spill] sm:$0xff] }
 0x522   :  { %v9716_v3 = vadd.f32 %v5409_v28, %v13323_v46  ;;  %5887 = vmatpush1.bf16.msra.mxu0 %v13550_v50  ;;  %v5411_v30 = vpop.f32.mrb[179].mxu1  ;;  %5992 = vmatprep.subr.bf16.mxu1 %v13241_v29  ;;  %v5418_v31 = vmax.f32 %v9714_v26, 0.0  ;;  %v13563_v50 = vld [vmem:[#allocation2 + $0x270] ss:$8 sps:$4 sm:$0xff]  }
 0x523   :  { %v9717_v18 = vadd.f32 %v5411_v30, %v13326_v54  ;;  %5888 = vmatprep.subr.bf16.mxu0 %v13555_v55  ;;  %v5419_v5 = vmax.f32 %v9715_v51, 0.0  ;;  %v14860_v26 = vld [vmem:[#allocation56_spill] sm:$0xff]  ;;  %v14865_v51 = vld [vmem:[#allocation39_spill] sm:$0xff] }
 0x524   :  { %v5420_v41 = vmax.f32 %v9716_v3, 0.0  ;;  %5972 = vmatmul.mubr.bf16.vlgmr.msra.gmra.mrb[188].mxu1 %v14857_v16  ;;  %v14862_v16 = vld [vmem:[#allocation37_spill] sm:$0xff]  ;;  %v14866_v3 = vld [vmem:[#allocation19_spill] sm:$0xff] }
 0x525   :  { %v5421_v10 = vmax.f32 %v9717_v18, 0.0  ;;  %5981 = vmatprep.mubr.bf16.mxu1 %v14796_v36  ;;  %5993 = vmatpush1.bf16.msra.mxu1 %v13247_v57  ;;  %v14867_v18 = vld [vmem:[#allocation40_spill] sm:$0xff] }
 0x526   :  { %v13561_v28 = vpack.c.bf16 %v5420_v41, %v5418_v31  ;;  %5889 = vmatpush1.bf16.msra.mxu0 %v13563_v50  ;;  %5994 = vmatprep.subr.bf16.mxu1 %v13253_v13  ;;  %v14868_v31 = vld [vmem:[#allocation20_spill] sm:$0xff]  ;;  %v14869_v41 = vld [vmem:[#allocation41_spill] sm:$0xff] }
 0x527   :  { %v13567_v30 = vpack.c.bf16 %v5421_v10, %v5419_v5  ;;  %6110 = vmatprep.subr.bf16.mxu0 %v13088_v38  ;;  %v14861_v5 = vld [vmem:[#allocation22_spill] sm:$0xff] }
 0x528   :  { %14858 = vst [vmem:[#allocation6_spill] sm:$0xff] %v13561_v28  ;;  %v14863_v10 = vld [vmem:[#allocation38_spill] sm:$0xff]  ;;  %v14870_v28 = vld [vmem:[#allocation9_spill] sm:$0xff] }
 0x529   :  { %14859 = vst [vmem:[#allocation71_spill] sm:$0xff] %v13567_v30  ;;  %5907 = vmatmul.mubr.bf16.vlgmr.msra.gmra.mrb[176].mxu0 %v14860_v26  ;;  %5995 = vmatpush1.bf16.msra.mxu1 %v13258_v53  ;;  %v14871_v30 = vld [vmem:[#allocation42_spill] sm:$0xff] }
 0x52a   :  { %6111 = vmatpush1.bf16.msra.mxu0 %v13093_v62  ;;  %5996 = vmatprep.subr.bf16.mxu1 %v13262_v63 }
 0x52b   :  { %6112 = vmatprep.subr.bf16.mxu0 %v13098_v20  ;;  %5916 = vmatprep.mubr.bf16.mxu0 %v14659_v42 }
 0x52c   :  { %5982 = vmatmul.mubr.bf16.gmra.mrb[192].mxu1 %v14818_v56  ;;  %v14864_v56 = vld [vmem:[#allocation18_spill] sm:$0xff] }
 0x52d   :  { %5997 = vmatpush1.bf16.msra.mxu1 %v13268_v25  ;;  %6024 = vmatprep.mubr.bf16.mxu1 %v14860_v26 }
 0x52e   :  { %6113 = vmatpush1.bf16.msra.mxu0 %v13104_v15  ;;  %5998 = vmatprep.subr.bf16.mxu1 %v13273_v9 }
 0x52f   :  { %6114 = vmatprep.subr.bf16.mxu0 %v13108_v43 }
 0x531   :  { %5917 = vmatmul.mubr.bf16.gmra.mrb[180].mxu0 %v14861_v5  ;;  %5999 = vmatpush1.bf16.msra.mxu1 %v13379_v1 }
 0x532   :  { %6115 = vmatpush1.bf16.msra.mxu0 %v13115_v4  ;;  %6142 = vmatprep.mubr.bf16.mxu0 %v14825_v33 }
 0x533   :  { %6000 = vmatprep.subr.bf16.mxu1 %v13383_v37  ;;  %6116 = vmatprep.subr.bf16.mxu0 %v13120_v61 }
 0x535   :  { %6001 = vmatpush1.bf16.msra.mxu1 %v13387_v52 }
 0x536   :  { %6117 = vmatpush1.bf16.msra.mxu0 %v13126_v7  ;;  %6002 = vmatprep.subr.bf16.mxu1 %v13391_v60 }
 0x537   :  { %6118 = vmatprep.subr.bf16.mxu0 %v13130_v44 }
 0x539   :  { %6003 = vmatpush1.bf16.msra.mxu1 %v13395_v45 }
 0x53a   :  { %6119 = vmatpush1.bf16.msra.mxu0 %v13136_v23  ;;  %6004 = vmatprep.subr.bf16.mxu1 %v13399_v35 }
 0x53b   :  { %6120 = vmatprep.subr.bf16.mxu0 %v13140_v19 }
 0x53d   :  { %6005 = vmatpush1.bf16.msra.mxu1 %v13403_v17 }
 0x53e   :  { %6121 = vmatpush1.bf16.msra.mxu0 %v13144_v48  ;;  %6006 = vmatprep.subr.bf16.mxu1 %v13407_v6 }
 0x53f   :  { %6122 = vmatprep.subr.bf16.mxu0 %v13148_v40  ;;  %v14880_v40 = vld [vmem:[#allocation59_spill] sm:$0xff] }
 0x541   :  { %6007 = vmatpush1.bf16.msra.mxu1 %v13413_v12 }
 0x542   :  { %6123 = vmatpush1.bf16.msra.mxu0 %v13152_v32  ;;  %6008 = vmatprep.subr.bf16.mxu1 %v13417_v34 }
 0x543   :  { %6124 = vmatprep.subr.bf16.mxu0 %v13156_v47  ;;  %v14877_v47 = vld [vmem:[#allocation45_spill] sm:$0xff] }
 0x545   :  { %6009 = vmatpush1.bf16.msra.mxu1 %v13421_v14 }
 0x546   :  { %6125 = vmatpush1.bf16.msra.mxu0 %v13160_v21  ;;  %6010 = vmatprep.subr.bf16.mxu1 %v13425_v11 }
 0x547   :  { %6126 = vmatprep.subr.bf16.mxu0 %v13164_v8  ;;  %v14876_v8 = vld [vmem:[#allocation57_spill] sm:$0xff] }
 0x549   :  { %6011 = vmatpush1.bf16.msra.mxu1 %v13431_v2 }
 0x54a   :  { %6127 = vmatpush1.bf16.msra.mxu0 %v13168_v58  ;;  %6012 = vmatprep.subr.bf16.mxu1 %v13435_v39  ;;  %v14874_v58 = vld [vmem:[#allocation55_spill] sm:$0xff] }
 0x54b   :  { %6128 = vmatprep.subr.bf16.mxu0 %v13172_v49  ;;  %v14872_v49 = vld [vmem:[#allocation8_spill] sm:$0xff] }
 0x54d   :  { %6013 = vmatpush1.bf16.msra.mxu1 %v14862_v16 }
 0x54e   :  { %6129 = vmatpush1.bf16.msra.mxu0 %v13177_v0  ;;  %6014 = vmatprep.subr.bf16.mxu1 %v14863_v10  ;;  %v14873_v0 = vld [vmem:[#allocation43_spill] sm:$0xff] }
 0x54f   :  { %6130 = vmatprep.subr.bf16.mxu0 %v14864_v56  ;;  %v14875_v56 = vld [vmem:[#allocation44_spill] sm:$0xff] }
 0x551   :  { %6015 = vmatpush1.bf16.msra.mxu1 %v14865_v51 }
 0x552   :  { %6131 = vmatpush1.bf16.msra.mxu0 %v14866_v3  ;;  %6016 = vmatprep.subr.bf16.mxu1 %v14867_v18 }
 0x553   :  { %6132 = vmatprep.subr.bf16.mxu0 %v14868_v31 }
 0x555   :  { %6017 = vmatpush1.bf16.msra.mxu1 %v14869_v41 }
 0x556   :  { %6133 = vmatpush1.bf16.msra.mxu0 %v14870_v28  ;;  %6018 = vmatprep.subr.bf16.mxu1 %v14871_v30  ;;  %v14878_v30 = vld [vmem:[#allocation58_spill] sm:$0xff] }
 0x557   :  { %6134 = vmatprep.subr.bf16.mxu0 %v14872_v49  ;;  %v14879_v49 = vld [vmem:[#allocation46_spill] sm:$0xff] }
 0x559   :  { %6019 = vmatpush1.bf16.msra.mxu1 %v14873_v0 }
 0x55a   :  { %6135 = vmatpush1.bf16.msra.mxu0 %v14874_v58  ;;  %6020 = vmatprep.subr.bf16.mxu1 %v14875_v56 }
 0x55b   :  { %6136 = vmatprep.subr.bf16.mxu0 %v14876_v8 }
 0x55c   :  { %v5566_v3 = vpop.f32.mrb[168].mxu0 }
 0x55d   :  { %v9718_v21 = vadd.f32 %v5566_v3, %v13323_v46  ;;  %v5568_v31 = vpop.f32.mrb[169].mxu0  ;;  %6021 = vmatpush1.bf16.msra.mxu1 %v14877_v47  ;;  %v14881_v3 = vld [vmem:[#allocation12_spill] sm:$0xff] }
 0x55e   :  { %v9719_v28 = vadd.f32 %v5568_v31, %v13326_v54  ;;  %v5570_v32 = vpop.f32.mrb[170].mxu0  ;;  %6137 = vmatpush1.bf16.msra.mxu0 %v14878_v30  ;;  %6022 = vmatprep.subr.bf16.mxu1 %v14879_v49  ;;  %v14882_v31 = vld [vmem:[#allocation47_spill] sm:$0xff] }
 0x55f   :  { %v9720_v0 = vadd.f32 %v5570_v32, %v13323_v46  ;;  %v5572_v58 = vpop.f32.mrb[171].mxu0  ;;  %6138 = vmatprep.subr.bf16.mxu0 %v14880_v40  ;;  %v5585_v56 = vmax.f32 %v9718_v21, 0.0 }
 0x560   :  { %v9721_v8 = vadd.f32 %v5572_v58, %v13326_v54  ;;  %v5586_v48 = vmax.f32 %v9719_v28, 0.0  ;;  %v14885_v58 = vld [vmem:[#allocation11_spill] sm:$0xff] }
 0x561   :  { %v5587_v41 = vmax.f32 %v9720_v0, 0.0  ;;  %6023 = vmatpush1.bf16.msra.mxu1 %v14881_v3 }
 0x562   :  { %v5588_v47 = vmax.f32 %v9721_v8, 0.0  ;;  %6139 = vmatpush1.bf16.msra.mxu0 %v13225_v59  ;;  %6045 = vmatprep.subr.bf16.mxu1 %v14882_v31  ;;  %v14889_v59 = vld [vmem:[#allocation25_spill] sm:$0xff] }
 0x563   :  { %v13639_v30 = vpack.c.bf16 %v5587_v41, %v5585_v56  ;;  %6140 = vmatprep.subr.bf16.mxu0 %v13232_v22  ;;  %v14886_v56 = vld [vmem:[#allocation48_spill] sm:$0xff] }
 0x564   :  { %v13642_v32 = vpack.c.bf16 %v5588_v47, %v5586_v48  ;;  %v5576_v49 = vpop.f32.mrb[172].mxu0  ;;  %6025 = vmatmul.mubr.bf16.vlgmr.msra.gmra.mrb[188].mxu1 %v14825_v33  ;;  %v14888_v33 = vld [vmem:[#allocation49_spill] sm:$0xff] }
 0x565   :  { %14883 = vst [vmem:[#allocation56_spill] sm:$0xff] %v13639_v30  ;;  %v9722_v21 = vadd.f32 %v5576_v49, %v13323_v46  ;;  %v5578_v0 = vpop.f32.mrb[173].mxu0  ;;  %6034 = vmatprep.mubr.bf16.mxu1 %v14861_v5  ;;  %6046 = vmatpush1.bf16.msra.mxu1 %v14885_v58 }
 0x566   :  { %14884 = vst [vmem:[#allocation22_spill] sm:$0xff] %v13642_v32  ;;  %v9723_v8 = vadd.f32 %v5578_v0, %v13326_v54  ;;  %v5580_v28 = vpop.f32.mrb[174].mxu0  ;;  %6141 = vmatpush1.bf16.msra.mxu0 %v13237_v27  ;;  %6047 = vmatprep.subr.bf16.mxu1 %v14886_v56  ;;  %v14887_v32 = vld [vmem:[#allocation26_spill] sm:$0xff] }
 0x567   :  { %v9724_v47 = vadd.f32 %v5580_v28, %v13323_v46  ;;  %v5582_v48 = vpop.f32.mrb[175].mxu0  ;;  %6163 = vmatprep.subr.bf16.mxu0 %v13241_v29  ;;  %v5589_v49 = vmax.f32 %v9722_v21, 0.0  ;;  %v14891_v28 = vld [vmem:[#allocation50_spill] sm:$0xff] }
 0x568   :  { %v9725_v41 = vadd.f32 %v5582_v48, %v13326_v54  ;;  %v5590_v22 = vmax.f32 %v9723_v8, 0.0  ;;  %v14893_v21 = vld [vmem:[#allocation10_spill] sm:$0xff]  ;;  %v14897_v8 = vld [vmem:[#allocation53_spill] sm:$0xff]  ;;  %v14899_v48 = vld [vmem:[#allocation67_spill] sm:$0xff] }
 0x569   :  { %v5591_v30 = vmax.f32 %v9724_v47, 0.0  ;;  %6143 = vmatmul.mubr.bf16.vlgmr.msra.gmra.mrb[184].mxu0 %v14887_v32  ;;  %6048 = vmatpush1.bf16.msra.mxu1 %v14888_v33  ;;  %v14894_v32 = vld [vmem:[#allocation52_spill] sm:$0xff]  ;;  %v14898_v47 = vld [vmem:[#allocation65_spill] sm:$0xff] }
 0x56a   :  { %v5592_v0 = vmax.f32 %v9725_v41, 0.0  ;;  %6152 = vmatprep.mubr.bf16.mxu0 %v14889_v59  ;;  %6164 = vmatpush1.bf16.msra.mxu0 %v13247_v57  ;;  %v14901_v41 = vld [vmem:[#allocation70_spill] sm:$0xff] }
 0x56b   :  { %v13658_v27 = vpack.c.bf16 %v5591_v30, %v5589_v49  ;;  %6049 = vmatprep.subr.bf16.mxu1 %v14891_v28  ;;  %6165 = vmatprep.subr.bf16.mxu0 %v13253_v13  ;;  %v14895_v30 = vld [vmem:[#allocation21_spill] sm:$0xff]  ;;  %v14913_v49 = vld [vmem:[#allocation14_spill] sm:$0xff] }
 0x56c   :  { %v13662_v29 = vpack.c.bf16 %v5592_v0, %v5590_v22  ;;  %6035 = vmatmul.mubr.bf16.gmra.mrb[192].mxu1 %v14889_v59  ;;  %v14896_v22 = vld [vmem:[#allocation51_spill] sm:$0xff]  ;;  %v14914_v0 = vld [vmem:[#allocation46_spill] sm:$0xff] }
 0x56d   :  { %14890 = vst [vmem:[#allocation37_spill] sm:$0xff] %v13658_v27  ;;  %6050 = vmatpush1.bf16.msra.mxu1 %v14893_v21  ;;  %6077 = vmatprep.mubr.bf16.mxu1 %v14659_v42 }
 0x56e   :  { %14892 = vst [vmem:[#allocation38_spill] sm:$0xff] %v13662_v29  ;;  %6166 = vmatpush1.bf16.msra.mxu0 %v13258_v53  ;;  %6051 = vmatprep.subr.bf16.mxu1 %v14894_v32 }
 0x56f   :  { %6167 = vmatprep.subr.bf16.mxu0 %v13262_v63 }
 0x571   :  { %6153 = vmatmul.mubr.bf16.gmra.mrb[188].mxu0 %v14796_v36  ;;  %6052 = vmatpush1.bf16.msra.mxu1 %v14895_v30  ;;  %v14900_v36 = vld [vmem:[#allocation69_spill] sm:$0xff] }
 0x572   :  { %6168 = vmatpush1.bf16.msra.mxu0 %v13268_v25  ;;  %6195 = vmatprep.mubr.bf16.mxu0 %v14896_v22 }
 0x573   :  { %6053 = vmatprep.subr.bf16.mxu1 %v14897_v8  ;;  %6169 = vmatprep.subr.bf16.mxu0 %v13273_v9 }
 0x575   :  { %6054 = vmatpush1.bf16.msra.mxu1 %v14898_v47 }
 0x576   :  { %6170 = vmatpush1.bf16.msra.mxu0 %v13379_v1  ;;  %6055 = vmatprep.subr.bf16.mxu1 %v13531_v24 }
 0x577   :  { %6171 = vmatprep.subr.bf16.mxu0 %v13383_v37 }
 0x579   :  { %6056 = vmatpush1.bf16.msra.mxu1 %v14899_v48 }
 0x57a   :  { %6172 = vmatpush1.bf16.msra.mxu0 %v13387_v52  ;;  %6057 = vmatprep.subr.bf16.mxu1 %v14900_v36 }
 0x57b   :  { %6173 = vmatprep.subr.bf16.mxu0 %v13391_v60 }
 0x57d   :  { %6058 = vmatpush1.bf16.msra.mxu1 %v14901_v41 }
 0x57e   :  { %6174 = vmatpush1.bf16.msra.mxu0 %v13395_v45  ;;  %6059 = vmatprep.subr.bf16.mxu1 %v13555_v55 }
 0x57f   :  { %6175 = vmatprep.subr.bf16.mxu0 %v13399_v35 }
 0x581   :  { %6060 = vmatpush1.bf16.msra.mxu1 %v13563_v50 }
 0x582   :  { %6176 = vmatpush1.bf16.msra.mxu0 %v13403_v17  ;;  %6281 = vmatprep.subr.bf16.mxu1 %v13088_v38  ;;  %v14902_v38 = vld [vmem:[#allocation54_spill] sm:$0xff] }
 0x583   :  { %6177 = vmatprep.subr.bf16.mxu0 %v13407_v6 }
 0x584   :  { %6078 = vmatmul.mubr.bf16.vlgmr.msra.gmra.mrb[188].mxu1 %v14896_v22 }
 0x585   :  { %6282 = vmatpush1.bf16.msra.mxu1 %v13093_v62  ;;  %6087 = vmatprep.mubr.bf16.mxu1 %v14659_v42  ;;  %v14903_v62 = vld [vmem:[#allocation29_spill] sm:$0xff] }
 0x586   :  { %6178 = vmatpush1.bf16.msra.mxu0 %v13413_v12  ;;  %6283 = vmatprep.subr.bf16.mxu1 %v13098_v20  ;;  %v14904_v20 = vld [vmem:[#allocation41_spill] sm:$0xff] }
 0x587   :  { %6179 = vmatprep.subr.bf16.mxu0 %v13417_v34 }
 0x589   :  { %6284 = vmatpush1.bf16.msra.mxu1 %v13104_v15  ;;  %v14905_v15 = vld [vmem:[#allocation30_spill] sm:$0xff] }
 0x58a   :  { %6180 = vmatpush1.bf16.msra.mxu0 %v13421_v14  ;;  %6285 = vmatprep.subr.bf16.mxu1 %v13108_v43  ;;  %v14906_v43 = vld [vmem:[#allocation42_spill] sm:$0xff] }
 0x58b   :  { %6181 = vmatprep.subr.bf16.mxu0 %v13425_v11 }
 0x58c   :  { %6088 = vmatmul.mubr.bf16.gmra.mrb[192].mxu1 %v14902_v38 }
 0x58d   :  { %6286 = vmatpush1.bf16.msra.mxu1 %v13115_v4  ;;  %6313 = vmatprep.mubr.bf16.mxu1 %v14860_v26  ;;  %v14907_v4 = vld [vmem:[#allocation31_spill] sm:$0xff] }
 0x58e   :  { %6182 = vmatpush1.bf16.msra.mxu0 %v13431_v2  ;;  %6287 = vmatprep.subr.bf16.mxu1 %v13120_v61  ;;  %v14908_v61 = vld [vmem:[#allocation43_spill] sm:$0xff] }
 0x58f   :  { %6183 = vmatprep.subr.bf16.mxu0 %v13435_v39 }
 0x591   :  { %6288 = vmatpush1.bf16.msra.mxu1 %v13126_v7  ;;  %v14909_v7 = vld [vmem:[#allocation32_spill] sm:$0xff] }
 0x592   :  { %6184 = vmatpush1.bf16.msra.mxu0 %v14862_v16  ;;  %6289 = vmatprep.subr.bf16.mxu1 %v13130_v44  ;;  %v14911_v44 = vld [vmem:[#allocation33_spill] sm:$0xff] }
 0x593   :  { %6185 = vmatprep.subr.bf16.mxu0 %v14863_v10 }
 0x595   :  { %6290 = vmatpush1.bf16.msra.mxu1 %v13136_v23  ;;  %v14910_v23 = vld [vmem:[#allocation44_spill] sm:$0xff] }
 0x596   :  { %6186 = vmatpush1.bf16.msra.mxu0 %v14865_v51  ;;  %6291 = vmatprep.subr.bf16.mxu1 %v13140_v19  ;;  %v14912_v19 = vld [vmem:[#allocation45_spill] sm:$0xff] }
 0x597   :  { %6187 = vmatprep.subr.bf16.mxu0 %v14867_v18 }
 0x599   :  { %6292 = vmatpush1.bf16.msra.mxu1 %v14903_v62  ;;  %v14915_v62 = vld [vmem:[#allocation15_spill] sm:$0xff] }
 0x59a   :  { %6188 = vmatpush1.bf16.msra.mxu0 %v14904_v20  ;;  %6293 = vmatprep.subr.bf16.mxu1 %v14905_v15  ;;  %v14916_v15 = vld [vmem:[#allocation16_spill] sm:$0xff] }
 0x59b   :  { %6189 = vmatprep.subr.bf16.mxu0 %v14906_v43 }
 0x59d   :  { %6294 = vmatpush1.bf16.msra.mxu1 %v14907_v4  ;;  %v14917_v4 = vld [vmem:[#allocation17_spill] sm:$0xff] }
 0x59e   :  { %6190 = vmatpush1.bf16.msra.mxu0 %v14908_v61  ;;  %6295 = vmatprep.subr.bf16.mxu1 %v14909_v7  ;;  %v14918_v7 = vld [vmem:[#allocation18_spill] sm:$0xff] }
 0x59f   :  { %6191 = vmatprep.subr.bf16.mxu0 %v14910_v23 }
 0x5a1   :  { %6296 = vmatpush1.bf16.msra.mxu1 %v14911_v44  ;;  %v14919_v44 = vld [vmem:[#allocation19_spill] sm:$0xff] }
 0x5a2   :  { %6192 = vmatpush1.bf16.msra.mxu0 %v14912_v19  ;;  %6297 = vmatprep.subr.bf16.mxu1 %v14913_v49  ;;  %v14920_v49 = vld [vmem:[#allocation20_spill] sm:$0xff] }
 0x5a3   :  { %6193 = vmatprep.subr.bf16.mxu0 %v14914_v0 }
 0x5a5   :  { %6298 = vmatpush1.bf16.msra.mxu1 %v14915_v62  ;;  %v14921_v62 = vld [vmem:[#allocation9_spill] sm:$0xff] }
 0x5a6   :  { %6194 = vmatpush1.bf16.msra.mxu0 %v14881_v3  ;;  %6299 = vmatprep.subr.bf16.mxu1 %v14916_v15  ;;  %v14922_v15 = vld [vmem:[#allocation8_spill] sm:$0xff] }
 0x5a7   :  { %6216 = vmatprep.subr.bf16.mxu0 %v14882_v31 }
 0x5a9   :  { %6196 = vmatmul.mubr.bf16.vlgmr.msra.gmra.mrb[184].mxu0 %v14860_v26  ;;  %6300 = vmatpush1.bf16.msra.mxu1 %v14917_v4  ;;  %v14923_v4 = vld [vmem:[#allocation55_spill] sm:$0xff] }
 0x5aa   :  { %6205 = vmatprep.mubr.bf16.mxu0 %v14902_v38  ;;  %6217 = vmatpush1.bf16.msra.mxu0 %v14885_v58 }
 0x5ab   :  { %6218 = vmatprep.subr.bf16.mxu0 %v14886_v56  ;;  %6301 = vmatprep.subr.bf16.mxu1 %v14918_v7  ;;  %v14924_v7 = vld [vmem:[#allocation57_spill] sm:$0xff] }
 0x5ad   :  { %6302 = vmatpush1.bf16.msra.mxu1 %v14919_v44 }
 0x5ae   :  { %6219 = vmatpush1.bf16.msra.mxu0 %v14888_v33  ;;  %6303 = vmatprep.subr.bf16.mxu1 %v14920_v49 }
 0x5af   :  { %6220 = vmatprep.subr.bf16.mxu0 %v14891_v28  ;;  %v14926_v28 = vld [vmem:[#allocation60_spill] sm:$0xff] }
 0x5b1   :  { %6206 = vmatmul.mubr.bf16.gmra.mrb[188].mxu0 %v14861_v5  ;;  %6304 = vmatpush1.bf16.msra.mxu1 %v14921_v62 }
 0x5b2   :  { %6221 = vmatpush1.bf16.msra.mxu0 %v14893_v21  ;;  %6305 = vmatprep.subr.bf16.mxu1 %v14922_v15  ;;  %v14925_v15 = vld [vmem:[#allocation58_spill] sm:$0xff] }
 0x5b3   :  { %6222 = vmatprep.subr.bf16.mxu0 %v14894_v32  ;;  %6248 = vmatprep.mubr.bf16.mxu0 %v14659_v42 }
 0x5b5   :  { %6306 = vmatpush1.bf16.msra.mxu1 %v14923_v4 }
 0x5b6   :  { %6223 = vmatpush1.bf16.msra.mxu0 %v14895_v30  ;;  %6307 = vmatprep.subr.bf16.mxu1 %v14924_v7 }
 0x5b7   :  { %v5737_v44 = vpop.f32.mrb[180].mxu1  ;;  %6224 = vmatprep.subr.bf16.mxu0 %v14897_v8 }
 0x5b8   :  { %v9726_v49 = vadd.f32 %v5737_v44, %v13323_v46  ;;  %v5739_v62 = vpop.f32.mrb[181].mxu1 }
 0x5b9   :  { %v9727_v27 = vadd.f32 %v5739_v62, %v13326_v54  ;;  %v5741_v29 = vpop.f32.mrb[182].mxu1  ;;  %6308 = vmatpush1.bf16.msra.mxu1 %v14925_v15 }
 0x5ba   :  { %v9728_v32 = vadd.f32 %v5741_v29, %v13323_v46  ;;  %6225 = vmatpush1.bf16.msra.mxu0 %v14898_v47  ;;  %v5743_v4 = vpop.f32.mrb[183].mxu1  ;;  %6309 = vmatprep.subr.bf16.mxu1 %v14880_v40  ;;  %v5756_v8 = vmax.f32 %v9726_v49, 0.0  ;;  %v14927_v29 = vld [vmem:[#allocation62_spill] sm:$0xff]  ;;  %v14928_v49 = vld [vmem:[#allocation63_spill] sm:$0xff] }
 0x5bb   :  { %v9729_v7 = vadd.f32 %v5743_v4, %v13326_v54  ;;  %6226 = vmatprep.subr.bf16.mxu0 %v13531_v24  ;;  %v5757_v44 = vmax.f32 %v9727_v27, 0.0 }
 0x5bc   :  { %v5758_v30 = vmax.f32 %v9728_v32, 0.0 }
 0x5bd   :  { %v5759_v21 = vmax.f32 %v9729_v7, 0.0  ;;  %6310 = vmatpush1.bf16.msra.mxu1 %v14926_v28 }
 0x5be   :  { %v13761_v62 = vpack.c.bf16 %v5758_v30, %v5756_v8  ;;  %6227 = vmatpush1.bf16.msra.mxu0 %v14899_v48  ;;  %6311 = vmatprep.subr.bf16.mxu1 %v14927_v29  ;;  %v14929_v8 = vld [vmem:[#allocation64_spill] sm:$0xff] }
 0x5bf   :  { %v13765_v15 = vpack.c.bf16 %v5759_v21, %v5757_v44  ;;  %v5747_v47 = vpop.f32.mrb[184].mxu1  ;;  %6228 = vmatprep.subr.bf16.mxu0 %v14900_v36 }
 0x5c0   :  { %v9730_v40 = vadd.f32 %v5747_v47, %v13323_v46  ;;  %v5749_v4 = vpop.f32.mrb[185].mxu1  ;;  %v14930_v47 = vld [vmem:[#allocation24_spill] sm:$0xff] }
 0x5c1   :  { %v9731_v32 = vadd.f32 %v5749_v4, %v13326_v54  ;;  %v5751_v27 = vpop.f32.mrb[186].mxu1  ;;  %6312 = vmatpush1.bf16.msra.mxu1 %v14928_v49 }
 0x5c2   :  { %v9732_v28 = vadd.f32 %v5751_v27, %v13323_v46  ;;  %6229 = vmatpush1.bf16.msra.mxu0 %v14901_v41  ;;  %v5753_v30 = vpop.f32.mrb[187].mxu1  ;;  %6334 = vmatprep.subr.bf16.mxu1 %v14929_v8  ;;  %v5760_v7 = vmax.f32 %v9730_v40, 0.0  ;;  %v14931_v40 = vld [vmem:[#allocation13_spill] sm:$0xff] }
 0x5c3   :  { %v9733_v21 = vadd.f32 %v5753_v30, %v13326_v54  ;;  %6230 = vmatprep.subr.bf16.mxu0 %v13555_v55  ;;  %v5761_v29 = vmax.f32 %v9731_v32, 0.0  ;;  %v10461_v30 = vld [vmem:[#allocation2 + $0x4] ss:$8 sps:$4 sm:$0xff]   ;;  %v10462_v32 = vld [vmem:[#allocation2] ss:$8 sps:$4 sm:$0xff]  }
 0x5c4   :  { %v5762_v44 = vmax.f32 %v9732_v28, 0.0  ;;  %6314 = vmatmul.mubr.bf16.vlgmr.msra.gmra.mrb[196].mxu1 %v14930_v47  ;;  %v10463_v28 = vld [vmem:[#allocation2 + $0x14] ss:$8 sps:$4 sm:$0xff]   ;;  %v10470_v8 = vld [vmem:[#allocation2 + $0x40] ss:$8 sps:$4 sm:$0xff]  }
 0x5c5   :  { %v5763_v4 = vmax.f32 %v9733_v21, 0.0  ;;  %6323 = vmatprep.mubr.bf16.mxu1 %v14861_v5  ;;  %6335 = vmatpush1.bf16.msra.mxu1 %v13247_v57  ;;  %v10464_v57 = vld [vmem:[#allocation2 + $0x10] ss:$8 sps:$4 sm:$0xff]   ;;  %v10471_v21 = vld [vmem:[#allocation2 + $0x54] ss:$8 sps:$4 sm:$0xff]  }
 0x5c6   :  { %v13779_v27 = vpack.c.bf16 %v5762_v44, %v5760_v7  ;;  %6231 = vmatpush1.bf16.msra.mxu0 %v13563_v50  ;;  %6336 = vmatprep.subr.bf16.mxu1 %v13253_v13  ;;  %v10465_v13 = vld [vmem:[#allocation2 + $0x24] ss:$8 sps:$4 sm:$0xff]   ;;  %v10472_v7 = vld [vmem:[#allocation2 + $0x50] ss:$8 sps:$4 sm:$0xff]   ;;  %v10474_v47 = vld [vmem:[#allocation2 + $0x60] ss:$8 sps:$4 sm:$0xff]  }
 0x5c7   :  { %v13783_v49 = vpack.c.bf16 %v5763_v4, %v5761_v29  ;;  %6452 = vmatprep.subr.bf16.mxu0 %v10461_v30  ;;  %v10473_v44 = vld [vmem:[#allocation2 + $0x64] ss:$8 sps:$4 sm:$0xff]   ;;  %v10475_v29 = vld [vmem:[#allocation2 + $0x74] ss:$8 sps:$4 sm:$0xff]   ;;  %v10476_v4 = vld [vmem:[#allocation2 + $0x70] ss:$8 sps:$4 sm:$0xff]  }
 0x5c8   :  { %v10477_v30 = vld [vmem:[#allocation2 + $0x84] ss:$8 sps:$4 sm:$0xff]  }
 0x5c9   :  { %6249 = vmatmul.mubr.bf16.vlgmr.msra.gmra.mrb[184].mxu0 %v14931_v40  ;;  %6337 = vmatpush1.bf16.msra.mxu1 %v13258_v53  ;;  %v14932_v53 = vld [vmem:[#allocation28_spill] sm:$0xff] }
 0x5ca   :  { %6453 = vmatpush1.bf16.msra.mxu0 %v10462_v32  ;;  %6338 = vmatprep.subr.bf16.mxu1 %v13262_v63  ;;  %v10466_v63 = vld [vmem:[#allocation2 + $0x20] ss:$8 sps:$4 sm:$0xff]  }
 0x5cb   :  { %6454 = vmatprep.subr.bf16.mxu0 %v10463_v28  ;;  %6258 = vmatprep.mubr.bf16.mxu0 %v14659_v42  ;;  %v10478_v32 = vld [vmem:[#allocation2 + $0x80] ss:$8 sps:$4 sm:$0xff]   ;;  %v10479_v28 = vld [vmem:[#allocation2 + $0x94] ss:$8 sps:$4 sm:$0xff]  }
 0x5cc   :  { %6324 = vmatmul.mubr.bf16.gmra.mrb[200].mxu1 %v14889_v59  ;;  %v10467_v59 = vld [vmem:[#allocation2 + $0x34] ss:$8 sps:$4 sm:$0xff]  }
 0x5cd   :  { %6339 = vmatpush1.bf16.msra.mxu1 %v13268_v25  ;;  %6366 = vmatprep.mubr.bf16.mxu1 %v14931_v40  ;;  %v10468_v25 = vld [vmem:[#allocation2 + $0x30] ss:$8 sps:$4 sm:$0xff]  }
 0x5ce   :  { %6455 = vmatpush1.bf16.msra.mxu0 %v10464_v57  ;;  %6340 = vmatprep.subr.bf16.mxu1 %v13273_v9  ;;  %v10469_v9 = vld [vmem:[#allocation2 + $0x44] ss:$8 sps:$4 sm:$0xff]   ;;  %v10480_v57 = vld [vmem:[#allocation2 + $0x90] ss:$8 sps:$4 sm:$0xff]  }
 0x5cf   :  { %6456 = vmatprep.subr.bf16.mxu0 %v10465_v13  ;;  %v10481_v13 = vld [vmem:[#allocation2 + $0xa4] ss:$8 sps:$4 sm:$0xff]  }
 0x5d1   :  { %6259 = vmatmul.mubr.bf16.gmra.mrb[188].mxu0 %v14932_v53  ;;  %6341 = vmatpush1.bf16.msra.mxu1 %v13379_v1 }
 0x5d2   :  { %6457 = vmatpush1.bf16.msra.mxu0 %v10466_v63  ;;  %6484 = vmatprep.mubr.bf16.mxu0 %v14896_v22  ;;  %v10482_v63 = vld [vmem:[#allocation2 + $0xa0] ss:$8 sps:$4 sm:$0xff]  }
 0x5d3   :  { %6342 = vmatprep.subr.bf16.mxu1 %v13383_v37  ;;  %6458 = vmatprep.subr.bf16.mxu0 %v10467_v59  ;;  %v10483_v59 = vld [vmem:[#allocation2 + $0xb4] ss:$8 sps:$4 sm:$0xff]  }
 0x5d5   :  { %6343 = vmatpush1.bf16.msra.mxu1 %v13387_v52 }
 0x5d6   :  { %6459 = vmatpush1.bf16.msra.mxu0 %v10468_v25  ;;  %6344 = vmatprep.subr.bf16.mxu1 %v13391_v60  ;;  %v10484_v25 = vld [vmem:[#allocation2 + $0xb0] ss:$8 sps:$4 sm:$0xff]  }
 0x5d7   :  { %6460 = vmatprep.subr.bf16.mxu0 %v10469_v9  ;;  %v10485_v9 = vld [vmem:[#allocation2 + $0xc4] ss:$8 sps:$4 sm:$0xff]  }
 0x5d9   :  { %6345 = vmatpush1.bf16.msra.mxu1 %v13395_v45 }
 0x5da   :  { %6461 = vmatpush1.bf16.msra.mxu0 %v10470_v8  ;;  %6346 = vmatprep.subr.bf16.mxu1 %v13399_v35  ;;  %v10486_v8 = vld [vmem:[#allocation2 + $0xc0] ss:$8 sps:$4 sm:$0xff]  }
 0x5db   :  { %6462 = vmatprep.subr.bf16.mxu0 %v10471_v21  ;;  %v10487_v21 = vld [vmem:[#allocation2 + $0xd4] ss:$8 sps:$4 sm:$0xff]  }
 0x5dd   :  { %6347 = vmatpush1.bf16.msra.mxu1 %v13403_v17 }
 0x5de   :  { %6463 = vmatpush1.bf16.msra.mxu0 %v10472_v7  ;;  %6348 = vmatprep.subr.bf16.mxu1 %v13407_v6 }
 0x5df   :  { %6464 = vmatprep.subr.bf16.mxu0 %v10473_v44 }
 0x5e1   :  { %6349 = vmatpush1.bf16.msra.mxu1 %v13413_v12 }
 0x5e2   :  { %6465 = vmatpush1.bf16.msra.mxu0 %v10474_v47  ;;  %6350 = vmatprep.subr.bf16.mxu1 %v13417_v34 }
 0x5e3   :  { %6466 = vmatprep.subr.bf16.mxu0 %v10475_v29 }
 0x5e5   :  { %6351 = vmatpush1.bf16.msra.mxu1 %v13421_v14 }
 0x5e6   :  { %6467 = vmatpush1.bf16.msra.mxu0 %v10476_v4  ;;  %6352 = vmatprep.subr.bf16.mxu1 %v13425_v11 }
 0x5e7   :  { %6468 = vmatprep.subr.bf16.mxu0 %v10477_v30  ;;  %v10488_v30 = vld [vmem:[#allocation2 + $0xd0] ss:$8 sps:$4 sm:$0xff]  }
 0x5e9   :  { %6353 = vmatpush1.bf16.msra.mxu1 %v13431_v2 }
 0x5ea   :  { %6469 = vmatpush1.bf16.msra.mxu0 %v10478_v32  ;;  %6354 = vmatprep.subr.bf16.mxu1 %v13435_v39 }
 0x5eb   :  { %6470 = vmatprep.subr.bf16.mxu0 %v10479_v28 }
 0x5ed   :  { %6355 = vmatpush1.bf16.msra.mxu1 %v14862_v16 }
 0x5ee   :  { %6471 = vmatpush1.bf16.msra.mxu0 %v10480_v57  ;;  %6356 = vmatprep.subr.bf16.mxu1 %v14863_v10  ;;  %v10489_v57 = vld [vmem:[#allocation2 + $0xe4] ss:$8 sps:$4 sm:$0xff]  }
 0x5ef   :  { %6472 = vmatprep.subr.bf16.mxu0 %v10481_v13 }
 0x5f1   :  { %6357 = vmatpush1.bf16.msra.mxu1 %v14865_v51 }
 0x5f2   :  { %6473 = vmatpush1.bf16.msra.mxu0 %v10482_v63  ;;  %6358 = vmatprep.subr.bf16.mxu1 %v14867_v18 }
 0x5f3   :  { %6474 = vmatprep.subr.bf16.mxu0 %v10483_v59 }
 0x5f5   :  { %6359 = vmatpush1.bf16.msra.mxu1 %v14904_v20 }
 0x5f6   :  { %6475 = vmatpush1.bf16.msra.mxu0 %v10484_v25  ;;  %6360 = vmatprep.subr.bf16.mxu1 %v14906_v43 }
 0x5f7   :  { %6476 = vmatprep.subr.bf16.mxu0 %v10485_v9 }
 0x5f9   :  { %6361 = vmatpush1.bf16.msra.mxu1 %v14908_v61 }
 0x5fa   :  { %6477 = vmatpush1.bf16.msra.mxu0 %v10486_v8  ;;  %6362 = vmatprep.subr.bf16.mxu1 %v14910_v23  ;;  %v10490_v8 = vld [vmem:[#allocation2 + $0xe0] ss:$8 sps:$4 sm:$0xff]  }
 0x5fb   :  { %6478 = vmatprep.subr.bf16.mxu0 %v10487_v21 }
 0x5fc   :  { %v5908_v7 = vpop.f32.mrb[176].mxu0 }
 0x5fd   :  { %v9734_v44 = vadd.f32 %v5908_v7, %v13323_v46  ;;  %v5910_v47 = vpop.f32.mrb[177].mxu0  ;;  %6363 = vmatpush1.bf16.msra.mxu1 %v14912_v19  ;;  %v10491_v7 = vld [vmem:[#allocation2 + $0xf4] ss:$8 sps:$4 sm:$0xff]  }
 0x5fe   :  { %v9735_v29 = vadd.f32 %v5910_v47, %v13326_v54  ;;  %v5912_v4 = vpop.f32.mrb[178].mxu0  ;;  %6479 = vmatpush1.bf16.msra.mxu0 %v10488_v30  ;;  %6364 = vmatprep.subr.bf16.mxu1 %v14914_v0 }
 0x5ff   :  { %v9736_v32 = vadd.f32 %v5912_v4, %v13323_v46  ;;  %v5914_v28 = vpop.f32.mrb[179].mxu0  ;;  %6480 = vmatprep.subr.bf16.mxu0 %v10489_v57  ;;  %v5927_v63 = vmax.f32 %v9734_v44, 0.0 }
 0x600   :  { %v9737_v13 = vadd.f32 %v5914_v28, %v13326_v54  ;;  %v5928_v25 = vmax.f32 %v9735_v29, 0.0  ;;  %v10492_v28 = vld [vmem:[#allocation2 + $0xf0] ss:$8 sps:$4 sm:$0xff]  }
 0x601   :  { %v5929_v59 = vmax.f32 %v9736_v32, 0.0  ;;  %6365 = vmatpush1.bf16.msra.mxu1 %v14881_v3 }
 0x602   :  { %v5930_v9 = vmax.f32 %v9737_v13, 0.0  ;;  %6481 = vmatpush1.bf16.msra.mxu0 %v10490_v8  ;;  %6387 = vmatprep.subr.bf16.mxu1 %v14882_v31 }
 0x603   :  { %v13825_v21 = vpack.c.bf16 %v5929_v59, %v5927_v63  ;;  %6482 = vmatprep.subr.bf16.mxu0 %v10491_v7  ;;  %v10493_v63 = vld [vmem:[#allocation2 + $0x104] ss:$8 sps:$4 sm:$0xff]   ;;  %v10494_v7 = vld [vmem:[#allocation2 + $0x100] ss:$8 sps:$4 sm:$0xff]  }
 0x604   :  { %v13827_v47 = vpack.c.bf16 %v5930_v9, %v5928_v25  ;;  %v5918_v4 = vpop.f32.mrb[180].mxu0  ;;  %6367 = vmatmul.mubr.bf16.vlgmr.msra.gmra.mrb[196].mxu1 %v14896_v22 }
 0x605   :  { %v9738_v44 = vadd.f32 %v5918_v4, %v13323_v46  ;;  %v5920_v30 = vpop.f32.mrb[181].mxu0  ;;  %6376 = vmatprep.mubr.bf16.mxu1 %v14932_v53  ;;  %6388 = vmatpush1.bf16.msra.mxu1 %v14885_v58 }
 0x606   :  { %v9739_v29 = vadd.f32 %v5920_v30, %v13326_v54  ;;  %v5922_v32 = vpop.f32.mrb[182].mxu0  ;;  %6483 = vmatpush1.bf16.msra.mxu0 %v10492_v28  ;;  %6389 = vmatprep.subr.bf16.mxu1 %v14886_v56  ;;  %v14933_v30 = vld [vmem:[#allocation50_spill] sm:$0xff] }
 0x607   :  { %v9740_v57 = vadd.f32 %v5922_v32, %v13323_v46  ;;  %v5924_v13 = vpop.f32.mrb[183].mxu0  ;;  %6505 = vmatprep.subr.bf16.mxu0 %v10493_v63  ;;  %v5931_v59 = vmax.f32 %v9738_v44, 0.0  ;;  %v10495_v32 = vld [vmem:[#allocation2 + $0x114] ss:$8 sps:$4 sm:$0xff]   ;;  %v14934_v44 = vld [vmem:[#allocation10_spill] sm:$0xff] }
 0x608   :  { %v9741_v22 = vadd.f32 %v5924_v13, %v13326_v54  ;;  %v5932_v9 = vmax.f32 %v9739_v29, 0.0  ;;  %v14935_v29 = vld [vmem:[#allocation52_spill] sm:$0xff]  ;;  %v14936_v13 = vld [vmem:[#allocation21_spill] sm:$0xff] }
 0x609   :  { %v5933_v25 = vmax.f32 %v9740_v57, 0.0  ;;  %6485 = vmatmul.mubr.bf16.vlgmr.msra.gmra.mrb[192].mxu0 %v14860_v26  ;;  %6390 = vmatpush1.bf16.msra.mxu1 %v14888_v33  ;;  %v10496_v26 = vld [vmem:[#allocation2 + $0x110] ss:$8 sps:$4 sm:$0xff]   ;;  %v10497_v57 = vld [vmem:[#allocation2 + $0x124] ss:$8 sps:$4 sm:$0xff]  }
 0x60a   :  { %v5934_v8 = vmax.f32 %v9741_v22, 0.0  ;;  %6494 = vmatprep.mubr.bf16.mxu0 %v14902_v38  ;;  %6506 = vmatpush1.bf16.msra.mxu0 %v10494_v7  ;;  %v10498_v63 = vld [vmem:[#allocation2 + $0x120] ss:$8 sps:$4 sm:$0xff]   ;;  %v14937_v22 = vld [vmem:[#allocation23_spill] sm:$0xff] }
 0x60b   :  { %v13840_v4 = vpack.c.bf16 %v5933_v25, %v5931_v59  ;;  %6391 = vmatprep.subr.bf16.mxu1 %v14933_v30  ;;  %6507 = vmatprep.subr.bf16.mxu0 %v10495_v32  ;;  %v14938_v59 = vld [vmem:[#allocation53_spill] sm:$0xff]  ;;  %v10196_v32 = vld [vmem:[%s14447_s7 + $0xb0] sm:$0xff]  }
 0x60c   :  { %v13843_v28 = vpack.c.bf16 %v5934_v8, %v5932_v9  ;;  %6377 = vmatmul.mubr.bf16.gmra.mrb[200].mxu1 %v14902_v38  ;;  %v10499_v38 = vld [vmem:[#allocation2 + $0x134] ss:$8 sps:$4 sm:$0xff]   ;;  %v14939_v25 = vld [vmem:[#allocation65_spill] sm:$0xff] }
 0x60d   :  { %6392 = vmatpush1.bf16.msra.mxu1 %v14934_v44  ;;  %6419 = vmatprep.mubr.bf16.mxu1 %v14659_v42 }
 0x60e   :  { %6508 = vmatpush1.bf16.msra.mxu0 %v10496_v26  ;;  %6393 = vmatprep.subr.bf16.mxu1 %v14935_v29  ;;  %v10502_v26 = vld [vmem:[#allocation2 + $0x240] ss:$8 sps:$4 sm:$0xff]  }
 0x60f   :  { %6509 = vmatprep.subr.bf16.mxu0 %v10497_v57  ;;  %v10197_v57 = vld [vmem:[%s14447_s7 + $0xf8] sm:$0xff]  }
 0x611   :  { %6495 = vmatmul.mubr.bf16.gmra.mrb[196].mxu0 %v14861_v5  ;;  %6394 = vmatpush1.bf16.msra.mxu1 %v14936_v13  ;;  %v10182_v5 = vld [vmem:[%s14447_s7 + $0x38] sm:$0xff]  }
 0x612   :  { %6510 = vmatpush1.bf16.msra.mxu0 %v10498_v63  ;;  %6537 = vmatprep.mubr.bf16.mxu0 %v14937_v22  ;;  %v10503_v63 = vld [vmem:[#allocation2 + $0x254] ss:$8 sps:$4 sm:$0xff]  }
 0x613   :  { %6395 = vmatprep.subr.bf16.mxu1 %v14938_v59  ;;  %6511 = vmatprep.subr.bf16.mxu0 %v10499_v38 }
 0x615   :  { %6396 = vmatpush1.bf16.msra.mxu1 %v14939_v25 }
 0x616   :  { %6512 = vmatpush1.bf16.msra.mxu0 %v13379_v1  ;;  %6397 = vmatprep.subr.bf16.mxu1 %v13531_v24  ;;  %v10167_v1 = vld [vmem:[%s14447_s7 + $0x40] sm:$0xff]   ;;  %v10177_v24 = vld [vmem:[%s14447_s7 + $0x68] sm:$0xff]  }
 0x617   :  { %6513 = vmatprep.subr.bf16.mxu0 %v13383_v37  ;;  %v10168_v37 = vld [vmem:[%s14447_s7] sm:$0xff]  }
 0x619   :  { %6398 = vmatpush1.bf16.msra.mxu1 %v14899_v48  ;;  %v14943_v48 = vld [vmem:[#allocation36_spill] sm:$0xff] }
 0x61a   :  { %6514 = vmatpush1.bf16.msra.mxu0 %v13387_v52  ;;  %6399 = vmatprep.subr.bf16.mxu1 %v14900_v36  ;;  %v10169_v52 = vld [vmem:[%s14447_s7 + $0x48] sm:$0xff]  }
 0x61b   :  { %6515 = vmatprep.subr.bf16.mxu0 %v13391_v60  ;;  %v10170_v60 = vld [vmem:[%s14447_s7 + $0x8] sm:$0xff]  }
 0x61c   :  { %v10186_v36 = vld [vmem:[%s14447_s7 + $0x88] sm:$0xff]  }
 0x61d   :  { %6400 = vmatpush1.bf16.msra.mxu1 %v14901_v41  ;;  %v10187_v41 = vld [vmem:[%s14447_s7 + $0xd0] sm:$0xff]  }
 0x61e   :  { %6516 = vmatpush1.bf16.msra.mxu0 %v13395_v45  ;;  %6401 = vmatprep.subr.bf16.mxu1 %v13555_v55  ;;  %v10171_v45 = vld [vmem:[%s14447_s7 + $0x50] sm:$0xff]  }
 0x61f   :  { %6517 = vmatprep.subr.bf16.mxu0 %v13399_v35  ;;  %v10172_v35 = vld [vmem:[%s14447_s7 + $0x10] sm:$0xff]  }
 0x620   :  { %v10180_v55 = vld [vmem:[%s14447_s7 + $0x30] sm:$0xff]  }
 0x621   :  { %6402 = vmatpush1.bf16.msra.mxu1 %v13563_v50  ;;  %v10181_v50 = vld [vmem:[%s14447_s7 + $0x78] sm:$0xff]  }
 0x622   :  { %6518 = vmatpush1.bf16.msra.mxu0 %v13403_v17  ;;  %9110 = vmatprep.subr.bf16.mxu1 %v10167_v1  ;;  %v10173_v17 = vld [vmem:[%s14447_s7 + $0x58] sm:$0xff]  }
 0x623   :  { %6519 = vmatprep.subr.bf16.mxu0 %v13407_v6  ;;  %v14940_v6 = vld [vmem:[#allocation7_spill] sm:$0xff]  ;;  %v10198_v1 = vld [vmem:[%s14447_s7 + $0xb8] sm:$0xff]  }
 0x624   :  { %6420 = vmatmul.mubr.bf16.vlgmr.msra.gmra.mrb[196].mxu1 %v14937_v22 }
 0x625   :  { %9111 = vmatpush3.bf16.msra.mxu1 %v10168_v37  ;;  %6429 = vmatprep.mubr.bf16.mxu1 %v14659_v42 }
 0x626   :  { %6520 = vmatpush1.bf16.msra.mxu0 %v13413_v12  ;;  %9112 = vmatprep.subr.bf16.mxu1 %v10169_v52  ;;  %v14941_v12 = vld [vmem:[#allocation34_spill] sm:$0xff]  ;;  %v10504_v52 = vld [vmem:[#allocation2 + $0x250] ss:$8 sps:$4 sm:$0xff]  }
 0x627   :  { %6521 = vmatprep.subr.bf16.mxu0 %v13417_v34  ;;  %v10174_v34 = vld [vmem:[%s14447_s7 + $0x18] sm:$0xff]  }
 0x629   :  { %9113 = vmatpush3.bf16.msra.mxu1 %v10170_v60  ;;  %v10199_v60 = vld [vmem:[%s14447_s7 + $0x140] sm:$0xff]  }
 0x62a   :  { %6522 = vmatpush1.bf16.msra.mxu0 %v13421_v14  ;;  %9114 = vmatprep.subr.bf16.mxu1 %v10171_v45  ;;  %v10175_v14 = vld [vmem:[%s14447_s7 + $0x60] sm:$0xff]  }
 0x62b   :  { %6523 = vmatprep.subr.bf16.mxu0 %v13425_v11  ;;  %v10176_v11 = vld [vmem:[%s14447_s7 + $0x20] sm:$0xff]  }
 0x62c   :  { %6430 = vmatmul.mubr.bf16.gmra.mrb[200].mxu1 %v14940_v6 }
 0x62d   :  { %9115 = vmatpush3.bf16.msra.mxu1 %v10172_v35  ;;  %7526 = vmatprep.mubr.bf16.mxu1 %v14941_v12 }
 0x62e   :  { %6524 = vmatpush1.bf16.msra.mxu0 %v13431_v2  ;;  %9116 = vmatprep.subr.bf16.mxu1 %v10173_v17  ;;  %v10178_v2 = vld [vmem:[%s14447_s7 + $0x28] sm:$0xff]  }
 0x62f   :  { %6525 = vmatprep.subr.bf16.mxu0 %v13435_v39  ;;  %v10179_v39 = vld [vmem:[%s14447_s7 + $0x70] sm:$0xff]   ;;  %v10505_v17 = vld [vmem:[#allocation2 + $0x264] ss:$8 sps:$4 sm:$0xff]  }
 0x631   :  { %9117 = vmatpush3.bf16.msra.mxu1 %v10174_v34 }
 0x632   :  { %6526 = vmatpush1.bf16.msra.mxu0 %v14862_v16  ;;  %9118 = vmatprep.subr.bf16.mxu1 %v10175_v14  ;;  %v10183_v16 = vld [vmem:[%s14447_s7 + $0xc0] sm:$0xff]  }
 0x633   :  { %6527 = vmatprep.subr.bf16.mxu0 %v14863_v10  ;;  %v10184_v10 = vld [vmem:[%s14447_s7 + $0x80] sm:$0xff]  }
 0x635   :  { %9119 = vmatpush3.bf16.msra.mxu1 %v10176_v11  ;;  %v10200_v11 = vld [vmem:[%s14447_s7 + $0x100] sm:$0xff]  }
 0x636   :  { %6528 = vmatpush1.bf16.msra.mxu0 %v14865_v51  ;;  %9120 = vmatprep.subr.bf16.mxu1 %v10177_v24  ;;  %v10185_v51 = vld [vmem:[%s14447_s7 + $0xc8] sm:$0xff]  }
 0x637   :  { %6529 = vmatprep.subr.bf16.mxu0 %v14867_v18  ;;  %v14942_v18 = vld [vmem:[#allocation27_spill] sm:$0xff] }
 0x639   :  { %9121 = vmatpush3.bf16.msra.mxu1 %v10178_v2  ;;  %v10506_v2 = vld [vmem:[#allocation2 + $0x260] ss:$8 sps:$4 sm:$0xff]  }
 0x63a   :  { %6530 = vmatpush1.bf16.msra.mxu0 %v14904_v20  ;;  %9122 = vmatprep.subr.bf16.mxu1 %v10179_v39  ;;  %v10188_v20 = vld [vmem:[%s14447_s7 + $0x90] sm:$0xff]  }
 0x63b   :  { %6531 = vmatprep.subr.bf16.mxu0 %v14906_v43  ;;  %v14945_v43 = vld [vmem:[#allocation68_spill] sm:$0xff] }
 0x63d   :  { %9123 = vmatpush3.bf16.msra.mxu1 %v10180_v55  ;;  %v10201_v55 = vld [vmem:[%s14447_s7 + $0x148] sm:$0xff]  }
 0x63e   :  { %6532 = vmatpush1.bf16.msra.mxu0 %v14908_v61  ;;  %9124 = vmatprep.subr.bf16.mxu1 %v10181_v50  ;;  %v10190_v61 = vld [vmem:[%s14447_s7 + $0x98] sm:$0xff]  }
 0x63f   :  { %6533 = vmatprep.subr.bf16.mxu0 %v14910_v23  ;;  %v10194_v23 = vld [vmem:[%s14447_s7 + $0xa8] sm:$0xff]  }
 0x641   :  { %9125 = vmatpush3.bf16.msra.mxu1 %v10182_v5  ;;  %v10507_v5 = vld [vmem:[#allocation2 + $0x274] ss:$8 sps:$4 sm:$0xff]  }
 0x642   :  { %6534 = vmatpush1.bf16.msra.mxu0 %v14912_v19  ;;  %9138 = vmatprep.subr.bf16.mxu1 %v10183_v16  ;;  %v10500_v19 = vld [vmem:[#allocation2 + $0x230] ss:$8 sps:$4 sm:$0xff]   ;;  %v10202_v16 = vld [vmem:[%s14447_s7 + $0x240] sm:$0xff]  }
 0x643   :  { %6535 = vmatprep.subr.bf16.mxu0 %v14914_v0  ;;  %v10195_v0 = vld [vmem:[%s14447_s7 + $0xf0] sm:$0xff]  }
 0x644   :  { %7527 = vmatmul.mubr.bf16.vlgmr.msra.gmra.mrb[204].mxu1 %v14942_v18  ;;  %v14946_v18 = vld [vmem:[#allocation66_spill] sm:$0xff] }
 0x645   :  { %7534 = vmatprep.mubr.bf16.mxu1 %v14943_v48  ;;  %9139 = vmatpush3.bf16.msra.mxu1 %v10184_v10 }
 0x646   :  { %6536 = vmatpush1.bf16.msra.mxu0 %v14881_v3  ;;  %9140 = vmatprep.subr.bf16.mxu1 %v10185_v51  ;;  %v10189_v3 = vld [vmem:[%s14447_s7 + $0xd8] sm:$0xff]  }
 0x647   :  { %6558 = vmatprep.subr.bf16.mxu0 %v14882_v31  ;;  %v14944_v31 = vld [vmem:[#allocation35_spill] sm:$0xff] }
 0x649   :  { %6538 = vmatmul.mubr.bf16.vlgmr.msra.gmra.mrb[192].mxu0 %v14931_v40  ;;  %9141 = vmatpush3.bf16.msra.mxu1 %v10186_v36 }
 0x64a   :  { %6547 = vmatprep.mubr.bf16.mxu0 %v14940_v6  ;;  %6559 = vmatpush1.bf16.msra.mxu0 %v14885_v58  ;;  %v10191_v58 = vld [vmem:[%s14447_s7 + $0xe0] sm:$0xff]  }
 0x64b   :  { %6560 = vmatprep.subr.bf16.mxu0 %v14886_v56  ;;  %9142 = vmatprep.subr.bf16.mxu1 %v10187_v41  ;;  %v10192_v56 = vld [vmem:[%s14447_s7 + $0xa0] sm:$0xff]   ;;  %v14947_v41 = vld [vmem:[#allocation71_spill] sm:$0xff] }
 0x64c   :  { %7535 = vmatmul.mubr.bf16.gmra.mrb[208].mxu1 %v14944_v31  ;;  %v10508_v31 = vld [vmem:[#allocation2 + $0x270] ss:$8 sps:$4 sm:$0xff]  }
 0x64d   :  { %9143 = vmatpush3.bf16.msra.mxu1 %v10188_v20  ;;  %7575 = vmatprep.mubr.bf16.mxu1 %v14945_v43  ;;  %v10203_v20 = vld [vmem:[%s14447_s7 + $0x108] sm:$0xff]   ;;  %v10204_v43 = vld [vmem:[%s14447_s7 + $0x200] sm:$0xff]  }
 0x64e   :  { %6561 = vmatpush1.bf16.msra.mxu0 %v14888_v33  ;;  %9144 = vmatprep.subr.bf16.mxu1 %v10189_v3  ;;  %v10193_v33 = vld [vmem:[%s14447_s7 + $0xe8] sm:$0xff]  }
 0x64f   :  { %6562 = vmatprep.subr.bf16.mxu0 %v14933_v30 }
 0x651   :  { %6548 = vmatmul.mubr.bf16.gmra.mrb[196].mxu0 %v14932_v53  ;;  %9145 = vmatpush3.bf16.msra.mxu1 %v10190_v61  ;;  %v10501_v53 = vld [vmem:[#allocation2 + $0x244] ss:$8 sps:$4 sm:$0xff]   ;;  %v10205_v61 = vld [vmem:[%s14447_s7 + $0x150] sm:$0xff]  }
 0x652   :  { %6563 = vmatpush1.bf16.msra.mxu0 %v14934_v44  ;;  %9146 = vmatprep.subr.bf16.mxu1 %v10191_v58 }
 0x653   :  { %6564 = vmatprep.subr.bf16.mxu0 %v14935_v29  ;;  %6590 = vmatprep.mubr.bf16.mxu0 %v14659_v42 }
 0x655   :  { %9147 = vmatpush3.bf16.msra.mxu1 %v10192_v56  ;;  %v10206_v56 = vld [vmem:[%s14447_s7 + $0x248] sm:$0xff]  }
 0x656   :  { %6565 = vmatpush1.bf16.msra.mxu0 %v10500_v19  ;;  %9148 = vmatprep.subr.bf16.mxu1 %v10193_v33  ;;  %v14948_v33 = vld [vmem:[#allocation61_spill] sm:$0xff]  ;;  %v10208_v19 = vld [vmem:[%s14447_s7 + $0x208] sm:$0xff]  }
 0x657   :  { %v6079_v40 = vpop.f32.mrb[188].mxu1  ;;  %6566 = vmatprep.subr.bf16.mxu0 %v10501_v53  ;;  %v14949_v53 = vld [vmem:[#allocation6_spill] sm:$0xff] }
 0x658   :  { %v9742_v9 = vadd.f32 %v6079_v40, %v13323_v46  ;;  %v6081_v8 = vpop.f32.mrb[189].mxu1  ;;  %v10210_v40 = vld [vmem:[%s14447_s7 + $0x250] sm:$0xff]  }
 0x659   :  { %v9743_v7 = vadd.f32 %v6081_v8, %v13326_v54  ;;  %v6083_v30 = vpop.f32.mrb[190].mxu1  ;;  %9149 = vmatpush3.bf16.msra.mxu1 %v10194_v23  ;;  %v10207_v23 = vld [vmem:[%s14447_s7 + $0x110] sm:$0xff]   ;;  %v10211_v8 = vld [vmem:[%s14447_s7 + $0x118] sm:$0xff]  }
 0x65a   :  { %v9744_v44 = vadd.f32 %v6083_v30, %v13323_v46  ;;  %6567 = vmatpush1.bf16.msra.mxu0 %v10502_v26  ;;  %v6085_v29 = vpop.f32.mrb[191].mxu1  ;;  %9150 = vmatprep.subr.bf16.mxu1 %v10195_v0  ;;  %v6098_v22 = vmax.f32 %v9742_v9, 0.0  ;;  %v10209_v0 = vld [vmem:[%s14447_s7 + $0x158] sm:$0xff]   ;;  %v14950_v9 = vld [vmem:[#allocation22_spill] sm:$0xff] }
 0x65b   :  { %v9745_v13 = vadd.f32 %v6085_v29, %v13326_v54  ;;  %6568 = vmatprep.subr.bf16.mxu0 %v10503_v63  ;;  %v6099_v38 = vmax.f32 %v9743_v7, 0.0  ;;  %v10212_v7 = vld [vmem:[%s14447_s7 + $0x210] sm:$0xff]   ;;  %v10214_v30 = vld [vmem:[%s14447_s7 + $0x258] sm:$0xff]   ;;  %v10217_v29 = vld [vmem:[%s14447_s7 + $0x168] sm:$0xff]  }
 0x65c   :  { %v6100_v59 = vmax.f32 %v9744_v44, 0.0  ;;  %v10215_v44 = vld [vmem:[%s14447_s7 + $0x120] sm:$0xff]   ;;  %v10216_v26 = vld [vmem:[%s14447_s7 + $0x218] sm:$0xff]   ;;  %v10221_v63 = vld [vmem:[%s14447_s7 + $0x170] sm:$0xff]  }
 0x65d   :  { %v6101_v25 = vmax.f32 %v9745_v13, 0.0  ;;  %9151 = vmatpush3.bf16.msra.mxu1 %v10196_v32  ;;  %v14951_v32 = vld [vmem:[#allocation5_spill] sm:$0xff]  ;;  %v10219_v13 = vld [vmem:[%s14447_s7 + $0x128] sm:$0xff]  }
 0x65e   :  { %v14004_v37 = vpack.c.bf16 %v6100_v59, %v6098_v22  ;;  %6569 = vmatpush1.bf16.msra.mxu0 %v10504_v52  ;;  %9152 = vmatprep.subr.bf16.mxu1 %v10197_v57  ;;  %v10218_v57 = vld [vmem:[%s14447_s7 + $0x260] sm:$0xff]   ;;  %v10222_v22 = vld [vmem:[%s14447_s7 + $0x268] sm:$0xff]   ;;  %v10223_v59 = vld [vmem:[%s14447_s7 + $0x130] sm:$0xff]  }
 0x65f   :  { %v14009_v45 = vpack.c.bf16 %v6101_v25, %v6099_v38  ;;  %v6089_v35 = vpop.f32.mrb[192].mxu1  ;;  %6570 = vmatprep.subr.bf16.mxu0 %v10505_v17  ;;  %v10224_v38 = vld [vmem:[%s14447_s7 + $0x228] sm:$0xff]   ;;  %v10225_v25 = vld [vmem:[%s14447_s7 + $0x178] sm:$0xff]  }
 0x660   :  { %v9746_v6 = vadd.f32 %v6089_v35, %v13323_v46  ;;  %v6091_v12 = vpop.f32.mrb[193].mxu1  ;;  %v10227_v52 = vld [vmem:[%s14447_s7 + $0x138] sm:$0xff]   ;;  %v10229_v35 = vld [vmem:[%s14447_s7 + $0x1c0] sm:$0xff]  }
 0x661   :  { %v9747_v34 = vadd.f32 %v6091_v12, %v13326_v54  ;;  %v6093_v14 = vpop.f32.mrb[194].mxu1  ;;  %9153 = vmatpush3.bf16.msra.mxu1 %v10198_v1  ;;  %v10226_v1 = vld [vmem:[%s14447_s7 + $0x270] sm:$0xff]   ;;  %v10230_v17 = vld [vmem:[%s14447_s7 + $0x278] sm:$0xff]  }
 0x662   :  { %v9748_v24 = vadd.f32 %v6093_v14, %v13323_v46  ;;  %6571 = vmatpush1.bf16.msra.mxu0 %v10506_v2  ;;  %v6095_v39 = vpop.f32.mrb[195].mxu1  ;;  %9166 = vmatprep.subr.bf16.mxu1 %v10199_v60  ;;  %v6102_v10 = vmax.f32 %v9746_v6, 0.0  ;;  %v10228_v60 = vld [vmem:[%s14447_s7 + $0x230] sm:$0xff]   ;;  %v10231_v6 = vld [vmem:[%s14447_s7 + $0x180] sm:$0xff]   ;;  %v10232_v12 = vld [vmem:[%s14447_s7 + $0x238] sm:$0xff]  }
 0x663   :  { %v9749_v50 = vadd.f32 %v6095_v39, %v13326_v54  ;;  %6572 = vmatprep.subr.bf16.mxu0 %v10507_v5  ;;  %v6103_v48 = vmax.f32 %v9747_v34, 0.0  ;;  %v10233_v34 = vld [vmem:[%s14447_s7 + $0x1c8] sm:$0xff]   ;;  %v10234_v14 = vld [vmem:[%s14447_s7 + $0x340] sm:$0xff]   ;;  %v10239_v5 = vld [vmem:[%s14447_s7 + $0x190] sm:$0xff]  }
 0x664   :  { %v6104_v51 = vmax.f32 %v9748_v24, 0.0  ;;  %7576 = vmatmul.mubr.bf16.vlgmr.msra.gmra.mrb[212].mxu1 %v14946_v18  ;;  %v14953_v24 = vld [vmem:[#allocation38_spill] sm:$0xff]  ;;  %v10236_v39 = vld [vmem:[%s14447_s7 + $0x300] sm:$0xff]   ;;  %v10244_v18 = vld [vmem:[%s14447_s7 + $0x310] sm:$0xff]  }
 0x665   :  { %v6105_v36 = vmax.f32 %v9749_v50, 0.0  ;;  %7583 = vmatprep.mubr.bf16.mxu1 %v14947_v41  ;;  %9167 = vmatpush3.bf16.msra.mxu1 %v10200_v11  ;;  %v14952_v11 = vld [vmem:[#allocation56_spill] sm:$0xff]  ;;  %v10235_v2 = vld [vmem:[%s14447_s7 + $0x188] sm:$0xff]  }
 0x666   :  { %v14029_v3 = vpack.c.bf16 %v6104_v51, %v6102_v10  ;;  %6573 = vmatpush1.bf16.msra.mxu0 %v10508_v31  ;;  %9168 = vmatprep.subr.bf16.mxu1 %v10201_v55  ;;  %v10237_v55 = vld [vmem:[%s14447_s7 + $0x1d0] sm:$0xff]   ;;  %v10238_v50 = vld [vmem:[%s14447_s7 + $0x348] sm:$0xff]   ;;  %v10241_v10 = vld [vmem:[%s14447_s7 + $0x1d8] sm:$0xff]  }
 0x667   :  { %v14037_v58 = vpack.c.bf16 %v6105_v36, %v6103_v48  ;;  %9222 = vmatprep.subr.bf16.mxu0 %v10202_v16  ;;  %v10240_v16 = vld [vmem:[%s14447_s7 + $0x308] sm:$0xff]   ;;  %v14954_v51 = vld [vmem:[#allocation37_spill] sm:$0xff]  ;;  %v10246_v36 = vld [vmem:[%s14447_s7 + $0x358] sm:$0xff]  }
 0x668   :  { %v10245_v48 = vld [vmem:[%s14447_s7 + $0x1e0] sm:$0xff]   ;;  %v10248_v41 = vld [vmem:[%s14447_s7 + $0x318] sm:$0xff]   ;;  %v10251_v31 = vld [vmem:[%s14447_s7 + $0x1a8] sm:$0xff]  }
 0x669   :  { %6591 = vmatmul.mubr.bf16.vlgmr.msra.gmra.mrb[192].mxu0 %v14948_v33  ;;  %9169 = vmatpush3.bf16.msra.mxu1 %v10203_v20  ;;  %v10249_v20 = vld [vmem:[%s14447_s7 + $0x1e8] sm:$0xff]   ;;  %v10255_v33 = vld [vmem:[%s14447_s7 + $0x1b0] sm:$0xff]  }
 0x66a   :  { %9223 = vmatpush3.bf16.msra.mxu0 %v10204_v43  ;;  %9170 = vmatprep.subr.bf16.mxu1 %v10205_v61  ;;  %v10252_v43 = vld [vmem:[%s14447_s7 + $0x320] sm:$0xff]   ;;  %v10253_v61 = vld [vmem:[%s14447_s7 + $0x1f0] sm:$0xff]  }
 0x66b   :  { %9224 = vmatprep.subr.bf16.mxu0 %v10206_v56  ;;  %6600 = vmatprep.mubr.bf16.mxu0 %v14659_v42  ;;  %v10213_v42 = vld [vmem:[%s14447_s7 + $0x160] sm:$0xff]   ;;  %v10254_v56 = vld [vmem:[%s14447_s7 + $0x368] sm:$0xff]  }
 0x66c   :  { %7584 = vmatmul.mubr.bf16.gmra.mrb[216].mxu1 %v14949_v53 }
 0x66d   :  { %9171 = vmatpush3.bf16.msra.mxu1 %v10207_v23  ;;  %7624 = vmatprep.mubr.bf16.mxu1 %v14950_v9  ;;  %v10256_v23 = vld [vmem:[%s14447_s7 + $0x328] sm:$0xff]  }
 0x66e   :  { %9225 = vmatpush3.bf16.msra.mxu0 %v10208_v19  ;;  %9172 = vmatprep.subr.bf16.mxu1 %v10209_v0  ;;  %v10257_v19 = vld [vmem:[%s14447_s7 + $0x1f8] sm:$0xff]   ;;  %v10258_v0 = vld [vmem:[%s14447_s7 + $0x370] sm:$0xff]  }
 0x66f   :  { %9226 = vmatprep.subr.bf16.mxu0 %v10210_v40 }
 0x671   :  { %6601 = vmatmul.mubr.bf16.gmra.mrb[196].mxu0 %v14951_v32  ;;  %9173 = vmatpush3.bf16.msra.mxu1 %v10211_v8  ;;  %v10259_v8 = vld [vmem:[%s14447_s7 + $0x1b8] sm:$0xff]   ;;  %v10261_v32 = vld [vmem:[%s14447_s7 + $0x2c0] sm:$0xff]  }
 0x672   :  { %9227 = vmatpush3.bf16.msra.mxu0 %v10212_v7  ;;  %7722 = vmatprep.mubr.bf16.mxu0 %v13827_v47  ;;  %v10220_v47 = vld [vmem:[%s14447_s7 + $0x220] sm:$0xff]  }
 0x673   :  { %9174 = vmatprep.subr.bf16.mxu1 %v10213_v42  ;;  %9228 = vmatprep.subr.bf16.mxu0 %v10214_v30  ;;  %v10260_v30 = vld [vmem:[%s14447_s7 + $0x330] sm:$0xff]  }
 0x675   :  { %9175 = vmatpush3.bf16.msra.mxu1 %v10215_v44 }
 0x676   :  { %9229 = vmatpush3.bf16.msra.mxu0 %v10216_v26  ;;  %9176 = vmatprep.subr.bf16.mxu1 %v10217_v29  ;;  %v10262_v29 = vld [vmem:[%s14447_s7 + $0x378] sm:$0xff]  }
 0x677   :  { %9230 = vmatprep.subr.bf16.mxu0 %v10218_v57 }
 0x679   :  { %9177 = vmatpush3.bf16.msra.mxu1 %v10219_v13 }
 0x67a   :  { %9231 = vmatpush3.bf16.msra.mxu0 %v10220_v47  ;;  %9178 = vmatprep.subr.bf16.mxu1 %v10221_v63  ;;  %v10263_v63 = vld [vmem:[%s14447_s7 + $0x280] sm:$0xff]  }
 0x67b   :  { %9232 = vmatprep.subr.bf16.mxu0 %v10222_v22 }
 0x67d   :  { %9179 = vmatpush3.bf16.msra.mxu1 %v10223_v59 }
 0x67e   :  { %9233 = vmatpush3.bf16.msra.mxu0 %v10224_v38  ;;  %9180 = vmatprep.subr.bf16.mxu1 %v10225_v25  ;;  %v10264_v38 = vld [vmem:[%s14447_s7 + $0x338] sm:$0xff]  }
 0x67f   :  { %9234 = vmatprep.subr.bf16.mxu0 %v10226_v1  ;;  %v10265_v1 = vld [vmem:[%s14447_s7 + $0x2c8] sm:$0xff]  }
 0x681   :  { %9181 = vmatpush3.bf16.msra.mxu1 %v10227_v52 }
 0x682   :  { %9235 = vmatpush3.bf16.msra.mxu0 %v10228_v60  ;;  %9194 = vmatprep.subr.bf16.mxu1 %v10229_v35 }
 0x683   :  { %9236 = vmatprep.subr.bf16.mxu0 %v10230_v17 }
 0x684   :  { %7625 = vmatmul.mubr.bf16.vlgmr.msra.gmra.mrb[220].mxu1 %v14952_v11 }
 0x685   :  { %7632 = vmatprep.mubr.bf16.mxu1 %v14953_v24  ;;  %9195 = vmatpush3.bf16.msra.mxu1 %v10231_v6  ;;  %v10266_v6 = vld [vmem:[%s14447_s7 + $0x288] sm:$0xff]  }
 0x686   :  { %9237 = vmatpush3.bf16.msra.mxu0 %v10232_v12  ;;  %9196 = vmatprep.subr.bf16.mxu1 %v10233_v34  ;;  %v10295_v12 = vld [vmem:[%s14447_s7 + $0x440] sm:$0xff]  }
 0x687   :  { %9278 = vmatprep.subr.bf16.mxu0 %v10234_v14 }
 0x689   :  { %7723 = vmatmul.mubr.bf16.vlgmr.msra.gmra.mrb[200].mxu0 %v13825_v21  ;;  %9197 = vmatpush3.bf16.msra.mxu1 %v10235_v2  ;;  %v10242_v21 = vld [vmem:[%s14447_s7 + $0x350] sm:$0xff]   ;;  %v10297_v2 = vld [vmem:[%s14447_s7 + $0x448] sm:$0xff]  }
 0x68a   :  { %7730 = vmatprep.mubr.bf16.mxu0 %v13843_v28  ;;  %9279 = vmatpush3.bf16.msra.mxu0 %v10236_v39  ;;  %v10243_v28 = vld [vmem:[%s14447_s7 + $0x198] sm:$0xff]  }
 0x68b   :  { %9198 = vmatprep.subr.bf16.mxu1 %v10237_v55  ;;  %9280 = vmatprep.subr.bf16.mxu0 %v10238_v50 }
 0x68c   :  { %7633 = vmatmul.mubr.bf16.gmra.mrb[224].mxu1 %v14954_v51 }
 0x68d   :  { %9199 = vmatpush3.bf16.msra.mxu1 %v10239_v5  ;;  %7673 = vmatprep.mubr.bf16.mxu1 %v13765_v15  ;;  %v10247_v15 = vld [vmem:[%s14447_s7 + $0x1a0] sm:$0xff]   ;;  %v10268_v5 = vld [vmem:[%s14447_s7 + $0x290] sm:$0xff]  }
 0x68e   :  { %9281 = vmatpush3.bf16.msra.mxu0 %v10240_v16  ;;  %9200 = vmatprep.subr.bf16.mxu1 %v10241_v10 }
 0x68f   :  { %9282 = vmatprep.subr.bf16.mxu0 %v10242_v21  ;;  %v10269_v21 = vld [vmem:[%s14447_s7 + $0x2d8] sm:$0xff]  }
 0x691   :  { %7731 = vmatmul.mubr.bf16.gmra.mrb[204].mxu0 %v13840_v4  ;;  %9201 = vmatpush3.bf16.msra.mxu1 %v10243_v28  ;;  %v10250_v4 = vld [vmem:[%s14447_s7 + $0x360] sm:$0xff]   ;;  %v10298_v28 = vld [vmem:[%s14447_s7 + $0x408] sm:$0xff]  }
 0x692   :  { %9283 = vmatpush3.bf16.msra.mxu0 %v10244_v18  ;;  %9202 = vmatprep.subr.bf16.mxu1 %v10245_v48  ;;  %v10299_v48 = vld [vmem:[%s14447_s7 + $0x450] sm:$0xff]  }
 0x693   :  { %9284 = vmatprep.subr.bf16.mxu0 %v10246_v36  ;;  %v10270_v36 = vld [vmem:[%s14447_s7 + $0x298] sm:$0xff]  }
 0x695   :  { %9203 = vmatpush3.bf16.msra.mxu1 %v10247_v15  ;;  %v10271_v15 = vld [vmem:[%s14447_s7 + $0x2e0] sm:$0xff]  }
 0x696   :  { %9285 = vmatpush3.bf16.msra.mxu0 %v10248_v41  ;;  %9204 = vmatprep.subr.bf16.mxu1 %v10249_v20  ;;  %v10272_v41 = vld [vmem:[%s14447_s7 + $0x2a0] sm:$0xff]   ;;  %v10273_v20 = vld [vmem:[%s14447_s7 + $0x2e8] sm:$0xff]  }
 0x697   :  { %9286 = vmatprep.subr.bf16.mxu0 %v10250_v4  ;;  %v10302_v4 = vld [vmem:[%s14447_s7 + $0x418] sm:$0xff]  }
 0x699   :  { %9205 = vmatpush3.bf16.msra.mxu1 %v10251_v31  ;;  %v10303_v31 = vld [vmem:[%s14447_s7 + $0x460] sm:$0xff]  }
 0x69a   :  { %9287 = vmatpush3.bf16.msra.mxu0 %v10252_v43  ;;  %9206 = vmatprep.subr.bf16.mxu1 %v10253_v61  ;;  %v10274_v43 = vld [vmem:[%s14447_s7 + $0x2a8] sm:$0xff]   ;;  %v10275_v61 = vld [vmem:[%s14447_s7 + $0x2f0] sm:$0xff]  }
 0x69b   :  { %9288 = vmatprep.subr.bf16.mxu0 %v10254_v56  ;;  %v10304_v56 = vld [vmem:[%s14447_s7 + $0x420] sm:$0xff]  }
 0x69c   :  { %v6250_v40 = vpop.f32.mrb[184].mxu0 }
 0x69d   :  { %v9750_v53 = vadd.f32 %v6250_v40, %v13323_v46  ;;  %v6252_v9 = vpop.f32.mrb[185].mxu0  ;;  %9207 = vmatpush3.bf16.msra.mxu1 %v10255_v33  ;;  %v10276_v33 = vld [vmem:[%s14447_s7 + $0x2b0] sm:$0xff]   ;;  %v10278_v40 = vld [vmem:[%s14447_s7 + $0x2b8] sm:$0xff]  }
 0x69e   :  { %v9751_v7 = vadd.f32 %v6252_v9, %v13326_v54  ;;  %v6254_v42 = vpop.f32.mrb[186].mxu0  ;;  %9289 = vmatpush3.bf16.msra.mxu0 %v10256_v23  ;;  %9208 = vmatprep.subr.bf16.mxu1 %v10257_v19  ;;  %v10305_v23 = vld [vmem:[%s14447_s7 + $0x468] sm:$0xff]   ;;  %v10277_v19 = vld [vmem:[%s14447_s7 + $0x2f8] sm:$0xff]   ;;  %v10279_v9 = vld [vmem:[%s14447_s7 + $0x3c0] sm:$0xff]  }
 0x69f   :  { %v9752_v44 = vadd.f32 %v6254_v42, %v13323_v46  ;;  %v6256_v26 = vpop.f32.mrb[187].mxu0  ;;  %9290 = vmatprep.subr.bf16.mxu0 %v10258_v0  ;;  %v6269_v13 = vmax.f32 %v9750_v53, 0.0  ;;  %v10306_v0 = vld [vmem:[%s14447_s7 + $0x428] sm:$0xff]   ;;  %v10307_v53 = vld [vmem:[%s14447_s7 + $0x470] sm:$0xff]   ;;  %v10309_v42 = vld [vmem:[%s14447_s7 + $0x478] sm:$0xff]  }
 0x6a0   :  { %v9753_v57 = vadd.f32 %v6256_v26, %v13326_v54  ;;  %v6270_v22 = vmax.f32 %v9751_v7, 0.0  ;;  %v10280_v7 = vld [vmem:[%s14447_s7 + $0x380] sm:$0xff]   ;;  %v10283_v26 = vld [vmem:[%s14447_s7 + $0x3d0] sm:$0xff]  }
 0x6a1   :  { %v6271_v47 = vmax.f32 %v9752_v44, 0.0  ;;  %9209 = vmatpush3.bf16.msra.mxu1 %v10259_v8  ;;  %v10308_v8 = vld [vmem:[%s14447_s7 + $0x430] sm:$0xff]   ;;  %v10282_v44 = vld [vmem:[%s14447_s7 + $0x388] sm:$0xff]  }
 0x6a2   :  { %v6272_v59 = vmax.f32 %v9753_v57, 0.0  ;;  %9291 = vmatpush3.bf16.msra.mxu0 %v10260_v30  ;;  %9250 = vmatprep.subr.bf16.mxu1 %v10261_v32  ;;  %v10281_v30 = vld [vmem:[%s14447_s7 + $0x3c8] sm:$0xff]   ;;  %v10310_v32 = vld [vmem:[%s14447_s7 + $0x438] sm:$0xff]   ;;  %v10287_v57 = vld [vmem:[%s14447_s7 + $0x3e0] sm:$0xff]  }
 0x6a3   :  { %v6277_v25 = vpack.c.bf16 %v6271_v47, %v6269_v13  ;;  %9292 = vmatprep.subr.bf16.mxu0 %v10262_v29  ;;  %v10284_v29 = vld [vmem:[%s14447_s7 + $0x390] sm:$0xff]   ;;  %v10288_v13 = vld [vmem:[%s14447_s7 + $0x3a0] sm:$0xff]   ;;  %v10290_v47 = vld [vmem:[%s14447_s7 + $0x3a8] sm:$0xff]  }
 0x6a4   :  { %v6278_v52 = vpack.c.bf16 %v6272_v59, %v6270_v22  ;;  %v6260_v60 = vpop.f32.mrb[188].mxu0  ;;  %7674 = vmatmul.mubr.bf16.vlgmr.msra.gmra.mrb[228].mxu1 %v13761_v62  ;;  %v10267_v62 = vld [vmem:[%s14447_s7 + $0x2d0] sm:$0xff]   ;;  %v10293_v59 = vld [vmem:[%s14447_s7 + $0x3f8] sm:$0xff]  }
 0x6a5   :  { %v9754_v35 = vadd.f32 %v6260_v60, %v13323_v46  ;;  %v6262_v17 = vpop.f32.mrb[189].mxu0  ;;  %7681 = vmatprep.mubr.bf16.mxu1 %v13783_v49  ;;  %9251 = vmatpush3.bf16.msra.mxu1 %v10263_v63  ;;  %v10296_v49 = vld [vmem:[%s14447_s7 + $0x400] sm:$0xff]   ;;  %v10291_v63 = vld [vmem:[%s14447_s7 + $0x3f0] sm:$0xff]  }
 0x6a6   :  { %v9755_v34 = vadd.f32 %v6262_v17, %v13326_v54  ;;  %v6264_v14 = vpop.f32.mrb[190].mxu0  ;;  %9293 = vmatpush3.bf16.msra.mxu0 %v10264_v38  ;;  %7820 = vmatprep.mubr.bf16.mxu0 %v6278_v52  ;;  %v10292_v22 = vld [vmem:[%s14447_s7 + $0x3b0] sm:$0xff]   ;;  %v10294_v38 = vld [vmem:[%s14447_s7 + $0x3b8] sm:$0xff]  }
 0x6a7   :  { %v9756_v11 = vadd.f32 %v6264_v14, %v13323_v46  ;;  %v6266_v24 = vpop.f32.mrb[191].mxu0  ;;  %9252 = vmatprep.subr.bf16.mxu1 %v10265_v1  ;;  %9334 = vmatprep.subr.bf16.mxu0 %v10295_v12  ;;  %v6273_v55 = vmax.f32 %v9754_v35, 0.0 }
 0x6a8   :  { %v9757_v39 = vadd.f32 %v6266_v24, %v13326_v54  ;;  %v6274_v16 = vmax.f32 %v9755_v34, 0.0 }
 0x6a9   :  { %v6275_v50 = vmax.f32 %v9756_v11, 0.0  ;;  %7821 = vmatmul.mubr.bf16.vlgmr.msra.gmra.mrb[208].mxu0 %v6277_v25  ;;  %9253 = vmatpush3.bf16.msra.mxu1 %v10266_v6 }
 0x6aa   :  { %v6276_v10 = vmax.f32 %v9757_v39, 0.0  ;;  %9254 = vmatprep.subr.bf16.mxu1 %v10267_v62  ;;  %9335 = vmatpush3.bf16.msra.mxu0 %v10296_v49 }
 0x6ab   :  { %v6279_v51 = vpack.c.bf16 %v6275_v50, %v6273_v55  ;;  %9336 = vmatprep.subr.bf16.mxu0 %v10297_v2 }
 0x6ac   :  { %v6280_v18 = vpack.c.bf16 %v6276_v10, %v6274_v16  ;;  %7682 = vmatmul.mubr.bf16.gmra.mrb[232].mxu1 %v13779_v27  ;;  %v10300_v27 = vld [vmem:[%s14447_s7 + $0x410] sm:$0xff]  }
 0x6ad   :  { %9255 = vmatpush3.bf16.msra.mxu1 %v10268_v5  ;;  %7771 = vmatprep.mubr.bf16.mxu1 %v14009_v45  ;;  %v10301_v45 = vld [vmem:[%s14447_s7 + $0x458] sm:$0xff]  }
 0x6ae   :  { %7828 = vmatprep.mubr.bf16.mxu0 %v6280_v18  ;;  %9256 = vmatprep.subr.bf16.mxu1 %v10269_v21 }
 0x6af   :  { %9337 = vmatpush3.bf16.msra.mxu0 %v10298_v28 }
 0x6b0   :  { %9338 = vmatprep.subr.bf16.mxu0 %v10299_v48 }
 0x6b1   :  { %7829 = vmatmul.mubr.bf16.gmra.mrb[212].mxu0 %v6279_v51  ;;  %9257 = vmatpush3.bf16.msra.mxu1 %v10270_v36 }
 0x6b2   :  { %9258 = vmatprep.subr.bf16.mxu1 %v10271_v15 }
 0x6b3   :  { %9339 = vmatpush3.bf16.msra.mxu0 %v10300_v27 }
 0x6b4   :  { %9340 = vmatprep.subr.bf16.mxu0 %v10301_v45 }
 0x6b5   :  { %9259 = vmatpush3.bf16.msra.mxu1 %v10272_v41 }
 0x6b6   :  { %9260 = vmatprep.subr.bf16.mxu1 %v10273_v20 }
 0x6b7   :  { %9341 = vmatpush3.bf16.msra.mxu0 %v10302_v4 }
 0x6b8   :  { %9342 = vmatprep.subr.bf16.mxu0 %v10303_v31 }
 0x6b9   :  { %9261 = vmatpush3.bf16.msra.mxu1 %v10274_v43 }
 0x6ba   :  { %9262 = vmatprep.subr.bf16.mxu1 %v10275_v61 }
 0x6bb   :  { %9343 = vmatpush3.bf16.msra.mxu0 %v10304_v56 }
 0x6bc   :  { %9344 = vmatprep.subr.bf16.mxu0 %v10305_v23 }
 0x6bd   :  { %9263 = vmatpush3.bf16.msra.mxu1 %v10276_v33 }
 0x6be   :  { %9264 = vmatprep.subr.bf16.mxu1 %v10277_v19 }
 0x6bf   :  { %9345 = vmatpush3.bf16.msra.mxu0 %v10306_v0  ;;  %v8437_v0 = vld [vmem:[%s14448_s8] ss:$0 sm:$0xff] }
 0x6c0   :  { %9346 = vmatprep.subr.bf16.mxu0 %v10307_v53 }
 0x6c1   :  { %9265 = vmatpush3.bf16.msra.mxu1 %v10278_v40 }
 0x6c2   :  { %9306 = vmatprep.subr.bf16.mxu1 %v10279_v9 }
 0x6c3   :  { %9347 = vmatpush3.bf16.msra.mxu0 %v10308_v8 }
 0x6c4   :  { %7772 = vmatmul.mubr.bf16.vlgmr.msra.gmra.mrb[236].mxu1 %v14004_v37  ;;  %9348 = vmatprep.subr.bf16.mxu0 %v10309_v42  ;;  %v10285_v37 = vld [vmem:[%s14447_s7 + $0x3d8] sm:$0xff]  }
 0x6c5   :  { %7779 = vmatprep.mubr.bf16.mxu1 %v14037_v58  ;;  %9307 = vmatpush3.bf16.msra.mxu1 %v10280_v7  ;;  %v10286_v58 = vld [vmem:[%s14447_s7 + $0x398] sm:$0xff]  }
 0x6c6   :  { %9308 = vmatprep.subr.bf16.mxu1 %v10281_v30 }
 0x6c7   :  { %9349 = vmatpush3.bf16.msra.mxu0 %v10310_v32 }
 0x6c9   :  { %9309 = vmatpush3.bf16.msra.mxu1 %v10282_v44 }
 0x6ca   :  { %9310 = vmatprep.subr.bf16.mxu1 %v10283_v26 }
 0x6cc   :  { %7780 = vmatmul.mubr.bf16.gmra.mrb[240].mxu1 %v14029_v3  ;;  %v10289_v3 = vld [vmem:[%s14447_s7 + $0x3e8] sm:$0xff]  }
 0x6cd   :  { %9311 = vmatpush3.bf16.msra.mxu1 %v10284_v29 }
 0x6ce   :  { %9312 = vmatprep.subr.bf16.mxu1 %v10285_v37 }
 0x6d1   :  { %9313 = vmatpush3.bf16.msra.mxu1 %v10286_v58 }
 0x6d2   :  { %9314 = vmatprep.subr.bf16.mxu1 %v10287_v57 }
 0x6d5   :  { %9315 = vmatpush3.bf16.msra.mxu1 %v10288_v13 }
 0x6d6   :  { %9316 = vmatprep.subr.bf16.mxu1 %v10289_v3 }
 0x6d9   :  { %9317 = vmatpush3.bf16.msra.mxu1 %v10290_v47 }
 0x6da   :  { %9318 = vmatprep.subr.bf16.mxu1 %v10291_v63 }
 0x6dd   :  { %9319 = vmatpush3.bf16.msra.mxu1 %v10292_v22 }
 0x6de   :  { %9320 = vmatprep.subr.bf16.mxu1 %v10293_v59 }
 0x6e1   :  { %9321 = vmatpush3.bf16.msra.mxu1 %v10294_v38 }
 0x6f7   :  { %v6421_v25 = vpop.f32.mrb[196].mxu1 }
 0x6f8   :  { %v9758_v1 = vadd.f32 %v6421_v25, %v13323_v46  ;;  %v6423_v52 = vpop.f32.mrb[197].mxu1 }
 0x6f9   :  { %v9759_v60 = vadd.f32 %v6423_v52, %v13326_v54  ;;  %v6425_v35 = vpop.f32.mrb[198].mxu1 }
 0x6fa   :  { %v9760_v17 = vadd.f32 %v6425_v35, %v13323_v46  ;;  %v6427_v6 = vpop.f32.mrb[199].mxu1  ;;  %v6440_v34 = vmax.f32 %v9758_v1, 0.0 }
 0x6fb   :  { %v9761_v12 = vadd.f32 %v6427_v6, %v13326_v54  ;;  %v6441_v62 = vmax.f32 %v9759_v60, 0.0 }
 0x6fc   :  { %v6442_v14 = vmax.f32 %v9760_v17, 0.0 }
 0x6fd   :  { %v6443_v49 = vmax.f32 %v9761_v12, 0.0 }
 0x6fe   :  { %v6448_v11 = vpack.c.bf16 %v6442_v14, %v6440_v34 }
 0x6ff   :  { %v6449_v24 = vpack.c.bf16 %v6443_v49, %v6441_v62  ;;  %v6431_v2 = vpop.f32.mrb[200].mxu1 }
 0x700   :  { %v9762_v39 = vadd.f32 %v6431_v2, %v13323_v46  ;;  %v6433_v55 = vpop.f32.mrb[201].mxu1 }
 0x701   :  { %v9763_v50 = vadd.f32 %v6433_v55, %v13326_v54  ;;  %v6435_v5 = vpop.f32.mrb[202].mxu1  ;;  %7869 = vmatprep.mubr.bf16.mxu1 %v6449_v24 }
 0x702   :  { %v9764_v16 = vadd.f32 %v6435_v5, %v13323_v46  ;;  %v6437_v10 = vpop.f32.mrb[203].mxu1  ;;  %7870 = vmatmul.mubr.bf16.vlgmr.msra.gmra.mrb[244].mxu1 %v6448_v11  ;;  %v6444_v51 = vmax.f32 %v9762_v39, 0.0 }
 0x703   :  { %v9765_v21 = vadd.f32 %v6437_v10, %v13326_v54  ;;  %v6445_v18 = vmax.f32 %v9763_v50, 0.0 }
 0x704   :  { %v6446_v28 = vmax.f32 %v9764_v16, 0.0 }
 0x705   :  { %v6447_v48 = vmax.f32 %v9765_v21, 0.0 }
 0x706   :  { %v6450_v36 = vpack.c.bf16 %v6446_v28, %v6444_v51 }
 0x707   :  { %v6451_v15 = vpack.c.bf16 %v6447_v48, %v6445_v18 }
 0x709   :  { %7877 = vmatprep.mubr.bf16.mxu1 %v6451_v15 }
 0x70a   :  { %7878 = vmatmul.mubr.bf16.gmra.mrb[248].mxu1 %v6450_v36 }
 0x717   :  { %v9126_v27 = vpop.f32.mrb[204].mxu1 }
 0x718   :  { %v9127_v45 = vpop.f32.mrb[205].mxu1 }
 0x719   :  { %v9128_v41 = vadd.f32 %v9127_v45, %v9126_v27  ;;  %v9129_v20 = vpop.f32.mrb[206].mxu1 }
 0x71a   :  { %v9130_v4 = vpop.f32.mrb[207].mxu1 }
 0x71b   :  { %v9131_v31 = vadd.f32 %v9130_v4, %v9129_v20  ;;  %v7529_v9 = vadd.f32 %v9128_v41, %v8437_v0 }
 0x71d   :  { %v7532_v30 = vadd.f32 %v9131_v31, %v8437_v0 }
 0x71f   :  { %v9132_v43 = vpop.f32.mrb[208].mxu1 }
 0x720   :  { %v9133_v61 = vpop.f32.mrb[209].mxu1 }
 0x721   :  { %v9134_v56 = vadd.f32 %v9133_v61, %v9132_v43  ;;  %v9135_v33 = vpop.f32.mrb[210].mxu1 }
 0x722   :  { %v9136_v23 = vpop.f32.mrb[211].mxu1 }
 0x723   :  { %v9137_v19 = vadd.f32 %v9136_v23, %v9135_v33  ;;  %v7537_v38 = vadd.f32 %v9134_v56, %v8437_v0 }
 0x725   :  { %v7540_v12 = vadd.f32 %v9137_v19, %v8437_v0 }
 0x737   :  { %v9154_v40 = vpop.f32.mrb[212].mxu1 }
 0x738   :  { %v9155_v53 = vpop.f32.mrb[213].mxu1 }
 0x739   :  { %v9156_v8 = vadd.f32 %v9155_v53, %v9154_v40  ;;  %v9157_v7 = vpop.f32.mrb[214].mxu1 }
 0x73a   :  { %v9158_v42 = vpop.f32.mrb[215].mxu1 }
 0x73b   :  { %v7578_v32 = vadd.f32 %v9156_v8, %v7529_v9  ;;  %v9159_v44 = vadd.f32 %v9158_v42, %v9157_v7  ;;  %v10311_v42 = vld [vmem:[%s14449_s9] sm:$0xff]  }
 0x73c   :  { %v6592_v26 = vpop.f32.mrb[192].mxu0  ;;  %9682 = vmatprep.subr.bf16.mxu1 %v10311_v42 }
 0x73d   :  { %v7581_v29 = vadd.f32 %v9159_v44, %v7532_v30  ;;  %v9766_v37 = vadd.f32 %v6592_v26, %v13323_v46  ;;  %v6594_v58 = vpop.f32.mrb[193].mxu0  ;;  %v10312_v30 = vld [vmem:[%s14449_s9 + $0x8] sm:$0xff]   ;;  %9683 = vmatpush3.bf16.msra.mxu1 %v10311_v42 }
 0x73e   :  { %v9767_v57 = vadd.f32 %v6594_v58, %v13326_v54  ;;  %v6596_v13 = vpop.f32.mrb[194].mxu0  ;;  %9684 = vmatprep.subr.bf16.mxu1 %v10312_v30 }
 0x73f   :  { %v9768_v3 = vadd.f32 %v6596_v13, %v13323_v46  ;;  %v6598_v47 = vpop.f32.mrb[195].mxu0  ;;  %v9160_v63 = vpop.f32.mrb[216].mxu1  ;;  %v6611_v25 = vmax.f32 %v9766_v37, 0.0 }
 0x740   :  { %v9769_v22 = vadd.f32 %v6598_v47, %v13326_v54  ;;  %v9161_v59 = vpop.f32.mrb[217].mxu1  ;;  %v6612_v35 = vmax.f32 %v9767_v57, 0.0  ;;  %v10313_v57 = vld [vmem:[%s14449_s9 + $0x10] sm:$0xff]  }
 0x741   :  { %v6613_v1 = vmax.f32 %v9768_v3, 0.0  ;;  %v9162_v52 = vadd.f32 %v9161_v59, %v9160_v63  ;;  %v9163_v60 = vpop.f32.mrb[218].mxu1  ;;  %9685 = vmatpush3.bf16.msra.mxu1 %v10312_v30 }
 0x742   :  { %v6614_v17 = vmax.f32 %v9769_v22, 0.0  ;;  %v9164_v6 = vpop.f32.mrb[219].mxu1  ;;  %9686 = vmatprep.subr.bf16.mxu1 %v10313_v57 }
 0x743   :  { %v6619_v34 = vpack.c.bf16 %v6613_v1, %v6611_v25  ;;  %v7586_v14 = vadd.f32 %v9162_v52, %v7537_v38  ;;  %v9165_v62 = vadd.f32 %v9164_v6, %v9163_v60 }
 0x744   :  { %v6620_v49 = vpack.c.bf16 %v6614_v17, %v6612_v35  ;;  %v6602_v11 = vpop.f32.mrb[196].mxu0 }
 0x745   :  { %v7589_v24 = vadd.f32 %v9165_v62, %v7540_v12  ;;  %v9770_v2 = vadd.f32 %v6602_v11, %v13323_v46  ;;  %v6604_v39 = vpop.f32.mrb[197].mxu0  ;;  %9687 = vmatpush3.bf16.msra.mxu1 %v10313_v57 }
 0x746   :  { %v9771_v55 = vadd.f32 %v6604_v39, %v13326_v54  ;;  %v6606_v50 = vpop.f32.mrb[198].mxu0  ;;  %7918 = vmatprep.mubr.bf16.mxu0 %v6620_v49 }
 0x747   :  { %v9772_v5 = vadd.f32 %v6606_v50, %v13323_v46  ;;  %v6608_v16 = vpop.f32.mrb[199].mxu0  ;;  %7919 = vmatmul.mubr.bf16.vlgmr.msra.gmra.mrb[216].mxu0 %v6619_v34  ;;  %v6615_v21 = vmax.f32 %v9770_v2, 0.0 }
 0x748   :  { %v9773_v10 = vadd.f32 %v6608_v16, %v13326_v54  ;;  %v6616_v28 = vmax.f32 %v9771_v55, 0.0 }
 0x749   :  { %v6617_v51 = vmax.f32 %v9772_v5, 0.0 }
 0x74a   :  { %v6618_v18 = vmax.f32 %v9773_v10, 0.0 }
 0x74b   :  { %v6621_v48 = vpack.c.bf16 %v6617_v51, %v6615_v21 }
 0x74c   :  { %v6622_v36 = vpack.c.bf16 %v6618_v18, %v6616_v28 }
 0x74e   :  { %7926 = vmatprep.mubr.bf16.mxu0 %v6622_v36 }
 0x74f   :  { %7927 = vmatmul.mubr.bf16.gmra.mrb[220].mxu0 %v6621_v48 }
 0x757   :  { %v9182_v15 = vpop.f32.mrb[220].mxu1 }
 0x758   :  { %v9183_v27 = vpop.f32.mrb[221].mxu1 }
 0x759   :  { %v9184_v45 = vadd.f32 %v9183_v27, %v9182_v15  ;;  %v9185_v41 = vpop.f32.mrb[222].mxu1  ;;  %v10314_v27 = vld [vmem:[%s14449_s9 + $0x18] sm:$0xff]  }
 0x75a   :  { %v9186_v20 = vpop.f32.mrb[223].mxu1  ;;  %9688 = vmatprep.subr.bf16.mxu1 %v10314_v27 }
 0x75b   :  { %v7627_v4 = vadd.f32 %v9184_v45, %v7578_v32  ;;  %v9187_v31 = vadd.f32 %v9186_v20, %v9185_v41  ;;  %9689 = vmatpush3.bf16.msra.mxu1 %v10314_v27 }
 0x75c   :  { %v9238_v46 = vpop.f32.mrb[200].mxu0 }
 0x75d   :  { %v7630_v43 = vadd.f32 %v9187_v31, %v7581_v29  ;;  %v9239_v61 = vpop.f32.mrb[201].mxu0 }
 0x75e   :  { %v9240_v56 = vadd.f32 %v9239_v61, %v9238_v46  ;;  %v9241_v54 = vpop.f32.mrb[202].mxu0  ;;  %v10315_v46 = vld [vmem:[%s14449_s9 + $0x20] sm:$0xff]  }
 0x75f   :  { %v9242_v33 = vpop.f32.mrb[203].mxu0  ;;  %v9188_v23 = vpop.f32.mrb[224].mxu1  ;;  %9690 = vmatprep.subr.bf16.mxu1 %v10315_v46 }
 0x760   :  { %v9243_v19 = vadd.f32 %v9242_v33, %v9241_v54  ;;  %v9189_v0 = vpop.f32.mrb[225].mxu1  ;;  %9691 = vmatpush3.bf16.msra.mxu1 %v10315_v46 }
 0x761   :  { %v9190_v40 = vadd.f32 %v9189_v0, %v9188_v23  ;;  %v9191_v53 = vpop.f32.mrb[226].mxu1  ;;  %v10316_v23 = vld [vmem:[%s14449_s9 + $0x28] sm:$0xff]  }
 0x762   :  { %v9192_v9 = vpop.f32.mrb[227].mxu1  ;;  %9692 = vmatprep.subr.bf16.mxu1 %v10316_v23 }
 0x763   :  { %v7635_v8 = vadd.f32 %v9190_v40, %v7586_v14  ;;  %v9193_v7 = vadd.f32 %v9192_v9, %v9191_v53 }
 0x764   :  { %v9244_v32 = vpop.f32.mrb[204].mxu0  ;;  %9693 = vmatpush3.bf16.msra.mxu1 %v10316_v23 }
 0x765   :  { %v7638_v44 = vadd.f32 %v9193_v7, %v7589_v24  ;;  %v9245_v26 = vpop.f32.mrb[205].mxu0 }
 0x766   :  { %v9246_v29 = vadd.f32 %v9245_v26, %v9244_v32  ;;  %v9247_v37 = vpop.f32.mrb[206].mxu0  ;;  %v10318_v32 = vld [vmem:[%s14449_s9 + $0x38] sm:$0xff]  }
 0x767   :  { %v9248_v58 = vpop.f32.mrb[207].mxu0 }
 0x768   :  { %v9249_v13 = vadd.f32 %v9248_v58, %v9247_v37 }
 0x777   :  { %v9210_v3 = vpop.f32.mrb[228].mxu1 }
 0x778   :  { %v9211_v47 = vpop.f32.mrb[229].mxu1 }
 0x779   :  { %v9212_v63 = vadd.f32 %v9211_v47, %v9210_v3  ;;  %v9213_v22 = vpop.f32.mrb[230].mxu1 }
 0x77a   :  { %v9214_v59 = vpop.f32.mrb[231].mxu1 }
 0x77b   :  { %v7676_v38 = vadd.f32 %v9212_v63, %v7627_v4  ;;  %v9215_v25 = vadd.f32 %v9214_v59, %v9213_v22 }
 0x77c   :  { %v9294_v1 = vpop.f32.mrb[208].mxu0 }
 0x77d   :  { %v7679_v52 = vadd.f32 %v9215_v25, %v7630_v43  ;;  %v9295_v60 = vpop.f32.mrb[209].mxu0  ;;  %v7725_v35 = vadd.f32 %v9240_v56, %v7676_v38 }
 0x77e   :  { %v9296_v17 = vadd.f32 %v9295_v60, %v9294_v1  ;;  %v9297_v6 = vpop.f32.mrb[210].mxu0 }
 0x77f   :  { %v9298_v12 = vpop.f32.mrb[211].mxu0  ;;  %v9216_v34 = vpop.f32.mrb[232].mxu1  ;;  %v7728_v14 = vadd.f32 %v9243_v19, %v7679_v52 }
 0x780   :  { %v9299_v62 = vadd.f32 %v9298_v12, %v9297_v6  ;;  %v9217_v49 = vpop.f32.mrb[233].mxu1 }
 0x781   :  { %v9218_v11 = vadd.f32 %v9217_v49, %v9216_v34  ;;  %v9219_v24 = vpop.f32.mrb[234].mxu1 }
 0x782   :  { %v9220_v2 = vpop.f32.mrb[235].mxu1 }
 0x783   :  { %v7684_v39 = vadd.f32 %v9218_v11, %v7635_v8  ;;  %v9221_v55 = vadd.f32 %v9220_v2, %v9219_v24  ;;  %v10317_v8 = vld [vmem:[%s14449_s9 + $0x30] sm:$0xff]  }
 0x784   :  { %v9300_v50 = vpop.f32.mrb[212].mxu0  ;;  %9694 = vmatprep.subr.bf16.mxu1 %v10317_v8 }
 0x785   :  { %v7687_v5 = vadd.f32 %v9221_v55, %v7638_v44  ;;  %v9301_v16 = vpop.f32.mrb[213].mxu0  ;;  %v7733_v10 = vadd.f32 %v9246_v29, %v7684_v39  ;;  %9695 = vmatpush3.bf16.msra.mxu1 %v10317_v8 }
 0x786   :  { %v9302_v21 = vadd.f32 %v9301_v16, %v9300_v50  ;;  %v9303_v51 = vpop.f32.mrb[214].mxu0  ;;  %9696 = vmatprep.subr.bf16.mxu1 %v10318_v32 }
 0x787   :  { %v9304_v28 = vpop.f32.mrb[215].mxu0  ;;  %v7736_v18 = vadd.f32 %v9249_v13, %v7687_v5 }
 0x788   :  { %v9305_v48 = vadd.f32 %v9304_v28, %v9303_v51 }
 0x789   :  { %9697 = vmatpush3.bf16.msra.mxu1 %v10318_v32 }
 0x797   :  { %v9266_v36 = vpop.f32.mrb[236].mxu1 }
 0x798   :  { %v9267_v15 = vpop.f32.mrb[237].mxu1 }
 0x799   :  { %v9268_v45 = vadd.f32 %v9267_v15, %v9266_v36  ;;  %v9269_v41 = vpop.f32.mrb[238].mxu1 }
 0x79a   :  { %v9270_v20 = vpop.f32.mrb[239].mxu1 }
 0x79b   :  { %v7774_v4 = vadd.f32 %v9268_v45, %v7725_v35  ;;  %v9271_v31 = vadd.f32 %v9270_v20, %v9269_v41 }
 0x79d   :  { %v7777_v43 = vadd.f32 %v9271_v31, %v7728_v14  ;;  %v7823_v61 = vadd.f32 %v9296_v17, %v7774_v4 }
 0x79f   :  { %v9272_v56 = vpop.f32.mrb[240].mxu1  ;;  %v7826_v54 = vadd.f32 %v9299_v62, %v7777_v43 }
 0x7a0   :  { %v9273_v33 = vpop.f32.mrb[241].mxu1 }
 0x7a1   :  { %v9274_v19 = vadd.f32 %v9273_v33, %v9272_v56  ;;  %v9275_v0 = vpop.f32.mrb[242].mxu1 }
 0x7a2   :  { %v9276_v40 = vpop.f32.mrb[243].mxu1 }
 0x7a3   :  { %v7782_v53 = vadd.f32 %v9274_v19, %v7733_v10  ;;  %v9277_v9 = vadd.f32 %v9276_v40, %v9275_v0 }
 0x7a5   :  { %v7785_v7 = vadd.f32 %v9277_v9, %v7736_v18  ;;  %v7831_v42 = vadd.f32 %v9302_v21, %v7782_v53 }
 0x7a7   :  { %v7834_v30 = vadd.f32 %v9305_v48, %v7785_v7  ;;  %v8582_v48 = vld [vmem:[%s14450_s10] ss:$0 sm:$0xff] }
 0x7d5   :  { %v9322_v44 = vpop.f32.mrb[244].mxu1 }
 0x7d6   :  { %v9323_v26 = vpop.f32.mrb[245].mxu1 }
 0x7d7   :  { %v9324_v29 = vadd.f32 %v9323_v26, %v9322_v44  ;;  %v9325_v37 = vpop.f32.mrb[246].mxu1 }
 0x7d8   :  { %v9326_v58 = vpop.f32.mrb[247].mxu1 }
 0x7d9   :  { %v7872_v57 = vadd.f32 %v9324_v29, %v7823_v61  ;;  %v9327_v13 = vadd.f32 %v9326_v58, %v9325_v37 }
 0x7db   :  { %v7875_v3 = vadd.f32 %v9327_v13, %v7826_v54 }
 0x7dd   :  { %v9328_v47 = vpop.f32.mrb[248].mxu1 }
 0x7de   :  { %v9329_v63 = vpop.f32.mrb[249].mxu1 }
 0x7df   :  { %v9330_v22 = vadd.f32 %v9329_v63, %v9328_v47  ;;  %v9331_v59 = vpop.f32.mrb[250].mxu1 }
 0x7e0   :  { %v9332_v38 = vpop.f32.mrb[251].mxu1 }
 0x7e1   :  { %v7880_v25 = vadd.f32 %v9330_v22, %v7831_v42  ;;  %v9333_v1 = vadd.f32 %v9332_v38, %v9331_v59 }
 0x7e3   :  { %v7883_v52 = vadd.f32 %v9333_v1, %v7834_v30 }
 0x81a   :  { %v9350_v60 = vpop.f32.mrb[216].mxu0 }
 0x81b   :  { %v9351_v35 = vpop.f32.mrb[217].mxu0 }
 0x81c   :  { %v9352_v17 = vadd.f32 %v9351_v35, %v9350_v60  ;;  %v9353_v6 = vpop.f32.mrb[218].mxu0 }
 0x81d   :  { %v9354_v12 = vpop.f32.mrb[219].mxu0 }
 0x81e   :  { %v7921_v34 = vadd.f32 %v9352_v17, %v7872_v57  ;;  %v9355_v14 = vadd.f32 %v9354_v12, %v9353_v6 }
 0x820   :  { %v7924_v62 = vadd.f32 %v9355_v14, %v7875_v3  ;;  %v7935_v49 = vmax.f32 %v7921_v34, 0.0 }
 0x822   :  { %v7936_v11 = vmax.f32 %v7924_v62, 0.0  ;;  %v9356_v24 = vpop.f32.mrb[220].mxu0 }
 0x823   :  { %v9357_v2 = vpop.f32.mrb[221].mxu0 }
 0x824   :  { %v9358_v39 = vadd.f32 %v9357_v2, %v9356_v24  ;;  %v9359_v55 = vpop.f32.mrb[222].mxu0  ;;  %v7939_v50 = vpack.c.bf16 %v7936_v11, %v7935_v49 }
 0x825   :  { %v9360_v5 = vpop.f32.mrb[223].mxu0 }
 0x826   :  { %v7929_v16 = vadd.f32 %v9358_v39, %v7880_v25  ;;  %v9361_v10 = vadd.f32 %v9360_v5, %v9359_v55  ;;  %9698 = vmatprep.mubr.bf16.mxu1 %v7939_v50 }
 0x828   :  { %v7932_v21 = vadd.f32 %v9361_v10, %v7883_v52  ;;  %v7937_v51 = vmax.f32 %v7929_v16, 0.0 }
 0x82a   :  { %v7938_v28 = vmax.f32 %v7932_v21, 0.0 }
 0x82c   :  { %v7940_v18 = vpack.c.bf16 %v7938_v28, %v7937_v51 }
 0x82e   :  { %9699 = vmatmul.mubr.bf16.vlgmr.msra.gmra.mrb[252].mxu1 %v7940_v18 }
 0x901   :  { %v9700_v36 = vpop.f32.mrb[252].mxu1 }
 0x902   :  { %v8039_v15 = vadd.f32 %v9700_v36, %v8582_v48  ;;  %v8030_v27 = vpop.f32.mrb[253].mxu1 }
 0x903   :  { %v8031_v45 = vadd.f32 %v8582_v48, %v8030_v27  ;;  %v9701_v41 = vpop.f32.mrb[254].mxu1 }
 0x904   :  { %8047 = vst [vmem:[%s14451_s11 + $0x10] sm:$0xff] %v8039_v15  ;;  %v8042_v20 = vadd.f32 %v9701_v41, %v8582_v48  ;;  %v8033_v4 = vpop.f32.mrb[255].mxu1 }
 0x905   :  { %8045 = vst [vmem:[%s14451_s11] sm:$0xff] %v8031_v45  ;;  %v8034_v31 = vadd.f32 %v8582_v48, %v8033_v4 }
 0x906   :  { %8048 = vst [vmem:[%s14451_s11 + $0x18] sm:$0xff] %v8042_v20 }
 0x907   :  { %8046 = vst [vmem:[%s14451_s11 + $0x8] sm:$0xff] %v8034_v31 }
 0x908   :  { %8053 = vsyncpa [#allocation3], 1 }

</bundles_post_ra>
